<compile_context>
chip_gen: v7x
topology: tpu7x:2x2x1
jax: 0.10.0
libtpu: 0.0.40
codegen_flags: <defaults>
</compile_context>

<pallas_src>
import jax
import jax.numpy as jnp
from jax import lax
from jax.experimental import pallas as pl
from jax.experimental.pallas import tpu as pltpu

DIM = 32            # scaled down from the original 128 (small test shapes)
LATENT_DIM = 32
CHANNELS = 3        # non-mnist branch
IMG_SIZE = 32       # 4 -> 8 -> 16 -> 32 via three stride-2 deconvs
BN_EPS = 1e-5

C1 = 4 * DIM                  # 128: channels into deconv1
C2 = 2 * DIM                  # 64 : channels into deconv2
C3 = DIM                      # 32 : channels into deconv3
F0 = 4 * 4 * C1               # 2048: Linear output features
FOUT = 16 * CHANNELS          # 48 : fused-kernel output lane width


# ------------------------------ fused kernel --------------------------------

def _generator_kernel(z_ref, lw_ref, lb_ref, g0_ref, b0_ref,
                      w1_ref, c1_ref, g1_ref, be1_ref,
                      w2_ref, c2_ref, g2_ref, be2_ref,
                      w3_ref, c3_ref, o_ref):
    n = z_ref.shape[0]

    def bn_relu(chunks, gamma, beta):
        # Training-mode batch-norm per column over all rows of all chunks,
        # two-pass (centered) variance, fused ReLU.
        count = float(len(chunks) * chunks[0].shape[0])
        s = jnp.zeros((1, chunks[0].shape[1]), jnp.float32)
        for t in chunks:
            s = s + jnp.sum(t, axis=0, keepdims=True)
        mean = s * (1.0 / count)
        ss = jnp.zeros_like(s)
        for t in chunks:
            d = t - mean
            ss = ss + jnp.sum(d * d, axis=0, keepdims=True)
        inv = gamma * lax.rsqrt(ss * (1.0 / count) + BN_EPS)
        shift = beta - mean * inv
        return [jnp.maximum(t * inv + shift, 0.0) for t in chunks]

    # ---- preprocess: Linear + BatchNorm1d + ReLU ---------------------------
    y0 = jnp.dot(z_ref[...], lw_ref[...],
                 preferred_element_type=jnp.float32) + lb_ref[...]
    x0 = bn_relu([y0], g0_ref[...], b0_ref[...])[0]                # (N, 16*C1)

    # rows relayout: columns are already (h0, w0, c) ordered, so 128-lane
    # aligned slices + one sublane concat give rows = (h0*4 + w0)*N + n.
    x1 = jnp.concatenate(
        [x0[:, j * C1:(j + 1) * C1] for j in range(16)], axis=0)   # (16N, C1)

    # ---- block1: ConvTranspose2d(4D->2D, 2, s=2) + BatchNorm2d + ReLU ------
    y1 = [jnp.dot(x1, w1_ref[j], preferred_element_type=jnp.float32)
          + c1_ref[...] for j in range(4)]                         # 4x(16N,C2)
    y1n = bn_relu(y1, g1_ref[...], be1_ref[...])
    x2 = jnp.concatenate(y1n, axis=0)                              # (64N, C2)

    # ---- block2: ConvTranspose2d(2D->D, 2, s=2) + BatchNorm2d + ReLU -------
    y2 = [jnp.dot(x2, w2_ref[j], preferred_element_type=jnp.float32)
          + c2_ref[...] for j in range(4)]                         # 4x(64N,C3)
    y2n = bn_relu(y2, g2_ref[...], be2_ref[...])

    # ---- deconv_out: ConvTranspose2d(D->3, 2, s=2) + tanh ------------------
    # Lane-padded block weights keep the HBM output 48 lanes wide instead of
    # 12 and avoid any lane-dim concatenation; tanh rides the EUP slot.
    acc = c3_ref[...] + jnp.dot(y2n[0], w3_ref[0],
                                preferred_element_type=jnp.float32)
    for j in range(1, 4):
        acc = acc + jnp.dot(y2n[j], w3_ref[j],
                            preferred_element_type=jnp.float32)
    o_ref[...] = jnp.tanh(acc)                                     # (64N, 48)


# ------------------------------ forward pass ---------------------------------

def generator_forward(params, z):
    n = z.shape[0]

    # One-time weight repacking (tiny, fused into the jit trace).
    # Linear: permute output features from (c, h, w) -> (h, w, c).
    lw = jnp.transpose(params["lin_w"].reshape(LATENT_DIM, C1, 4, 4),
                       (0, 2, 3, 1)).reshape(LATENT_DIM, F0)
    perm0 = lambda v: jnp.transpose(v.reshape(C1, 4, 4), (1, 2, 0)).reshape(1, F0)
    lb, g0, b0 = perm0(params["lin_b"]), perm0(params["bn0_g"]), perm0(params["bn0_b"])

    # Deconv weights: (Cin, Cout, kh, kw) -> (kh*kw, Cin, Cout).
    w1 = jnp.transpose(params["dc1_w"], (2, 3, 0, 1)).reshape(4, C1, C2)
    w2 = jnp.transpose(params["dc2_w"], (2, 3, 0, 1)).reshape(4, C2, C3)
    # Final deconv: lane-padded block weights, 4 x (C3, 48).
    w3d = jnp.transpose(params["dc3_w"], (0, 2, 3, 1)).reshape(C3, 4 * CHANNELS)
    w3 = jnp.zeros((4, C3, FOUT), jnp.float32)
    for j in range(4):
        w3 = w3.at[j, :, j * 4 * CHANNELS:(j + 1) * 4 * CHANNELS].set(w3d)

    c1 = params["dc1_b"].reshape(1, C2)
    c2 = params["dc2_b"].reshape(1, C3)
    c3 = jnp.tile(params["dc3_b"], 16).reshape(1, FOUT)
    g1, be1 = params["bn1_g"].reshape(1, C2), params["bn1_b"].reshape(1, C2)
    g2, be2 = params["bn2_g"].reshape(1, C3), params["bn2_b"].reshape(1, C3)

    rows = 64 * n
    full = lambda s: pl.BlockSpec(s, lambda *_: (0,) * len(s))

    out = pl.pallas_call(
        _generator_kernel,
        out_shape=jax.ShapeDtypeStruct((rows, FOUT), jnp.float32),
        grid=(1,),
        in_specs=[full(z.shape), full(lw.shape), full(lb.shape), full(g0.shape),
                  full(b0.shape), full(w1.shape), full(c1.shape), full(g1.shape),
                  full(be1.shape), full(w2.shape), full(c2.shape), full(g2.shape),
                  full(be2.shape), full(w3.shape), full(c3.shape)],
        out_specs=full((rows, FOUT)),
        compiler_params=pltpu.CompilerParams(
            dimension_semantics=("arbitrary",)),
    )(z, lw, lb, g0, b0, w1, c1, g1, be1, w2, c2, g2, be2, w3, c3)

    # Unscramble rows=(a1,b1,h0,w0,n), feats=(a2,b2,a3,b3,c) back to NCHW.
    t = out.reshape(2, 2, 4, 4, n * FOUT)          # a1, b1, h0, w0, rest
    t = jnp.transpose(t, (2, 0, 3, 1, 4))          # h0, a1, w0, b1, rest
    t = t.reshape(8, 8, n, 2, 2, 2, 2, CHANNELS)   # h1, w1, n, a2, b2, a3, b3, c
    t = jnp.transpose(t, (2, 7, 0, 3, 5, 1, 4, 6))  # n, c, h1, a2, a3, w1, b2, b3
    return t.reshape(n, CHANNELS, IMG_SIZE, IMG_SIZE)


# ------------------------------ parameters -----------------------------------

def init_params(key):
    ks = jax.random.split(key, 8)
    return {
        # Linear stored as (in, out); deconvs in PyTorch layout (Cin, Cout, 2, 2).
        "lin_w": jax.random.normal(ks[0], (LATENT_DIM, F0), jnp.float32) * 0.05,
        "lin_b": jax.random.normal(ks[1], (F0,), jnp.float32) * 0.05,
        "bn0_g": jnp.ones((F0,), jnp.float32),
        "bn0_b": jnp.zeros((F0,), jnp.float32),
        "dc1_w": jax.random.normal(ks[2], (C1, C2, 2, 2), jnp.float32) * 0.05,
        "dc1_b": jax.random.normal(ks[3], (C2,), jnp.float32) * 0.05,
        "bn1_g": jnp.ones((C2,), jnp.float32),
        "bn1_b": jnp.zeros((C2,), jnp.float32),
        "dc2_w": jax.random.normal(ks[4], (C2, C3, 2, 2), jnp.float32) * 0.05,
        "dc2_b": jax.random.normal(ks[5], (C3,), jnp.float32) * 0.05,
        "bn2_g": jnp.ones((C3,), jnp.float32),
        "bn2_b": jnp.zeros((C3,), jnp.float32),
        "dc3_w": jax.random.normal(ks[6], (C3, CHANNELS, 2, 2), jnp.float32) * 0.05,
        "dc3_b": jax.random.normal(ks[7], (CHANNELS,), jnp.float32) * 0.05,
    }


# ------------------------- plain-JAX reference -------------------------------

def _deconv2x2_ref(x, w, b):
    # x: (N, Cin, H, W), w: (Cin, Cout, 2, 2) -> (N, Cout, 2H, 2W)
    y = jnp.einsum("nchw,cokl->nohkwl", x, w, precision=lax.Precision.HIGHEST)
    n_, co, h, _, w_, _ = y.shape
    return y.reshape(n_, co, 2 * h, 2 * w_) + b[None, :, None, None]


def _bn_ref(x, g, b, axes):
    m = jnp.mean(x, axis=axes, keepdims=True)
    v = jnp.mean((x - m) ** 2, axis=axes, keepdims=True)
    shp = [1] * x.ndim
    shp[1 if x.ndim == 4 else -1] = -1
    return (x - m) / jnp.sqrt(v + BN_EPS) * g.reshape(shp) + b.reshape(shp)


def generator_reference(params, z):
    y = jnp.matmul(z, params["lin_w"], precision=lax.Precision.HIGHEST)
    y = y + params["lin_b"]
    y = jnp.maximum(_bn_ref(y, params["bn0_g"], params["bn0_b"], (0,)), 0.0)
    x = y.reshape(-1, C1, 4, 4)
    x = _deconv2x2_ref(x, params["dc1_w"], params["dc1_b"])
    x = jnp.maximum(_bn_ref(x, params["bn1_g"], params["bn1_b"], (0, 2, 3)), 0.0)
    x = _deconv2x2_ref(x, params["dc2_w"], params["dc2_b"])
    x = jnp.maximum(_bn_ref(x, params["bn2_g"], params["bn2_b"], (0, 2, 3)), 0.0)
    x = _deconv2x2_ref(x, params["dc3_w"], params["dc3_b"])
    return jnp.tanh(x)


if __name__ == "__main__":
    key = jax.random.PRNGKey(0)
    pkey, zkey = jax.random.split(key)
    params = init_params(pkey)
    z = jax.random.normal(zkey, (8, LATENT_DIM), dtype=jnp.float32)

    out = jax.jit(generator_forward)(params, z)
    out = jax.block_until_ready(out)

    assert out.shape == (8, CHANNELS, IMG_SIZE, IMG_SIZE), out.shape
    assert bool(jnp.all(jnp.isfinite(out)))
    assert bool(jnp.all(jnp.abs(out) <= 1.0))     # tanh range

    ref = jax.block_until_ready(jax.jit(generator_reference)(params, z))
    err = float(jnp.max(jnp.abs(out - ref)))
    assert err < 2e-2, f"max abs error vs plain-JAX reference: {err}"

    print("KERNEL_OK")
</pallas_src>

<mosaic_0001>
module attributes {stable_mosaic.version = 11 : i64} {
  func.func @_generator_kernel(%arg0: i32, %arg1: memref<8x32xf32, #tpu.memory_space<vmem>>, %arg2: memref<32x2048xf32, #tpu.memory_space<vmem>>, %arg3: memref<1x2048xf32, #tpu.memory_space<vmem>>, %arg4: memref<1x2048xf32, #tpu.memory_space<vmem>>, %arg5: memref<1x2048xf32, #tpu.memory_space<vmem>>, %arg6: memref<4x128x64xf32, #tpu.memory_space<vmem>>, %arg7: memref<1x64xf32, #tpu.memory_space<vmem>>, %arg8: memref<1x64xf32, #tpu.memory_space<vmem>>, %arg9: memref<1x64xf32, #tpu.memory_space<vmem>>, %arg10: memref<4x64x32xf32, #tpu.memory_space<vmem>>, %arg11: memref<1x32xf32, #tpu.memory_space<vmem>>, %arg12: memref<1x32xf32, #tpu.memory_space<vmem>>, %arg13: memref<1x32xf32, #tpu.memory_space<vmem>>, %arg14: memref<4x32x48xf32, #tpu.memory_space<vmem>>, %arg15: memref<1x48xf32, #tpu.memory_space<vmem>>, %arg16: memref<512x48xf32, #tpu.memory_space<vmem>>) attributes {dimension_semantics = [#tpu.dimension_semantics<arbitrary>], iteration_bounds = array<i64: 1>, scalar_prefetch = 0 : i64, scratch_operands = 0 : i64, tpu.core_type = #tpu.core_type<tc>, window_params = [{pipeline_mode = #tpu.pipeline_mode<synchronous>, transform_indices = @transform_0, window_bounds = array<i64: 8, 32>}, {pipeline_mode = #tpu.pipeline_mode<synchronous>, transform_indices = @transform_1, window_bounds = array<i64: 32, 2048>}, {pipeline_mode = #tpu.pipeline_mode<synchronous>, transform_indices = @transform_2, window_bounds = array<i64: 1, 2048>}, {pipeline_mode = #tpu.pipeline_mode<synchronous>, transform_indices = @transform_3, window_bounds = array<i64: 1, 2048>}, {pipeline_mode = #tpu.pipeline_mode<synchronous>, transform_indices = @transform_4, window_bounds = array<i64: 1, 2048>}, {pipeline_mode = #tpu.pipeline_mode<synchronous>, transform_indices = @transform_5, window_bounds = array<i64: 4, 128, 64>}, {pipeline_mode = #tpu.pipeline_mode<synchronous>, transform_indices = @transform_6, window_bounds = array<i64: 1, 64>}, {pipeline_mode = #tpu.pipeline_mode<synchronous>, transform_indices = @transform_7, window_bounds = array<i64: 1, 64>}, {pipeline_mode = #tpu.pipeline_mode<synchronous>, transform_indices = @transform_8, window_bounds = array<i64: 1, 64>}, {pipeline_mode = #tpu.pipeline_mode<synchronous>, transform_indices = @transform_9, window_bounds = array<i64: 4, 64, 32>}, {pipeline_mode = #tpu.pipeline_mode<synchronous>, transform_indices = @transform_10, window_bounds = array<i64: 1, 32>}, {pipeline_mode = #tpu.pipeline_mode<synchronous>, transform_indices = @transform_11, window_bounds = array<i64: 1, 32>}, {pipeline_mode = #tpu.pipeline_mode<synchronous>, transform_indices = @transform_12, window_bounds = array<i64: 1, 32>}, {pipeline_mode = #tpu.pipeline_mode<synchronous>, transform_indices = @transform_13, window_bounds = array<i64: 4, 32, 48>}, {pipeline_mode = #tpu.pipeline_mode<synchronous>, transform_indices = @transform_14, window_bounds = array<i64: 1, 48>}, {pipeline_mode = #tpu.pipeline_mode<synchronous>, transform_indices = @transform_15, window_bounds = array<i64: 512, 48>}]} {
    %c0 = arith.constant 0 : index
    %c0_0 = arith.constant 0 : index
    %0 = vector.load %arg1[%c0, %c0_0] : memref<8x32xf32, #tpu.memory_space<vmem>>, vector<8x32xf32>
    %c0_1 = arith.constant 0 : index
    %c0_2 = arith.constant 0 : index
    %1 = vector.load %arg2[%c0_1, %c0_2] : memref<32x2048xf32, #tpu.memory_space<vmem>>, vector<32x2048xf32>
    %cst = arith.constant dense<0.000000e+00> : vector<8x2048xf32>
    %2 = tpu.matmul %0, %1, %cst {dimension_numbers = #tpu.dot_dimension_numbers<[1], [0], [0], [1], [0, 0, 1, 1], [], []>} : vector<8x32xf32>, vector<32x2048xf32>, vector<8x2048xf32> -> vector<8x2048xf32>
    %c0_3 = arith.constant 0 : index
    %c0_4 = arith.constant 0 : index
    %3 = vector.load %arg3[%c0_3, %c0_4] : memref<1x2048xf32, #tpu.memory_space<vmem>>, vector<1x2048xf32>
    %4 = vector.broadcast %3 : vector<1x2048xf32> to vector<8x2048xf32>
    %5 = arith.addf %2, %4 : vector<8x2048xf32>
    %c0_5 = arith.constant 0 : index
    %c0_6 = arith.constant 0 : index
    %6 = vector.load %arg4[%c0_5, %c0_6] : memref<1x2048xf32, #tpu.memory_space<vmem>>, vector<1x2048xf32>
    %c0_7 = arith.constant 0 : index
    %c0_8 = arith.constant 0 : index
    %7 = vector.load %arg5[%c0_7, %c0_8] : memref<1x2048xf32, #tpu.memory_space<vmem>>, vector<1x2048xf32>
    %cst_9 = arith.constant 0.000000e+00 : f32
    %8 = vector.broadcast %cst_9 : f32 to vector<1x2048xf32>
    %cst_10 = arith.constant dense<0.000000e+00> : vector<2048xf32>
    %9 = vector.multi_reduction <add>, %5, %cst_10 [0] : vector<8x2048xf32> to vector<2048xf32>
    %10 = vector.shape_cast %9 : vector<2048xf32> to vector<1x2048xf32>
    %11 = arith.addf %8, %10 : vector<1x2048xf32>
    %cst_11 = arith.constant 1.250000e-01 : f32
    %12 = vector.broadcast %cst_11 : f32 to vector<1x2048xf32>
    %13 = arith.mulf %11, %12 : vector<1x2048xf32>
    %cst_12 = arith.constant 0.000000e+00 : f32
    %14 = vector.broadcast %cst_12 : f32 to vector<1x2048xf32>
    %15 = vector.broadcast %13 : vector<1x2048xf32> to vector<8x2048xf32>
    %16 = arith.subf %5, %15 : vector<8x2048xf32>
    %17 = arith.mulf %16, %16 : vector<8x2048xf32>
    %cst_13 = arith.constant dense<0.000000e+00> : vector<2048xf32>
    %18 = vector.multi_reduction <add>, %17, %cst_13 [0] : vector<8x2048xf32> to vector<2048xf32>
    %19 = vector.shape_cast %18 : vector<2048xf32> to vector<1x2048xf32>
    %20 = arith.addf %14, %19 : vector<1x2048xf32>
    %cst_14 = arith.constant 1.250000e-01 : f32
    %21 = vector.broadcast %cst_14 : f32 to vector<1x2048xf32>
    %22 = arith.mulf %20, %21 : vector<1x2048xf32>
    %cst_15 = arith.constant 9.99999974E-6 : f32
    %23 = vector.broadcast %cst_15 : f32 to vector<1x2048xf32>
    %24 = arith.addf %22, %23 : vector<1x2048xf32>
    %25 = math.rsqrt %24 : vector<1x2048xf32>
    %26 = arith.mulf %6, %25 : vector<1x2048xf32>
    %27 = arith.mulf %13, %26 : vector<1x2048xf32>
    %28 = arith.subf %7, %27 : vector<1x2048xf32>
    %29 = vector.broadcast %26 : vector<1x2048xf32> to vector<8x2048xf32>
    %30 = arith.mulf %5, %29 : vector<8x2048xf32>
    %31 = vector.broadcast %28 : vector<1x2048xf32> to vector<8x2048xf32>
    %32 = arith.addf %30, %31 : vector<8x2048xf32>
    %cst_16 = arith.constant 0.000000e+00 : f32
    %33 = vector.broadcast %cst_16 : f32 to vector<8x2048xf32>
    %34 = arith.maximumf %32, %33 : vector<8x2048xf32>
    %35 = vector.extract_strided_slice %34 {offsets = [0, 0], sizes = [8, 128], strides = [1, 1]} : vector<8x2048xf32> to vector<8x128xf32>
    %36 = vector.extract_strided_slice %34 {offsets = [0, 128], sizes = [8, 128], strides = [1, 1]} : vector<8x2048xf32> to vector<8x128xf32>
    %37 = vector.extract_strided_slice %34 {offsets = [0, 256], sizes = [8, 128], strides = [1, 1]} : vector<8x2048xf32> to vector<8x128xf32>
    %38 = vector.extract_strided_slice %34 {offsets = [0, 384], sizes = [8, 128], strides = [1, 1]} : vector<8x2048xf32> to vector<8x128xf32>
    %39 = vector.extract_strided_slice %34 {offsets = [0, 512], sizes = [8, 128], strides = [1, 1]} : vector<8x2048xf32> to vector<8x128xf32>
    %40 = vector.extract_strided_slice %34 {offsets = [0, 640], sizes = [8, 128], strides = [1, 1]} : vector<8x2048xf32> to vector<8x128xf32>
    %41 = vector.extract_strided_slice %34 {offsets = [0, 768], sizes = [8, 128], strides = [1, 1]} : vector<8x2048xf32> to vector<8x128xf32>
    %42 = vector.extract_strided_slice %34 {offsets = [0, 896], sizes = [8, 128], strides = [1, 1]} : vector<8x2048xf32> to vector<8x128xf32>
    %43 = vector.extract_strided_slice %34 {offsets = [0, 1024], sizes = [8, 128], strides = [1, 1]} : vector<8x2048xf32> to vector<8x128xf32>
    %44 = vector.extract_strided_slice %34 {offsets = [0, 1152], sizes = [8, 128], strides = [1, 1]} : vector<8x2048xf32> to vector<8x128xf32>
    %45 = vector.extract_strided_slice %34 {offsets = [0, 1280], sizes = [8, 128], strides = [1, 1]} : vector<8x2048xf32> to vector<8x128xf32>
    %46 = vector.extract_strided_slice %34 {offsets = [0, 1408], sizes = [8, 128], strides = [1, 1]} : vector<8x2048xf32> to vector<8x128xf32>
    %47 = vector.extract_strided_slice %34 {offsets = [0, 1536], sizes = [8, 128], strides = [1, 1]} : vector<8x2048xf32> to vector<8x128xf32>
    %48 = vector.extract_strided_slice %34 {offsets = [0, 1664], sizes = [8, 128], strides = [1, 1]} : vector<8x2048xf32> to vector<8x128xf32>
    %49 = vector.extract_strided_slice %34 {offsets = [0, 1792], sizes = [8, 128], strides = [1, 1]} : vector<8x2048xf32> to vector<8x128xf32>
    %50 = vector.extract_strided_slice %34 {offsets = [0, 1920], sizes = [8, 128], strides = [1, 1]} : vector<8x2048xf32> to vector<8x128xf32>
    %51 = tpu.concatenate %35, %36, %37, %38, %39, %40, %41, %42, %43, %44, %45, %46, %47, %48, %49, %50 in 0 : vector<8x128xf32>, vector<8x128xf32>, vector<8x128xf32>, vector<8x128xf32>, vector<8x128xf32>, vector<8x128xf32>, vector<8x128xf32>, vector<8x128xf32>, vector<8x128xf32>, vector<8x128xf32>, vector<8x128xf32>, vector<8x128xf32>, vector<8x128xf32>, vector<8x128xf32>, vector<8x128xf32>, vector<8x128xf32> -> vector<128x128xf32>
    %c0_17 = arith.constant 0 : index
    %c0_18 = arith.constant 0 : index
    %c0_19 = arith.constant 0 : index
    %52 = vector.load %arg6[%c0_17, %c0_18, %c0_19] : memref<4x128x64xf32, #tpu.memory_space<vmem>>, vector<1x128x64xf32>
    %53 = vector.shape_cast %52 : vector<1x128x64xf32> to vector<128x64xf32>
    %cst_20 = arith.constant dense<0.000000e+00> : vector<128x64xf32>
    %54 = tpu.matmul %51, %53, %cst_20 {dimension_numbers = #tpu.dot_dimension_numbers<[1], [0], [0], [1], [0, 0, 1, 1], [], []>} : vector<128x128xf32>, vector<128x64xf32>, vector<128x64xf32> -> vector<128x64xf32>
    %c0_21 = arith.constant 0 : index
    %c0_22 = arith.constant 0 : index
    %55 = vector.load %arg7[%c0_21, %c0_22] : memref<1x64xf32, #tpu.memory_space<vmem>>, vector<1x64xf32>
    %56 = vector.broadcast %55 : vector<1x64xf32> to vector<128x64xf32>
    %57 = arith.addf %54, %56 : vector<128x64xf32>
    %c1 = arith.constant 1 : index
    %c0_23 = arith.constant 0 : index
    %c0_24 = arith.constant 0 : index
    %58 = vector.load %arg6[%c1, %c0_23, %c0_24] : memref<4x128x64xf32, #tpu.memory_space<vmem>>, vector<1x128x64xf32>
    %59 = vector.shape_cast %58 : vector<1x128x64xf32> to vector<128x64xf32>
    %cst_25 = arith.constant dense<0.000000e+00> : vector<128x64xf32>
    %60 = tpu.matmul %51, %59, %cst_25 {dimension_numbers = #tpu.dot_dimension_numbers<[1], [0], [0], [1], [0, 0, 1, 1], [], []>} : vector<128x128xf32>, vector<128x64xf32>, vector<128x64xf32> -> vector<128x64xf32>
    %c0_26 = arith.constant 0 : index
    %c0_27 = arith.constant 0 : index
    %61 = vector.load %arg7[%c0_26, %c0_27] : memref<1x64xf32, #tpu.memory_space<vmem>>, vector<1x64xf32>
    %62 = vector.broadcast %61 : vector<1x64xf32> to vector<128x64xf32>
    %63 = arith.addf %60, %62 : vector<128x64xf32>
    %c2 = arith.constant 2 : index
    %c0_28 = arith.constant 0 : index
    %c0_29 = arith.constant 0 : index
    %64 = vector.load %arg6[%c2, %c0_28, %c0_29] : memref<4x128x64xf32, #tpu.memory_space<vmem>>, vector<1x128x64xf32>
    %65 = vector.shape_cast %64 : vector<1x128x64xf32> to vector<128x64xf32>
    %cst_30 = arith.constant dense<0.000000e+00> : vector<128x64xf32>
    %66 = tpu.matmul %51, %65, %cst_30 {dimension_numbers = #tpu.dot_dimension_numbers<[1], [0], [0], [1], [0, 0, 1, 1], [], []>} : vector<128x128xf32>, vector<128x64xf32>, vector<128x64xf32> -> vector<128x64xf32>
    %c0_31 = arith.constant 0 : index
    %c0_32 = arith.constant 0 : index
    %67 = vector.load %arg7[%c0_31, %c0_32] : memref<1x64xf32, #tpu.memory_space<vmem>>, vector<1x64xf32>
    %68 = vector.broadcast %67 : vector<1x64xf32> to vector<128x64xf32>
    %69 = arith.addf %66, %68 : vector<128x64xf32>
    %c3 = arith.constant 3 : index
    %c0_33 = arith.constant 0 : index
    %c0_34 = arith.constant 0 : index
    %70 = vector.load %arg6[%c3, %c0_33, %c0_34] : memref<4x128x64xf32, #tpu.memory_space<vmem>>, vector<1x128x64xf32>
    %71 = vector.shape_cast %70 : vector<1x128x64xf32> to vector<128x64xf32>
    %cst_35 = arith.constant dense<0.000000e+00> : vector<128x64xf32>
    %72 = tpu.matmul %51, %71, %cst_35 {dimension_numbers = #tpu.dot_dimension_numbers<[1], [0], [0], [1], [0, 0, 1, 1], [], []>} : vector<128x128xf32>, vector<128x64xf32>, vector<128x64xf32> -> vector<128x64xf32>
    %c0_36 = arith.constant 0 : index
    %c0_37 = arith.constant 0 : index
    %73 = vector.load %arg7[%c0_36, %c0_37] : memref<1x64xf32, #tpu.memory_space<vmem>>, vector<1x64xf32>
    %74 = vector.broadcast %73 : vector<1x64xf32> to vector<128x64xf32>
    %75 = arith.addf %72, %74 : vector<128x64xf32>
    %c0_38 = arith.constant 0 : index
    %c0_39 = arith.constant 0 : index
    %76 = vector.load %arg8[%c0_38, %c0_39] : memref<1x64xf32, #tpu.memory_space<vmem>>, vector<1x64xf32>
    %c0_40 = arith.constant 0 : index
    %c0_41 = arith.constant 0 : index
    %77 = vector.load %arg9[%c0_40, %c0_41] : memref<1x64xf32, #tpu.memory_space<vmem>>, vector<1x64xf32>
    %cst_42 = arith.constant 0.000000e+00 : f32
    %78 = vector.broadcast %cst_42 : f32 to vector<1x64xf32>
    %cst_43 = arith.constant dense<0.000000e+00> : vector<64xf32>
    %79 = vector.multi_reduction <add>, %57, %cst_43 [0] : vector<128x64xf32> to vector<64xf32>
    %80 = vector.shape_cast %79 : vector<64xf32> to vector<1x64xf32>
    %81 = arith.addf %78, %80 : vector<1x64xf32>
    %cst_44 = arith.constant dense<0.000000e+00> : vector<64xf32>
    %82 = vector.multi_reduction <add>, %63, %cst_44 [0] : vector<128x64xf32> to vector<64xf32>
    %83 = vector.shape_cast %82 : vector<64xf32> to vector<1x64xf32>
    %84 = arith.addf %81, %83 : vector<1x64xf32>
    %cst_45 = arith.constant dense<0.000000e+00> : vector<64xf32>
    %85 = vector.multi_reduction <add>, %69, %cst_45 [0] : vector<128x64xf32> to vector<64xf32>
    %86 = vector.shape_cast %85 : vector<64xf32> to vector<1x64xf32>
    %87 = arith.addf %84, %86 : vector<1x64xf32>
    %cst_46 = arith.constant dense<0.000000e+00> : vector<64xf32>
    %88 = vector.multi_reduction <add>, %75, %cst_46 [0] : vector<128x64xf32> to vector<64xf32>
    %89 = vector.shape_cast %88 : vector<64xf32> to vector<1x64xf32>
    %90 = arith.addf %87, %89 : vector<1x64xf32>
    %cst_47 = arith.constant 0.001953125 : f32
    %91 = vector.broadcast %cst_47 : f32 to vector<1x64xf32>
    %92 = arith.mulf %90, %91 : vector<1x64xf32>
    %cst_48 = arith.constant 0.000000e+00 : f32
    %93 = vector.broadcast %cst_48 : f32 to vector<1x64xf32>
    %94 = vector.broadcast %92 : vector<1x64xf32> to vector<128x64xf32>
    %95 = arith.subf %57, %94 : vector<128x64xf32>
    %96 = arith.mulf %95, %95 : vector<128x64xf32>
    %cst_49 = arith.constant dense<0.000000e+00> : vector<64xf32>
    %97 = vector.multi_reduction <add>, %96, %cst_49 [0] : vector<128x64xf32> to vector<64xf32>
    %98 = vector.shape_cast %97 : vector<64xf32> to vector<1x64xf32>
    %99 = arith.addf %93, %98 : vector<1x64xf32>
    %100 = vector.broadcast %92 : vector<1x64xf32> to vector<128x64xf32>
    %101 = arith.subf %63, %100 : vector<128x64xf32>
    %102 = arith.mulf %101, %101 : vector<128x64xf32>
    %cst_50 = arith.constant dense<0.000000e+00> : vector<64xf32>
    %103 = vector.multi_reduction <add>, %102, %cst_50 [0] : vector<128x64xf32> to vector<64xf32>
    %104 = vector.shape_cast %103 : vector<64xf32> to vector<1x64xf32>
    %105 = arith.addf %99, %104 : vector<1x64xf32>
    %106 = vector.broadcast %92 : vector<1x64xf32> to vector<128x64xf32>
    %107 = arith.subf %69, %106 : vector<128x64xf32>
    %108 = arith.mulf %107, %107 : vector<128x64xf32>
    %cst_51 = arith.constant dense<0.000000e+00> : vector<64xf32>
    %109 = vector.multi_reduction <add>, %108, %cst_51 [0] : vector<128x64xf32> to vector<64xf32>
    %110 = vector.shape_cast %109 : vector<64xf32> to vector<1x64xf32>
    %111 = arith.addf %105, %110 : vector<1x64xf32>
    %112 = vector.broadcast %92 : vector<1x64xf32> to vector<128x64xf32>
    %113 = arith.subf %75, %112 : vector<128x64xf32>
    %114 = arith.mulf %113, %113 : vector<128x64xf32>
    %cst_52 = arith.constant dense<0.000000e+00> : vector<64xf32>
    %115 = vector.multi_reduction <add>, %114, %cst_52 [0] : vector<128x64xf32> to vector<64xf32>
    %116 = vector.shape_cast %115 : vector<64xf32> to vector<1x64xf32>
    %117 = arith.addf %111, %116 : vector<1x64xf32>
    %cst_53 = arith.constant 0.001953125 : f32
    %118 = vector.broadcast %cst_53 : f32 to vector<1x64xf32>
    %119 = arith.mulf %117, %118 : vector<1x64xf32>
    %cst_54 = arith.constant 9.99999974E-6 : f32
    %120 = vector.broadcast %cst_54 : f32 to vector<1x64xf32>
    %121 = arith.addf %119, %120 : vector<1x64xf32>
    %122 = math.rsqrt %121 : vector<1x64xf32>
    %123 = arith.mulf %76, %122 : vector<1x64xf32>
    %124 = arith.mulf %92, %123 : vector<1x64xf32>
    %125 = arith.subf %77, %124 : vector<1x64xf32>
    %126 = vector.broadcast %123 : vector<1x64xf32> to vector<128x64xf32>
    %127 = arith.mulf %57, %126 : vector<128x64xf32>
    %128 = vector.broadcast %125 : vector<1x64xf32> to vector<128x64xf32>
    %129 = arith.addf %127, %128 : vector<128x64xf32>
    %cst_55 = arith.constant 0.000000e+00 : f32
    %130 = vector.broadcast %cst_55 : f32 to vector<128x64xf32>
    %131 = arith.maximumf %129, %130 : vector<128x64xf32>
    %132 = vector.broadcast %123 : vector<1x64xf32> to vector<128x64xf32>
    %133 = arith.mulf %63, %132 : vector<128x64xf32>
    %134 = vector.broadcast %125 : vector<1x64xf32> to vector<128x64xf32>
    %135 = arith.addf %133, %134 : vector<128x64xf32>
    %cst_56 = arith.constant 0.000000e+00 : f32
    %136 = vector.broadcast %cst_56 : f32 to vector<128x64xf32>
    %137 = arith.maximumf %135, %136 : vector<128x64xf32>
    %138 = vector.broadcast %123 : vector<1x64xf32> to vector<128x64xf32>
    %139 = arith.mulf %69, %138 : vector<128x64xf32>
    %140 = vector.broadcast %125 : vector<1x64xf32> to vector<128x64xf32>
    %141 = arith.addf %139, %140 : vector<128x64xf32>
    %cst_57 = arith.constant 0.000000e+00 : f32
    %142 = vector.broadcast %cst_57 : f32 to vector<128x64xf32>
    %143 = arith.maximumf %141, %142 : vector<128x64xf32>
    %144 = vector.broadcast %123 : vector<1x64xf32> to vector<128x64xf32>
    %145 = arith.mulf %75, %144 : vector<128x64xf32>
    %146 = vector.broadcast %125 : vector<1x64xf32> to vector<128x64xf32>
    %147 = arith.addf %145, %146 : vector<128x64xf32>
    %cst_58 = arith.constant 0.000000e+00 : f32
    %148 = vector.broadcast %cst_58 : f32 to vector<128x64xf32>
    %149 = arith.maximumf %147, %148 : vector<128x64xf32>
    %150 = tpu.concatenate %131, %137, %143, %149 in 0 : vector<128x64xf32>, vector<128x64xf32>, vector<128x64xf32>, vector<128x64xf32> -> vector<512x64xf32>
    %c0_59 = arith.constant 0 : index
    %c0_60 = arith.constant 0 : index
    %c0_61 = arith.constant 0 : index
    %151 = vector.load %arg10[%c0_59, %c0_60, %c0_61] : memref<4x64x32xf32, #tpu.memory_space<vmem>>, vector<1x64x32xf32>
    %152 = vector.shape_cast %151 : vector<1x64x32xf32> to vector<64x32xf32>
    %cst_62 = arith.constant dense<0.000000e+00> : vector<512x32xf32>
    %153 = tpu.matmul %150, %152, %cst_62 {dimension_numbers = #tpu.dot_dimension_numbers<[1], [0], [0], [1], [0, 0, 1, 1], [], []>} : vector<512x64xf32>, vector<64x32xf32>, vector<512x32xf32> -> vector<512x32xf32>
    %c0_63 = arith.constant 0 : index
    %c0_64 = arith.constant 0 : index
    %154 = vector.load %arg11[%c0_63, %c0_64] : memref<1x32xf32, #tpu.memory_space<vmem>>, vector<1x32xf32>
    %155 = vector.broadcast %154 : vector<1x32xf32> to vector<512x32xf32>
    %156 = arith.addf %153, %155 : vector<512x32xf32>
    %c1_65 = arith.constant 1 : index
    %c0_66 = arith.constant 0 : index
    %c0_67 = arith.constant 0 : index
    %157 = vector.load %arg10[%c1_65, %c0_66, %c0_67] : memref<4x64x32xf32, #tpu.memory_space<vmem>>, vector<1x64x32xf32>
    %158 = vector.shape_cast %157 : vector<1x64x32xf32> to vector<64x32xf32>
    %cst_68 = arith.constant dense<0.000000e+00> : vector<512x32xf32>
    %159 = tpu.matmul %150, %158, %cst_68 {dimension_numbers = #tpu.dot_dimension_numbers<[1], [0], [0], [1], [0, 0, 1, 1], [], []>} : vector<512x64xf32>, vector<64x32xf32>, vector<512x32xf32> -> vector<512x32xf32>
    %c0_69 = arith.constant 0 : index
    %c0_70 = arith.constant 0 : index
    %160 = vector.load %arg11[%c0_69, %c0_70] : memref<1x32xf32, #tpu.memory_space<vmem>>, vector<1x32xf32>
    %161 = vector.broadcast %160 : vector<1x32xf32> to vector<512x32xf32>
    %162 = arith.addf %159, %161 : vector<512x32xf32>
    %c2_71 = arith.constant 2 : index
    %c0_72 = arith.constant 0 : index
    %c0_73 = arith.constant 0 : index
    %163 = vector.load %arg10[%c2_71, %c0_72, %c0_73] : memref<4x64x32xf32, #tpu.memory_space<vmem>>, vector<1x64x32xf32>
    %164 = vector.shape_cast %163 : vector<1x64x32xf32> to vector<64x32xf32>
    %cst_74 = arith.constant dense<0.000000e+00> : vector<512x32xf32>
    %165 = tpu.matmul %150, %164, %cst_74 {dimension_numbers = #tpu.dot_dimension_numbers<[1], [0], [0], [1], [0, 0, 1, 1], [], []>} : vector<512x64xf32>, vector<64x32xf32>, vector<512x32xf32> -> vector<512x32xf32>
    %c0_75 = arith.constant 0 : index
    %c0_76 = arith.constant 0 : index
    %166 = vector.load %arg11[%c0_75, %c0_76] : memref<1x32xf32, #tpu.memory_space<vmem>>, vector<1x32xf32>
    %167 = vector.broadcast %166 : vector<1x32xf32> to vector<512x32xf32>
    %168 = arith.addf %165, %167 : vector<512x32xf32>
    %c3_77 = arith.constant 3 : index
    %c0_78 = arith.constant 0 : index
    %c0_79 = arith.constant 0 : index
    %169 = vector.load %arg10[%c3_77, %c0_78, %c0_79] : memref<4x64x32xf32, #tpu.memory_space<vmem>>, vector<1x64x32xf32>
    %170 = vector.shape_cast %169 : vector<1x64x32xf32> to vector<64x32xf32>
    %cst_80 = arith.constant dense<0.000000e+00> : vector<512x32xf32>
    %171 = tpu.matmul %150, %170, %cst_80 {dimension_numbers = #tpu.dot_dimension_numbers<[1], [0], [0], [1], [0, 0, 1, 1], [], []>} : vector<512x64xf32>, vector<64x32xf32>, vector<512x32xf32> -> vector<512x32xf32>
    %c0_81 = arith.constant 0 : index
    %c0_82 = arith.constant 0 : index
    %172 = vector.load %arg11[%c0_81, %c0_82] : memref<1x32xf32, #tpu.memory_space<vmem>>, vector<1x32xf32>
    %173 = vector.broadcast %172 : vector<1x32xf32> to vector<512x32xf32>
    %174 = arith.addf %171, %173 : vector<512x32xf32>
    %c0_83 = arith.constant 0 : index
    %c0_84 = arith.constant 0 : index
    %175 = vector.load %arg12[%c0_83, %c0_84] : memref<1x32xf32, #tpu.memory_space<vmem>>, vector<1x32xf32>
    %c0_85 = arith.constant 0 : index
    %c0_86 = arith.constant 0 : index
    %176 = vector.load %arg13[%c0_85, %c0_86] : memref<1x32xf32, #tpu.memory_space<vmem>>, vector<1x32xf32>
    %cst_87 = arith.constant 0.000000e+00 : f32
    %177 = vector.broadcast %cst_87 : f32 to vector<1x32xf32>
    %cst_88 = arith.constant dense<0.000000e+00> : vector<32xf32>
    %178 = vector.multi_reduction <add>, %156, %cst_88 [0] : vector<512x32xf32> to vector<32xf32>
    %179 = vector.shape_cast %178 : vector<32xf32> to vector<1x32xf32>
    %180 = arith.addf %177, %179 : vector<1x32xf32>
    %cst_89 = arith.constant dense<0.000000e+00> : vector<32xf32>
    %181 = vector.multi_reduction <add>, %162, %cst_89 [0] : vector<512x32xf32> to vector<32xf32>
    %182 = vector.shape_cast %181 : vector<32xf32> to vector<1x32xf32>
    %183 = arith.addf %180, %182 : vector<1x32xf32>
    %cst_90 = arith.constant dense<0.000000e+00> : vector<32xf32>
    %184 = vector.multi_reduction <add>, %168, %cst_90 [0] : vector<512x32xf32> to vector<32xf32>
    %185 = vector.shape_cast %184 : vector<32xf32> to vector<1x32xf32>
    %186 = arith.addf %183, %185 : vector<1x32xf32>
    %cst_91 = arith.constant dense<0.000000e+00> : vector<32xf32>
    %187 = vector.multi_reduction <add>, %174, %cst_91 [0] : vector<512x32xf32> to vector<32xf32>
    %188 = vector.shape_cast %187 : vector<32xf32> to vector<1x32xf32>
    %189 = arith.addf %186, %188 : vector<1x32xf32>
    %cst_92 = arith.constant 4.8828125E-4 : f32
    %190 = vector.broadcast %cst_92 : f32 to vector<1x32xf32>
    %191 = arith.mulf %189, %190 : vector<1x32xf32>
    %cst_93 = arith.constant 0.000000e+00 : f32
    %192 = vector.broadcast %cst_93 : f32 to vector<1x32xf32>
    %193 = vector.broadcast %191 : vector<1x32xf32> to vector<512x32xf32>
    %194 = arith.subf %156, %193 : vector<512x32xf32>
    %195 = arith.mulf %194, %194 : vector<512x32xf32>
    %cst_94 = arith.constant dense<0.000000e+00> : vector<32xf32>
    %196 = vector.multi_reduction <add>, %195, %cst_94 [0] : vector<512x32xf32> to vector<32xf32>
    %197 = vector.shape_cast %196 : vector<32xf32> to vector<1x32xf32>
    %198 = arith.addf %192, %197 : vector<1x32xf32>
    %199 = vector.broadcast %191 : vector<1x32xf32> to vector<512x32xf32>
    %200 = arith.subf %162, %199 : vector<512x32xf32>
    %201 = arith.mulf %200, %200 : vector<512x32xf32>
    %cst_95 = arith.constant dense<0.000000e+00> : vector<32xf32>
    %202 = vector.multi_reduction <add>, %201, %cst_95 [0] : vector<512x32xf32> to vector<32xf32>
    %203 = vector.shape_cast %202 : vector<32xf32> to vector<1x32xf32>
    %204 = arith.addf %198, %203 : vector<1x32xf32>
    %205 = vector.broadcast %191 : vector<1x32xf32> to vector<512x32xf32>
    %206 = arith.subf %168, %205 : vector<512x32xf32>
    %207 = arith.mulf %206, %206 : vector<512x32xf32>
    %cst_96 = arith.constant dense<0.000000e+00> : vector<32xf32>
    %208 = vector.multi_reduction <add>, %207, %cst_96 [0] : vector<512x32xf32> to vector<32xf32>
    %209 = vector.shape_cast %208 : vector<32xf32> to vector<1x32xf32>
    %210 = arith.addf %204, %209 : vector<1x32xf32>
    %211 = vector.broadcast %191 : vector<1x32xf32> to vector<512x32xf32>
    %212 = arith.subf %174, %211 : vector<512x32xf32>
    %213 = arith.mulf %212, %212 : vector<512x32xf32>
    %cst_97 = arith.constant dense<0.000000e+00> : vector<32xf32>
    %214 = vector.multi_reduction <add>, %213, %cst_97 [0] : vector<512x32xf32> to vector<32xf32>
    %215 = vector.shape_cast %214 : vector<32xf32> to vector<1x32xf32>
    %216 = arith.addf %210, %215 : vector<1x32xf32>
    %cst_98 = arith.constant 4.8828125E-4 : f32
    %217 = vector.broadcast %cst_98 : f32 to vector<1x32xf32>
    %218 = arith.mulf %216, %217 : vector<1x32xf32>
    %cst_99 = arith.constant 9.99999974E-6 : f32
    %219 = vector.broadcast %cst_99 : f32 to vector<1x32xf32>
    %220 = arith.addf %218, %219 : vector<1x32xf32>
    %221 = math.rsqrt %220 : vector<1x32xf32>
    %222 = arith.mulf %175, %221 : vector<1x32xf32>
    %223 = arith.mulf %191, %222 : vector<1x32xf32>
    %224 = arith.subf %176, %223 : vector<1x32xf32>
    %225 = vector.broadcast %222 : vector<1x32xf32> to vector<512x32xf32>
    %226 = arith.mulf %156, %225 : vector<512x32xf32>
    %227 = vector.broadcast %224 : vector<1x32xf32> to vector<512x32xf32>
    %228 = arith.addf %226, %227 : vector<512x32xf32>
    %cst_100 = arith.constant 0.000000e+00 : f32
    %229 = vector.broadcast %cst_100 : f32 to vector<512x32xf32>
    %230 = arith.maximumf %228, %229 : vector<512x32xf32>
    %231 = vector.broadcast %222 : vector<1x32xf32> to vector<512x32xf32>
    %232 = arith.mulf %162, %231 : vector<512x32xf32>
    %233 = vector.broadcast %224 : vector<1x32xf32> to vector<512x32xf32>
    %234 = arith.addf %232, %233 : vector<512x32xf32>
    %cst_101 = arith.constant 0.000000e+00 : f32
    %235 = vector.broadcast %cst_101 : f32 to vector<512x32xf32>
    %236 = arith.maximumf %234, %235 : vector<512x32xf32>
    %237 = vector.broadcast %222 : vector<1x32xf32> to vector<512x32xf32>
    %238 = arith.mulf %168, %237 : vector<512x32xf32>
    %239 = vector.broadcast %224 : vector<1x32xf32> to vector<512x32xf32>
    %240 = arith.addf %238, %239 : vector<512x32xf32>
    %cst_102 = arith.constant 0.000000e+00 : f32
    %241 = vector.broadcast %cst_102 : f32 to vector<512x32xf32>
    %242 = arith.maximumf %240, %241 : vector<512x32xf32>
    %243 = vector.broadcast %222 : vector<1x32xf32> to vector<512x32xf32>
    %244 = arith.mulf %174, %243 : vector<512x32xf32>
    %245 = vector.broadcast %224 : vector<1x32xf32> to vector<512x32xf32>
    %246 = arith.addf %244, %245 : vector<512x32xf32>
    %cst_103 = arith.constant 0.000000e+00 : f32
    %247 = vector.broadcast %cst_103 : f32 to vector<512x32xf32>
    %248 = arith.maximumf %246, %247 : vector<512x32xf32>
    %c0_104 = arith.constant 0 : index
    %c0_105 = arith.constant 0 : index
    %249 = vector.load %arg15[%c0_104, %c0_105] : memref<1x48xf32, #tpu.memory_space<vmem>>, vector<1x48xf32>
    %c0_106 = arith.constant 0 : index
    %c0_107 = arith.constant 0 : index
    %c0_108 = arith.constant 0 : index
    %250 = vector.load %arg14[%c0_106, %c0_107, %c0_108] : memref<4x32x48xf32, #tpu.memory_space<vmem>>, vector<1x32x48xf32>
    %251 = vector.shape_cast %250 : vector<1x32x48xf32> to vector<32x48xf32>
    %cst_109 = arith.constant dense<0.000000e+00> : vector<512x48xf32>
    %252 = tpu.matmul %230, %251, %cst_109 {dimension_numbers = #tpu.dot_dimension_numbers<[1], [0], [0], [1], [0, 0, 1, 1], [], []>} : vector<512x32xf32>, vector<32x48xf32>, vector<512x48xf32> -> vector<512x48xf32>
    %253 = vector.broadcast %249 : vector<1x48xf32> to vector<512x48xf32>
    %254 = arith.addf %253, %252 : vector<512x48xf32>
    %c1_110 = arith.constant 1 : index
    %c0_111 = arith.constant 0 : index
    %c0_112 = arith.constant 0 : index
    %255 = vector.load %arg14[%c1_110, %c0_111, %c0_112] : memref<4x32x48xf32, #tpu.memory_space<vmem>>, vector<1x32x48xf32>
    %256 = vector.shape_cast %255 : vector<1x32x48xf32> to vector<32x48xf32>
    %cst_113 = arith.constant dense<0.000000e+00> : vector<512x48xf32>
    %257 = tpu.matmul %236, %256, %cst_113 {dimension_numbers = #tpu.dot_dimension_numbers<[1], [0], [0], [1], [0, 0, 1, 1], [], []>} : vector<512x32xf32>, vector<32x48xf32>, vector<512x48xf32> -> vector<512x48xf32>
    %258 = arith.addf %254, %257 : vector<512x48xf32>
    %c2_114 = arith.constant 2 : index
    %c0_115 = arith.constant 0 : index
    %c0_116 = arith.constant 0 : index
    %259 = vector.load %arg14[%c2_114, %c0_115, %c0_116] : memref<4x32x48xf32, #tpu.memory_space<vmem>>, vector<1x32x48xf32>
    %260 = vector.shape_cast %259 : vector<1x32x48xf32> to vector<32x48xf32>
    %cst_117 = arith.constant dense<0.000000e+00> : vector<512x48xf32>
    %261 = tpu.matmul %242, %260, %cst_117 {dimension_numbers = #tpu.dot_dimension_numbers<[1], [0], [0], [1], [0, 0, 1, 1], [], []>} : vector<512x32xf32>, vector<32x48xf32>, vector<512x48xf32> -> vector<512x48xf32>
    %262 = arith.addf %258, %261 : vector<512x48xf32>
    %c3_118 = arith.constant 3 : index
    %c0_119 = arith.constant 0 : index
    %c0_120 = arith.constant 0 : index
    %263 = vector.load %arg14[%c3_118, %c0_119, %c0_120] : memref<4x32x48xf32, #tpu.memory_space<vmem>>, vector<1x32x48xf32>
    %264 = vector.shape_cast %263 : vector<1x32x48xf32> to vector<32x48xf32>
    %cst_121 = arith.constant dense<0.000000e+00> : vector<512x48xf32>
    %265 = tpu.matmul %248, %264, %cst_121 {dimension_numbers = #tpu.dot_dimension_numbers<[1], [0], [0], [1], [0, 0, 1, 1], [], []>} : vector<512x32xf32>, vector<32x48xf32>, vector<512x48xf32> -> vector<512x48xf32>
    %266 = arith.addf %262, %265 : vector<512x48xf32>
    %267 = math.tanh %266 : vector<512x48xf32>
    %c0_122 = arith.constant 0 : index
    %c0_123 = arith.constant 0 : index
    %268 = vector.load %arg16[%c0_122, %c0_123] : memref<512x48xf32, #tpu.memory_space<vmem>>, vector<512x48xf32>
    tpu.vector_store %arg16[%c0_122, %c0_123], %267 {strides = array<i32>} : memref<512x48xf32, #tpu.memory_space<vmem>>, vector<512x48xf32>,
    return
  }
  func.func @transform_0(%arg0: i32) -> (i32, i32) {
    %c0_i32 = arith.constant 0 : i32
    %c0_i32_0 = arith.constant 0 : i32
    %c0_i32_1 = arith.constant 0 : i32
    return %c0_i32, %c0_i32_0 : i32, i32
  }
  func.func @transform_1(%arg0: i32) -> (i32, i32) {
    %c0_i32 = arith.constant 0 : i32
    %c0_i32_0 = arith.constant 0 : i32
    %c0_i32_1 = arith.constant 0 : i32
    return %c0_i32, %c0_i32_0 : i32, i32
  }
  func.func @transform_2(%arg0: i32) -> (i32, i32) {
    %c0_i32 = arith.constant 0 : i32
    %c0_i32_0 = arith.constant 0 : i32
    %c0_i32_1 = arith.constant 0 : i32
    return %c0_i32, %c0_i32_0 : i32, i32
  }
  func.func @transform_3(%arg0: i32) -> (i32, i32) {
    %c0_i32 = arith.constant 0 : i32
    %c0_i32_0 = arith.constant 0 : i32
    %c0_i32_1 = arith.constant 0 : i32
    return %c0_i32, %c0_i32_0 : i32, i32
  }
  func.func @transform_4(%arg0: i32) -> (i32, i32) {
    %c0_i32 = arith.constant 0 : i32
    %c0_i32_0 = arith.constant 0 : i32
    %c0_i32_1 = arith.constant 0 : i32
    return %c0_i32, %c0_i32_0 : i32, i32
  }
  func.func @transform_5(%arg0: i32) -> (i32, i32, i32) {
    %c0_i32 = arith.constant 0 : i32
    %c0_i32_0 = arith.constant 0 : i32
    %c0_i32_1 = arith.constant 0 : i32
    %c0_i32_2 = arith.constant 0 : i32
    return %c0_i32, %c0_i32_0, %c0_i32_1 : i32, i32, i32
  }
  func.func @transform_6(%arg0: i32) -> (i32, i32) {
    %c0_i32 = arith.constant 0 : i32
    %c0_i32_0 = arith.constant 0 : i32
    %c0_i32_1 = arith.constant 0 : i32
    return %c0_i32, %c0_i32_0 : i32, i32
  }
  func.func @transform_7(%arg0: i32) -> (i32, i32) {
    %c0_i32 = arith.constant 0 : i32
    %c0_i32_0 = arith.constant 0 : i32
    %c0_i32_1 = arith.constant 0 : i32
    return %c0_i32, %c0_i32_0 : i32, i32
  }
  func.func @transform_8(%arg0: i32) -> (i32, i32) {
    %c0_i32 = arith.constant 0 : i32
    %c0_i32_0 = arith.constant 0 : i32
    %c0_i32_1 = arith.constant 0 : i32
    return %c0_i32, %c0_i32_0 : i32, i32
  }
  func.func @transform_9(%arg0: i32) -> (i32, i32, i32) {
    %c0_i32 = arith.constant 0 : i32
    %c0_i32_0 = arith.constant 0 : i32
    %c0_i32_1 = arith.constant 0 : i32
    %c0_i32_2 = arith.constant 0 : i32
    return %c0_i32, %c0_i32_0, %c0_i32_1 : i32, i32, i32
  }
  func.func @transform_10(%arg0: i32) -> (i32, i32) {
    %c0_i32 = arith.constant 0 : i32
    %c0_i32_0 = arith.constant 0 : i32
    %c0_i32_1 = arith.constant 0 : i32
    return %c0_i32, %c0_i32_0 : i32, i32
  }
  func.func @transform_11(%arg0: i32) -> (i32, i32) {
    %c0_i32 = arith.constant 0 : i32
    %c0_i32_0 = arith.constant 0 : i32
    %c0_i32_1 = arith.constant 0 : i32
    return %c0_i32, %c0_i32_0 : i32, i32
  }
  func.func @transform_12(%arg0: i32) -> (i32, i32) {
    %c0_i32 = arith.constant 0 : i32
    %c0_i32_0 = arith.constant 0 : i32
    %c0_i32_1 = arith.constant 0 : i32
    return %c0_i32, %c0_i32_0 : i32, i32
  }
  func.func @transform_13(%arg0: i32) -> (i32, i32, i32) {
    %c0_i32 = arith.constant 0 : i32
    %c0_i32_0 = arith.constant 0 : i32
    %c0_i32_1 = arith.constant 0 : i32
    %c0_i32_2 = arith.constant 0 : i32
    return %c0_i32, %c0_i32_0, %c0_i32_1 : i32, i32, i32
  }
  func.func @transform_14(%arg0: i32) -> (i32, i32) {
    %c0_i32 = arith.constant 0 : i32
    %c0_i32_0 = arith.constant 0 : i32
    %c0_i32_1 = arith.constant 0 : i32
    return %c0_i32, %c0_i32_0 : i32, i32
  }
  func.func @transform_15(%arg0: i32) -> (i32, i32) {
    %c0_i32 = arith.constant 0 : i32
    %c0_i32_0 = arith.constant 0 : i32
    %c0_i32_1 = arith.constant 0 : i32
    return %c0_i32, %c0_i32_0 : i32, i32
  }
}

</mosaic_0001>

<bundles_post_ra>
// kernel: tile.9
= control target key start
LH: loop header
LB: loop body
LE: loop exit
PB: predicated region body
PF: predicated region fallthrough
CT: control target
= control target key end

     0   :  { %s131_s10 = smov 45   ;;  %s132_s11 = smov 39   ;;  %vm3_vm0 = vcmask 23552   ;;  %vm9_vm1 = vcmask 392552   ;;  %vm15_vm2 = vcmask 367952   ;;  %vm21_vm3 = vcmask 343352   ;;  %s207_s0 = inlined_call_operand.vmem [shape: f32[16,3], index: 0, kind: input, shape index: {}]   ;;  %s208_s1 = inlined_call_operand.vmem [shape: f32[1,48], index: 1, kind: output, shape index: {}]  }
   0x1   :  { %v101_v0 = vld [vmem:[%s207_s0 + $0xf] sm:$0x1]   ;;  %v103_v1 = vld [vmem:[%s207_s0 + $0xd] sm:$0x1]   ;;  %v102_v2 = vld [vmem:[%s207_s0 + $0xe] sm:$0x1]  }
   0x2   :  { %7 = vrot.lane.b32.xlu0 %v101_v0, %s131_s10  ;;  %19 = vrot.lane.b32.xlu1 %v103_v1, %s132_s11  ;;  %v104_v3 = vld [vmem:[%s207_s0 + $0xc] sm:$0x1]   ;;  %s133_s16 = smov 42   ;;  %s134_s17 = smov 36   ;;  %v105_v4 = vld [vmem:[%s207_s0 + $0xb] sm:$0x1]  }
   0x3   :  { %v106_v5 = vld [vmem:[%s207_s0 + $0xa] sm:$0x1]   ;;  %v2_v6 = vld [vmem:[%s207_s0] sm:$0x1]   ;;  %s135_s24 = smov 33   ;;  %s136_s25 = smov 30  }
   0x4   :  { %4 = vst.msk [vmem:[#allocation0] sm:$0x1] %vm3_vm0, %v2_v6   ;;  %v107_v7 = vld [vmem:[%s207_s0 + $0x9] sm:$0x1]   ;;  %v108_v8 = vld [vmem:[%s207_s0 + $0x8] sm:$0x1]  }
   0x5   :  { %s137_s30 = smov 27   ;;  %s138_s2 = smov 24   ;;  %v109_v9 = vld [vmem:[%s207_s0 + $0x7] sm:$0x1]   ;;  %v110_v10 = vld [vmem:[%s207_s0 + $0x6] sm:$0x1]  }
   0x6   :  { %13 = vrot.lane.b32.xlu0 %v102_v2, %s133_s16  ;;  %25 = vrot.lane.b32.xlu1 %v104_v3, %s134_s17  ;;  %s139_s7 = smov 21   ;;  %s140_s8 = smov 18   ;;  %v111_v11 = vld [vmem:[%s207_s0 + $0x5] sm:$0x1]   ;;  %v112_v12 = vld [vmem:[%s207_s0 + $0x4] sm:$0x1]  }
   0x7   :  { %s141_s13 = smov 15   ;;  %s142_s14 = smov 12   ;;  %v113_v13 = vld [vmem:[%s207_s0 + $0x3] sm:$0x1]   ;;  %v114_v14 = vld [vmem:[%s207_s0 + $0x2] sm:$0x1]  }
   0x8   :  { %s143_s19 = smov 9   ;;  %s144_s20 = smov 6   ;;  %v115_v15 = vld [vmem:[%s207_s0 + $0x1] sm:$0x1]   ;;  %vm27_vm4 = vcmask 318752   ;;  %vm33_vm5 = vcmask 294152  }
   0x9   :  { %s145_s0 = smov 3   ;;  %vm39_vm6 = vcmask 269552   ;;  %vm45_vm7 = vcmask 244952   ;;  %vm51_vm8 = vcmask 220352   ;;  %vm57_vm9 = vcmask 195752  }
   0xa   :  { %31 = vrot.lane.b32.xlu0 %v105_v4, %s135_s24  ;;  %37 = vrot.lane.b32.xlu1 %v106_v5, %s136_s25  ;;  %vm63_vm10 = vcmask 171152   ;;  %vm69_vm11 = vcmask 146552   ;;  %vm75_vm12 = vcmask 121952   ;;  %vm81_vm13 = vcmask 97352  }
   0xb   :  { %vm87_vm14 = vcmask 72752   ;;  %vm93_vm15 = vcmask 48152  }
   0xe   :  { %43 = vrot.lane.b32.xlu0 %v107_v7, %s137_s30  ;;  %49 = vrot.lane.b32.xlu1 %v108_v8, %s138_s2 }
  0x12   :  { %55 = vrot.lane.b32.xlu0 %v109_v9, %s139_s7  ;;  %61 = vrot.lane.b32.xlu1 %v110_v10, %s140_s8 }
  0x16   :  { %67 = vrot.lane.b32.xlu0 %v111_v11, %s141_s13  ;;  %73 = vrot.lane.b32.xlu1 %v112_v12, %s142_s14 }
  0x1a   :  { %79 = vrot.lane.b32.xlu0 %v113_v13, %s143_s19  ;;  %85 = vrot.lane.b32.xlu1 %v114_v14, %s144_s20 }
  0x1e   :  { %91 = vrot.lane.b32.xlu0 %v115_v15, %s145_s0 }
  0x74   :  { %v8_v16 = vpop.permute.xlu0 %7   ;;  %v20_v17 = vpop.permute.xlu1 %19  }
  0x75   :  { %10 = vst.msk [vmem:[#allocation0] sm:$0x1] %vm9_vm1, %v8_v16  }
  0x78   :  { %v14_v18 = vpop.permute.xlu0 %13   ;;  %v26_v19 = vpop.permute.xlu1 %25  }
  0x79   :  { %16 = vst.msk [vmem:[#allocation0] sm:$0x1] %vm15_vm2, %v14_v18  }
  0x7a   :  { %22 = vst.msk [vmem:[#allocation0] sm:$0x1] %vm21_vm3, %v20_v17  }
  0x7b   :  { %28 = vst.msk [vmem:[#allocation0] sm:$0x1] %vm27_vm4, %v26_v19  }
  0x7c   :  { %v32_v20 = vpop.permute.xlu0 %31   ;;  %v38_v21 = vpop.permute.xlu1 %37  }
  0x7d   :  { %34 = vst.msk [vmem:[#allocation0] sm:$0x1] %vm33_vm5, %v32_v20  }
  0x7e   :  { %40 = vst.msk [vmem:[#allocation0] sm:$0x1] %vm39_vm6, %v38_v21  }
  0x80   :  { %v44_v22 = vpop.permute.xlu0 %43   ;;  %v50_v23 = vpop.permute.xlu1 %49  }
  0x81   :  { %46 = vst.msk [vmem:[#allocation0] sm:$0x1] %vm45_vm7, %v44_v22  }
  0x82   :  { %52 = vst.msk [vmem:[#allocation0] sm:$0x1] %vm51_vm8, %v50_v23  }
  0x84   :  { %v56_v24 = vpop.permute.xlu0 %55   ;;  %v62_v25 = vpop.permute.xlu1 %61  }
  0x85   :  { %58 = vst.msk [vmem:[#allocation0] sm:$0x1] %vm57_vm9, %v56_v24  }
  0x86   :  { %64 = vst.msk [vmem:[#allocation0] sm:$0x1] %vm63_vm10, %v62_v25  }
  0x88   :  { %v68_v26 = vpop.permute.xlu0 %67   ;;  %v74_v27 = vpop.permute.xlu1 %73  }
  0x89   :  { %70 = vst.msk [vmem:[#allocation0] sm:$0x1] %vm69_vm11, %v68_v26  }
  0x8a   :  { %76 = vst.msk [vmem:[#allocation0] sm:$0x1] %vm75_vm12, %v74_v27  }
  0x8c   :  { %v80_v28 = vpop.permute.xlu0 %79   ;;  %v86_v29 = vpop.permute.xlu1 %85  }
  0x8d   :  { %82 = vst.msk [vmem:[#allocation0] sm:$0x1] %vm81_vm13, %v80_v28  }
  0x8e   :  { %88 = vst.msk [vmem:[#allocation0] sm:$0x1] %vm87_vm14, %v86_v29  }
  0x90   :  { %v92_v30 = vpop.permute.xlu0 %91  }
  0x91   :  { %94 = vst.msk [vmem:[#allocation0] sm:$0x1] %vm93_vm15, %v92_v30  }
  0x98   :  { %v98_v31 = vld [vmem:[#allocation0] sm:$0x1] }
  0x99   :  { %100 = vst [vmem:[%s208_s1] sm:$0x1] %v98_v31 }

// kernel: tile.8
= control target key start
LH: loop header
LB: loop body
LE: loop exit
PB: predicated region body
PF: predicated region fallthrough
CT: control target
= control target key end

     0   :  { %2 = vsyncpa [#allocation1], 0  ;;  %s47_s6 = smov [#allocation0]   ;;  %s76_s0 = inlined_call_operand.hbm [shape: f32[3], index: 0, kind: input, shape index: {}]   ;;  %s77_s1 = inlined_call_operand.vmem [shape: f32[16,3], index: 1, kind: output, shape index: {}]  }
   0x1   :  { %s9_s7 = sshll.u32 %s47_s6, 4  ;;  %s23_s10 = scalar_lea.hbm %s76_s0, 16  ;;  %s10_s7 = int_to_ptr.vmem [resolvable:$true] %s9_s7 }
   0x2   :  { %p24_p0 = scmp.ne.s32.totalorder %s76_s0, %s23_s10  ;;  %p27_p1 = scmp.lt.u32.totalorder %s23_s10, %s76_s0 }
   0x4   :  { %p29_p2 = pnand %p27_p1, %p24_p0 }
   0x6   :  { %32 = shalt.err (!%p29_p2)
}
   0x7   :  { %s33_s15 = scalar_lea.vmem %s10_s7, 16  ;;  %s37_s16 = scalar_lea.vmem %s10_s7, 32 }
   0x8   :  { %p34_p3 = scmp.ne.s32.totalorder %s10_s7, %s33_s15  ;;  %p38_p4 = scmp.lt.s32.totalorder %s10_s7, %s10_s7 }
   0x9   :  { %p39_p5 = scmp.lt.s32.totalorder %s37_s16, %s33_s15 }
   0xb   :  { %p40_p6 = por %p39_p5, %p38_p4 }
   0xd   :  { %p41_p7 = pnand %p40_p6, %p34_p3 }
   0xf   :  { %44 = shalt.err (!%p41_p7)
}
  0x10   :  { %12 = dma.hbm_to_vmem [thread:$0]  %s76_s0, 16, %s10_s7, [#allocation1]  }
  0x11   :  { %45 = dma.done.wait [#allocation1], 16  }
  0x12   :  { %46 = vsyncadd [#allocation1], 4294967280  ;;  %v16_v0 = vld [vmem:[#allocation0] ss:$0 sm:$0xff] }
  0x13   :  { %17 = vst [vmem:[%s77_s1] sm:$0xff] %v16_v0  ;;  %21 = vst [vmem:[%s77_s1 + $0x8] sm:$0xff] %v16_v0 }
  0x14   :  { %20 = vsyncpa [#allocation1], 1 }

// kernel: generator_forward.1
= control target key start
LH: loop header
LB: loop body
LE: loop exit
PB: predicated region body
PF: predicated region fallthrough
CT: control target
= control target key end

     0   :  { %v12823_v3 = vmov 0.0   ;;  %vm199_vm0 = vcmask 261120   ;;  %vm2215_vm1 = vcmask 523264   ;;  %vm9660_vm2 = vcmask 392192   ;;  %s19631_s1 = inlined_call_operand.vmem [shape: f32[32,2048], index: 1, kind: input, shape index: {}]   ;;  %s19632_s0 = inlined_call_operand.vmem [shape: f32[8,32], index: 0, kind: input, shape index: {}]   ;;  %s19633_s5 = inlined_call_operand.vmem [shape: f32[4,128,64], index: 5, kind: input, shape index: {}]   ;;  %s19634_s2 = inlined_call_operand.vmem [shape: f32[1,2048], index: 2, kind: input, shape index: {}]   ;;  %s19635_s3 = inlined_call_operand.vmem [shape: f32[1,2048], index: 3, kind: input, shape index: {}]   ;;  %s19636_s4 = inlined_call_operand.vmem [shape: f32[1,2048], index: 4, kind: input, shape index: {}]   ;;  %s19637_s6 = inlined_call_operand.vmem [shape: f32[1,64], index: 6, kind: input, shape index: {}]   ;;  %s19638_s9 = inlined_call_operand.vmem [shape: f32[4,64,32], index: 9, kind: input, shape index: {}]   ;;  %s19639_s7 = inlined_call_operand.vmem [shape: f32[1,64], index: 7, kind: input, shape index: {}]   ;;  %s19640_s8 = inlined_call_operand.vmem [shape: f32[1,64], index: 8, kind: input, shape index: {}]   ;;  %s19641_s10 = inlined_call_operand.vmem [shape: f32[1,32], index: 10, kind: input, shape index: {}]   ;;  %s19642_s13 = inlined_call_operand.vmem [shape: f32[4,32,48], index: 13, kind: input, shape index: {}]   ;;  %s19643_s11 = inlined_call_operand.vmem [shape: f32[1,32], index: 11, kind: input, shape index: {}]   ;;  %s19644_s12 = inlined_call_operand.vmem [shape: f32[1,32], index: 12, kind: input, shape index: {}]   ;;  %s19645_s14 = inlined_call_operand.vmem [shape: f32[1,48], index: 14, kind: input, shape index: {}]   ;;  %s19646_s15 = inlined_call_operand.vmem [shape: f32[512,48], index: 15, kind: output, shape index: {}]  }
   0x1   :  { %v52_v0 = vld [vmem:[%s19631_s1 + $0x8] sm:$0xff]  ;;  %v54_v2 = vld [vmem:[%s19631_s1 + $0x18] sm:$0xff]  ;;  %267 = vmatprep.mubr.f32.mxu0 %v12823_v3  ;;  %338 = vmatprep.mubr.f32.mxu1 %v12823_v3  ;;  %v51_v6 = vld [vmem:[%s19631_s1] sm:$0xff] }
   0x2   :  { %v68_v1 = vld [vmem:[%s19631_s1 + $0x88] sm:$0xff]  ;;  %v70_v5 = vld [vmem:[%s19631_s1 + $0x98] sm:$0xff]  ;;  %v67_v7 = vld [vmem:[%s19631_s1 + $0x80] sm:$0xff] }
   0x3   :  { %v12112_v4 = vpack.c.bf16 %v68_v1, %v52_v0  ;;  %v12120_v8 = vpack.c.bf16 %v70_v5, %v54_v2  ;;  %v12114_v9 = vpack.c.bf16 %v67_v7, %v51_v6  ;;  %v53_v10 = vld [vmem:[%s19631_s1 + $0x10] sm:$0xff]  ;;  %v84_v12 = vld [vmem:[%s19631_s1 + $0x108] sm:$0xff]  ;;  %v86_v15 = vld [vmem:[%s19631_s1 + $0x118] sm:$0xff] }
   0x4   :  { %v69_v11 = vld [vmem:[%s19631_s1 + $0x90] sm:$0xff]  ;;  %v100_v14 = vld [vmem:[%s19631_s1 + $0x188] sm:$0xff]  ;;  %v102_v16 = vld [vmem:[%s19631_s1 + $0x198] sm:$0xff] }
   0x5   :  { %12113 = vmatprep.subr.bf16.mxu0 %v12112_v4  ;;  %v12122_v13 = vpack.c.bf16 %v69_v11, %v53_v10  ;;  %12121 = vmatprep.subr.bf16.mxu1 %v12120_v8  ;;  %v12116_v17 = vpack.c.bf16 %v100_v14, %v84_v12  ;;  %v12124_v18 = vpack.c.bf16 %v102_v16, %v86_v15  ;;  %v83_v19 = vld [vmem:[%s19631_s1 + $0x100] sm:$0xff]  ;;  %v85_v21 = vld [vmem:[%s19631_s1 + $0x110] sm:$0xff]  ;;  %v56_v24 = vld [vmem:[%s19631_s1 + $0x28] sm:$0xff] }
   0x6   :  { %12115 = vmatpush1.bf16.msra.mxu0 %v12114_v9  ;;  %v99_v20 = vld [vmem:[%s19631_s1 + $0x180] sm:$0xff]  ;;  %v101_v23 = vld [vmem:[%s19631_s1 + $0x190] sm:$0xff]  ;;  %v72_v27 = vld [vmem:[%s19631_s1 + $0xa8] sm:$0xff] }
   0x7   :  { %12123 = vmatpush1.bf16.msra.mxu1 %v12122_v13  ;;  %v12118_v22 = vpack.c.bf16 %v99_v20, %v83_v19  ;;  %12117 = vmatprep.subr.bf16.mxu0 %v12116_v17  ;;  %v12126_v25 = vpack.c.bf16 %v101_v23, %v85_v21  ;;  %v12961_v26 = vld [vmem:[%s19632_s0] sm:$0xff]  ;;  %v58_v28 = vld [vmem:[%s19631_s1 + $0x38] sm:$0xff]  ;;  %v12128_v30 = vpack.c.bf16 %v72_v27, %v56_v24  ;;  %v57_v34 = vld [vmem:[%s19631_s1 + $0x30] sm:$0xff] }
   0x8   :  { %12125 = vmatprep.subr.bf16.mxu1 %v12124_v18  ;;  %v74_v29 = vld [vmem:[%s19631_s1 + $0xb8] sm:$0xff]  ;;  %v55_v32 = vld [vmem:[%s19631_s1 + $0x20] sm:$0xff]  ;;  %v73_v36 = vld [vmem:[%s19631_s1 + $0xb0] sm:$0xff] }
   0x9   :  { %v12136_v31 = vpack.c.bf16 %v74_v29, %v58_v28  ;;  %v71_v33 = vld [vmem:[%s19631_s1 + $0xa0] sm:$0xff]  ;;  %v88_v37 = vld [vmem:[%s19631_s1 + $0x128] sm:$0xff]  ;;  %v12138_v39 = vpack.c.bf16 %v73_v36, %v57_v34  ;;  %v90_v41 = vld [vmem:[%s19631_s1 + $0x138] sm:$0xff] }
   0xa   :  { %12119 = vmatpush1.bf16.msra.mxu0 %v12118_v22  ;;  %v12130_v35 = vpack.c.bf16 %v71_v33, %v55_v32  ;;  %v104_v38 = vld [vmem:[%s19631_s1 + $0x1a8] sm:$0xff]  ;;  %v106_v42 = vld [vmem:[%s19631_s1 + $0x1b8] sm:$0xff]  ;;  %v87_v43 = vld [vmem:[%s19631_s1 + $0x120] sm:$0xff] }
   0xb   :  { %12127 = vmatpush1.bf16.msra.mxu1 %v12126_v25  ;;  %12129 = vmatprep.subr.bf16.mxu0 %v12128_v30  ;;  %v12132_v40 = vpack.c.bf16 %v104_v38, %v88_v37  ;;  %v12140_v44 = vpack.c.bf16 %v106_v42, %v90_v41  ;;  %v103_v45 = vld [vmem:[%s19631_s1 + $0x1a0] sm:$0xff]  ;;  %v89_v46 = vld [vmem:[%s19631_s1 + $0x130] sm:$0xff]  ;;  %v60_v48 = vld [vmem:[%s19631_s1 + $0x48] sm:$0xff] }
   0xc   :  { %12137 = vmatprep.subr.bf16.mxu1 %v12136_v31  ;;  %v105_v47 = vld [vmem:[%s19631_s1 + $0x1b0] sm:$0xff]  ;;  %v76_v49 = vld [vmem:[%s19631_s1 + $0xc8] sm:$0xff]  ;;  %v62_v50 = vld [vmem:[%s19631_s1 + $0x58] sm:$0xff]  ;;  %v12134_v51 = vpack.c.bf16 %v103_v45, %v87_v43 }
   0xd   :  { %9729 = vmatmul.mubr.msk.f32.vlgmr.msra.gmra.mrb[0].mxu0 %vm199_vm0, %v12961_v26  ;;  %v78_v52 = vld [vmem:[%s19631_s1 + $0xd8] sm:$0xff]  ;;  %v12142_v53 = vpack.c.bf16 %v105_v47, %v89_v46  ;;  %v12144_v54 = vpack.c.bf16 %v76_v49, %v60_v48  ;;  %v59_v55 = vld [vmem:[%s19631_s1 + $0x40] sm:$0xff]  ;;  %v61_v57 = vld [vmem:[%s19631_s1 + $0x50] sm:$0xff] }
   0xe   :  { %9730 = vmatmul.mubr.msk.f32.vlgmr.msra.gmra.mrb[0].mxu1 %vm199_vm0, %v12961_v26  ;;  %12131 = vmatpush1.bf16.msra.mxu0 %v12130_v35  ;;  %v75_v56 = vld [vmem:[%s19631_s1 + $0xc0] sm:$0xff]  ;;  %v12152_v58 = vpack.c.bf16 %v78_v52, %v62_v50  ;;  %v77_v59 = vld [vmem:[%s19631_s1 + $0xd0] sm:$0xff]  ;;  %v92_v60 = vld [vmem:[%s19631_s1 + $0x148] sm:$0xff] }
   0xf   :  { %12139 = vmatpush1.bf16.msra.mxu1 %v12138_v39  ;;  %12133 = vmatprep.subr.bf16.mxu0 %v12132_v40  ;;  %v108_v61 = vld [vmem:[%s19631_s1 + $0x1c8] sm:$0xff]  ;;  %v94_v62 = vld [vmem:[%s19631_s1 + $0x158] sm:$0xff]  ;;  %v12146_v0 = vpack.c.bf16 %v75_v56, %v59_v55  ;;  %v12154_v1 = vpack.c.bf16 %v77_v59, %v61_v57  ;;  %v91_v4 = vld [vmem:[%s19631_s1 + $0x140] sm:$0xff] }
  0x10   :  { %12141 = vmatprep.subr.bf16.mxu1 %v12140_v44  ;;  %409 = vmatprep.mubr.f32.mxu0 %v12823_v3  ;;  %v110_v63 = vld [vmem:[%s19631_s1 + $0x1d8] sm:$0xff]  ;;  %v12148_v2 = vpack.c.bf16 %v108_v61, %v92_v60  ;;  %v107_v5 = vld [vmem:[%s19631_s1 + $0x1c0] sm:$0xff]  ;;  %v93_v6 = vld [vmem:[%s19631_s1 + $0x150] sm:$0xff] }
  0x11   :  { %480 = vmatprep.mubr.f32.mxu1 %v12823_v3  ;;  %v12156_v7 = vpack.c.bf16 %v110_v63, %v94_v62  ;;  %v109_v8 = vld [vmem:[%s19631_s1 + $0x1d0] sm:$0xff]  ;;  %v64_v9 = vld [vmem:[%s19631_s1 + $0x68] sm:$0xff]  ;;  %v66_v11 = vld [vmem:[%s19631_s1 + $0x78] sm:$0xff]  ;;  %v12150_v13 = vpack.c.bf16 %v107_v5, %v91_v4 }
  0x12   :  { %12135 = vmatpush1.bf16.msra.mxu0 %v12134_v51  ;;  %v80_v10 = vld [vmem:[%s19631_s1 + $0xe8] sm:$0xff]  ;;  %v82_v12 = vld [vmem:[%s19631_s1 + $0xf8] sm:$0xff]  ;;  %v12158_v14 = vpack.c.bf16 %v109_v8, %v93_v6  ;;  %v63_v16 = vld [vmem:[%s19631_s1 + $0x60] sm:$0xff] }
  0x13   :  { %12143 = vmatpush1.bf16.msra.mxu1 %v12142_v53  ;;  %12145 = vmatprep.subr.bf16.mxu0 %v12144_v54  ;;  %v12160_v15 = vpack.c.bf16 %v80_v10, %v64_v9  ;;  %v79_v17 = vld [vmem:[%s19631_s1 + $0xe0] sm:$0xff]  ;;  %v65_v18 = vld [vmem:[%s19631_s1 + $0x70] sm:$0xff]  ;;  %v12168_v19 = vpack.c.bf16 %v82_v12, %v66_v11  ;;  %v96_v21 = vld [vmem:[%s19631_s1 + $0x168] sm:$0xff] }
  0x14   :  { %12153 = vmatprep.subr.bf16.mxu1 %v12152_v58  ;;  %v81_v20 = vld [vmem:[%s19631_s1 + $0xf0] sm:$0xff]  ;;  %v112_v22 = vld [vmem:[%s19631_s1 + $0x1e8] sm:$0xff]  ;;  %v98_v23 = vld [vmem:[%s19631_s1 + $0x178] sm:$0xff]  ;;  %v12162_v25 = vpack.c.bf16 %v79_v17, %v63_v16 }
  0x15   :  { %9731 = vmatmul.mubr.msk.f32.vlgmr.msra.gmra.mrb[2].mxu0 %vm199_vm0, %v12961_v26  ;;  %v114_v24 = vld [vmem:[%s19631_s1 + $0x1f8] sm:$0xff]  ;;  %v12170_v27 = vpack.c.bf16 %v81_v20, %v65_v18  ;;  %v12164_v28 = vpack.c.bf16 %v112_v22, %v96_v21  ;;  %v95_v29 = vld [vmem:[%s19631_s1 + $0x160] sm:$0xff]  ;;  %v97_v32 = vld [vmem:[%s19631_s1 + $0x170] sm:$0xff] }
  0x16   :  { %9732 = vmatmul.mubr.msk.f32.vlgmr.msra.gmra.mrb[2].mxu1 %vm199_vm0, %v12961_v26  ;;  %12147 = vmatpush1.bf16.msra.mxu0 %v12146_v0  ;;  %v111_v30 = vld [vmem:[%s19631_s1 + $0x1e0] sm:$0xff]  ;;  %v12172_v31 = vpack.c.bf16 %v114_v24, %v98_v23  ;;  %v113_v33 = vld [vmem:[%s19631_s1 + $0x1f0] sm:$0xff]  ;;  %v1560_v37 = vld [vmem:[%s19633_s5 + $0x8] sm:$0xff] }
  0x17   :  { %12155 = vmatpush1.bf16.msra.mxu1 %v12154_v1  ;;  %12149 = vmatprep.subr.bf16.mxu0 %v12148_v2  ;;  %v12166_v34 = vpack.c.bf16 %v111_v30, %v95_v29  ;;  %v12174_v35 = vpack.c.bf16 %v113_v33, %v97_v32  ;;  %v1559_v36 = vld [vmem:[%s19633_s5] sm:$0xff]  ;;  %v9739_v39 = vld [vmem:[%s19633_s5 + $0x88] sm:$0xff]  ;;  %v1561_v41 = vld [vmem:[%s19633_s5 + $0x10] sm:$0xff] }
  0x18   :  { %12157 = vmatprep.subr.bf16.mxu1 %v12156_v7  ;;  %551 = vmatprep.mubr.f32.mxu0 %v12823_v3  ;;  %v12176_v38 = vpack.c.bf16 %v1560_v37, %v1559_v36  ;;  %v1562_v42 = vld [vmem:[%s19633_s5 + $0x18] sm:$0xff]  ;;  %v9740_v43 = vld [vmem:[%s19633_s5 + $0x90] sm:$0xff]  ;;  %v1563_v48 = vld [vmem:[%s19633_s5 + $0x20] sm:$0xff] }
  0x19   :  { %622 = vmatprep.mubr.f32.mxu1 %v12823_v3  ;;  %v12180_v44 = vpack.c.bf16 %v1562_v42, %v1561_v41  ;;  %v9741_v45 = vld [vmem:[%s19633_s5 + $0x98] sm:$0xff]  ;;  %v1564_v49 = vld [vmem:[%s19633_s5 + $0x28] sm:$0xff]  ;;  %v9742_v50 = vld [vmem:[%s19633_s5 + $0xa0] sm:$0xff] }
  0x1a   :  { %12151 = vmatpush1.bf16.msra.mxu0 %v12150_v13  ;;  %v12212_v46 = vpack.c.bf16 %v9741_v45, %v9740_v43  ;;  %v12184_v51 = vpack.c.bf16 %v1564_v49, %v1563_v48  ;;  %v9743_v52 = vld [vmem:[%s19633_s5 + $0xa8] sm:$0xff]  ;;  %v1565_v55 = vld [vmem:[%s19633_s5 + $0x30] sm:$0xff]  ;;  %v1566_v56 = vld [vmem:[%s19633_s5 + $0x38] sm:$0xff] }
  0x1b   :  { %12159 = vmatpush1.bf16.msra.mxu1 %v12158_v14  ;;  %12161 = vmatprep.subr.bf16.mxu0 %v12160_v15  ;;  %v12216_v53 = vpack.c.bf16 %v9743_v52, %v9742_v50  ;;  %v9744_v57 = vld [vmem:[%s19633_s5 + $0xb0] sm:$0xff]  ;;  %v13179_v58 = vld [vmem:[%s19634_s2] sm:$0xff]  ;;  %v12188_v61 = vpack.c.bf16 %v1566_v56, %v1565_v55  ;;  %v9745_v62 = vld [vmem:[%s19633_s5 + $0xb8] sm:$0xff] }
  0x1c   :  { %12169 = vmatprep.subr.bf16.mxu1 %v12168_v19  ;;  %v12220_v0 = vpack.c.bf16 %v9745_v62, %v9744_v57  ;;  %v1567_v5 = vld [vmem:[%s19633_s5 + $0x40] sm:$0xff]  ;;  %v1568_v6 = vld [vmem:[%s19633_s5 + $0x48] sm:$0xff]  ;;  %v1569_v23 = vld [vmem:[%s19633_s5 + $0x50] sm:$0xff] }
  0x1d   :  { %9733 = vmatmul.mubr.msk.f32.vlgmr.msra.gmra.mrb[4].mxu0 %vm199_vm0, %v12961_v26  ;;  %v9746_v7 = vld [vmem:[%s19633_s5 + $0xc0] sm:$0xff]  ;;  %v12192_v10 = vpack.c.bf16 %v1568_v6, %v1567_v5  ;;  %v9747_v11 = vld [vmem:[%s19633_s5 + $0xc8] sm:$0xff]  ;;  %v1570_v24 = vld [vmem:[%s19633_s5 + $0x58] sm:$0xff] }
  0x1e   :  { %9734 = vmatmul.mubr.msk.f32.vlgmr.msra.gmra.mrb[4].mxu1 %vm199_vm0, %v12961_v26  ;;  %12163 = vmatpush1.bf16.msra.mxu0 %v12162_v25  ;;  %v12224_v14 = vpack.c.bf16 %v9747_v11, %v9746_v7  ;;  %v13228_v17 = vld [vmem:[%s19634_s2 + $0x8] sm:$0xff]  ;;  %v9748_v25 = vld [vmem:[%s19633_s5 + $0xd0] sm:$0xff]  ;;  %v12196_v32 = vpack.c.bf16 %v1570_v24, %v1569_v23  ;;  %v9749_v33 = vld [vmem:[%s19633_s5 + $0xd8] sm:$0xff] }
  0x1f   :  { %12171 = vmatpush1.bf16.msra.mxu1 %v12170_v27  ;;  %12165 = vmatprep.subr.bf16.mxu0 %v12164_v28  ;;  %v12824_v27 = vmov 1966171168   ;;  %v12228_v37 = vpack.c.bf16 %v9749_v33, %v9748_v25  ;;  %v1572_v45 = vld [vmem:[%s19633_s5 + $0x68] sm:$0xff] }
  0x20   :  { %12173 = vmatprep.subr.bf16.mxu1 %v12172_v31  ;;  %693 = vmatprep.mubr.f32.mxu0 %v12823_v3  ;;  %v13245_v28 = vunpack.c.l.s4 %v12824_v27  ;;  %v9751_v52 = vld [vmem:[%s19633_s5 + $0xe8] sm:$0xff] }
  0x21   :  { %764 = vmatprep.mubr.f32.mxu1 %v12823_v3  ;;  %v9738_v3 = vld [vmem:[%s19633_s5 + $0x80] sm:$0xff] }
  0x22   :  { %12167 = vmatpush1.bf16.msra.mxu0 %v12166_v34  ;;  %v12208_v40 = vpack.c.bf16 %v9739_v39, %v9738_v3 }
  0x23   :  { %12175 = vmatpush1.bf16.msra.mxu1 %v12174_v35  ;;  %12177 = vmatprep.subr.bf16.mxu0 %v12176_v38 }
  0x24   :  { %12209 = vmatprep.subr.bf16.mxu1 %v12208_v40 }
  0x25   :  { %9735 = vmatmul.mubr.msk.f32.vlgmr.msra.gmra.mrb[6].mxu0 %vm199_vm0, %v12961_v26 }
  0x26   :  { %9736 = vmatmul.mubr.msk.f32.vlgmr.msra.gmra.mrb[6].mxu1 %vm199_vm0, %v12961_v26  ;;  %v119_v26 = vlaneseq  ;;  %12179 = vmatpush3.bf16.msra.mxu0 %v12176_v38 }
  0x27   :  { %12211 = vmatpush3.bf16.msra.mxu1 %v12208_v40  ;;  %12181 = vmatprep.subr.bf16.mxu0 %v12180_v44 }
  0x28   :  { %v13150_v47 = vshrl.u32 %v119_v26, 7  ;;  %12213 = vmatprep.subr.bf16.mxu1 %v12212_v46 }
  0x2a   :  { %12183 = vmatpush3.bf16.msra.mxu0 %v12180_v44  ;;  %v13165_v54 = vsub.s32 0, %v13150_v47  ;;  %v13182_v59 = vsub.s32 2, %v13150_v47  ;;  %v13185_v60 = vsub.s32 1, %v13150_v47  ;;  %v13191_v63 = vsub.s32 3, %v13150_v47  ;;  %v1571_v44 = vld [vmem:[%s19633_s5 + $0x60] sm:$0xff] }
  0x2b   :  { %12215 = vmatpush3.bf16.msra.mxu1 %v12212_v46  ;;  %12185 = vmatprep.subr.bf16.mxu0 %v12184_v51  ;;  %v13196_v2 = vsub.s32 4, %v13150_v47  ;;  %v13199_v4 = vsub.s32 6, %v13150_v47  ;;  %v13220_v13 = vsub.s32 5, %v13150_v47  ;;  %v13223_v16 = vsub.s32 7, %v13150_v47  ;;  %v9750_v46 = vld [vmem:[%s19633_s5 + $0xe0] sm:$0xff] }
  0x2c   :  { %20244 = vst [vmem:[#allocation2_spill] sm:$0xff] %v13165_v54  ;;  %12217 = vmatprep.subr.bf16.mxu1 %v12216_v53  ;;  %v122_v1 = vrot.slane %v13179_v58, %v13165_v54  ;;  %v130_v8 = vrot.slane %v13179_v58, %v13182_v59  ;;  %v126_v9 = vrot.slane %v13179_v58, %v13185_v60 }
  0x2d   :  { %v134_v12 = vrot.slane %v13179_v58, %v13191_v63  ;;  %v138_v21 = vrot.slane %v13179_v58, %v13196_v2  ;;  %v146_v22 = vrot.slane %v13179_v58, %v13199_v4  ;;  %v142_v36 = vrot.slane %v13179_v58, %v13220_v13 }
  0x2e   :  { %12187 = vmatpush3.bf16.msra.mxu0 %v12184_v51  ;;  %v150_v39 = vrot.slane %v13179_v58, %v13223_v16  ;;  %v12200_v51 = vpack.c.bf16 %v1572_v45, %v1571_v44  ;;  %v12232_v57 = vpack.c.bf16 %v9751_v52, %v9750_v46 }
  0x2f   :  { %12219 = vmatpush3.bf16.msra.mxu1 %v12216_v53  ;;  %12189 = vmatprep.subr.bf16.mxu0 %v12188_v61 }
  0x30   :  { %12221 = vmatprep.subr.bf16.mxu1 %v12220_v0 }
  0x32   :  { %12191 = vmatpush3.bf16.msra.mxu0 %v12188_v61 }
  0x33   :  { %12223 = vmatpush3.bf16.msra.mxu1 %v12220_v0  ;;  %12193 = vmatprep.subr.bf16.mxu0 %v12192_v10 }
  0x34   :  { %12225 = vmatprep.subr.bf16.mxu1 %v12224_v14 }
  0x36   :  { %12195 = vmatpush3.bf16.msra.mxu0 %v12192_v10 }
  0x37   :  { %12227 = vmatpush3.bf16.msra.mxu1 %v12224_v14  ;;  %12197 = vmatprep.subr.bf16.mxu0 %v12196_v32 }
  0x38   :  { %12229 = vmatprep.subr.bf16.mxu1 %v12228_v37 }
  0x3a   :  { %12199 = vmatpush3.bf16.msra.mxu0 %v12196_v32 }
  0x3b   :  { %12231 = vmatpush3.bf16.msra.mxu1 %v12228_v37  ;;  %12201 = vmatprep.subr.bf16.mxu0 %v12200_v51 }
  0x3c   :  { %12233 = vmatprep.subr.bf16.mxu1 %v12232_v57 }
  0x3e   :  { %12203 = vmatpush3.bf16.msra.mxu0 %v12200_v51 }
  0x3f   :  { %12235 = vmatpush3.bf16.msra.mxu1 %v12232_v57 }
  0xe0   :  { %v269_v15 = vpop.f32.mrb[0].mxu0 }
  0xe1   :  { %v13230_v18 = vadd.f32 %v269_v15, %v122_v1  ;;  %v340_v19 = vpop.f32.mrb[0].mxu1  ;;  %v271_v20 = vpop.f32.mrb[1].mxu0 }
  0xe2   :  { %v13247_v29 = vadd.f32 %v340_v19, %v130_v8  ;;  %v13249_v30 = vadd.f32 %v271_v20, %v126_v9  ;;  %v342_v31 = vpop.f32.mrb[1].mxu1 }
  0xe3   :  { %v775_v34 = vrot.slane %v13230_v18, 4  ;;  %v13255_v35 = vadd.f32 %v342_v31, %v134_v12 }
  0xe4   :  { %v787_v38 = vrot.slane %v13247_v29, 4  ;;  %v781_v3 = vrot.slane %v13249_v30, 4 }
  0xe5   :  { %20245 = vst [vmem:[#allocation3_spill] sm:$0xff] %v13255_v35  ;;  %v776_v26 = vadd.f32 %v775_v34, %v13230_v18  ;;  %v793_v41 = vrot.slane %v13255_v35, 4 }
  0xe6   :  { %v788_v49 = vadd.f32 %v787_v38, %v13247_v29  ;;  %v782_v50 = vadd.f32 %v781_v3, %v13249_v30 }
  0xe7   :  { %v777_v53 = vrot.slane %v776_v26, 2  ;;  %v794_v55 = vadd.f32 %v793_v41, %v13255_v35 }
  0xe8   :  { %v789_v58 = vrot.slane %v788_v49, 2  ;;  %v783_v61 = vrot.slane %v782_v50, 2  ;;  %v411_v62 = vpop.f32.mrb[2].mxu0 }
  0xe9   :  { %v778_v5 = vadd.f32 %v777_v53, %v776_v26  ;;  %v795_v6 = vrot.slane %v794_v55, 2  ;;  %v13293_v7 = vadd.f32 %v411_v62, %v138_v21  ;;  %v482_v8 = vpop.f32.mrb[2].mxu1  ;;  %v413_v9 = vpop.f32.mrb[3].mxu0 }
  0xea   :  { %v790_v11 = vadd.f32 %v789_v58, %v788_v49  ;;  %v784_v12 = vadd.f32 %v783_v61, %v782_v50  ;;  %v13297_v14 = vadd.f32 %v482_v8, %v146_v22  ;;  %v13299_v15 = vadd.f32 %v413_v9, %v142_v36  ;;  %v484_v19 = vpop.f32.mrb[3].mxu1 }
  0xeb   :  { %20246 = vst [vmem:[#allocation4_spill] sm:$0xff] %v13293_v7  ;;  %v779_v20 = vrot.slane %v778_v5, 1  ;;  %v796_v23 = vadd.f32 %v795_v6, %v794_v55  ;;  %v799_v21 = vrot.slane %v13293_v7, 4  ;;  %v13302_v24 = vadd.f32 %v484_v19, %v150_v39 }
  0xec   :  { %20247 = vst [vmem:[#allocation5_spill] sm:$0xff] %v13297_v14  ;;  %20248 = vst [vmem:[#allocation6_spill] sm:$0xff] %v13299_v15  ;;  %v791_v25 = vrot.slane %v790_v11, 1  ;;  %v785_v27 = vrot.slane %v784_v12, 1  ;;  %v811_v31 = vrot.slane %v13297_v14, 4  ;;  %v805_v32 = vrot.slane %v13299_v15, 4 }
  0xed   :  { %20249 = vst [vmem:[#allocation7_spill] sm:$0xff] %v13302_v24  ;;  %v780_v33 = vadd.f32 %v779_v20, %v778_v5  ;;  %v797_v34 = vrot.slane %v796_v23, 1  ;;  %v800_v22 = vadd.f32 %v799_v21, %v13293_v7  ;;  %v817_v36 = vrot.slane %v13302_v24, 4 }
  0xee   :  { %v792_v37 = vadd.f32 %v791_v25, %v790_v11  ;;  %v786_v38 = vadd.f32 %v785_v27, %v784_v12  ;;  %v812_v3 = vadd.f32 %v811_v31, %v13297_v14  ;;  %v806_v26 = vadd.f32 %v805_v32, %v13299_v15 }
  0xef   :  { %v13310_v39 = vmul.f32 0.125, %v780_v33  ;;  %v798_v41 = vadd.f32 %v797_v34, %v796_v23  ;;  %v801_v44 = vrot.slane %v800_v22, 2  ;;  %v818_v45 = vadd.f32 %v817_v36, %v13302_v24 }
  0xf0   :  { %v13313_v46 = vmul.f32 0.125, %v792_v37  ;;  %v13315_v49 = vmul.f32 0.125, %v786_v38  ;;  %v813_v50 = vrot.slane %v812_v3, 2  ;;  %v807_v51 = vrot.slane %v806_v26, 2  ;;  %v13317_v52 = vpop.f32.mrb[4].mxu0 }
  0xf1   :  { %v903_v53 = vsub.f32 %v13230_v18, %v13310_v39  ;;  %v13321_v55 = vmul.f32 0.125, %v798_v41  ;;  %v802_v57 = vadd.f32 %v801_v44, %v800_v22  ;;  %v819_v58 = vrot.slane %v818_v45, 2  ;;  %v13323_v61 = vpop.f32.mrb[4].mxu1  ;;  %v13325_v62 = vpop.f32.mrb[5].mxu0 }
  0xf2   :  { %v905_v5 = vsub.f32 %v13247_v29, %v13313_v46  ;;  %v904_v6 = vsub.f32 %v13249_v30, %v13315_v49  ;;  %v814_v8 = vadd.f32 %v813_v50, %v812_v3  ;;  %v808_v9 = vadd.f32 %v807_v51, %v806_v26  ;;  %v13331_v11 = vpop.f32.mrb[5].mxu1 }
  0xf3   :  { %v919_v12 = vmul.f32 %v903_v53, %v903_v53  ;;  %v906_v19 = vsub.f32 %v13255_v35, %v13321_v55  ;;  %v803_v20 = vrot.slane %v802_v57, 1  ;;  %v820_v23 = vadd.f32 %v819_v58, %v818_v45 }
  0xf4   :  { %v921_v21 = vmul.f32 %v905_v5, %v905_v5  ;;  %v920_v25 = vmul.f32 %v904_v6, %v904_v6  ;;  %v815_v27 = vrot.slane %v814_v8, 1  ;;  %v809_v31 = vrot.slane %v808_v9, 1 }
  0xf5   :  { %v935_v32 = vrot.slane %v919_v12, 4  ;;  %v922_v33 = vmul.f32 %v906_v19, %v906_v19  ;;  %v804_v34 = vadd.f32 %v803_v20, %v802_v57  ;;  %v821_v22 = vrot.slane %v820_v23, 1 }
  0xf6   :  { %v947_v36 = vrot.slane %v921_v21, 4  ;;  %v941_v37 = vrot.slane %v920_v25, 4  ;;  %v816_v38 = vadd.f32 %v815_v27, %v814_v8  ;;  %v810_v3 = vadd.f32 %v809_v31, %v808_v9 }
  0xf7   :  { %v936_v26 = vadd.f32 %v935_v32, %v919_v12  ;;  %v953_v41 = vrot.slane %v922_v33, 4  ;;  %v13335_v44 = vmul.f32 0.125, %v804_v34  ;;  %v822_v50 = vadd.f32 %v821_v22, %v820_v23 }
  0xf8   :  { %v948_v51 = vadd.f32 %v947_v36, %v921_v21  ;;  %v942_v53 = vadd.f32 %v941_v37, %v920_v25  ;;  %v13337_v45 = vmul.f32 0.125, %v816_v38  ;;  %v13339_v58 = vmul.f32 0.125, %v810_v3  ;;  %v13341_v5 = vpop.f32.mrb[6].mxu0 }
  0xf9   :  { %v937_v6 = vrot.slane %v936_v26, 2  ;;  %v954_v57 = vadd.f32 %v953_v41, %v922_v33  ;;  %v907_v19 = vsub.f32 %v13293_v7, %v13335_v44  ;;  %v13345_v8 = vmul.f32 0.125, %v822_v50  ;;  %v13347_v9 = vpop.f32.mrb[6].mxu1  ;;  %v13349_v12 = vpop.f32.mrb[7].mxu0 }
  0xfa   :  { %v949_v20 = vrot.slane %v948_v51, 2  ;;  %v943_v23 = vrot.slane %v942_v53, 2  ;;  %v909_v21 = vsub.f32 %v13297_v14, %v13337_v45  ;;  %v908_v25 = vsub.f32 %v13299_v15, %v13339_v58  ;;  %v13355_v27 = vpop.f32.mrb[7].mxu1 }
  0xfb   :  { %v938_v31 = vadd.f32 %v937_v6, %v936_v26  ;;  %v955_v32 = vrot.slane %v954_v57, 2  ;;  %v923_v33 = vmul.f32 %v907_v19, %v907_v19  ;;  %v910_v34 = vsub.f32 %v13302_v24, %v13345_v8 }
  0xfc   :  { %v950_v22 = vadd.f32 %v949_v20, %v948_v51  ;;  %v944_v36 = vadd.f32 %v943_v23, %v942_v53  ;;  %v925_v37 = vmul.f32 %v909_v21, %v909_v21  ;;  %v924_v38 = vmul.f32 %v908_v25, %v908_v25 }
  0xfd   :  { %v939_v3 = vrot.slane %v938_v31, 1  ;;  %v956_v41 = vadd.f32 %v955_v32, %v954_v57  ;;  %v959_v50 = vrot.slane %v923_v33, 4  ;;  %v926_v10 = vmul.f32 %v910_v34, %v910_v34 }
  0xfe   :  { %v951_v48 = vrot.slane %v950_v22, 1  ;;  %v945_v1 = vrot.slane %v944_v36, 1  ;;  %v971_v0 = vrot.slane %v925_v37, 4  ;;  %v965_v56 = vrot.slane %v924_v38, 4 }
  0xff   :  { %v940_v43 = vadd.f32 %v939_v3, %v938_v31  ;;  %v957_v42 = vrot.slane %v956_v41, 1  ;;  %v960_v26 = vadd.f32 %v959_v50, %v923_v33  ;;  %v977_v6 = vrot.slane %v926_v10, 4 }
 0x100   :  { %v952_v19 = vadd.f32 %v951_v48, %v950_v22  ;;  %v946_v40 = vadd.f32 %v945_v1, %v944_v36  ;;  %v972_v14 = vadd.f32 %v971_v0, %v925_v37  ;;  %v966_v24 = vadd.f32 %v965_v56, %v924_v38 }
 0x101   :  { %v1047_v51 = vmul.f32 0.125, %v940_v43  ;;  %v958_v53 = vadd.f32 %v957_v42, %v956_v41  ;;  %v961_v20 = vrot.slane %v960_v26, 2  ;;  %v978_v23 = vadd.f32 %v977_v6, %v926_v10 }
 0x102   :  { %v1049_v21 = vmul.f32 0.125, %v952_v19  ;;  %v1048_v57 = vmul.f32 0.125, %v946_v40  ;;  %v973_v25 = vrot.slane %v972_v14, 2  ;;  %v967_v32 = vrot.slane %v966_v24, 2 }
 0x103   :  { %v1063_v34 = vadd.f32 1e-05, %v1047_v51  ;;  %v1050_v15 = vmul.f32 0.125, %v958_v53  ;;  %v962_v7 = vadd.f32 %v961_v20, %v960_v26  ;;  %v979_v35 = vrot.slane %v978_v23, 2 }
 0x104   :  { %v1065_v31 = vadd.f32 1e-05, %v1049_v21  ;;  %v1064_v3 = vadd.f32 1e-05, %v1048_v57  ;;  %v974_v33 = vadd.f32 %v973_v25, %v972_v14  ;;  %v968_v50 = vadd.f32 %v967_v32, %v966_v24 }
 0x105   :  { %12658 = vrsqrt.f32 %v1063_v34  ;;  %v1066_v48 = vadd.f32 1e-05, %v1050_v15  ;;  %v963_v0 = vrot.slane %v962_v7, 1  ;;  %v980_v56 = vadd.f32 %v979_v35, %v978_v23 }
 0x106   :  { %12660 = vrsqrt.f32 %v1065_v31  ;;  %v975_v42 = vrot.slane %v974_v33, 1  ;;  %v969_v43 = vrot.slane %v968_v50, 1  ;;  %v20250_v40 = vrot.slane %v13228_v17, %v13165_v54 }
 0x107   :  { %12662 = vrsqrt.f32 %v1064_v3  ;;  %v964_v10 = vadd.f32 %v963_v0, %v962_v7  ;;  %v981_v22 = vrot.slane %v980_v56, 1  ;;  %v20252_v14 = vrot.slane %v13228_v17, %v13182_v59 }
 0x108   :  { %v13363_v1 = vadd.f32 %v13317_v52, %v20250_v40  ;;  %12664 = vrsqrt.f32 %v1066_v48  ;;  %v976_v35 = vadd.f32 %v975_v42, %v974_v33  ;;  %v970_v15 = vadd.f32 %v969_v43, %v968_v50 }
 0x109   :  { %v13369_v24 = vadd.f32 %v13323_v61, %v20252_v14  ;;  %v1051_v37 = vmul.f32 0.125, %v964_v10  ;;  %v982_v38 = vadd.f32 %v981_v22, %v980_v56  ;;  %v20254_v52 = vrot.slane %v13228_v17, %v13185_v60 }
 0x10a   :  { %20251 = vst [vmem:[#allocation8_spill] sm:$0xff] %v13363_v1  ;;  %v823_v36 = vrot.slane %v13363_v1, 4  ;;  %v1053_v26 = vmul.f32 0.125, %v976_v35  ;;  %v1052_v6 = vmul.f32 0.125, %v970_v15  ;;  %v20256_v19 = vrot.slane %v13228_v17, %v13191_v63 }
 0x10b   :  { %20253 = vst [vmem:[#allocation9_spill] sm:$0xff] %v13369_v24  ;;  %v835_v41 = vrot.slane %v13369_v24, 4  ;;  %v13377_v7 = vadd.f32 %v13325_v62, %v20254_v52  ;;  %v1067_v53 = vadd.f32 1e-05, %v1051_v37  ;;  %v1054_v20 = vmul.f32 0.125, %v982_v38 }
 0x10c   :  { %v824_v61 = vadd.f32 %v823_v36, %v13363_v1  ;;  %v13384_v51 = vadd.f32 %v13331_v11, %v20256_v19  ;;  %v1069_v57 = vadd.f32 1e-05, %v1053_v26  ;;  %v1068_v25 = vadd.f32 1e-05, %v1052_v6 }
 0x10d   :  { %20255 = vst [vmem:[#allocation10_spill] sm:$0xff] %v13377_v7  ;;  %v836_v23 = vadd.f32 %v835_v41, %v13369_v24  ;;  %v829_v21 = vrot.slane %v13377_v7, 4  ;;  %12666 = vrsqrt.f32 %v1067_v53  ;;  %v1070_v34 = vadd.f32 1e-05, %v1054_v20 }
 0x10e   :  { %20257 = vst [vmem:[#allocation11_spill] sm:$0xff] %v13384_v51  ;;  %v825_v62 = vrot.slane %v824_v61, 2  ;;  %v841_v32 = vrot.slane %v13384_v51, 4  ;;  %12668 = vrsqrt.f32 %v1069_v57  ;;  %v20258_v50 = vrot.slane %v13228_v17, %v13196_v2 }
 0x10f   :  { %v837_v31 = vrot.slane %v836_v23, 2  ;;  %v830_v3 = vadd.f32 %v829_v21, %v13377_v7  ;;  %v12659_v0 = vpop.eup %12658  ;;  %12670 = vrsqrt.f32 %v1068_v25  ;;  %v20260_v43 = vrot.slane %v13228_v17, %v13199_v4 }
 0x110   :  { %v826_v33 = vadd.f32 %v825_v62, %v824_v61  ;;  %v842_v11 = vadd.f32 %v841_v32, %v13384_v51  ;;  %v13395_v48 = vadd.f32 %v13341_v5, %v20258_v50  ;;  %v12661_v10 = vpop.eup %12660  ;;  %12672 = vrsqrt.f32 %v1070_v34 }
 0x111   :  { %v838_v56 = vadd.f32 %v837_v31, %v836_v23  ;;  %v831_v42 = vrot.slane %v830_v3, 2  ;;  %v13401_v40 = vadd.f32 %v13347_v9, %v20260_v43  ;;  %v12663_v15 = vpop.eup %12662  ;;  %v20262_v5 = vunpack.c.0.s8 %v13245_v28 }
 0x112   :  { %20259 = vst [vmem:[#allocation12_spill] sm:$0xff] %v13395_v48  ;;  %v827_v22 = vrot.slane %v826_v33, 1  ;;  %v843_v14 = vrot.slane %v842_v11, 2  ;;  %v847_v35 = vrot.slane %v13395_v48, 4  ;;  %v12665_v52 = vpop.eup %12664  ;;  %v20263_v61 = vrot.slane %v13228_v17, %v13220_v13 }
 0x113   :  { %20261 = vst [vmem:[#allocation13_spill] sm:$0xff] %v13401_v40  ;;  %v13407_v36 = vsub.s32 %v20262_v5, %v13150_v47  ;;  %v839_v37 = vrot.slane %v838_v56, 1  ;;  %v832_v38 = vadd.f32 %v831_v42, %v830_v3  ;;  %v859_v41 = vrot.slane %v13401_v40, 4 }
 0x114   :  { %v828_v26 = vadd.f32 %v827_v22, %v826_v33  ;;  %v844_v9 = vadd.f32 %v843_v14, %v842_v11  ;;  %v848_v6 = vadd.f32 %v847_v35, %v13395_v48  ;;  %v13415_v19 = vadd.f32 %v13349_v12, %v20263_v61 }
 0x115   :  { %v1111_v53 = vcombine.low %v12659_v0, %v12663_v15  ;;  %v840_v20 = vadd.f32 %v839_v37, %v838_v56  ;;  %v833_v28 = vrot.slane %v832_v38, 1  ;;  %v860_v47 = vadd.f32 %v859_v41, %v13401_v40 }
 0x116   :  { %20264 = vst [vmem:[#allocation14_spill] sm:$0xff] %v13415_v19  ;;  %v1112_v23 = vcombine.low %v12661_v10, %v12665_v52  ;;  %v13418_v21 = vmul.f32 0.125, %v828_v26  ;;  %v845_v57 = vrot.slane %v844_v9, 1  ;;  %v849_v25 = vrot.slane %v848_v6, 2 }
 0x117   :  { %v13420_v62 = vmul.f32 0.125, %v840_v20  ;;  %v834_v32 = vadd.f32 %v833_v28, %v832_v38  ;;  %v861_v34 = vrot.slane %v860_v47, 2  ;;  %v853_v33 = vrot.slane %v13415_v19, 4  ;;  %v12667_v11 = vpop.eup %12666 }
 0x118   :  { %v911_v31 = vsub.f32 %v13363_v1, %v13418_v21  ;;  %v846_v3 = vadd.f32 %v845_v57, %v844_v9  ;;  %v850_v12 = vadd.f32 %v849_v25, %v848_v6  ;;  %v1121_v50 = vrot.slane %v1111_v53, %v13407_v36  ;;  %v12669_v43 = vpop.eup %12668 }
 0x119   :  { %v913_v0 = vsub.f32 %v13369_v24, %v13420_v62  ;;  %v13428_v56 = vmul.f32 0.125, %v834_v32  ;;  %v862_v42 = vadd.f32 %v861_v34, %v860_v47  ;;  %v1128_v10 = vrot.slane %v1112_v23, %v13407_v36  ;;  %v12671_v15 = vpop.eup %12670 }
 0x11a   :  { %v927_v22 = vmul.f32 %v911_v31, %v911_v31  ;;  %v13431_v14 = vmul.f32 0.125, %v846_v3  ;;  %v851_v35 = vrot.slane %v850_v12, 1  ;;  %v854_v41 = vadd.f32 %v853_v33, %v13415_v19  ;;  %v12673_v52 = vpop.eup %12672 }
 0x11b   :  { %v929_v5 = vmul.f32 %v913_v0, %v913_v0  ;;  %v912_v37 = vsub.f32 %v13377_v7, %v13428_v56  ;;  %v863_v38 = vrot.slane %v862_v42, 1  ;;  %v1113_v26 = vcombine.low %v12667_v11, %v12671_v15 }
 0x11c   :  { %20265 = vst [vmem:[#allocation15_spill] sm:$0xff] %v13431_v14  ;;  %v983_v9 = vrot.slane %v927_v22, 4  ;;  %v914_v6 = vsub.f32 %v13384_v51, %v13431_v14  ;;  %v852_v61 = vadd.f32 %v851_v35, %v850_v12  ;;  %v1114_v53 = vcombine.low %v12669_v43, %v12673_v52 }
 0x11d   :  { %v995_v20 = vrot.slane %v929_v5, 4  ;;  %v928_v28 = vmul.f32 %v912_v37, %v912_v37  ;;  %v864_v47 = vadd.f32 %v863_v38, %v862_v42  ;;  %v1135_v23 = vrot.slane %v1113_v26, %v13407_v36 }
 0x11e   :  { %v930_v57 = vmul.f32 %v914_v6, %v914_v6  ;;  %v13439_v25 = vmul.f32 0.125, %v852_v61  ;;  %v1143_v32 = vcombine.low %v1121_v50, %v1128_v10  ;;  %v1142_v34 = vrot.slane %v1114_v53, %v13407_v36  ;;  %v771_v10 = vld [vmem:[%s19635_s3] sm:$0xff] }
 0x11f   :  { %v984_v31 = vadd.f32 %v983_v9, %v927_v22  ;;  %v996_v3 = vadd.f32 %v995_v20, %v929_v5  ;;  %v989_v33 = vrot.slane %v928_v28, 4  ;;  %v13444_v0 = vmul.f32 0.125, %v864_v47 }
 0x120   :  { %v915_v11 = vsub.f32 %v13395_v48, %v13439_v25  ;;  %v855_v12 = vrot.slane %v854_v41, 2  ;;  %v1144_v43 = vcombine.low %v1135_v23, %v1142_v34  ;;  %v1001_v35 = vrot.slane %v930_v57, 4 }
 0x121   :  { %v1151_v15 = vrot.slane %v1143_v32, %v13407_v36  ;;  %v985_v38 = vrot.slane %v984_v31, 2  ;;  %v997_v50 = vrot.slane %v996_v3, 2  ;;  %v990_v22 = vadd.f32 %v989_v33, %v928_v28 }
 0x122   :  { %v856_v42 = vadd.f32 %v855_v12, %v854_v41  ;;  %v1158_v37 = vrot.slane %v1144_v43, %v13407_v36  ;;  %v931_v5 = vmul.f32 %v915_v11, %v915_v11  ;;  %v917_v52 = vsub.f32 %v13401_v40, %v13444_v0 }
 0x123   :  { %v1002_v6 = vadd.f32 %v1001_v35, %v930_v57  ;;  %v986_v53 = vadd.f32 %v985_v38, %v984_v31  ;;  %v998_v20 = vadd.f32 %v997_v50, %v996_v3  ;;  %v991_v47 = vrot.slane %v990_v22, 2 }
 0x124   :  { %v857_v26 = vrot.slane %v856_v42, 1  ;;  %v1159_v9 = vcombine.low %v1151_v15, %v1158_v37  ;;  %v1007_v23 = vrot.slane %v931_v5, 4  ;;  %v933_v32 = vmul.f32 %v917_v52, %v917_v52 }
 0x125   :  { %v1003_v57 = vrot.slane %v1002_v6, 2  ;;  %v182_v15 = vrot.slane %v13228_v17, %v13223_v16  ;;  %v999_v37 = vrot.slane %v998_v20, 1  ;;  %v992_v38 = vadd.f32 %v991_v47, %v990_v22  ;;  %v9752_v17 = vld [vmem:[%s19633_s5 + $0xf0] sm:$0xff]  ;;  %v9753_v22 = vld [vmem:[%s19633_s5 + $0xf8] sm:$0xff] }
 0x126   :  { %v858_v61 = vadd.f32 %v857_v26, %v856_v42  ;;  %v1211_v41 = vmul.f32 %v1159_v9, %v771_v10  ;;  %v987_v42 = vrot.slane %v986_v53, 1  ;;  %v1008_v50 = vadd.f32 %v1007_v23, %v931_v5 }
 0x127   :  { %v1019_v10 = vrot.slane %v933_v32, 4  ;;  %v1004_v26 = vadd.f32 %v1003_v57, %v1002_v6  ;;  %v1000_v23 = vadd.f32 %v999_v37, %v998_v20  ;;  %v993_v40 = vrot.slane %v992_v38, 1 }
 0x128   :  { %v13454_v34 = vrot.slane %v1211_v41, %v13196_v2  ;;  %v13457_v12 = vrot.slane %v1211_v41, %v13220_v13  ;;  %v13460_v28 = vrot.slane %v1211_v41, %v13199_v4  ;;  %v13463_v33 = vrot.slane %v1211_v41, %v13223_v16 }
 0x129   :  { %v13465_v11 = vmul.f32 0.125, %v858_v61  ;;  %v988_v5 = vadd.f32 %v987_v42, %v986_v53  ;;  %v13492_v61 = vadd.f32 %v13355_v27, %v182_v15  ;;  %v12236_v57 = vpack.c.bf16 %v9753_v22, %v9752_v17 }
 0x12a   :  { %v1299_v31 = vmul.f32 %v13454_v34, %v13335_v44  ;;  %v1300_v3 = vmul.f32 %v13457_v12, %v13339_v58  ;;  %v1301_v43 = vmul.f32 %v13460_v28, %v13337_v45  ;;  %v1302_v35 = vmul.f32 %v13463_v33, %v13345_v8  ;;  %v1573_v44 = vld [vmem:[%s19633_s5 + $0x70] sm:$0xff]  ;;  %v1574_v58 = vld [vmem:[%s19633_s5 + $0x78] sm:$0xff] }
 0x12b   :  { %v916_v45 = vsub.f32 %v13415_v19, %v13465_v11  ;;  %v12204_v47 = vpack.c.bf16 %v1574_v58, %v1573_v44  ;;  %v1009_v19 = vrot.slane %v1008_v50, 2  ;;  %v865_v6 = vrot.slane %v13492_v61, 4  ;;  %12237 = vmatprep.subr.bf16.mxu1 %v12236_v57 }
 0x12c   :  { %v1329_v8 = vcombine.low %v1299_v31, %v1300_v3  ;;  %v1330_v52 = vcombine.low %v1301_v43, %v1302_v35  ;;  %v1020_v31 = vadd.f32 %v1019_v10, %v933_v32  ;;  %v13496_v43 = vrot.slane %v1211_v41, %v13165_v54  ;;  %12239 = vmatpush3.bf16.msra.mxu1 %v12236_v57 }
 0x12d   :  { %v932_v9 = vmul.f32 %v916_v45, %v916_v45  ;;  %12205 = vmatprep.subr.bf16.mxu0 %v12204_v47  ;;  %v1005_v42 = vrot.slane %v1004_v26, 1  ;;  %v13501_v27 = vrot.slane %v1211_v41, %v13185_v60  ;;  %v866_v32 = vadd.f32 %v865_v6, %v13492_v61 }
 0x12e   :  { %v1351_v35 = vrot.slane %v1329_v8, %v13407_v36  ;;  %v1358_v53 = vrot.slane %v1330_v52, %v13407_v36  ;;  %12207 = vmatpush3.bf16.msra.mxu0 %v12204_v47  ;;  %v1226_v15 = vrot.slane %v1211_v41, %v13182_v59  ;;  %v13506_v37 = vrot.slane %v1211_v41, %v13191_v63  ;;  %v9754_v8 = vld [vmem:[%s19633_s5 + $0x100] sm:$0xff]  ;;  %v9755_v52 = vld [vmem:[%s19633_s5 + $0x108] sm:$0xff] }
 0x12f   :  { %v1013_v3 = vrot.slane %v932_v9, 4  ;;  %v994_v10 = vadd.f32 %v993_v40, %v992_v38  ;;  %v1010_v44 = vadd.f32 %v1009_v19, %v1008_v50  ;;  %v1295_v58 = vmul.f32 %v13496_v43, %v13310_v39  ;;  %v9770_v39 = vld [vmem:[%s19633_s5 + $0x180] sm:$0xff] }
 0x130   :  { %v1296_v45 = vmul.f32 %v13501_v27, %v13315_v49  ;;  %v867_v41 = vrot.slane %v866_v32, 2  ;;  %v1297_v40 = vmul.f32 %v1226_v15, %v13313_v46  ;;  %v1298_v19 = vmul.f32 %v13506_v37, %v13321_v55  ;;  %v9771_v49 = vld [vmem:[%s19633_s5 + $0x188] sm:$0xff] }
 0x131   :  { %v1014_v20 = vadd.f32 %v1013_v3, %v932_v9  ;;  %v1055_v38 = vmul.f32 0.125, %v988_v5  ;;  %v1057_v50 = vmul.f32 0.125, %v1000_v23  ;;  %v1021_v22 = vrot.slane %v1020_v31, 2 }
 0x132   :  { %v1327_v9 = vcombine.low %v1295_v58, %v1296_v45  ;;  %v1360_v47 = vcombine.low %v1351_v35, %v1358_v53  ;;  %v868_v3 = vadd.f32 %v867_v41, %v866_v32  ;;  %v1328_v6 = vcombine.low %v1297_v40, %v1298_v19 }
 0x133   :  { %v1015_v17 = vrot.slane %v1014_v20, 2  ;;  %v13527_v57 = vpack.c.bf16 %v9755_v52, %v9754_v8  ;;  %v1006_v46 = vadd.f32 %v1005_v42, %v1004_v26  ;;  %v13530_v51 = vpack.c.bf16 %v9771_v49, %v9770_v39 }
 0x134   :  { %v1337_v55 = vrot.slane %v1327_v9, %v13407_v36  ;;  %v1056_v24 = vmul.f32 0.125, %v994_v10  ;;  %v1011_v7 = vrot.slane %v1010_v44, 1  ;;  %v869_v1 = vrot.slane %v868_v3, 1  ;;  %v9756_v9 = vld [vmem:[%s19633_s5 + $0x110] sm:$0xff] }
 0x135   :  { %v1016_v48 = vadd.f32 %v1015_v17, %v1014_v20  ;;  %v1344_v14 = vrot.slane %v1328_v6, %v13407_v36  ;;  %12241 = vmatprep.subr.bf16.mxu0 %v13527_v57  ;;  %v1022_v5 = vadd.f32 %v1021_v22, %v1020_v31  ;;  %12273 = vmatprep.subr.bf16.mxu1 %v13530_v51  ;;  %v1071_v35 = vadd.f32 1e-05, %v1055_v38  ;;  %v773_v31 = vld [vmem:[%s19636_s4] sm:$0xff]  ;;  %v9772_v6 = vld [vmem:[%s19633_s5 + $0x190] sm:$0xff] }
 0x136   :  { %v1374_v23 = vrot.slane %v1360_v47, %v13407_v36  ;;  %v870_v53 = vadd.f32 %v869_v1, %v868_v3  ;;  %v1073_v42 = vadd.f32 1e-05, %v1057_v50  ;;  %v1058_v20 = vmul.f32 0.125, %v1006_v46  ;;  %v9773_v46 = vld [vmem:[%s19633_s5 + $0x198] sm:$0xff] }
 0x137   :  { %v1359_v26 = vcombine.low %v1337_v55, %v1344_v14  ;;  %v1017_v32 = vrot.slane %v1016_v48, 1  ;;  %v1072_v58 = vadd.f32 1e-05, %v1056_v24  ;;  %v1012_v45 = vadd.f32 %v1011_v7, %v1010_v44 }
 0x138   :  { %v13536_v10 = vmul.f32 0.125, %v870_v53  ;;  %v1023_v52 = vrot.slane %v1022_v5, 1  ;;  %12674 = vrsqrt.f32 %v1071_v35  ;;  %v1074_v14 = vadd.f32 1e-05, %v1058_v20  ;;  %v20266_v35 = vld [vmem:[#allocation3_spill] sm:$0xff] }
 0x139   :  { %v1367_v8 = vrot.slane %v1359_v26, %v13407_v36  ;;  %12676 = vrsqrt.f32 %v1073_v42  ;;  %v1018_v41 = vadd.f32 %v1017_v32, %v1016_v48  ;;  %v1059_v24 = vmul.f32 0.125, %v1012_v45  ;;  %v20267_v32 = vld [vmem:[#allocation4_spill] sm:$0xff] }
 0x13a   :  { %v918_v17 = vsub.f32 %v13492_v61, %v13536_v10  ;;  %12678 = vrsqrt.f32 %v1072_v58  ;;  %v1024_v40 = vadd.f32 %v1023_v52, %v1022_v5  ;;  %v1429_v19 = vmul.f32 %v13496_v43, %v13230_v18  ;;  %v9757_v18 = vld [vmem:[%s19633_s5 + $0x118] sm:$0xff] }
 0x13b   :  { %v1375_v1 = vcombine.low %v1367_v8, %v1374_v23  ;;  %v1430_v39 = vmul.f32 %v13501_v27, %v13249_v30  ;;  %v1431_v49 = vmul.f32 %v1226_v15, %v13247_v29  ;;  %12680 = vrsqrt.f32 %v1074_v14 }
 0x13c   :  { %v934_v7 = vmul.f32 %v918_v17, %v918_v17  ;;  %v1060_v29 = vmul.f32 0.125, %v1018_v41  ;;  %v1075_v55 = vadd.f32 1e-05, %v1059_v24  ;;  %v1061_v5 = vmul.f32 0.125, %v1024_v40  ;;  %v9759_v17 = vld [vmem:[%s19633_s5 + $0x128] sm:$0xff]  ;;  %v9774_v24 = vld [vmem:[%s19633_s5 + $0x1a0] sm:$0xff] }
 0x13d   :  { %v13544_v44 = vsub.f32 %v773_v31, %v1375_v1  ;;  %v12244_v23 = vpack.c.bf16 %v9757_v18, %v9756_v9  ;;  %v1432_v53 = vmul.f32 %v13506_v37, %v20266_v35  ;;  %v1433_v58 = vmul.f32 %v13454_v34, %v20267_v32  ;;  %v9758_v31 = vld [vmem:[%s19633_s5 + $0x120] sm:$0xff]  ;;  %v20269_v9 = vld [vmem:[#allocation5_spill] sm:$0xff] }
 0x13e   :  { %v1025_v38 = vrot.slane %v934_v7, 4  ;;  %v1076_v45 = vadd.f32 1e-05, %v1060_v29  ;;  %v12276_v52 = vpack.c.bf16 %v9773_v46, %v9772_v6  ;;  %12682 = vrsqrt.f32 %v1075_v55  ;;  %v9776_v6 = vld [vmem:[%s19633_s5 + $0x1b0] sm:$0xff]  ;;  %v9777_v46 = vld [vmem:[%s19633_s5 + $0x1b8] sm:$0xff] }
 0x13f   :  { %v1450_v50 = vrot.slane %v13544_v44, %v13165_v54  ;;  %v1454_v48 = vrot.slane %v13544_v44, %v13185_v60  ;;  %v1458_v22 = vrot.slane %v13544_v44, %v13182_v59  ;;  %v1462_v30 = vrot.slane %v13544_v44, %v13191_v63 }
 0x140   :  { %v1466_v43 = vrot.slane %v13544_v44, %v13196_v2  ;;  %v1026_v27 = vadd.f32 %v1025_v38, %v934_v7  ;;  %v1470_v37 = vrot.slane %v13544_v44, %v13220_v13  ;;  %v9775_v7 = vld [vmem:[%s19633_s5 + $0x1a8] sm:$0xff]  ;;  %v1474_v40 = vrot.slane %v13544_v44, %v13199_v4 }
 0x141   :  { %v1527_v15 = vadd.f32 %v1450_v50, %v1429_v19  ;;  %v1528_v47 = vadd.f32 %v1454_v48, %v1430_v39  ;;  %v1529_v3 = vadd.f32 %v1458_v22, %v1431_v49  ;;  %v1530_v8 = vadd.f32 %v1462_v30, %v1432_v53  ;;  %v20268_v39 = vld [vmem:[#allocation6_spill] sm:$0xff] }
 0x142   :  { %v1027_v26 = vrot.slane %v1026_v27, 2  ;;  %v13589_v1 = vpop.eup %12674  ;;  %v1531_v41 = vadd.f32 %v1466_v43, %v1433_v58  ;;  %v1434_v49 = vmul.f32 %v13457_v12, %v20268_v39  ;;  %v1077_v50 = vadd.f32 1e-05, %v1061_v5  ;;  %v9763_v58 = vld [vmem:[%s19633_s5 + $0x148] sm:$0xff] }
 0x143   :  { %v13575_v42 = vmax.f32 %v1527_v15, 0.0  ;;  %v13577_v20 = vmax.f32 %v1528_v47, 0.0  ;;  %v13593_v34 = vmax.f32 %v1529_v3, 0.0  ;;  %v13603_v19 = vpop.eup %12676  ;;  %v12248_v22 = vpack.c.bf16 %v9759_v17, %v9758_v31 }
 0x144   :  { %v1028_v14 = vadd.f32 %v1027_v26, %v1026_v27  ;;  %v13609_v38 = vpop.eup %12678  ;;  %v1435_v18 = vmul.f32 %v13460_v28, %v20269_v9  ;;  %v13617_v29 = vmax.f32 %v1530_v8, 0.0  ;;  %v1532_v30 = vadd.f32 %v1470_v37, %v1434_v49  ;;  %v9760_v28 = vld [vmem:[%s19633_s5 + $0x130] sm:$0xff]  ;;  %v9779_v8 = vld [vmem:[%s19633_s5 + $0x1c8] sm:$0xff] }
 0x145   :  { %11056 = vmatprep.mubr.f32.mxu0 %v13575_v42  ;;  %11112 = vmatprep.mubr.f32.mxu1 %v13575_v42  ;;  %v12280_v12 = vpack.c.bf16 %v9775_v7, %v9774_v24  ;;  %v1478_v43 = vrot.slane %v13544_v44, %v13223_v16  ;;  %12684 = vrsqrt.f32 %v1076_v45  ;;  %v12681_v47 = vpop.eup %12680  ;;  %v20270_v44 = vld [vmem:[#allocation7_spill] sm:$0xff]  ;;  %v12284_v32 = vpack.c.bf16 %v9777_v46, %v9776_v6  ;;  %v9778_v45 = vld [vmem:[%s19633_s5 + $0x1c0] sm:$0xff]  ;;  %v9780_v24 = vld [vmem:[%s19633_s5 + $0x1d0] sm:$0xff] }
 0x146   :  { %11057 = vmatmul.mubr.f32.vlgmr.msra.gmra.mrb[8].mxu0 %v13577_v20  ;;  %11113 = vmatmul.mubr.f32.vlgmr.msra.gmra.mrb[8].mxu1 %v13577_v20  ;;  %v1029_v48 = vrot.slane %v1028_v14, 1  ;;  %v1533_v15 = vadd.f32 %v1474_v40, %v1435_v18  ;;  %v1436_v3 = vmul.f32 %v13463_v33, %v20270_v44  ;;  %12686 = vrsqrt.f32 %v1077_v50  ;;  %v9781_v7 = vld [vmem:[%s19633_s5 + $0x1d8] sm:$0xff]  ;;  %v9767_v9 = vld [vmem:[%s19633_s5 + $0x168] sm:$0xff] }
 0x147   :  { %12243 = vmatpush3.bf16.msra.mxu0 %v13527_v57  ;;  %11059 = vmatprep.mubr.f32.mxu0 %v13593_v34  ;;  %v13621_v57 = vmax.f32 %v1531_v41, 0.0  ;;  %v13641_v5 = vmax.f32 %v1532_v30, 0.0  ;;  %v12288_v37 = vpack.c.bf16 %v9779_v8, %v9778_v45  ;;  %v9765_v41 = vld [vmem:[%s19633_s5 + $0x158] sm:$0xff]  ;;  %v1160_v39 = vcombine.low %v13589_v1, %v13609_v38  ;;  %v9782_v1 = vld [vmem:[%s19633_s5 + $0x1e0] sm:$0xff] }
 0x148   :  { %11115 = vmatprep.mubr.f32.mxu1 %v13593_v34  ;;  %12275 = vmatpush3.bf16.msra.mxu1 %v13530_v51  ;;  %v1030_v27 = vadd.f32 %v1029_v48, %v1028_v14  ;;  %v9761_v51 = vld [vmem:[%s19633_s5 + $0x138] sm:$0xff]  ;;  %v1534_v35 = vadd.f32 %v1478_v43, %v1436_v3  ;;  %v13643_v53 = vmax.f32 %v1533_v15, 0.0  ;;  %v9764_v14 = vld [vmem:[%s19633_s5 + $0x150] sm:$0xff]  ;;  %v1161_v49 = vcombine.low %v13603_v19, %v12681_v47  ;;  %v9783_v19 = vld [vmem:[%s19633_s5 + $0x1e8] sm:$0xff] }
 0x149   :  { %12245 = vmatprep.subr.bf16.mxu0 %v12244_v23  ;;  %12277 = vmatprep.subr.bf16.mxu1 %v12276_v52  ;;  %v12252_v26 = vpack.c.bf16 %v9761_v51, %v9760_v28  ;;  %v12260_v50 = vpack.c.bf16 %v9765_v41, %v9764_v14  ;;  %v12292_v48 = vpack.c.bf16 %v9781_v7, %v9780_v24  ;;  %v9768_v28 = vld [vmem:[%s19633_s5 + $0x170] sm:$0xff]  ;;  %v9769_v47 = vld [vmem:[%s19633_s5 + $0x178] sm:$0xff] }
 0x14a   :  { %11060 = vmatmul.mubr.f32.gmra.mrb[10].mxu0 %v13617_v29  ;;  %11116 = vmatmul.mubr.f32.gmra.mrb[10].mxu1 %v13617_v29  ;;  %v1062_v55 = vmul.f32 0.125, %v1030_v27  ;;  %v13661_v31 = vmax.f32 %v1534_v35, 0.0  ;;  %v1170_v38 = vrot.slane %v1160_v39, %v13407_v36  ;;  %v12296_v15 = vpack.c.bf16 %v9783_v19, %v9782_v1  ;;  %v9784_v3 = vld [vmem:[%s19633_s5 + $0x1f0] sm:$0xff]  ;;  %v9785_v6 = vld [vmem:[%s19633_s5 + $0x1f8] sm:$0xff] }
 0x14b   :  { %12247 = vmatpush3.bf16.msra.mxu0 %v12244_v23  ;;  %11062 = vmatprep.mubr.f32.mxu0 %v13621_v57  ;;  %v9762_v23 = vld [vmem:[%s19633_s5 + $0x140] sm:$0xff]  ;;  %v12268_v35 = vpack.c.bf16 %v9769_v47, %v9768_v28  ;;  %v774_v28 = vld [vmem:[%s19636_s4 + $0x8] sm:$0xff] }
 0x14c   :  { %11118 = vmatprep.mubr.f32.mxu1 %v13621_v57  ;;  %12279 = vmatpush3.bf16.msra.mxu1 %v12276_v52  ;;  %v1078_v33 = vadd.f32 1e-05, %v1062_v55  ;;  %v12683_v52 = vpop.eup %12682  ;;  %v12256_v17 = vpack.c.bf16 %v9763_v58, %v9762_v23  ;;  %v772_v58 = vld [vmem:[%s19635_s3 + $0x8] sm:$0xff] }
 0x14d   :  { %12249 = vmatprep.subr.bf16.mxu0 %v12248_v22  ;;  %12281 = vmatprep.subr.bf16.mxu1 %v12280_v12 }
 0x14e   :  { %11063 = vmatmul.mubr.f32.gmra.mrb[12].mxu0 %v13641_v5  ;;  %11119 = vmatmul.mubr.f32.gmra.mrb[12].mxu1 %v13641_v5  ;;  %12688 = vrsqrt.f32 %v1078_v33  ;;  %v12300_v33 = vpack.c.bf16 %v9785_v6, %v9784_v3  ;;  %v20273_v6 = vld [vmem:[#allocation10_spill] sm:$0xff] }
 0x14f   :  { %12251 = vmatpush3.bf16.msra.mxu0 %v12248_v22  ;;  %11065 = vmatprep.mubr.f32.mxu0 %v13643_v53  ;;  %v12685_v40 = vpop.eup %12684  ;;  %v9766_v22 = vld [vmem:[%s19633_s5 + $0x160] sm:$0xff] }
 0x150   :  { %11121 = vmatprep.mubr.f32.mxu1 %v13643_v53  ;;  %12283 = vmatpush3.bf16.msra.mxu1 %v12280_v12  ;;  %v12687_v18 = vpop.eup %12686  ;;  %v1162_v30 = vcombine.low %v12683_v52, %v12685_v40  ;;  %v1177_v12 = vrot.slane %v1161_v49, %v13407_v36  ;;  %v12264_v43 = vpack.c.bf16 %v9767_v9, %v9766_v22 }
 0x151   :  { %12253 = vmatprep.subr.bf16.mxu0 %v12252_v26  ;;  %12285 = vmatprep.subr.bf16.mxu1 %v12284_v32 }
 0x152   :  { %11066 = vmatmul.mubr.f32.gmra.mrb[14].mxu0 %v13661_v31  ;;  %11122 = vmatmul.mubr.f32.gmra.mrb[14].mxu1 %v13661_v31  ;;  %v1184_v51 = vrot.slane %v1162_v30, %v13407_v36  ;;  %v1192_v46 = vcombine.low %v1170_v38, %v1177_v12  ;;  %v20271_v30 = vld [vmem:[#allocation15_spill] sm:$0xff] }
 0x153   :  { %12255 = vmatpush3.bf16.msra.mxu0 %v12252_v26 }
 0x154   :  { %12287 = vmatpush3.bf16.msra.mxu1 %v12284_v32  ;;  %12257 = vmatprep.subr.bf16.mxu0 %v12256_v17  ;;  %v1200_v32 = vrot.slane %v1192_v46, %v13407_v36 }
 0x155   :  { %12289 = vmatprep.subr.bf16.mxu1 %v12288_v37 }
 0x157   :  { %12259 = vmatpush3.bf16.msra.mxu0 %v12256_v17 }
 0x158   :  { %12291 = vmatpush3.bf16.msra.mxu1 %v12288_v37  ;;  %12261 = vmatprep.subr.bf16.mxu0 %v12260_v50  ;;  %v12689_v27 = vpop.eup %12688 }
 0x159   :  { %12293 = vmatprep.subr.bf16.mxu1 %v12292_v48  ;;  %v1163_v44 = vcombine.low %v12687_v18, %v12689_v27 }
 0x15b   :  { %12263 = vmatpush3.bf16.msra.mxu0 %v12260_v50  ;;  %v1191_v55 = vrot.slane %v1163_v44, %v13407_v36  ;;  %v20272_v44 = vld [vmem:[#allocation8_spill] sm:$0xff] }
 0x15c   :  { %12295 = vmatpush3.bf16.msra.mxu1 %v12292_v48  ;;  %12265 = vmatprep.subr.bf16.mxu0 %v12264_v43 }
 0x15d   :  { %12297 = vmatprep.subr.bf16.mxu1 %v12296_v15  ;;  %v1193_v26 = vcombine.low %v1184_v51, %v1191_v55 }
 0x15f   :  { %12267 = vmatpush3.bf16.msra.mxu0 %v12264_v43  ;;  %v1207_v23 = vrot.slane %v1193_v26, %v13407_v36 }
 0x160   :  { %12299 = vmatpush3.bf16.msra.mxu1 %v12296_v15  ;;  %12269 = vmatprep.subr.bf16.mxu0 %v12268_v35 }
 0x161   :  { %12301 = vmatprep.subr.bf16.mxu1 %v12300_v33  ;;  %v1208_v45 = vcombine.low %v1200_v32, %v1207_v23 }
 0x163   :  { %12271 = vmatpush3.bf16.msra.mxu0 %v12268_v35  ;;  %v1212_v8 = vmul.f32 %v1208_v45, %v772_v58  ;;  %v20274_v35 = vld [vmem:[#allocation9_spill] sm:$0xff] }
 0x164   :  { %12303 = vmatpush3.bf16.msra.mxu1 %v12300_v33 }
 0x165   :  { %v1266_v52 = vrot.slane %v1212_v8, %v13196_v2  ;;  %v1270_v17 = vrot.slane %v1212_v8, %v13220_v13  ;;  %v1274_v37 = vrot.slane %v1212_v8, %v13199_v4  ;;  %v1278_v14 = vrot.slane %v1212_v8, %v13223_v16 }
 0x166   :  { %v1250_v41 = vrot.slane %v1212_v8, %v13165_v54  ;;  %v1254_v24 = vrot.slane %v1212_v8, %v13185_v60  ;;  %v1258_v7 = vrot.slane %v1212_v8, %v13182_v59  ;;  %v1262_v40 = vrot.slane %v1212_v8, %v13191_v63 }
 0x167   :  { %v1307_v39 = vmul.f32 %v1266_v52, %v13439_v25  ;;  %v1308_v49 = vmul.f32 %v1270_v17, %v13465_v11  ;;  %v1309_v50 = vmul.f32 %v1274_v37, %v13444_v0  ;;  %v1310_v48 = vmul.f32 %v1278_v14, %v13536_v10 }
 0x168   :  { %v1303_v22 = vmul.f32 %v1250_v41, %v13418_v21  ;;  %v1304_v9 = vmul.f32 %v1254_v24, %v13428_v56  ;;  %v1305_v18 = vmul.f32 %v1258_v7, %v13420_v62  ;;  %v1306_v1 = vmul.f32 %v1262_v40, %v20271_v30 }
 0x169   :  { %v1378_v19 = vcombine.low %v1307_v39, %v1308_v49  ;;  %v1379_v38 = vcombine.low %v1309_v50, %v1310_v48  ;;  %v1444_v21 = vmul.f32 %v1278_v14, %v13492_v61  ;;  %v1437_v3 = vmul.f32 %v1250_v41, %v20272_v44  ;;  %v20275_v14 = vld [vmem:[#allocation11_spill] sm:$0xff]  ;;  %v20276_v50 = vld [vmem:[#allocation12_spill] sm:$0xff] }
 0x16a   :  { %v1376_v12 = vcombine.low %v1303_v22, %v1304_v9  ;;  %v1377_v43 = vcombine.low %v1305_v18, %v1306_v1  ;;  %v1438_v46 = vmul.f32 %v1254_v24, %v20273_v6  ;;  %v1439_v33 = vmul.f32 %v1258_v7, %v20274_v35  ;;  %v20277_v22 = vld [vmem:[#allocation14_spill] sm:$0xff] }
 0x16b   :  { %v1400_v25 = vrot.slane %v1378_v19, %v13407_v36  ;;  %v1407_v11 = vrot.slane %v1379_v38, %v13407_v36  ;;  %v1440_v41 = vmul.f32 %v1262_v40, %v20275_v14  ;;  %v20278_v40 = vld [vmem:[#allocation13_spill] sm:$0xff] }
 0x16c   :  { %v1386_v0 = vrot.slane %v1376_v12, %v13407_v36  ;;  %v1393_v10 = vrot.slane %v1377_v43, %v13407_v36  ;;  %v1443_v9 = vmul.f32 %v1274_v37, %v20278_v40 }
 0x16d   :  { %v1409_v27 = vcombine.low %v1400_v25, %v1407_v11 }
 0x16e   :  { %v1408_v56 = vcombine.low %v1386_v0, %v1393_v10  ;;  %v13773_v10 = vld [vmem:[%s19637_s6] ss:$0 sm:$0xff] }
 0x16f   :  { %v1423_v62 = vrot.slane %v1409_v27, %v13407_v36 }
 0x170   :  { %v1416_v15 = vrot.slane %v1408_v56, %v13407_v36 }
 0x172   :  { %v1424_v47 = vcombine.low %v1416_v15, %v1423_v62 }
 0x174   :  { %v1428_v51 = vsub.f32 %v774_v28, %v1424_v47 }
 0x176   :  { %v1482_v55 = vrot.slane %v1428_v51, %v13165_v54  ;;  %v1486_v61 = vrot.slane %v1428_v51, %v13185_v60  ;;  %v1490_v26 = vrot.slane %v1428_v51, %v13182_v59  ;;  %v1494_v36 = vrot.slane %v1428_v51, %v13191_v63 }
 0x177   :  { %v1510_v32 = vrot.slane %v1428_v51, %v13223_v16  ;;  %v1498_v8 = vrot.slane %v1428_v51, %v13196_v2  ;;  %v1441_v60 = vmul.f32 %v1266_v52, %v20276_v50  ;;  %v1502_v7 = vrot.slane %v1428_v51, %v13220_v13 }
 0x178   :  { %v1535_v23 = vadd.f32 %v1482_v55, %v1437_v3  ;;  %v1536_v58 = vadd.f32 %v1486_v61, %v1438_v46  ;;  %v1537_v45 = vadd.f32 %v1490_v26, %v1439_v33  ;;  %v1538_v48 = vadd.f32 %v1494_v36, %v1440_v41 }
 0x179   :  { %v1542_v24 = vadd.f32 %v1510_v32, %v1444_v21  ;;  %v1539_v63 = vadd.f32 %v1498_v8, %v1441_v60  ;;  %v1506_v16 = vrot.slane %v1428_v51, %v13199_v4  ;;  %v1442_v2 = vmul.f32 %v1270_v17, %v20277_v22 }
 0x17a   :  { %v1551_v39 = vmax.f32 %v1535_v23, 0.0  ;;  %v1552_v49 = vmax.f32 %v1536_v58, 0.0  ;;  %v1553_v59 = vmax.f32 %v1537_v45, 0.0  ;;  %v1554_v18 = vmax.f32 %v1538_v48, 0.0 }
 0x17b   :  { %v1540_v30 = vadd.f32 %v1502_v7, %v1442_v2  ;;  %v1555_v52 = vmax.f32 %v1539_v63, 0.0  ;;  %v1541_v1 = vadd.f32 %v1506_v16, %v1443_v9  ;;  %v1558_v4 = vmax.f32 %v1542_v24, 0.0 }
 0x17c   :  { %11068 = vmatprep.mubr.f32.mxu0 %v1551_v39  ;;  %11124 = vmatprep.mubr.f32.mxu1 %v1551_v39 }
 0x17d   :  { %11069 = vmatmul.mubr.f32.gmra.mrb[16].mxu0 %v1552_v49  ;;  %11125 = vmatmul.mubr.f32.gmra.mrb[16].mxu1 %v1552_v49  ;;  %v1556_v13 = vmax.f32 %v1540_v30, 0.0  ;;  %v1557_v19 = vmax.f32 %v1541_v1, 0.0 }
 0x17e   :  { %11071 = vmatprep.mubr.f32.mxu0 %v1553_v59  ;;  %11127 = vmatprep.mubr.f32.mxu1 %v1553_v59 }
 0x181   :  { %11072 = vmatmul.mubr.f32.gmra.mrb[18].mxu0 %v1554_v18  ;;  %11128 = vmatmul.mubr.f32.gmra.mrb[18].mxu1 %v1554_v18 }
 0x182   :  { %11074 = vmatprep.mubr.f32.mxu0 %v1555_v52  ;;  %11130 = vmatprep.mubr.f32.mxu1 %v1555_v52 }
 0x185   :  { %11075 = vmatmul.mubr.f32.gmra.mrb[20].mxu0 %v1556_v13  ;;  %11131 = vmatmul.mubr.f32.gmra.mrb[20].mxu1 %v1556_v13 }
 0x186   :  { %11077 = vmatprep.mubr.f32.mxu0 %v1557_v19  ;;  %11133 = vmatprep.mubr.f32.mxu1 %v1557_v19 }
 0x189   :  { %11078 = vmatmul.mubr.f32.gmra.mrb[22].mxu0 %v1558_v4  ;;  %11134 = vmatmul.mubr.f32.gmra.mrb[22].mxu1 %v1558_v4 }
 0x18a   :  { %11168 = vmatprep.mubr.f32.mxu0 %v13575_v42  ;;  %11224 = vmatprep.mubr.f32.mxu1 %v13575_v42 }
 0x18d   :  { %11169 = vmatmul.mubr.f32.vlgmr.msra.gmra.mrb[24].mxu0 %v13577_v20  ;;  %11225 = vmatmul.mubr.f32.vlgmr.msra.gmra.mrb[24].mxu1 %v13577_v20 }
 0x18e   :  { %11171 = vmatprep.mubr.f32.mxu0 %v13593_v34  ;;  %11227 = vmatprep.mubr.f32.mxu1 %v13593_v34 }
 0x191   :  { %11172 = vmatmul.mubr.f32.gmra.mrb[26].mxu0 %v13617_v29  ;;  %11228 = vmatmul.mubr.f32.gmra.mrb[26].mxu1 %v13617_v29 }
 0x192   :  { %11174 = vmatprep.mubr.f32.mxu0 %v13621_v57  ;;  %11230 = vmatprep.mubr.f32.mxu1 %v13621_v57 }
 0x195   :  { %11175 = vmatmul.mubr.f32.gmra.mrb[28].mxu0 %v13641_v5  ;;  %11231 = vmatmul.mubr.f32.gmra.mrb[28].mxu1 %v13641_v5 }
 0x196   :  { %11177 = vmatprep.mubr.f32.mxu0 %v13643_v53  ;;  %11233 = vmatprep.mubr.f32.mxu1 %v13643_v53 }
 0x199   :  { %11178 = vmatmul.mubr.f32.gmra.mrb[30].mxu0 %v13661_v31  ;;  %11234 = vmatmul.mubr.f32.gmra.mrb[30].mxu1 %v13661_v31 }
 0x19a   :  { %11180 = vmatprep.mubr.f32.mxu0 %v1551_v39  ;;  %11236 = vmatprep.mubr.f32.mxu1 %v1551_v39 }
 0x19d   :  { %11181 = vmatmul.mubr.f32.gmra.mrb[32].mxu0 %v1552_v49  ;;  %11237 = vmatmul.mubr.f32.gmra.mrb[32].mxu1 %v1552_v49 }
 0x19e   :  { %11183 = vmatprep.mubr.f32.mxu0 %v1553_v59  ;;  %11239 = vmatprep.mubr.f32.mxu1 %v1553_v59 }
 0x1a1   :  { %11184 = vmatmul.mubr.f32.gmra.mrb[34].mxu0 %v1554_v18  ;;  %11240 = vmatmul.mubr.f32.gmra.mrb[34].mxu1 %v1554_v18 }
 0x1a2   :  { %11186 = vmatprep.mubr.f32.mxu0 %v1555_v52  ;;  %11242 = vmatprep.mubr.f32.mxu1 %v1555_v52 }
 0x1a5   :  { %11187 = vmatmul.mubr.f32.gmra.mrb[36].mxu0 %v1556_v13  ;;  %11243 = vmatmul.mubr.f32.gmra.mrb[36].mxu1 %v1556_v13 }
 0x1a6   :  { %11189 = vmatprep.mubr.f32.mxu0 %v1557_v19  ;;  %11245 = vmatprep.mubr.f32.mxu1 %v1557_v19 }
 0x1a9   :  { %11190 = vmatmul.mubr.f32.gmra.mrb[38].mxu0 %v1558_v4  ;;  %11246 = vmatmul.mubr.f32.gmra.mrb[38].mxu1 %v1558_v4 }
 0x219   :  { %v11058_v42 = vpop.f32.mrb[8].mxu0  ;;  %v11114_v20 = vpop.f32.mrb[8].mxu1 }
 0x21a   :  { %v1648_v34 = vpop.f32.mrb[9].mxu0  ;;  %v1810_v29 = vpop.f32.mrb[9].mxu1  ;;  %v13776_v21 = vadd.f32 %v11058_v42, %v13773_v10  ;;  %v13779_v27 = vadd.f32 %v11114_v20, %v13773_v10 }
 0x21b   :  { %v13782_v56 = vadd.f32 %v13773_v10, %v1648_v34  ;;  %v13785_v62 = vadd.f32 %v13773_v10, %v1810_v29 }
 0x21c   :  { %20279 = vst [vmem:[#allocation3_spill] sm:$0xff] %v13779_v27  ;;  %v2217_v47 = vsel %vm2215_vm1, %v13776_v21, 0.0  ;;  %v2255_v51 = vsel %vm2215_vm1, %v13779_v27, 0.0 }
 0x21d   :  { %v11061_v57 = vpop.f32.mrb[10].mxu0  ;;  %v11117_v5 = vpop.f32.mrb[10].mxu1  ;;  %20280 = vst [vmem:[#allocation4_spill] sm:$0xff] %v13785_v62  ;;  %v2216_v44 = vsel %vm2215_vm1, %v13782_v56, 0.0  ;;  %v2254_v3 = vsel %vm2215_vm1, %v13785_v62, 0.0 }
 0x21e   :  { %v1658_v53 = vpop.f32.mrb[11].mxu0  ;;  %v1820_v31 = vpop.f32.mrb[11].mxu1  ;;  %v2218_v55 = vadd.f32 %v2217_v47, %v2216_v44  ;;  %v2256_v61 = vadd.f32 %v2255_v51, %v2254_v3  ;;  %v13806_v35 = vadd.f32 %v11061_v57, %v13773_v10  ;;  %v13809_v33 = vadd.f32 %v11117_v5, %v13773_v10 }
 0x21f   :  { %v13788_v15 = vadd.f32 %v13773_v10, %v1658_v53  ;;  %v13791_v28 = vadd.f32 %v13773_v10, %v1820_v31 }
 0x220   :  { %20282 = vst [vmem:[#allocation5_spill] sm:$0xff] %v13809_v33  ;;  %v2221_v58 = vsel %vm2215_vm1, %v13806_v35, 0.0  ;;  %v2259_v45 = vsel %vm2215_vm1, %v13809_v33, 0.0 }
 0x221   :  { %v11064_v17 = vpop.f32.mrb[12].mxu0  ;;  %v11120_v37 = vpop.f32.mrb[12].mxu1  ;;  %20281 = vst [vmem:[#allocation6_spill] sm:$0xff] %v13791_v28  ;;  %v2219_v6 = vsel %vm2215_vm1, %v13788_v15, 0.0  ;;  %v2257_v46 = vsel %vm2215_vm1, %v13791_v28, 0.0 }
 0x222   :  { %v1668_v38 = vpop.f32.mrb[13].mxu0  ;;  %v1830_v12 = vpop.f32.mrb[13].mxu1  ;;  %v2220_v26 = vadd.f32 %v2219_v6, %v2218_v55  ;;  %v2258_v36 = vadd.f32 %v2257_v46, %v2256_v61  ;;  %v13826_v39 = vadd.f32 %v11064_v17, %v13773_v10  ;;  %v13829_v49 = vadd.f32 %v11120_v37, %v13773_v10 }
 0x223   :  { %v13812_v32 = vadd.f32 %v13773_v10, %v1668_v38  ;;  %v13815_v23 = vadd.f32 %v13773_v10, %v1830_v12 }
 0x224   :  { %v2222_v8 = vadd.f32 %v2221_v58, %v2220_v26  ;;  %v2260_v14 = vadd.f32 %v2259_v45, %v2258_v36  ;;  %20284 = vst [vmem:[#allocation15_spill] sm:$0xff] %v13829_v49  ;;  %v2225_v59 = vsel %vm2215_vm1, %v13826_v39, 0.0  ;;  %v2263_v63 = vsel %vm2215_vm1, %v13829_v49, 0.0 }
 0x225   :  { %v11067_v43 = vpop.f32.mrb[14].mxu0  ;;  %v11123_v25 = vpop.f32.mrb[14].mxu1  ;;  %20283 = vst [vmem:[#allocation7_spill] sm:$0xff] %v13815_v23  ;;  %v2223_v41 = vsel %vm2215_vm1, %v13812_v32, 0.0  ;;  %v2261_v24 = vsel %vm2215_vm1, %v13815_v23, 0.0 }
 0x226   :  { %v1678_v11 = vpop.f32.mrb[15].mxu0  ;;  %v1840_v0 = vpop.f32.mrb[15].mxu1  ;;  %v2224_v50 = vadd.f32 %v2223_v41, %v2222_v8  ;;  %v2262_v60 = vadd.f32 %v2261_v24, %v2260_v14  ;;  %v13846_v9 = vadd.f32 %v11067_v43, %v13773_v10  ;;  %v13849_v18 = vadd.f32 %v11123_v25, %v13773_v10 }
 0x227   :  { %v13832_v48 = vadd.f32 %v13773_v10, %v1678_v11  ;;  %v13835_v7 = vadd.f32 %v13773_v10, %v1840_v0 }
 0x228   :  { %v2226_v16 = vadd.f32 %v2225_v59, %v2224_v50  ;;  %v2264_v22 = vadd.f32 %v2263_v63, %v2262_v60  ;;  %20286 = vst [vmem:[#allocation10_spill] sm:$0xff] %v13849_v18  ;;  %v2229_v1 = vsel %vm2215_vm1, %v13846_v9, 0.0  ;;  %v2267_v13 = vsel %vm2215_vm1, %v13849_v18, 0.0 }
 0x229   :  { %20285 = vst [vmem:[#allocation8_spill] sm:$0xff] %v13835_v7  ;;  %v2227_v2 = vsel %vm2215_vm1, %v13832_v48, 0.0  ;;  %v2265_v40 = vsel %vm2215_vm1, %v13835_v7, 0.0 }
 0x22a   :  { %v2228_v30 = vadd.f32 %v2227_v2, %v2226_v16  ;;  %v2266_v52 = vadd.f32 %v2265_v40, %v2264_v22 }
 0x22c   :  { %v2230_v20 = vadd.f32 %v2229_v1, %v2228_v30  ;;  %v2268_v29 = vadd.f32 %v2267_v13, %v2266_v52 }
 0x250   :  { %v11070_v19 = vpop.f32.mrb[16].mxu0  ;;  %v11126_v4 = vpop.f32.mrb[16].mxu1 }
 0x251   :  { %v1688_v42 = vpop.f32.mrb[17].mxu0  ;;  %v1850_v34 = vpop.f32.mrb[17].mxu1  ;;  %v13862_v53 = vadd.f32 %v11070_v19, %v13773_v10  ;;  %v13865_v31 = vadd.f32 %v11126_v4, %v13773_v10 }
 0x252   :  { %v13856_v57 = vadd.f32 %v13773_v10, %v1688_v42  ;;  %v13859_v5 = vadd.f32 %v13773_v10, %v1850_v34 }
 0x253   :  { %20288 = vst [vmem:[#allocation11_spill] sm:$0xff] %v13865_v31  ;;  %v2233_v44 = vsel %vm2215_vm1, %v13862_v53, 0.0  ;;  %v2271_v3 = vsel %vm2215_vm1, %v13865_v31, 0.0 }
 0x254   :  { %20287 = vst [vmem:[#allocation9_spill] sm:$0xff] %v13859_v5  ;;  %v2231_v17 = vsel %vm2215_vm1, %v13856_v57, 0.0  ;;  %v2269_v37 = vsel %vm2215_vm1, %v13859_v5, 0.0  ;;  %v11073_v38 = vpop.f32.mrb[18].mxu0  ;;  %v11129_v12 = vpop.f32.mrb[18].mxu1 }
 0x255   :  { %v2232_v43 = vadd.f32 %v2231_v17, %v2230_v20  ;;  %v2270_v25 = vadd.f32 %v2269_v37, %v2268_v29  ;;  %v1698_v11 = vpop.f32.mrb[19].mxu0  ;;  %v1860_v0 = vpop.f32.mrb[19].mxu1  ;;  %v13886_v8 = vadd.f32 %v11073_v38, %v13773_v10  ;;  %v13889_v14 = vadd.f32 %v11129_v12, %v13773_v10 }
 0x256   :  { %v13872_v47 = vadd.f32 %v13773_v10, %v1698_v11  ;;  %v13875_v51 = vadd.f32 %v13773_v10, %v1860_v0 }
 0x257   :  { %v2234_v55 = vadd.f32 %v2233_v44, %v2232_v43  ;;  %v2272_v61 = vadd.f32 %v2271_v3, %v2270_v25  ;;  %20290 = vst [vmem:[#allocation14_spill] sm:$0xff] %v13889_v14  ;;  %v2237_v2 = vsel %vm2215_vm1, %v13886_v8, 0.0  ;;  %v2275_v40 = vsel %vm2215_vm1, %v13889_v14, 0.0 }
 0x258   :  { %20289 = vst [vmem:[#allocation12_spill] sm:$0xff] %v13875_v51  ;;  %v11076_v6 = vpop.f32.mrb[20].mxu0  ;;  %v11132_v46 = vpop.f32.mrb[20].mxu1  ;;  %v2235_v58 = vsel %vm2215_vm1, %v13872_v47, 0.0  ;;  %v2273_v45 = vsel %vm2215_vm1, %v13875_v51, 0.0 }
 0x259   :  { %v1708_v26 = vpop.f32.mrb[21].mxu0  ;;  %v1870_v36 = vpop.f32.mrb[21].mxu1  ;;  %v2236_v50 = vadd.f32 %v2235_v58, %v2234_v55  ;;  %v2274_v60 = vadd.f32 %v2273_v45, %v2272_v61  ;;  %v13902_v30 = vadd.f32 %v11076_v6, %v13773_v10  ;;  %v13905_v52 = vadd.f32 %v11132_v46, %v13773_v10 }
 0x25a   :  { %v13892_v16 = vadd.f32 %v13773_v10, %v1708_v26  ;;  %v13895_v22 = vadd.f32 %v13773_v10, %v1870_v36 }
 0x25b   :  { %20292 = vst [vmem:[#allocation16_spill] sm:$0xff] %v13905_v52  ;;  %v2238_v19 = vadd.f32 %v2237_v2, %v2236_v50  ;;  %v2276_v4 = vadd.f32 %v2275_v40, %v2274_v60  ;;  %v2241_v6 = vsel %vm2215_vm1, %v13902_v30, 0.0  ;;  %v2279_v46 = vsel %vm2215_vm1, %v13905_v52, 0.0 }
 0x25c   :  { %v11079_v41 = vpop.f32.mrb[22].mxu0  ;;  %v11135_v24 = vpop.f32.mrb[22].mxu1  ;;  %20291 = vst [vmem:[#allocation13_spill] sm:$0xff] %v13895_v22  ;;  %v2239_v17 = vsel %vm2215_vm1, %v13892_v16, 0.0  ;;  %v2277_v37 = vsel %vm2215_vm1, %v13895_v22, 0.0 }
 0x25d   :  { %v1718_v59 = vpop.f32.mrb[23].mxu0  ;;  %v1880_v63 = vpop.f32.mrb[23].mxu1  ;;  %v2240_v55 = vadd.f32 %v2239_v17, %v2238_v19  ;;  %v2278_v61 = vadd.f32 %v2277_v37, %v2276_v4  ;;  %v13948_v2 = vadd.f32 %v11079_v41, %v13773_v10  ;;  %v13951_v40 = vadd.f32 %v11135_v24, %v13773_v10 }
 0x25e   :  { %v13954_v19 = vadd.f32 %v13773_v10, %v1718_v59  ;;  %v13957_v4 = vadd.f32 %v13773_v10, %v1880_v63 }
 0x25f   :  { %20298 = vst [vmem:[#allocation22_spill] sm:$0xff] %v13948_v2  ;;  %20299 = vst [vmem:[#allocation23_spill] sm:$0xff] %v13951_v40 }
 0x260   :  { %v11170_v1 = vpop.f32.mrb[24].mxu0  ;;  %v11226_v13 = vpop.f32.mrb[24].mxu1  ;;  %20300 = vst [vmem:[#allocation24_spill] sm:$0xff] %v13954_v19  ;;  %20301 = vst [vmem:[#allocation25_spill] sm:$0xff] %v13957_v4 }
 0x261   :  { %v13908_v42 = vadd.f32 %v11170_v1, %v13773_v10  ;;  %v13911_v20 = vadd.f32 %v11226_v13, %v13773_v10  ;;  %v1972_v34 = vpop.f32.mrb[25].mxu0  ;;  %v2134_v29 = vpop.f32.mrb[25].mxu1 }
 0x262   :  { %v13918_v38 = vadd.f32 %v13773_v10, %v1972_v34  ;;  %v13921_v12 = vadd.f32 %v13773_v10, %v2134_v29 }
 0x263   :  { %20293 = vst [vmem:[#allocation17_spill] sm:$0xff] %v13911_v20  ;;  %v2293_v43 = vsel %vm2215_vm1, %v13908_v42, 0.0  ;;  %v2331_v25 = vsel %vm2215_vm1, %v13911_v20, 0.0 }
 0x264   :  { %20294 = vst [vmem:[#allocation18_spill] sm:$0xff] %v13918_v38  ;;  %20295 = vst [vmem:[#allocation19_spill] sm:$0xff] %v13921_v12  ;;  %v2292_v11 = vsel %vm2215_vm1, %v13918_v38, 0.0  ;;  %v2330_v0 = vsel %vm2215_vm1, %v13921_v12, 0.0  ;;  %v11173_v44 = vpop.f32.mrb[26].mxu0  ;;  %v11229_v3 = vpop.f32.mrb[26].mxu1 }
 0x265   :  { %v1982_v26 = vpop.f32.mrb[27].mxu0  ;;  %v2144_v36 = vpop.f32.mrb[27].mxu1  ;;  %v13936_v58 = vadd.f32 %v11173_v44, %v13773_v10  ;;  %v13939_v45 = vadd.f32 %v11229_v3, %v13773_v10  ;;  %v2294_v1 = vadd.f32 %v2293_v43, %v2292_v11  ;;  %v2332_v13 = vadd.f32 %v2331_v25, %v2330_v0 }
 0x266   :  { %v13942_v50 = vadd.f32 %v13773_v10, %v1982_v26  ;;  %v13945_v60 = vadd.f32 %v13773_v10, %v2144_v36  ;;  %v2242_v26 = vadd.f32 %v2241_v6, %v2240_v55  ;;  %v2280_v36 = vadd.f32 %v2279_v46, %v2278_v61 }
 0x267   :  { %20296 = vst [vmem:[#allocation20_spill] sm:$0xff] %v13939_v45  ;;  %v2297_v24 = vsel %vm2215_vm1, %v13936_v58, 0.0  ;;  %v2335_v37 = vsel %vm2215_vm1, %v13939_v45, 0.0 }
 0x268   :  { %20297 = vst [vmem:[#allocation21_spill] sm:$0xff] %v13945_v60  ;;  %v2295_v34 = vsel %vm2215_vm1, %v13942_v50, 0.0  ;;  %v2333_v29 = vsel %vm2215_vm1, %v13945_v60, 0.0  ;;  %v11176_v17 = vpop.f32.mrb[28].mxu0  ;;  %v11232_v41 = vpop.f32.mrb[28].mxu1 }
 0x269   :  { %v2296_v43 = vadd.f32 %v2295_v34, %v2294_v1  ;;  %v2334_v59 = vadd.f32 %v2333_v29, %v2332_v13  ;;  %v1992_v25 = vpop.f32.mrb[29].mxu0  ;;  %v2154_v11 = vpop.f32.mrb[29].mxu1  ;;  %v13968_v63 = vadd.f32 %v11176_v17, %v13773_v10  ;;  %v13971_v0 = vadd.f32 %v11232_v41, %v13773_v10 }
 0x26a   :  { %v13974_v44 = vadd.f32 %v13773_v10, %v1992_v25  ;;  %v13977_v3 = vadd.f32 %v13773_v10, %v2154_v11  ;;  %v2243_v1 = vsel %vm2215_vm1, %v13954_v19, 0.0  ;;  %v2281_v13 = vsel %vm2215_vm1, %v13957_v4, 0.0 }
 0x26b   :  { %20302 = vst [vmem:[#allocation26_spill] sm:$0xff] %v13971_v0  ;;  %v2298_v54 = vadd.f32 %v2297_v24, %v2296_v43  ;;  %v2336_v45 = vadd.f32 %v2335_v37, %v2334_v59  ;;  %v2301_v6 = vsel %vm2215_vm1, %v13968_v63, 0.0  ;;  %v2339_v46 = vsel %vm2215_vm1, %v13971_v0, 0.0 }
 0x26c   :  { %20303 = vst [vmem:[#allocation27_spill] sm:$0xff] %v13977_v3  ;;  %v2299_v34 = vsel %vm2215_vm1, %v13974_v44, 0.0  ;;  %v2337_v29 = vsel %vm2215_vm1, %v13977_v3, 0.0  ;;  %v11179_v17 = vpop.f32.mrb[30].mxu0  ;;  %v11235_v41 = vpop.f32.mrb[30].mxu1  ;;  %v2244_v3 = vadd.f32 %v2243_v1, %v2242_v26  ;;  %v2282_v60 = vadd.f32 %v2281_v13, %v2280_v36 }
 0x26d   :  { %v2300_v55 = vadd.f32 %v2299_v34, %v2298_v54  ;;  %v2338_v61 = vadd.f32 %v2337_v29, %v2336_v45  ;;  %v2002_v24 = vpop.f32.mrb[31].mxu0  ;;  %v2164_v37 = vpop.f32.mrb[31].mxu1  ;;  %v13992_v43 = vadd.f32 %v11179_v17, %v13773_v10  ;;  %v13995_v59 = vadd.f32 %v11235_v41, %v13773_v10 }
 0x26e   :  { %v13998_v25 = vadd.f32 %v13773_v10, %v2002_v24  ;;  %v14001_v11 = vadd.f32 %v13773_v10, %v2164_v37  ;;  %v2245_v54 = vsel %vm2215_vm1, %v13948_v2, 0.0  ;;  %v2283_v45 = vsel %vm2215_vm1, %v13951_v40, 0.0 }
 0x26f   :  { %20304 = vst [vmem:[#allocation28_spill] sm:$0xff] %v13992_v43  ;;  %20305 = vst [vmem:[#allocation29_spill] sm:$0xff] %v13995_v59  ;;  %v2302_v20 = vadd.f32 %v2301_v6, %v2300_v55  ;;  %v2340_v0 = vadd.f32 %v2339_v46, %v2338_v61  ;;  %v2305_v6 = vsel %vm2215_vm1, %v13992_v43, 0.0  ;;  %v2343_v46 = vsel %vm2215_vm1, %v13995_v59, 0.0 }
 0x270   :  { %20306 = vst [vmem:[#allocation30_spill] sm:$0xff] %v13998_v25  ;;  %20307 = vst [vmem:[#allocation31_spill] sm:$0xff] %v14001_v11  ;;  %v2303_v34 = vsel %vm2215_vm1, %v13998_v25, 0.0  ;;  %v2341_v29 = vsel %vm2215_vm1, %v14001_v11, 0.0  ;;  %v11182_v17 = vpop.f32.mrb[32].mxu0  ;;  %v11238_v41 = vpop.f32.mrb[32].mxu1  ;;  %v2284_v61 = vadd.f32 %v2283_v45, %v2282_v60 }
 0x271   :  { %v2304_v24 = vadd.f32 %v2303_v34, %v2302_v20  ;;  %v2342_v37 = vadd.f32 %v2341_v29, %v2340_v0  ;;  %v14012_v26 = vadd.f32 %v11182_v17, %v13773_v10  ;;  %v14015_v36 = vadd.f32 %v11238_v41, %v13773_v10  ;;  %v2012_v1 = vpop.f32.mrb[33].mxu0  ;;  %v2174_v13 = vpop.f32.mrb[33].mxu1 }
 0x272   :  { %v14022_v55 = vadd.f32 %v13773_v10, %v2012_v1  ;;  %v14025_v20 = vadd.f32 %v13773_v10, %v2174_v13  ;;  %v2246_v0 = vadd.f32 %v2245_v54, %v2244_v3 }
 0x273   :  { %20308 = vst [vmem:[#allocation32_spill] sm:$0xff] %v14012_v26  ;;  %20309 = vst [vmem:[#allocation33_spill] sm:$0xff] %v14015_v36  ;;  %v2306_v34 = vadd.f32 %v2305_v6, %v2304_v24  ;;  %v2344_v29 = vadd.f32 %v2343_v46, %v2342_v37  ;;  %v2309_v59 = vsel %vm2215_vm1, %v14012_v26, 0.0  ;;  %v2347_v1 = vsel %vm2215_vm1, %v14015_v36, 0.0 }
 0x274   :  { %20310 = vst [vmem:[#allocation34_spill] sm:$0xff] %v14022_v55  ;;  %20311 = vst [vmem:[#allocation35_spill] sm:$0xff] %v14025_v20  ;;  %v2307_v17 = vsel %vm2215_vm1, %v14022_v55, 0.0  ;;  %v2345_v41 = vsel %vm2215_vm1, %v14025_v20, 0.0  ;;  %v11185_v11 = vpop.f32.mrb[34].mxu0  ;;  %v11241_v12 = vpop.f32.mrb[34].mxu1 }
 0x275   :  { %v2308_v13 = vadd.f32 %v2307_v17, %v2306_v34  ;;  %v2346_v43 = vadd.f32 %v2345_v41, %v2344_v29  ;;  %v2022_v3 = vpop.f32.mrb[35].mxu0  ;;  %v2184_v60 = vpop.f32.mrb[35].mxu1  ;;  %v14036_v54 = vadd.f32 %v11185_v11, %v13773_v10  ;;  %v14039_v45 = vadd.f32 %v11241_v12, %v13773_v10 }
 0x276   :  { %v14042_v24 = vadd.f32 %v13773_v10, %v2022_v3  ;;  %v14045_v37 = vadd.f32 %v13773_v10, %v2184_v60  ;;  %v2247_v6 = vrot.slane %v2246_v0, 4  ;;  %v2285_v46 = vrot.slane %v2284_v61, 4 }
 0x277   :  { %20312 = vst [vmem:[#allocation36_spill] sm:$0xff] %v14036_v54  ;;  %20313 = vst [vmem:[#allocation37_spill] sm:$0xff] %v14039_v45  ;;  %v2310_v20 = vadd.f32 %v2309_v59, %v2308_v13  ;;  %v2348_v36 = vadd.f32 %v2347_v1, %v2346_v43  ;;  %v2313_v43 = vsel %vm2215_vm1, %v14036_v54, 0.0  ;;  %v2351_v59 = vsel %vm2215_vm1, %v14039_v45, 0.0 }
 0x278   :  { %20314 = vst [vmem:[#allocation38_spill] sm:$0xff] %v14042_v24  ;;  %20315 = vst [vmem:[#allocation39_spill] sm:$0xff] %v14045_v37  ;;  %v2311_v34 = vsel %vm2215_vm1, %v14042_v24, 0.0  ;;  %v2349_v11 = vsel %vm2215_vm1, %v14045_v37, 0.0  ;;  %v11188_v29 = vpop.f32.mrb[36].mxu0  ;;  %v11244_v17 = vpop.f32.mrb[36].mxu1  ;;  %v2286_v13 = vadd.f32 %v2285_v46, %v2284_v61 }
 0x279   :  { %v2312_v12 = vadd.f32 %v2311_v34, %v2310_v20  ;;  %v2350_v41 = vadd.f32 %v2349_v11, %v2348_v36  ;;  %v14052_v3 = vadd.f32 %v11188_v29, %v13773_v10  ;;  %v14055_v60 = vadd.f32 %v11244_v17, %v13773_v10  ;;  %v2032_v26 = vpop.f32.mrb[37].mxu0  ;;  %v2194_v55 = vpop.f32.mrb[37].mxu1 }
 0x27a   :  { %v14062_v1 = vadd.f32 %v13773_v10, %v2032_v26  ;;  %v14065_v20 = vadd.f32 %v13773_v10, %v2194_v55  ;;  %v2248_v36 = vadd.f32 %v2247_v6, %v2246_v0 }
 0x27b   :  { %20316 = vst [vmem:[#allocation40_spill] sm:$0xff] %v14052_v3  ;;  %20317 = vst [vmem:[#allocation41_spill] sm:$0xff] %v14055_v60  ;;  %v2314_v34 = vadd.f32 %v2313_v43, %v2312_v12  ;;  %v2352_v11 = vadd.f32 %v2351_v59, %v2350_v41  ;;  %v2317_v45 = vsel %vm2215_vm1, %v14052_v3, 0.0  ;;  %v2355_v26 = vsel %vm2215_vm1, %v14055_v60, 0.0 }
 0x27c   :  { %20318 = vst [vmem:[#allocation42_spill] sm:$0xff] %v14062_v1  ;;  %20319 = vst [vmem:[#allocation43_spill] sm:$0xff] %v14065_v20  ;;  %v2315_v29 = vsel %vm2215_vm1, %v14062_v1, 0.0  ;;  %v2353_v17 = vsel %vm2215_vm1, %v14065_v20, 0.0  ;;  %v11191_v37 = vpop.f32.mrb[38].mxu0  ;;  %v11247_v54 = vpop.f32.mrb[38].mxu1 }
 0x27d   :  { %v2316_v55 = vadd.f32 %v2315_v29, %v2314_v34  ;;  %v2354_v24 = vadd.f32 %v2353_v17, %v2352_v11  ;;  %v2042_v0 = vpop.f32.mrb[39].mxu0  ;;  %v2204_v61 = vpop.f32.mrb[39].mxu1  ;;  %v14076_v6 = vadd.f32 %v11191_v37, %v13773_v10  ;;  %v14079_v46 = vadd.f32 %v11247_v54, %v13773_v10 }
 0x27e   :  { %v14082_v12 = vadd.f32 %v13773_v10, %v2042_v0  ;;  %v14085_v41 = vadd.f32 %v13773_v10, %v2204_v61  ;;  %v2249_v43 = vrot.slane %v2248_v36, 2  ;;  %v2287_v59 = vrot.slane %v2286_v13, 2 }
 0x27f   :  { %20320 = vst [vmem:[#allocation44_spill] sm:$0xff] %v14076_v6  ;;  %20321 = vst [vmem:[#allocation45_spill] sm:$0xff] %v14079_v46  ;;  %v2318_v20 = vadd.f32 %v2317_v45, %v2316_v55  ;;  %v2356_v60 = vadd.f32 %v2355_v26, %v2354_v24  ;;  %v2321_v54 = vsel %vm2215_vm1, %v14076_v6, 0.0  ;;  %v2359_v17 = vsel %vm2215_vm1, %v14079_v46, 0.0 }
 0x280   :  { %20322 = vst [vmem:[#allocation46_spill] sm:$0xff] %v14082_v12  ;;  %20323 = vst [vmem:[#allocation47_spill] sm:$0xff] %v14085_v41  ;;  %v2319_v34 = vsel %vm2215_vm1, %v14082_v12, 0.0  ;;  %v2357_v37 = vsel %vm2215_vm1, %v14085_v41, 0.0  ;;  %v2250_v10 = vadd.f32 %v2249_v43, %v2248_v36  ;;  %v2288_v0 = vadd.f32 %v2287_v59, %v2286_v13 }
 0x281   :  { %v2320_v11 = vadd.f32 %v2319_v34, %v2318_v20  ;;  %v2358_v29 = vadd.f32 %v2357_v37, %v2356_v60 }
 0x282   :  { %v2251_v26 = vrot.slane %v2250_v10, 1  ;;  %v2289_v55 = vrot.slane %v2288_v0, 1 }
 0x283   :  { %v2322_v61 = vadd.f32 %v2321_v54, %v2320_v11  ;;  %v2360_v3 = vadd.f32 %v2359_v17, %v2358_v29 }
 0x284   :  { %v2252_v20 = vadd.f32 %v2251_v26, %v2250_v10  ;;  %v2290_v60 = vadd.f32 %v2289_v55, %v2288_v0 }
 0x285   :  { %v2323_v45 = vrot.slane %v2322_v61, 4  ;;  %v2361_v24 = vrot.slane %v2360_v3, 4 }
 0x286   :  { %v2291_v4 = vadd.f32 %v2290_v60, %v2252_v20 }
 0x287   :  { %v2324_v12 = vadd.f32 %v2323_v45, %v2322_v61  ;;  %v2362_v1 = vadd.f32 %v2361_v24, %v2360_v3 }
 0x289   :  { %v2325_v25 = vrot.slane %v2324_v12, 2  ;;  %v2363_v41 = vrot.slane %v2362_v1, 2 }
 0x28b   :  { %v2326_v34 = vadd.f32 %v2325_v25, %v2324_v12  ;;  %v2364_v37 = vadd.f32 %v2363_v41, %v2362_v1 }
 0x28d   :  { %v2327_v6 = vrot.slane %v2326_v34, 1  ;;  %v2365_v40 = vrot.slane %v2364_v37, 1 }
 0x28f   :  { %v2328_v46 = vadd.f32 %v2327_v6, %v2326_v34  ;;  %v2366_v13 = vadd.f32 %v2365_v40, %v2364_v37 }
 0x291   :  { %v2329_v36 = vadd.f32 %v2328_v46, %v2291_v4 }
 0x293   :  { %v2367_v43 = vadd.f32 %v2366_v13, %v2329_v36 }
 0x295   :  { %v14095_v59 = vmul.f32 0.001953125, %v2367_v43 }
 0x297   :  { %v2369_v11 = vsub.f32 %v13782_v56, %v14095_v59  ;;  %v2370_v3 = vsub.f32 %v13776_v21, %v14095_v59  ;;  %v2371_v29 = vsub.f32 %v13788_v15, %v14095_v59  ;;  %v2372_v25 = vsub.f32 %v13806_v35, %v14095_v59 }
 0x298   :  { %v2373_v40 = vsub.f32 %v13812_v32, %v14095_v59  ;;  %v2374_v6 = vsub.f32 %v13826_v39, %v14095_v59  ;;  %v2375_v45 = vsub.f32 %v13832_v48, %v14095_v59  ;;  %v2439_v20 = vsub.f32 %v13785_v62, %v14095_v59  ;;  %v20339_v62 = vld [vmem:[#allocation44_spill] sm:$0xff] }
 0x299   :  { %v2385_v1 = vmul.f32 %v2369_v11, %v2369_v11  ;;  %v2386_v12 = vmul.f32 %v2370_v3, %v2370_v3  ;;  %v2387_v4 = vmul.f32 %v2371_v29, %v2371_v29  ;;  %v2388_v46 = vmul.f32 %v2372_v25, %v2372_v25 }
 0x29a   :  { %v2389_v10 = vmul.f32 %v2373_v40, %v2373_v40  ;;  %v2390_v24 = vmul.f32 %v2374_v6, %v2374_v6  ;;  %v2440_v34 = vsub.f32 %v13779_v27, %v14095_v59  ;;  %v2376_v36 = vsub.f32 %v13846_v9, %v14095_v59 }
 0x29b   :  { %v2401_v41 = vsel %vm2215_vm1, %v2385_v1, 0.0  ;;  %v2402_v54 = vsel %vm2215_vm1, %v2386_v12, 0.0  ;;  %v2404_v0 = vsel %vm2215_vm1, %v2387_v4, 0.0  ;;  %v2406_v26 = vsel %vm2215_vm1, %v2388_v46, 0.0 }
 0x29c   :  { %v2403_v17 = vadd.f32 %v2402_v54, %v2401_v41  ;;  %v2408_v60 = vsel %vm2215_vm1, %v2389_v10, 0.0  ;;  %v2391_v13 = vmul.f32 %v2375_v45, %v2375_v45  ;;  %v2410_v43 = vsel %vm2215_vm1, %v2390_v24, 0.0 }
 0x29d   :  { %v2441_v11 = vsub.f32 %v13791_v28, %v14095_v59  ;;  %v2455_v29 = vmul.f32 %v2439_v20, %v2439_v20  ;;  %v2442_v25 = vsub.f32 %v13809_v33, %v14095_v59  ;;  %v2456_v1 = vmul.f32 %v2440_v34, %v2440_v34 }
 0x29e   :  { %v2405_v61 = vadd.f32 %v2404_v0, %v2403_v17  ;;  %v2377_v12 = vsub.f32 %v13856_v57, %v14095_v59  ;;  %v2378_v40 = vsub.f32 %v13862_v53, %v14095_v59  ;;  %v2379_v4 = vsub.f32 %v13872_v47, %v14095_v59 }
 0x29f   :  { %v2380_v6 = vsub.f32 %v13886_v8, %v14095_v59  ;;  %v2392_v46 = vmul.f32 %v2376_v36, %v2376_v36  ;;  %v2412_v41 = vsel %vm2215_vm1, %v2391_v13, 0.0  ;;  %v2443_v54 = vsub.f32 %v13815_v23, %v14095_v59 }
 0x2a0   :  { %v2407_v55 = vadd.f32 %v2406_v26, %v2405_v61  ;;  %v2457_v17 = vmul.f32 %v2441_v11, %v2441_v11  ;;  %v2381_v10 = vsub.f32 %v13892_v16, %v14095_v59  ;;  %v2382_v0 = vsub.f32 %v13902_v30, %v14095_v59 }
 0x2a1   :  { %v2471_v45 = vsel %vm2215_vm1, %v2455_v29, 0.0  ;;  %v2383_v24 = vsub.f32 %v13954_v19, %v14095_v59  ;;  %v2444_v26 = vsub.f32 %v13829_v49, %v14095_v59  ;;  %v2472_v20 = vsel %vm2215_vm1, %v2456_v1, 0.0 }
 0x2a2   :  { %v2409_v37 = vadd.f32 %v2408_v60, %v2407_v55  ;;  %v2458_v55 = vmul.f32 %v2442_v25, %v2442_v25  ;;  %v2384_v60 = vsub.f32 %v13948_v2, %v14095_v59  ;;  %v2393_v34 = vmul.f32 %v2377_v12, %v2377_v12 }
 0x2a3   :  { %v2473_v36 = vadd.f32 %v2472_v20, %v2471_v45  ;;  %v2414_v13 = vsel %vm2215_vm1, %v2392_v46, 0.0  ;;  %v2459_v11 = vmul.f32 %v2443_v54, %v2443_v54  ;;  %v2395_v29 = vmul.f32 %v2379_v4, %v2379_v4 }
 0x2a4   :  { %v2411_v3 = vadd.f32 %v2410_v43, %v2409_v37  ;;  %v2394_v37 = vmul.f32 %v2378_v40, %v2378_v40  ;;  %v2445_v43 = vsub.f32 %v13835_v7, %v14095_v59  ;;  %v2397_v23 = vmul.f32 %v2381_v10, %v2381_v10 }
 0x2a5   :  { %v2446_v1 = vsub.f32 %v13849_v18, %v14095_v59  ;;  %v2460_v33 = vmul.f32 %v2444_v26, %v2444_v26  ;;  %v2476_v12 = vsel %vm2215_vm1, %v2458_v55, 0.0  ;;  %v2398_v40 = vmul.f32 %v2382_v0, %v2382_v0 }
 0x2a6   :  { %v2413_v61 = vadd.f32 %v2412_v41, %v2411_v3  ;;  %v2474_v3 = vsel %vm2215_vm1, %v2457_v17, 0.0  ;;  %v2396_v41 = vmul.f32 %v2380_v6, %v2380_v6  ;;  %v2399_v45 = vmul.f32 %v2383_v24, %v2383_v24 }
 0x2a7   :  { %v2475_v25 = vadd.f32 %v2474_v3, %v2473_v36  ;;  %v2400_v46 = vmul.f32 %v2384_v60, %v2384_v60  ;;  %v2416_v7 = vsel %vm2215_vm1, %v2393_v34, 0.0  ;;  %v2447_v54 = vsub.f32 %v13859_v5, %v14095_v59 }
 0x2a8   :  { %v2415_v49 = vadd.f32 %v2414_v13, %v2413_v61  ;;  %v2461_v4 = vmul.f32 %v2445_v43, %v2445_v43  ;;  %v2478_v6 = vsel %vm2215_vm1, %v2459_v11, 0.0  ;;  %v2418_v10 = vsel %vm2215_vm1, %v2394_v37, 0.0 }
 0x2a9   :  { %v2477_v20 = vadd.f32 %v2476_v12, %v2475_v25  ;;  %v2509_v26 = vsub.f32 %v13918_v38, %v14095_v59  ;;  %v2448_v0 = vsub.f32 %v13865_v31, %v14095_v59  ;;  %v2462_v24 = vmul.f32 %v2446_v1, %v2446_v1  ;;  %v20336_v31 = vld [vmem:[#allocation40_spill] sm:$0xff] }
 0x2aa   :  { %v2417_v17 = vadd.f32 %v2416_v7, %v2415_v49  ;;  %v2480_v55 = vsel %vm2215_vm1, %v2460_v33, 0.0  ;;  %v2510_v60 = vsub.f32 %v13908_v42, %v14095_v59  ;;  %v2420_v34 = vsel %vm2215_vm1, %v2395_v29, 0.0 }
 0x2ab   :  { %v2479_v61 = vadd.f32 %v2478_v6, %v2477_v20  ;;  %v2422_v36 = vsel %vm2215_vm1, %v2396_v41, 0.0  ;;  %v2424_v49 = vsel %vm2215_vm1, %v2397_v23, 0.0  ;;  %v14173_v37 = vsel %vm2215_vm1, %v2398_v40, 0.0 }
 0x2ac   :  { %v2463_v13 = vmul.f32 %v2447_v54, %v2447_v54  ;;  %v2482_v43 = vsel %vm2215_vm1, %v2461_v4, 0.0  ;;  %v2511_v11 = vsub.f32 %v13942_v50, %v14095_v59  ;;  %v2419_v33 = vadd.f32 %v2418_v10, %v2417_v17 }
 0x2ad   :  { %v2481_v7 = vadd.f32 %v2480_v55, %v2479_v61  ;;  %v2449_v3 = vsub.f32 %v13875_v51, %v14095_v59  ;;  %v2525_v29 = vmul.f32 %v2509_v26, %v2509_v26  ;;  %v2464_v1 = vmul.f32 %v2448_v0, %v2448_v0 }
 0x2ae   :  { %v2484_v41 = vsel %vm2215_vm1, %v2462_v24, 0.0  ;;  %v2512_v23 = vsub.f32 %v13936_v58, %v14095_v59  ;;  %v2526_v12 = vmul.f32 %v2510_v60, %v2510_v60  ;;  %v14184_v40 = vsel %vm2215_vm1, %v2399_v45, 0.0 }
 0x2af   :  { %v2483_v25 = vadd.f32 %v2482_v43, %v2481_v7  ;;  %v2450_v20 = vsub.f32 %v13889_v14, %v14095_v59  ;;  %v2451_v54 = vsub.f32 %v13895_v22, %v14095_v59  ;;  %v2452_v6 = vsub.f32 %v13905_v52, %v14095_v59 }
 0x2b0   :  { %v2486_v17 = vsel %vm2215_vm1, %v2463_v13, 0.0  ;;  %v2513_v10 = vsub.f32 %v13974_v44, %v14095_v59  ;;  %v2527_v61 = vmul.f32 %v2511_v11, %v2511_v11  ;;  %v2421_v26 = vadd.f32 %v2420_v34, %v2419_v33 }
 0x2b1   :  { %v2485_v4 = vadd.f32 %v2484_v41, %v2483_v25  ;;  %v2465_v0 = vmul.f32 %v2449_v3, %v2449_v3  ;;  %v2541_v24 = vsel %vm2215_vm1, %v2525_v29, 0.0  ;;  %v2488_v55 = vsel %vm2215_vm1, %v2464_v1, 0.0  ;;  %v20324_v25 = vld [vmem:[#allocation25_spill] sm:$0xff]  ;;  %v20325_v41 = vld [vmem:[#allocation23_spill] sm:$0xff]  ;;  %v20326_v3 = vld [vmem:[#allocation30_spill] sm:$0xff] }
 0x2b2   :  { %v2514_v60 = vsub.f32 %v13968_v63, %v14095_v59  ;;  %v2528_v7 = vmul.f32 %v2512_v23, %v2512_v23  ;;  %v2542_v43 = vsel %vm2215_vm1, %v2526_v12, 0.0  ;;  %v2453_v13 = vsub.f32 %v20324_v25, %v14095_v59  ;;  %v20327_v25 = vld [vmem:[#allocation28_spill] sm:$0xff] }
 0x2b3   :  { %v2487_v45 = vadd.f32 %v2486_v17, %v2485_v4  ;;  %v2454_v38 = vsub.f32 %v20325_v41, %v14095_v59  ;;  %v2543_v34 = vadd.f32 %v2542_v43, %v2541_v24  ;;  %v2466_v33 = vmul.f32 %v2450_v20, %v2450_v20 }
 0x2b4   :  { %v2515_v29 = vsub.f32 %v20326_v3, %v14095_v59  ;;  %v2529_v4 = vmul.f32 %v2513_v10, %v2513_v10  ;;  %v2544_v1 = vsel %vm2215_vm1, %v2527_v61, 0.0  ;;  %v2423_v17 = vadd.f32 %v2422_v36, %v2421_v26  ;;  %v20328_v36 = vld [vmem:[#allocation34_spill] sm:$0xff] }
 0x2b5   :  { %v2489_v11 = vadd.f32 %v2488_v55, %v2487_v45  ;;  %v2467_v52 = vmul.f32 %v2451_v54, %v2451_v54  ;;  %v2468_v23 = vmul.f32 %v2452_v6, %v2452_v6  ;;  %v2545_v22 = vadd.f32 %v2544_v1, %v2543_v34 }
 0x2b6   :  { %v2490_v12 = vsel %vm2215_vm1, %v2465_v0, 0.0  ;;  %v2516_v14 = vsub.f32 %v20327_v25, %v14095_v59  ;;  %v2530_v51 = vmul.f32 %v2514_v60, %v2514_v60  ;;  %v2546_v45 = vsel %vm2215_vm1, %v2528_v7, 0.0 }
 0x2b7   :  { %v14212_v20 = vsel %vm2215_vm1, %v2400_v46, 0.0  ;;  %v2469_v24 = vmul.f32 %v2453_v13, %v2453_v13  ;;  %v2491_v55 = vadd.f32 %v2490_v12, %v2489_v11  ;;  %v2547_v10 = vadd.f32 %v2546_v45, %v2545_v22  ;;  %v20329_v46 = vld [vmem:[#allocation32_spill] sm:$0xff] }
 0x2b8   :  { %v2470_v43 = vmul.f32 %v2454_v38, %v2454_v38  ;;  %v2517_v54 = vsub.f32 %v20328_v36, %v14095_v59  ;;  %v2531_v6 = vmul.f32 %v2515_v29, %v2515_v29  ;;  %v2548_v61 = vsel %vm2215_vm1, %v2529_v4, 0.0  ;;  %v20330_v4 = vld [vmem:[#allocation19_spill] sm:$0xff] }
 0x2b9   :  { %v2425_v26 = vadd.f32 %v2424_v49, %v2423_v17  ;;  %v2492_v0 = vsel %vm2215_vm1, %v2466_v33, 0.0  ;;  %v2494_v60 = vsel %vm2215_vm1, %v2467_v52, 0.0  ;;  %v2549_v34 = vadd.f32 %v2548_v61, %v2547_v10  ;;  %v20331_v33 = vld [vmem:[#allocation38_spill] sm:$0xff] }
 0x2ba   :  { %v2496_v7 = vsel %vm2215_vm1, %v2468_v23, 0.0  ;;  %v2518_v13 = vsub.f32 %v20329_v46, %v14095_v59  ;;  %v2532_v11 = vmul.f32 %v2516_v14, %v2516_v14  ;;  %v2550_v22 = vsel %vm2215_vm1, %v2530_v51, 0.0  ;;  %v20332_v23 = vld [vmem:[#allocation17_spill] sm:$0xff]  ;;  %v20334_v61 = vld [vmem:[#allocation42_spill] sm:$0xff] }
 0x2bb   :  { %v2493_v38 = vadd.f32 %v2492_v0, %v2491_v55  ;;  %v2498_v1 = vsel %vm2215_vm1, %v2469_v24, 0.0  ;;  %v2551_v29 = vadd.f32 %v2550_v22, %v2549_v34  ;;  %v2579_v49 = vsub.f32 %v20330_v4, %v14095_v59  ;;  %v20333_v55 = vld [vmem:[#allocation36_spill] sm:$0xff] }
 0x2bc   :  { %v2519_v17 = vsub.f32 %v20331_v33, %v14095_v59  ;;  %v2533_v52 = vmul.f32 %v2517_v54, %v2517_v54  ;;  %v2552_v12 = vsel %vm2215_vm1, %v2531_v6, 0.0  ;;  %v2580_v45 = vsub.f32 %v20332_v23, %v14095_v59  ;;  %v20335_v54 = vld [vmem:[#allocation21_spill] sm:$0xff] }
 0x2bd   :  { %v2427_v14 = vadd.f32 %v14173_v37, %v2425_v26  ;;  %v2500_v51 = vsel %vm2215_vm1, %v2470_v43, 0.0  ;;  %v2520_v24 = vsub.f32 %v20333_v55, %v14095_v59  ;;  %v2553_v10 = vadd.f32 %v2552_v12, %v2551_v29  ;;  %v20337_v29 = vld [vmem:[#allocation20_spill] sm:$0xff] }
 0x2be   :  { %v2521_v0 = vsub.f32 %v20334_v61, %v14095_v59  ;;  %v2534_v34 = vmul.f32 %v2518_v13, %v2518_v13  ;;  %v2554_v22 = vsel %vm2215_vm1, %v2532_v11, 0.0  ;;  %v2581_v6 = vsub.f32 %v20335_v54, %v14095_v59  ;;  %v20338_v11 = vld [vmem:[#allocation46_spill] sm:$0xff] }
 0x2bf   :  { %v2495_v41 = vadd.f32 %v2494_v60, %v2493_v38  ;;  %v2522_v5 = vsub.f32 %v20336_v31, %v14095_v59  ;;  %v2555_v37 = vadd.f32 %v2554_v22, %v2553_v10  ;;  %v2595_v26 = vmul.f32 %v2579_v49, %v2579_v49  ;;  %v20340_v49 = vld [vmem:[#allocation27_spill] sm:$0xff] }
 0x2c0   :  { %v2535_v43 = vmul.f32 %v2519_v17, %v2519_v17  ;;  %v2556_v18 = vsel %vm2215_vm1, %v2533_v52, 0.0  ;;  %v2582_v12 = vsub.f32 %v20337_v29, %v14095_v59  ;;  %v2596_v28 = vmul.f32 %v2580_v45, %v2580_v45 }
 0x2c1   :  { %v2429_v13 = vadd.f32 %v14184_v40, %v2427_v14  ;;  %v2523_v27 = vsub.f32 %v20338_v11, %v14095_v59  ;;  %v2524_v60 = vsub.f32 %v20339_v62, %v14095_v59  ;;  %v2557_v38 = vadd.f32 %v2556_v18, %v2555_v37  ;;  %v20341_v14 = vld [vmem:[#allocation26_spill] sm:$0xff] }
 0x2c2   :  { %v2536_v2 = vmul.f32 %v2520_v24, %v2520_v24  ;;  %v2558_v10 = vsel %vm2215_vm1, %v2534_v34, 0.0  ;;  %v2583_v17 = vsub.f32 %v20340_v49, %v14095_v59  ;;  %v2597_v52 = vmul.f32 %v2581_v6, %v2581_v6 }
 0x2c3   :  { %v2497_v22 = vadd.f32 %v2496_v7, %v2495_v41  ;;  %v2537_v54 = vmul.f32 %v2521_v0, %v2521_v0  ;;  %v2559_v29 = vadd.f32 %v2558_v10, %v2557_v38  ;;  %v2611_v45 = vsel %vm2215_vm1, %v2595_v26, 0.0  ;;  %v20342_v41 = vld [vmem:[#allocation31_spill] sm:$0xff]  ;;  %v2859_v26 = vld [vmem:[%s19638_s9] sm:$0xff]  ;;  %v20343_v10 = vld [vmem:[#allocation29_spill] sm:$0xff] }
 0x2c4   :  { %v2560_v40 = vsel %vm2215_vm1, %v2535_v43, 0.0  ;;  %v2584_v23 = vsub.f32 %v20341_v14, %v14095_v59  ;;  %v2598_v4 = vmul.f32 %v2582_v12, %v2582_v12  ;;  %v2612_v18 = vsel %vm2215_vm1, %v2596_v28, 0.0 }
 0x2c5   :  { %v2538_v24 = vmul.f32 %v2522_v5, %v2522_v5  ;;  %v2539_v37 = vmul.f32 %v2523_v27, %v2523_v27  ;;  %v2561_v34 = vadd.f32 %v2560_v40, %v2559_v29  ;;  %v2613_v19 = vadd.f32 %v2612_v18, %v2611_v45  ;;  %v2860_v27 = vld [vmem:[%s19638_s9 + $0x8] sm:$0xff]  ;;  %v2862_v29 = vld [vmem:[%s19638_s9 + $0x18] sm:$0xff] }
 0x2c6   :  { %v2562_v49 = vsel %vm2215_vm1, %v2536_v2, 0.0  ;;  %v2585_v7 = vsub.f32 %v20342_v41, %v14095_v59  ;;  %v2599_v0 = vmul.f32 %v2583_v17, %v2583_v17  ;;  %v2614_v6 = vsel %vm2215_vm1, %v2597_v52, 0.0  ;;  %v2861_v2 = vld [vmem:[%s19638_s9 + $0x10] sm:$0xff]  ;;  %v20344_v17 = vld [vmem:[#allocation35_spill] sm:$0xff] }
 0x2c7   :  { %v2431_v43 = vadd.f32 %v14212_v20, %v2429_v13  ;;  %v2499_v12 = vadd.f32 %v2498_v1, %v2497_v22  ;;  %v2563_v28 = vadd.f32 %v2562_v49, %v2561_v34  ;;  %v2615_v5 = vadd.f32 %v2614_v6, %v2613_v19 }
 0x2c8   :  { %v2564_v38 = vsel %vm2215_vm1, %v2537_v54, 0.0  ;;  %v2586_v20 = vsub.f32 %v20343_v10, %v14095_v59  ;;  %v2600_v1 = vmul.f32 %v2584_v23, %v2584_v23  ;;  %v2616_v19 = vsel %vm2215_vm1, %v2598_v4, 0.0  ;;  %v2863_v4 = vld [vmem:[%s19638_s9 + $0x20] sm:$0xff]  ;;  %v2864_v23 = vld [vmem:[%s19638_s9 + $0x28] sm:$0xff] }
 0x2c9   :  { %v2565_v13 = vadd.f32 %v2564_v38, %v2563_v28  ;;  %v2566_v49 = vsel %vm2215_vm1, %v2538_v24, 0.0  ;;  %v2587_v52 = vsub.f32 %v20344_v17, %v14095_v59  ;;  %v2617_v22 = vadd.f32 %v2616_v19, %v2615_v5 }
 0x2ca   :  { %v2601_v45 = vmul.f32 %v2585_v7, %v2585_v7  ;;  %v2618_v40 = vsel %vm2215_vm1, %v2599_v0, 0.0  ;;  %v12304_v18 = vpack.c.bf16 %v2860_v27, %v2859_v26  ;;  %v12308_v34 = vpack.c.bf16 %v2862_v29, %v2861_v2  ;;  %v20345_v7 = vld [vmem:[#allocation33_spill] sm:$0xff] }
 0x2cb   :  { %v2501_v6 = vadd.f32 %v2500_v51, %v2499_v12  ;;  %v2540_v54 = vmul.f32 %v2524_v60, %v2524_v60  ;;  %v2567_v41 = vadd.f32 %v2566_v49, %v2565_v13  ;;  %v2619_v14 = vadd.f32 %v2618_v40, %v2617_v22  ;;  %v20346_v12 = vld [vmem:[#allocation39_spill] sm:$0xff] }
 0x2cc   :  { %v2568_v24 = vsel %vm2215_vm1, %v2539_v37, 0.0  ;;  %v2588_v28 = vsub.f32 %v20345_v7, %v14095_v59  ;;  %v2602_v0 = vmul.f32 %v2586_v20, %v2586_v20  ;;  %v2620_v26 = vsel %vm2215_vm1, %v2600_v1, 0.0  ;;  %12305 = vmatprep.subr.bf16.mxu1 %v12304_v18  ;;  %v2865_v20 = vld [vmem:[%s19638_s9 + $0x30] sm:$0xff]  ;;  %v20347_v1 = vld [vmem:[#allocation37_spill] sm:$0xff]  ;;  %v20348_v40 = vld [vmem:[#allocation43_spill] sm:$0xff] }
 0x2cd   :  { %v2569_v51 = vadd.f32 %v2568_v24, %v2567_v41  ;;  %v2621_v60 = vadd.f32 %v2620_v26, %v2619_v14  ;;  %12307 = vmatpush3.bf16.msra.mxu1 %v12304_v18  ;;  %v2589_v5 = vsub.f32 %v20346_v12, %v14095_v59  ;;  %v2603_v27 = vmul.f32 %v2587_v52, %v2587_v52  ;;  %v2866_v14 = vld [vmem:[%s19638_s9 + $0x38] sm:$0xff] }
 0x2ce   :  { %v2622_v2 = vsel %vm2215_vm1, %v2601_v45, 0.0  ;;  %12309 = vmatprep.subr.bf16.mxu1 %v12308_v34  ;;  %v12312_v29 = vpack.c.bf16 %v2864_v23, %v2863_v4  ;;  %v2432_v38 = vrot.slane %v2431_v43, 4  ;;  %v2502_v37 = vrot.slane %v2501_v6, 4 }
 0x2cf   :  { %v2623_v19 = vadd.f32 %v2622_v2, %v2621_v60  ;;  %v2570_v41 = vsel %vm2215_vm1, %v2540_v54, 0.0  ;;  %v2590_v13 = vsub.f32 %v20347_v1, %v14095_v59  ;;  %v2604_v49 = vmul.f32 %v2588_v28, %v2588_v28  ;;  %v9851_v28 = vld [vmem:[%s19638_s9 + $0x40] sm:$0xff] }
 0x2d0   :  { %v2624_v52 = vsel %vm2215_vm1, %v2602_v0, 0.0  ;;  %v2571_v22 = vadd.f32 %v2570_v41, %v2569_v51  ;;  %v2591_v18 = vsub.f32 %v20348_v40, %v14095_v59  ;;  %v2605_v4 = vmul.f32 %v2589_v5, %v2589_v5  ;;  %v9852_v0 = vld [vmem:[%s19638_s9 + $0x48] sm:$0xff] }
 0x2d1   :  { %v2625_v45 = vadd.f32 %v2624_v52, %v2623_v19  ;;  %12311 = vmatpush3.bf16.msra.mxu1 %v12308_v34  ;;  %v2626_v23 = vsel %vm2215_vm1, %v2603_v27, 0.0  ;;  %v12316_v24 = vpack.c.bf16 %v2866_v14, %v2865_v20  ;;  %v2433_v26 = vadd.f32 %v2432_v38, %v2431_v43  ;;  %v20349_v34 = vld [vmem:[#allocation41_spill] sm:$0xff]  ;;  %v20350_v43 = vld [vmem:[#allocation47_spill] sm:$0xff] }
 0x2d2   :  { %12313 = vmatprep.subr.bf16.mxu1 %v12312_v29  ;;  %v2503_v60 = vadd.f32 %v2502_v37, %v2501_v6  ;;  %v2592_v51 = vsub.f32 %v20349_v34, %v14095_v59  ;;  %v2606_v2 = vmul.f32 %v2590_v13, %v2590_v13  ;;  %v2628_v5 = vsel %vm2215_vm1, %v2604_v49, 0.0 }
 0x2d3   :  { %v2627_v54 = vadd.f32 %v2626_v23, %v2625_v45  ;;  %v2572_v27 = vrot.slane %v2571_v22, 4  ;;  %v2593_v6 = vsub.f32 %v20350_v43, %v14095_v59  ;;  %v2607_v38 = vmul.f32 %v2591_v18, %v2591_v18  ;;  %v20351_v45 = vld [vmem:[#allocation45_spill] sm:$0xff] }
 0x2d4   :  { %v2630_v37 = vsel %vm2215_vm1, %v2605_v4, 0.0  ;;  %v14321_v20 = vpack.c.bf16 %v9852_v0, %v9851_v28  ;;  %v2434_v14 = vrot.slane %v2433_v26, 2  ;;  %v2504_v41 = vrot.slane %v2503_v60, 2 }
 0x2d5   :  { %v2629_v19 = vadd.f32 %v2628_v5, %v2627_v54  ;;  %12315 = vmatpush3.bf16.msra.mxu1 %v12312_v29  ;;  %v2594_v13 = vsub.f32 %v20351_v45, %v14095_v59  ;;  %v2608_v23 = vmul.f32 %v2592_v51, %v2592_v51  ;;  %v2632_v49 = vsel %vm2215_vm1, %v2606_v2, 0.0 }
 0x2d6   :  { %12317 = vmatprep.subr.bf16.mxu1 %v12316_v24  ;;  %v2573_v54 = vadd.f32 %v2572_v27, %v2571_v22  ;;  %v2609_v5 = vmul.f32 %v2593_v6, %v2593_v6  ;;  %v2634_v18 = vsel %vm2215_vm1, %v2607_v38, 0.0  ;;  %v2435_v4 = vadd.f32 %v2434_v14, %v2433_v26 }
 0x2d7   :  { %v2631_v52 = vadd.f32 %v2630_v37, %v2629_v19  ;;  %v2505_v28 = vadd.f32 %v2504_v41, %v2503_v60  ;;  %v2610_v34 = vmul.f32 %v2594_v13, %v2594_v13  ;;  %v2636_v19 = vsel %vm2215_vm1, %v2608_v23, 0.0 }
 0x2d8   :  { %v2574_v37 = vrot.slane %v2573_v54, 2  ;;  %v2638_v51 = vsel %vm2215_vm1, %v2609_v5, 0.0  ;;  %v2436_v45 = vrot.slane %v2435_v4, 1 }
 0x2d9   :  { %v2633_v29 = vadd.f32 %v2632_v49, %v2631_v52  ;;  %12319 = vmatpush3.bf16.msra.mxu1 %v12316_v24  ;;  %v2506_v2 = vrot.slane %v2505_v28, 1  ;;  %v2640_v24 = vsel %vm2215_vm1, %v2610_v34, 0.0  ;;  %v2213_v34 = vld [vmem:[%s19639_s7] sm:$0x1] }
 0x2da   :  { %12321 = vmatprep.subr.bf16.mxu1 %v14321_v20  ;;  %v2575_v27 = vadd.f32 %v2574_v37, %v2573_v54  ;;  %v2437_v38 = vadd.f32 %v2436_v45, %v2435_v4  ;;  %v2214_v4 = vld [vmem:[%s19640_s8] sm:$0x1] }
 0x2db   :  { %v2635_v0 = vadd.f32 %v2634_v18, %v2633_v29  ;;  %v2507_v52 = vadd.f32 %v2506_v2, %v2505_v28  ;;  %v20352_v37 = vld [vmem:[#allocation2_spill] sm:$0xff] }
 0x2dc   :  { %v2576_v26 = vrot.slane %v2575_v27, 1 }
 0x2dd   :  { %v2637_v40 = vadd.f32 %v2636_v19, %v2635_v0  ;;  %v2508_v14 = vadd.f32 %v2507_v52, %v2437_v38 }
 0x2de   :  { %v2577_v13 = vadd.f32 %v2576_v26, %v2575_v27 }
 0x2df   :  { %v2639_v22 = vadd.f32 %v2638_v51, %v2637_v40 }
 0x2e0   :  { %v2578_v29 = vadd.f32 %v2577_v13, %v2508_v14  ;;  %v9854_v13 = vld [vmem:[%s19638_s9 + $0x58] sm:$0xff] }
 0x2e1   :  { %v2641_v6 = vadd.f32 %v2640_v24, %v2639_v22 }
 0x2e3   :  { %v2642_v49 = vrot.slane %v2641_v6, 4 }
 0x2e5   :  { %v2643_v60 = vadd.f32 %v2642_v49, %v2641_v6 }
 0x2e7   :  { %v2644_v41 = vrot.slane %v2643_v60, 2 }
 0x2e9   :  { %v2645_v23 = vadd.f32 %v2644_v41, %v2643_v60  ;;  %v9853_v41 = vld [vmem:[%s19638_s9 + $0x50] sm:$0xff] }
 0x2eb   :  { %v2646_v18 = vrot.slane %v2645_v23, 1 }
 0x2ed   :  { %v2647_v0 = vadd.f32 %v2646_v18, %v2645_v23 }
 0x2ef   :  { %v2648_v5 = vadd.f32 %v2647_v0, %v2578_v29 }
 0x2f1   :  { %v2649_v19 = vmul.f32 0.001953125, %v2648_v5 }
 0x2f3   :  { %v2650_v1 = vadd.f32 1e-05, %v2649_v19 }
 0x2f5   :  { %12690 = vrsqrt.f32 %v2650_v1 }
 0x2ff   :  { %v12691_v40 = vpop.eup %12690 }
 0x300   :  { %v2652_v45 = vmul.f32 %v12691_v40, %v2213_v34 }
 0x302   :  { %v2653_v54 = vmul.f32 %v2652_v45, %v14095_v59  ;;  %v14339_v51 = vrot.slane %v2652_v45, %v20352_v37 }
 0x304   :  { %v2654_v28 = vsub.f32 %v2214_v4, %v2653_v54  ;;  %v2662_v1 = vmul.f32 %v14339_v51, %v13776_v21  ;;  %v2661_v22 = vmul.f32 %v14339_v51, %v13782_v56  ;;  %v2663_v59 = vmul.f32 %v14339_v51, %v13788_v15 }
 0x305   :  { %v2664_v24 = vmul.f32 %v14339_v51, %v13806_v35  ;;  %v2665_v27 = vmul.f32 %v14339_v51, %v13812_v32  ;;  %v2764_v6 = vmul.f32 %v14339_v51, %v13908_v42  ;;  %v2765_v38 = vmul.f32 %v14339_v51, %v13942_v50 }
 0x306   :  { %v14342_v2 = vrot.slane %v2654_v28, %v20352_v37  ;;  %v2766_v56 = vmul.f32 %v14339_v51, %v13936_v58  ;;  %v2767_v15 = vmul.f32 %v14339_v51, %v13974_v44  ;;  %v2768_v35 = vmul.f32 %v14339_v51, %v13968_v63  ;;  %v20377_v37 = vld [vmem:[#allocation10_spill] sm:$0xff] }
 0x307   :  { %v2769_v32 = vmul.f32 %v14339_v51, %v20326_v3  ;;  %v2770_v42 = vmul.f32 %v14339_v51, %v20327_v25  ;;  %v2771_v50 = vmul.f32 %v14339_v51, %v20328_v36  ;;  %v2772_v52 = vmul.f32 %v14339_v51, %v20329_v46 }
 0x308   :  { %v2684_v21 = vadd.f32 %v14342_v2, %v2662_v1  ;;  %v2773_v58 = vmul.f32 %v14339_v51, %v20331_v33  ;;  %v2774_v44 = vmul.f32 %v14339_v51, %v20333_v55  ;;  %v2775_v63 = vmul.f32 %v14339_v51, %v20334_v61  ;;  %v9855_v1 = vld [vmem:[%s19638_s9 + $0x60] sm:$0xff] }
 0x309   :  { %v2776_v3 = vmul.f32 %v14339_v51, %v20336_v31  ;;  %v2777_v25 = vmul.f32 %v14339_v51, %v20338_v11  ;;  %v2778_v36 = vmul.f32 %v14339_v51, %v20339_v62  ;;  %v2683_v46 = vadd.f32 %v14342_v2, %v2661_v22  ;;  %v9856_v22 = vld [vmem:[%s19638_s9 + $0x68] sm:$0xff] }
 0x30a   :  { %v2685_v49 = vadd.f32 %v14342_v2, %v2663_v59  ;;  %v14387_v33 = vmax.f32 %v2684_v21, 0.0  ;;  %v14390_v55 = vadd.f32 %v2764_v6, %v14342_v2  ;;  %v14393_v61 = vadd.f32 %v2765_v38, %v14342_v2 }
 0x30b   :  { %v14396_v31 = vadd.f32 %v2766_v56, %v14342_v2  ;;  %v14399_v11 = vadd.f32 %v2767_v15, %v14342_v2  ;;  %v14402_v62 = vadd.f32 %v2768_v35, %v14342_v2  ;;  %v14405_v26 = vadd.f32 %v2769_v32, %v14342_v2  ;;  %v9857_v56 = vld [vmem:[%s19638_s9 + $0x70] sm:$0xff] }
 0x30c   :  { %v14408_v60 = vadd.f32 %v2770_v42, %v14342_v2  ;;  %v14411_v14 = vadd.f32 %v2771_v50, %v14342_v2  ;;  %v14420_v23 = vadd.f32 %v2772_v52, %v14342_v2  ;;  %v14423_v29 = vadd.f32 %v2773_v58, %v14342_v2 }
 0x30d   :  { %v14426_v18 = vadd.f32 %v2774_v44, %v14342_v2  ;;  %v14429_v0 = vadd.f32 %v2775_v63, %v14342_v2  ;;  %v14432_v5 = vadd.f32 %v2776_v3, %v14342_v2  ;;  %v14435_v19 = vadd.f32 %v2777_v25, %v14342_v2  ;;  %v20353_v3 = vld [vmem:[#allocation24_spill] sm:$0xff] }
 0x30e   :  { %v14438_v40 = vadd.f32 %v2778_v36, %v14342_v2  ;;  %v14440_v34 = vmax.f32 %v2683_v46, 0.0  ;;  %v2686_v45 = vadd.f32 %v14342_v2, %v2664_v24  ;;  %v12324_v54 = vpack.c.bf16 %v9854_v13, %v9853_v41  ;;  %v20355_v36 = vld [vmem:[#allocation17_spill] sm:$0xff]  ;;  %v20358_v13 = vld [vmem:[#allocation27_spill] sm:$0xff] }
 0x30f   :  { %v2687_v4 = vadd.f32 %v14342_v2, %v2665_v27  ;;  %v14446_v28 = vmax.f32 %v2685_v49, 0.0  ;;  %v2666_v59 = vmul.f32 %v14339_v51, %v13826_v39  ;;  %v2667_v24 = vmul.f32 %v14339_v51, %v13832_v48  ;;  %v9858_v48 = vld [vmem:[%s19638_s9 + $0x78] sm:$0xff]  ;;  %v20357_v49 = vld [vmem:[#allocation20_spill] sm:$0xff] }
 0x310   :  { %11264 = vmatprep.mubr.msk.f32.mxu1 %vm2215_vm1, %v14440_v34  ;;  %v14464_v6 = vmax.f32 %v2686_v45, 0.0  ;;  %v12328_v38 = vpack.c.bf16 %v9856_v22, %v9855_v1  ;;  %v2669_v15 = vmul.f32 %v14339_v51, %v13856_v57  ;;  %v14485_v35 = vmul.f32 %v14339_v51, %v20350_v43  ;;  %v20360_v22 = vld [vmem:[#allocation31_spill] sm:$0xff] }
 0x311   :  { %11265 = vmatmul.mubr.msk.f32.vlgmr.msra.gmra.mrb[40].mxu1 %vm2215_vm1, %v14387_v33  ;;  %v2688_v27 = vadd.f32 %v14342_v2, %v2666_v59  ;;  %v2689_v21 = vadd.f32 %v14342_v2, %v2667_v24  ;;  %v14467_v39 = vmax.f32 %v2687_v4, 0.0  ;;  %v2670_v50 = vmul.f32 %v14339_v51, %v13862_v53  ;;  %v20354_v53 = vld [vmem:[#allocation19_spill] sm:$0xff]  ;;  %v20359_v4 = vld [vmem:[#allocation26_spill] sm:$0xff] }
 0x312   :  { %12323 = vmatpush3.bf16.msra.mxu1 %v14321_v20  ;;  %11267 = vmatprep.mubr.msk.f32.mxu1 %vm2215_vm1, %v14446_v28  ;;  %v2668_v20 = vmul.f32 %v14339_v51, %v13846_v9  ;;  %v12332_v9 = vpack.c.bf16 %v9858_v48, %v9857_v56  ;;  %v2671_v57 = vmul.f32 %v14339_v51, %v13872_v47 }
 0x313   :  { %12325 = vmatprep.subr.bf16.mxu1 %v12324_v54  ;;  %v14488_v42 = vmax.f32 %v2688_v27, 0.0  ;;  %v2691_v52 = vadd.f32 %v14342_v2, %v2669_v15  ;;  %v14495_v58 = vmax.f32 %v2689_v21, 0.0  ;;  %v2672_v43 = vmul.f32 %v14339_v51, %v13886_v8 }
 0x314   :  { %v2690_v32 = vadd.f32 %v14342_v2, %v2668_v20  ;;  %v2673_v44 = vmul.f32 %v14339_v51, %v13892_v16  ;;  %v2674_v63 = vmul.f32 %v14339_v51, %v13902_v30  ;;  %v2675_v25 = vmul.f32 %v14339_v51, %v20353_v3  ;;  %v20356_v16 = vld [vmem:[#allocation21_spill] sm:$0xff] }
 0x315   :  { %11268 = vmatmul.mubr.msk.f32.gmra.mrb[42].mxu1 %vm2215_vm1, %v14464_v6  ;;  %v2811_v47 = vmul.f32 %v14339_v51, %v20354_v53  ;;  %v2812_v46 = vmul.f32 %v14339_v51, %v20355_v36  ;;  %v2692_v8 = vadd.f32 %v14342_v2, %v2670_v50  ;;  %v2813_v30 = vmul.f32 %v14339_v51, %v20356_v16  ;;  %v20361_v3 = vld [vmem:[#allocation37_spill] sm:$0xff] }
 0x316   :  { %11270 = vmatprep.mubr.msk.f32.mxu1 %vm2215_vm1, %v14467_v39  ;;  %12327 = vmatpush3.bf16.msra.mxu1 %v12324_v54  ;;  %v2814_v41 = vmul.f32 %v14339_v51, %v20357_v49  ;;  %v2815_v45 = vmul.f32 %v14339_v51, %v20358_v13  ;;  %v14520_v54 = vmax.f32 %v2690_v32, 0.0  ;;  %v2816_v1 = vmul.f32 %v14339_v51, %v20359_v4  ;;  %v20364_v16 = vld [vmem:[#allocation45_spill] sm:$0xff] }
 0x317   :  { %12329 = vmatprep.subr.bf16.mxu1 %v12328_v38  ;;  %v2817_v59 = vmul.f32 %v14339_v51, %v20360_v22  ;;  %v2693_v24 = vadd.f32 %v14342_v2, %v2671_v57  ;;  %v14527_v27 = vmax.f32 %v2691_v52, 0.0  ;;  %v2819_v21 = vmul.f32 %v14339_v51, %v20344_v17  ;;  %v9923_v22 = vld [vmem:[%s19638_s9 + $0x80] sm:$0xff] }
 0x318   :  { %v2820_v56 = vmul.f32 %v14339_v51, %v20345_v7  ;;  %v2821_v48 = vmul.f32 %v14339_v51, %v20346_v12  ;;  %v2694_v20 = vadd.f32 %v14342_v2, %v2672_v43  ;;  %v14542_v15 = vmax.f32 %v2692_v8, 0.0 }
 0x319   :  { %11271 = vmatmul.mubr.msk.f32.gmra.mrb[44].mxu1 %vm2215_vm1, %v14488_v42  ;;  %v14548_v17 = vadd.f32 %v2812_v46, %v14342_v2  ;;  %v14551_v7 = vadd.f32 %v2813_v30, %v14342_v2  ;;  %v14554_v12 = vadd.f32 %v2814_v41, %v14342_v2  ;;  %v14557_v32 = vadd.f32 %v2815_v45, %v14342_v2  ;;  %v20363_v46 = vld [vmem:[#allocation41_spill] sm:$0xff] }
 0x31a   :  { %11273 = vmatprep.mubr.msk.f32.mxu1 %vm2215_vm1, %v14495_v58  ;;  %12331 = vmatpush3.bf16.msra.mxu1 %v12328_v38  ;;  %v2818_v38 = vmul.f32 %v14339_v51, %v20343_v10  ;;  %v14545_v10 = vadd.f32 %v2811_v47, %v14342_v2  ;;  %v14560_v50 = vadd.f32 %v2816_v1, %v14342_v2  ;;  %v14563_v52 = vmax.f32 %v2693_v24, 0.0  ;;  %v20362_v47 = vld [vmem:[#allocation43_spill] sm:$0xff] }
 0x31b   :  { %12333 = vmatprep.subr.bf16.mxu1 %v12332_v9  ;;  %v2695_v57 = vadd.f32 %v14342_v2, %v2673_v44  ;;  %v14566_v43 = vadd.f32 %v2817_v59, %v14342_v2  ;;  %v2822_v53 = vmul.f32 %v14339_v51, %v20361_v3  ;;  %v2823_v36 = vmul.f32 %v14339_v51, %v20362_v47  ;;  %v9924_v59 = vld [vmem:[%s19638_s9 + $0x88] sm:$0xff]  ;;  %v20366_v3 = vld [vmem:[#allocation4_spill] sm:$0xff] }
 0x31c   :  { %v2824_v8 = vmul.f32 %v14339_v51, %v20363_v46  ;;  %v2826_v44 = vmul.f32 %v14339_v51, %v20364_v16  ;;  %v2696_v30 = vadd.f32 %v14342_v2, %v2674_v63  ;;  %v14584_v49 = vmax.f32 %v2694_v20, 0.0  ;;  %v20367_v46 = vld [vmem:[#allocation3_spill] sm:$0xff]  ;;  %v20368_v16 = vld [vmem:[#allocation6_spill] sm:$0xff] }
 0x31d   :  { %11274 = vmatmul.mubr.msk.f32.gmra.mrb[46].mxu1 %vm2215_vm1, %v14520_v54  ;;  %v14587_v41 = vadd.f32 %v2819_v21, %v14342_v2  ;;  %v14590_v13 = vadd.f32 %v2820_v56, %v14342_v2  ;;  %v14593_v45 = vadd.f32 %v2821_v48, %v14342_v2  ;;  %v14596_v4 = vadd.f32 %v2822_v53, %v14342_v2  ;;  %v20365_v48 = vld [vmem:[#allocation22_spill] sm:$0xff] }
 0x31e   :  { %11276 = vmatprep.mubr.msk.f32.mxu1 %vm2215_vm1, %v14527_v27  ;;  %12335 = vmatpush3.bf16.msra.mxu1 %v12332_v9  ;;  %v14569_v9 = vadd.f32 %v2818_v38, %v14342_v2  ;;  %v14599_v1 = vadd.f32 %v2823_v36, %v14342_v2  ;;  %v14602_v63 = vadd.f32 %v2824_v8, %v14342_v2  ;;  %v14611_v38 = vmax.f32 %v2695_v57, 0.0 }
 0x31f   :  { %v2697_v24 = vadd.f32 %v14342_v2, %v2675_v25  ;;  %v14615_v21 = vadd.f32 %v14485_v35, %v14342_v2  ;;  %v14618_v56 = vadd.f32 %v2826_v44, %v14342_v2  ;;  %v2676_v20 = vmul.f32 %v14339_v51, %v20365_v48  ;;  %v20369_v48 = vld [vmem:[#allocation5_spill] sm:$0xff] }
 0x320   :  { %v2715_v53 = vmul.f32 %v14339_v51, %v20366_v3  ;;  %v14628_v25 = vpack.c.bf16 %v9924_v59, %v9923_v22  ;;  %v14631_v57 = vmax.f32 %v2696_v30, 0.0  ;;  %v2716_v8 = vmul.f32 %v14339_v51, %v20367_v46  ;;  %v20370_v3 = vld [vmem:[#allocation7_spill] sm:$0xff] }
 0x321   :  { %11277 = vmatmul.mubr.msk.f32.gmra.mrb[48].mxu1 %vm2215_vm1, %v14542_v15  ;;  %v2698_v35 = vadd.f32 %v14342_v2, %v2676_v20  ;;  %v14633_v47 = vmax.f32 %v2697_v24, 0.0  ;;  %v2717_v44 = vmul.f32 %v14339_v51, %v20368_v16  ;;  %v2718_v20 = vmul.f32 %v14339_v51, %v20369_v48  ;;  %v20373_v16 = vld [vmem:[#allocation15_spill] sm:$0xff]  ;;  %v20374_v48 = vld [vmem:[#allocation8_spill] sm:$0xff] }
 0x322   :  { %11279 = vmatprep.mubr.msk.f32.mxu1 %vm2215_vm1, %v14563_v52  ;;  %v2731_v36 = vadd.f32 %v2715_v53, %v14342_v2  ;;  %12337 = vmatprep.subr.bf16.mxu1 %v14628_v25  ;;  %v2732_v22 = vadd.f32 %v2716_v8, %v14342_v2  ;;  %v2719_v53 = vmul.f32 %v14339_v51, %v20370_v3 }
 0x323   :  { %v14645_v30 = vmax.f32 %v2698_v35, 0.0  ;;  %v2733_v24 = vadd.f32 %v2717_v44, %v14342_v2  ;;  %v2734_v46 = vadd.f32 %v2718_v20, %v14342_v2  ;;  %v2720_v44 = vmul.f32 %v14339_v51, %v20373_v16 }
 0x324   :  { %v14648_v59 = vmax.f32 %v2731_v36, 0.0  ;;  %v14659_v35 = vmax.f32 %v2732_v22, 0.0  ;;  %v2735_v8 = vadd.f32 %v2719_v53, %v14342_v2  ;;  %v2721_v3 = vmul.f32 %v14339_v51, %v20374_v48 }
 0x325   :  { %11280 = vmatmul.mubr.msk.f32.gmra.mrb[50].mxu1 %vm2215_vm1, %v14584_v49  ;;  %v14662_v36 = vmax.f32 %v2733_v24, 0.0  ;;  %v14673_v22 = vmax.f32 %v2734_v46, 0.0  ;;  %v2736_v20 = vadd.f32 %v2720_v44, %v14342_v2  ;;  %v2722_v16 = vmul.f32 %v14339_v51, %v20377_v37 }
 0x326   :  { %11282 = vmatprep.mubr.msk.f32.mxu1 %vm2215_vm1, %v14611_v38  ;;  %20371 = vst [vmem:[#allocation30_spill] sm:$0xff] %v14659_v35  ;;  %v14676_v24 = vmax.f32 %v2735_v8, 0.0  ;;  %v2737_v53 = vadd.f32 %v2721_v3, %v14342_v2 }
 0x327   :  { %20372 = vst [vmem:[#allocation28_spill] sm:$0xff] %v14662_v36  ;;  %20375 = vst [vmem:[#allocation34_spill] sm:$0xff] %v14673_v22  ;;  %v14687_v46 = vmax.f32 %v2736_v20, 0.0  ;;  %v2738_v44 = vadd.f32 %v2722_v16, %v14342_v2 }
 0x328   :  { %20376 = vst [vmem:[#allocation32_spill] sm:$0xff] %v14676_v24  ;;  %v14690_v8 = vmax.f32 %v2737_v53, 0.0 }
 0x329   :  { %11283 = vmatmul.mubr.msk.f32.gmra.mrb[52].mxu1 %vm2215_vm1, %v14631_v57  ;;  %20379 = vst [vmem:[#allocation38_spill] sm:$0xff] %v14687_v46  ;;  %v14701_v20 = vmax.f32 %v2738_v44, 0.0 }
 0x32a   :  { %11285 = vmatprep.mubr.msk.f32.mxu1 %vm2215_vm1, %v14633_v47  ;;  %20380 = vst [vmem:[#allocation36_spill] sm:$0xff] %v14690_v8 }
 0x32b   :  { %20383 = vst [vmem:[#allocation42_spill] sm:$0xff] %v14701_v20 }
 0x32d   :  { %11286 = vmatmul.mubr.msk.f32.gmra.mrb[54].mxu1 %vm2215_vm1, %v14645_v30 }
 0x32e   :  { %11288 = vmatprep.mubr.msk.f32.mxu1 %vm2215_vm1, %v14648_v59 }
 0x331   :  { %11289 = vmatmul.mubr.msk.f32.gmra.mrb[56].mxu1 %vm2215_vm1, %v14659_v35  ;;  %v20378_v35 = vld [vmem:[#allocation9_spill] sm:$0xff] }
 0x332   :  { %11291 = vmatprep.mubr.msk.f32.mxu1 %vm2215_vm1, %v14662_v36  ;;  %v2723_v48 = vmul.f32 %v14339_v51, %v20378_v35  ;;  %v20381_v36 = vld [vmem:[#allocation11_spill] sm:$0xff] }
 0x333   :  { %v2724_v37 = vmul.f32 %v14339_v51, %v20381_v36 }
 0x334   :  { %v2739_v3 = vadd.f32 %v2723_v48, %v14342_v2 }
 0x335   :  { %11292 = vmatmul.mubr.msk.f32.gmra.mrb[58].mxu1 %vm2215_vm1, %v14673_v22  ;;  %v20382_v22 = vld [vmem:[#allocation12_spill] sm:$0xff]  ;;  %v2740_v16 = vadd.f32 %v2724_v37, %v14342_v2 }
 0x336   :  { %11294 = vmatprep.mubr.msk.f32.mxu1 %vm2215_vm1, %v14676_v24  ;;  %v2725_v35 = vmul.f32 %v14339_v51, %v20382_v22  ;;  %v14704_v53 = vmax.f32 %v2739_v3, 0.0  ;;  %v20385_v24 = vld [vmem:[#allocation14_spill] sm:$0xff] }
 0x337   :  { %v2726_v36 = vmul.f32 %v14339_v51, %v20385_v24  ;;  %v14715_v44 = vmax.f32 %v2740_v16, 0.0 }
 0x338   :  { %20384 = vst [vmem:[#allocation40_spill] sm:$0xff] %v14704_v53  ;;  %v2741_v48 = vadd.f32 %v2725_v35, %v14342_v2 }
 0x339   :  { %11295 = vmatmul.mubr.msk.f32.gmra.mrb[60].mxu1 %vm2215_vm1, %v14687_v46  ;;  %v20386_v46 = vld [vmem:[#allocation13_spill] sm:$0xff]  ;;  %20387 = vst [vmem:[#allocation46_spill] sm:$0xff] %v14715_v44  ;;  %v2742_v37 = vadd.f32 %v2726_v36, %v14342_v2 }
 0x33a   :  { %11297 = vmatprep.mubr.msk.f32.mxu1 %vm2215_vm1, %v14690_v8  ;;  %v2727_v22 = vmul.f32 %v14339_v51, %v20386_v46  ;;  %v14718_v3 = vmax.f32 %v2741_v48, 0.0  ;;  %v20389_v8 = vld [vmem:[#allocation16_spill] sm:$0xff] }
 0x33b   :  { %v2728_v24 = vmul.f32 %v14339_v51, %v20389_v8  ;;  %v14729_v16 = vmax.f32 %v2742_v37, 0.0 }
 0x33c   :  { %20388 = vst [vmem:[#allocation44_spill] sm:$0xff] %v14718_v3  ;;  %v2743_v35 = vadd.f32 %v2727_v22, %v14342_v2 }
 0x33d   :  { %11298 = vmatmul.mubr.msk.f32.gmra.mrb[62].mxu1 %vm2215_vm1, %v14701_v20  ;;  %v20390_v20 = vld [vmem:[#allocation25_spill] sm:$0xff]  ;;  %v2744_v36 = vadd.f32 %v2728_v24, %v14342_v2 }
 0x33e   :  { %11300 = vmatprep.mubr.msk.f32.mxu1 %vm2215_vm1, %v14704_v53  ;;  %v2729_v46 = vmul.f32 %v14339_v51, %v20390_v20  ;;  %v14732_v48 = vmax.f32 %v2743_v35, 0.0  ;;  %v20391_v53 = vld [vmem:[#allocation23_spill] sm:$0xff] }
 0x33f   :  { %v2730_v8 = vmul.f32 %v14339_v51, %v20391_v53  ;;  %v14743_v37 = vmax.f32 %v2744_v36, 0.0  ;;  %v14775_v36 = vmax.f32 %v14399_v11, 0.0  ;;  %v14795_v11 = vmax.f32 %v14411_v14, 0.0 }
 0x340   :  { %v2745_v22 = vadd.f32 %v2729_v46, %v14342_v2  ;;  %v14772_v46 = vmax.f32 %v14396_v31, 0.0  ;;  %v14792_v31 = vmax.f32 %v14408_v60, 0.0  ;;  %v14812_v60 = vmax.f32 %v14426_v18, 0.0 }
 0x341   :  { %11301 = vmatmul.mubr.msk.f32.gmra.mrb[64].mxu1 %vm2215_vm1, %v14715_v44  ;;  %v20392_v44 = vld [vmem:[#allocation18_spill] sm:$0xff]  ;;  %v2746_v24 = vadd.f32 %v2730_v8, %v14342_v2  ;;  %20394 = vst [vmem:[#allocation35_spill] sm:$0xff] %v14775_v36  ;;  %v14815_v14 = vmax.f32 %v14429_v0, 0.0  ;;  %v14832_v18 = vmax.f32 %v14438_v40, 0.0  ;;  %v14835_v0 = vmax.f32 %v14545_v10, 0.0 }
 0x342   :  { %11303 = vmatprep.mubr.msk.f32.mxu1 %vm2215_vm1, %v14718_v3  ;;  %v2763_v20 = vmul.f32 %v14339_v51, %v20392_v44  ;;  %v14747_v3 = vmax.f32 %v2745_v22, 0.0  ;;  %v14765_v44 = vmax.f32 %v14393_v61, 0.0  ;;  %20393 = vst [vmem:[#allocation29_spill] sm:$0xff] %v14772_v46  ;;  %v14785_v61 = vmax.f32 %v14405_v26, 0.0  ;;  %20396 = vst [vmem:[#allocation39_spill] sm:$0xff] %v14792_v31  ;;  %v9928_v22 = vld [vmem:[%s19638_s9 + $0xa8] sm:$0xff] }
 0x343   :  { %v14753_v53 = vmax.f32 %v2746_v24, 0.0  ;;  %v14805_v26 = vmax.f32 %v14423_v29, 0.0  ;;  %v14825_v29 = vmax.f32 %v14435_v19, 0.0  ;;  %v14845_v19 = vmax.f32 %v14551_v7, 0.0  ;;  %v9930_v24 = vld [vmem:[%s19638_s9 + $0xb8] sm:$0xff] }
 0x344   :  { %v2779_v35 = vadd.f32 %v2763_v20, %v14342_v2  ;;  %v14762_v2 = vmax.f32 %v14390_v55, 0.0  ;;  %v14782_v55 = vmax.f32 %v14402_v62, 0.0  ;;  %20395 = vst [vmem:[#allocation33_spill] sm:$0xff] %v14785_v61  ;;  %v14802_v62 = vmax.f32 %v14420_v23, 0.0  ;;  %v9929_v20 = vld [vmem:[%s19638_s9 + $0xb0] sm:$0xff] }
 0x345   :  { %11304 = vmatmul.mubr.msk.f32.gmra.mrb[66].mxu1 %vm2215_vm1, %v14729_v16  ;;  %20397 = vst [vmem:[#allocation47_spill] sm:$0xff] %v14805_v26  ;;  %v14822_v23 = vmax.f32 %v14432_v5, 0.0  ;;  %v14842_v5 = vmax.f32 %v14548_v17, 0.0  ;;  %v14852_v40 = vmax.f32 %v14554_v12, 0.0  ;;  %v14855_v10 = vmax.f32 %v14557_v32, 0.0 }
 0x346   :  { %11306 = vmatprep.mubr.msk.f32.mxu1 %vm2215_vm1, %v14732_v48  ;;  %v14755_v51 = vmax.f32 %v2779_v35, 0.0  ;;  %v14862_v17 = vmax.f32 %v14560_v50, 0.0  ;;  %v14865_v7 = vmax.f32 %v14566_v43, 0.0  ;;  %v14872_v12 = vmax.f32 %v14569_v9, 0.0  ;;  %v9995_v35 = vld [vmem:[%s19638_s9 + $0xc0] sm:$0xff] }
 0x347   :  { %v14875_v32 = vmax.f32 %v14587_v41, 0.0  ;;  %v14882_v50 = vmax.f32 %v14590_v13, 0.0  ;;  %v14885_v43 = vmax.f32 %v14593_v45, 0.0  ;;  %v14892_v9 = vmax.f32 %v14596_v4, 0.0 }
 0x348   :  { %v14895_v41 = vmax.f32 %v14599_v1, 0.0  ;;  %v14902_v13 = vmax.f32 %v14602_v63, 0.0  ;;  %v14905_v45 = vmax.f32 %v14615_v21, 0.0  ;;  %v14912_v4 = vmax.f32 %v14618_v56, 0.0  ;;  %v9925_v1 = vld [vmem:[%s19638_s9 + $0x90] sm:$0xff]  ;;  %v9926_v63 = vld [vmem:[%s19638_s9 + $0x98] sm:$0xff] }
 0x349   :  { %11307 = vmatmul.mubr.msk.f32.gmra.mrb[68].mxu1 %vm2215_vm1, %v14743_v37  ;;  %20398 = vst [vmem:[#allocation24_spill] sm:$0xff] %v14875_v32  ;;  %20399 = vst [vmem:[#allocation19_spill] sm:$0xff] %v14882_v50  ;;  %v12340_v21 = vpack.c.bf16 %v9926_v63, %v9925_v1  ;;  %v9927_v56 = vld [vmem:[%s19638_s9 + $0xa0] sm:$0xff]  ;;  %v9996_v1 = vld [vmem:[%s19638_s9 + $0xc8] sm:$0xff] }
 0x34a   :  { %11309 = vmatprep.mubr.msk.f32.mxu1 %vm2215_vm1, %v14747_v3  ;;  %20400 = vst [vmem:[#allocation17_spill] sm:$0xff] %v14885_v43  ;;  %20401 = vst [vmem:[#allocation21_spill] sm:$0xff] %v14895_v41  ;;  %v12344_v8 = vpack.c.bf16 %v9928_v22, %v9927_v56  ;;  %v14955_v63 = vpack.c.bf16 %v9996_v1, %v9995_v35  ;;  %v20405_v56 = vld [vmem:[#allocation28_spill] sm:$0xff]  ;;  %v20406_v22 = vld [vmem:[#allocation34_spill] sm:$0xff] }
 0x34b   :  { %20402 = vst [vmem:[#allocation20_spill] sm:$0xff] %v14902_v13  ;;  %20403 = vst [vmem:[#allocation27_spill] sm:$0xff] %v14905_v45  ;;  %v20411_v35 = vld [vmem:[#allocation40_spill] sm:$0xff]  ;;  %v20412_v1 = vld [vmem:[#allocation46_spill] sm:$0xff] }
 0x34d   :  { %11310 = vmatmul.mubr.msk.f32.gmra.mrb[70].mxu1 %vm2215_vm1, %v14753_v53 }
 0x34e   :  { %11312 = vmatprep.mubr.msk.f32.mxu1 %vm2215_vm1, %v14755_v51 }
 0x351   :  { %11313 = vmatmul.mubr.msk.f32.gmra.mrb[72].mxu1 %vm2215_vm1, %v14762_v2 }
 0x352   :  { %11315 = vmatprep.mubr.msk.f32.mxu1 %vm2215_vm1, %v14765_v44 }
 0x355   :  { %11316 = vmatmul.mubr.msk.f32.gmra.mrb[74].mxu1 %vm2215_vm1, %v14772_v46 }
 0x356   :  { %11318 = vmatprep.mubr.msk.f32.mxu1 %vm2215_vm1, %v14775_v36 }
 0x359   :  { %11319 = vmatmul.mubr.msk.f32.gmra.mrb[76].mxu1 %vm2215_vm1, %v14782_v55 }
 0x35a   :  { %11321 = vmatprep.mubr.msk.f32.mxu1 %vm2215_vm1, %v14785_v61 }
 0x35d   :  { %11322 = vmatmul.mubr.msk.f32.gmra.mrb[78].mxu1 %vm2215_vm1, %v14792_v31 }
 0x35e   :  { %11324 = vmatprep.mubr.msk.f32.mxu1 %vm2215_vm1, %v14795_v11 }
 0x361   :  { %11325 = vmatmul.mubr.msk.f32.gmra.mrb[80].mxu1 %vm2215_vm1, %v14802_v62 }
 0x362   :  { %11327 = vmatprep.mubr.msk.f32.mxu1 %vm2215_vm1, %v14805_v26 }
 0x365   :  { %11328 = vmatmul.mubr.msk.f32.gmra.mrb[82].mxu1 %vm2215_vm1, %v14812_v60 }
 0x366   :  { %11330 = vmatprep.mubr.msk.f32.mxu1 %vm2215_vm1, %v14815_v14 }
 0x369   :  { %11331 = vmatmul.mubr.msk.f32.gmra.mrb[84].mxu1 %vm2215_vm1, %v14822_v23 }
 0x36a   :  { %11333 = vmatprep.mubr.msk.f32.mxu1 %vm2215_vm1, %v14825_v29 }
 0x36d   :  { %11334 = vmatmul.mubr.msk.f32.gmra.mrb[86].mxu1 %vm2215_vm1, %v14832_v18 }
 0x36e   :  { %11336 = vmatprep.mubr.msk.f32.mxu1 %vm2215_vm1, %v14835_v0 }
 0x371   :  { %11337 = vmatmul.mubr.msk.f32.gmra.mrb[88].mxu1 %vm2215_vm1, %v14842_v5 }
 0x372   :  { %11339 = vmatprep.mubr.msk.f32.mxu1 %vm2215_vm1, %v14845_v19 }
 0x375   :  { %11340 = vmatmul.mubr.msk.f32.gmra.mrb[90].mxu1 %vm2215_vm1, %v14852_v40 }
 0x376   :  { %11342 = vmatprep.mubr.msk.f32.mxu1 %vm2215_vm1, %v14855_v10 }
 0x379   :  { %11343 = vmatmul.mubr.msk.f32.gmra.mrb[92].mxu1 %vm2215_vm1, %v14862_v17 }
 0x37a   :  { %11345 = vmatprep.mubr.msk.f32.mxu1 %vm2215_vm1, %v14865_v7 }
 0x37d   :  { %11346 = vmatmul.mubr.msk.f32.gmra.mrb[94].mxu1 %vm2215_vm1, %v14872_v12 }
 0x37e   :  { %11348 = vmatprep.mubr.msk.f32.mxu1 %vm2215_vm1, %v14875_v32 }
 0x381   :  { %11349 = vmatmul.mubr.msk.f32.gmra.mrb[96].mxu1 %vm2215_vm1, %v14882_v50 }
 0x382   :  { %11351 = vmatprep.mubr.msk.f32.mxu1 %vm2215_vm1, %v14885_v43 }
 0x385   :  { %11352 = vmatmul.mubr.msk.f32.gmra.mrb[98].mxu1 %vm2215_vm1, %v14892_v9 }
 0x386   :  { %11354 = vmatprep.mubr.msk.f32.mxu1 %vm2215_vm1, %v14895_v41 }
 0x389   :  { %11355 = vmatmul.mubr.msk.f32.gmra.mrb[100].mxu1 %vm2215_vm1, %v14902_v13 }
 0x38a   :  { %11357 = vmatprep.mubr.msk.f32.mxu1 %vm2215_vm1, %v14905_v45 }
 0x38d   :  { %11358 = vmatmul.mubr.msk.f32.gmra.mrb[102].mxu1 %vm2215_vm1, %v14912_v4 }
 0x38e   :  { %11376 = vmatprep.mubr.msk.f32.mxu1 %vm2215_vm1, %v14440_v34 }
 0x391   :  { %11377 = vmatmul.mubr.msk.f32.vlgmr.msra.gmra.mrb[104].mxu1 %vm2215_vm1, %v14387_v33 }
 0x392   :  { %12339 = vmatpush3.bf16.msra.mxu1 %v14628_v25  ;;  %11379 = vmatprep.mubr.msk.f32.mxu1 %vm2215_vm1, %v14446_v28  ;;  %v12348_v25 = vpack.c.bf16 %v9930_v24, %v9929_v20  ;;  %v20408_v20 = vld [vmem:[#allocation38_spill] sm:$0xff]  ;;  %v20409_v24 = vld [vmem:[#allocation36_spill] sm:$0xff] }
 0x393   :  { %12341 = vmatprep.subr.bf16.mxu1 %v12340_v21 }
 0x395   :  { %11380 = vmatmul.mubr.msk.f32.gmra.mrb[106].mxu1 %vm2215_vm1, %v14464_v6 }
 0x396   :  { %11382 = vmatprep.mubr.msk.f32.mxu1 %vm2215_vm1, %v14467_v39  ;;  %12343 = vmatpush3.bf16.msra.mxu1 %v12340_v21  ;;  %v20404_v21 = vld [vmem:[#allocation30_spill] sm:$0xff] }
 0x397   :  { %12345 = vmatprep.subr.bf16.mxu1 %v12344_v8 }
 0x399   :  { %11383 = vmatmul.mubr.msk.f32.gmra.mrb[108].mxu1 %vm2215_vm1, %v14488_v42 }
 0x39a   :  { %11385 = vmatprep.mubr.msk.f32.mxu1 %vm2215_vm1, %v14495_v58  ;;  %12347 = vmatpush3.bf16.msra.mxu1 %v12344_v8  ;;  %v20407_v8 = vld [vmem:[#allocation32_spill] sm:$0xff] }
 0x39b   :  { %12349 = vmatprep.subr.bf16.mxu1 %v12348_v25 }
 0x39d   :  { %11386 = vmatmul.mubr.msk.f32.gmra.mrb[110].mxu1 %vm2215_vm1, %v14520_v54 }
 0x39e   :  { %11388 = vmatprep.mubr.msk.f32.mxu1 %vm2215_vm1, %v14527_v27  ;;  %12351 = vmatpush3.bf16.msra.mxu1 %v12348_v25  ;;  %v20410_v25 = vld [vmem:[#allocation42_spill] sm:$0xff] }
 0x39f   :  { %12353 = vmatprep.subr.bf16.mxu1 %v14955_v63 }
 0x3a1   :  { %11389 = vmatmul.mubr.msk.f32.gmra.mrb[112].mxu1 %vm2215_vm1, %v14542_v15 }
 0x3a2   :  { %11391 = vmatprep.mubr.msk.f32.mxu1 %vm2215_vm1, %v14563_v52 }
 0x3a5   :  { %11392 = vmatmul.mubr.msk.f32.gmra.mrb[114].mxu1 %vm2215_vm1, %v14584_v49 }
 0x3a6   :  { %11394 = vmatprep.mubr.msk.f32.mxu1 %vm2215_vm1, %v14611_v38 }
 0x3a9   :  { %11395 = vmatmul.mubr.msk.f32.gmra.mrb[116].mxu1 %vm2215_vm1, %v14631_v57 }
 0x3aa   :  { %11397 = vmatprep.mubr.msk.f32.mxu1 %vm2215_vm1, %v14633_v47 }
 0x3ad   :  { %11398 = vmatmul.mubr.msk.f32.gmra.mrb[118].mxu1 %vm2215_vm1, %v14645_v30 }
 0x3ae   :  { %11400 = vmatprep.mubr.msk.f32.mxu1 %vm2215_vm1, %v14648_v59 }
 0x3b1   :  { %11401 = vmatmul.mubr.msk.f32.gmra.mrb[120].mxu1 %vm2215_vm1, %v20404_v21 }
 0x3b2   :  { %11403 = vmatprep.mubr.msk.f32.mxu1 %vm2215_vm1, %v20405_v56  ;;  %v20413_v56 = vld [vmem:[#allocation44_spill] sm:$0xff] }
 0x3b5   :  { %11404 = vmatmul.mubr.msk.f32.gmra.mrb[122].mxu1 %vm2215_vm1, %v20406_v22 }
 0x3b6   :  { %11406 = vmatprep.mubr.msk.f32.mxu1 %vm2215_vm1, %v20407_v8 }
 0x3b9   :  { %11407 = vmatmul.mubr.msk.f32.gmra.mrb[124].mxu1 %vm2215_vm1, %v20408_v20 }
 0x3ba   :  { %11409 = vmatprep.mubr.msk.f32.mxu1 %vm2215_vm1, %v20409_v24 }
 0x3bd   :  { %11410 = vmatmul.mubr.msk.f32.gmra.mrb[126].mxu1 %vm2215_vm1, %v20410_v25 }
 0x3be   :  { %11412 = vmatprep.mubr.msk.f32.mxu1 %vm2215_vm1, %v20411_v35 }
 0x3c1   :  { %11413 = vmatmul.mubr.msk.f32.gmra.mrb[128].mxu1 %vm2215_vm1, %v20412_v1 }
 0x3c2   :  { %11415 = vmatprep.mubr.msk.f32.mxu1 %vm2215_vm1, %v20413_v56 }
 0x3c5   :  { %11416 = vmatmul.mubr.msk.f32.gmra.mrb[130].mxu1 %vm2215_vm1, %v14729_v16 }
 0x3c6   :  { %11418 = vmatprep.mubr.msk.f32.mxu1 %vm2215_vm1, %v14732_v48 }
 0x3c9   :  { %11419 = vmatmul.mubr.msk.f32.gmra.mrb[132].mxu1 %vm2215_vm1, %v14743_v37 }
 0x3ca   :  { %11421 = vmatprep.mubr.msk.f32.mxu1 %vm2215_vm1, %v14747_v3 }
 0x3cd   :  { %11422 = vmatmul.mubr.msk.f32.gmra.mrb[134].mxu1 %vm2215_vm1, %v14753_v53 }
 0x3ce   :  { %11424 = vmatprep.mubr.msk.f32.mxu1 %vm2215_vm1, %v14755_v51 }
 0x3d1   :  { %11425 = vmatmul.mubr.msk.f32.gmra.mrb[136].mxu1 %vm2215_vm1, %v14762_v2 }
 0x3d2   :  { %11427 = vmatprep.mubr.msk.f32.mxu1 %vm2215_vm1, %v14765_v44 }
 0x3d5   :  { %11428 = vmatmul.mubr.msk.f32.gmra.mrb[138].mxu1 %vm2215_vm1, %v14772_v46 }
 0x3d6   :  { %11430 = vmatprep.mubr.msk.f32.mxu1 %vm2215_vm1, %v14775_v36 }
 0x3d9   :  { %11431 = vmatmul.mubr.msk.f32.gmra.mrb[140].mxu1 %vm2215_vm1, %v14782_v55 }
 0x3da   :  { %11433 = vmatprep.mubr.msk.f32.mxu1 %vm2215_vm1, %v14785_v61 }
 0x3dd   :  { %11434 = vmatmul.mubr.msk.f32.gmra.mrb[142].mxu1 %vm2215_vm1, %v14792_v31 }
 0x3de   :  { %11436 = vmatprep.mubr.msk.f32.mxu1 %vm2215_vm1, %v14795_v11 }
 0x3e1   :  { %11437 = vmatmul.mubr.msk.f32.gmra.mrb[144].mxu1 %vm2215_vm1, %v14802_v62 }
 0x3e2   :  { %11439 = vmatprep.mubr.msk.f32.mxu1 %vm2215_vm1, %v14805_v26 }
 0x3e4   :  { %v15030_v46 = vpop.f32.mrb[40].mxu1 }
 0x3e5   :  { %20414 = vst [vmem:[#allocation26_spill] sm:$0xff] %v15030_v46  ;;  %v15032_v36 = vpop.f32.mrb[41].mxu1  ;;  %11440 = vmatmul.mubr.msk.f32.gmra.mrb[146].mxu1 %vm2215_vm1, %v14812_v60 }
 0x3e6   :  { %20415 = vst [vmem:[#allocation31_spill] sm:$0xff] %v15032_v36  ;;  %11442 = vmatprep.mubr.msk.f32.mxu1 %vm2215_vm1, %v14815_v14 }
 0x3e8   :  { %v15038_v31 = vpop.f32.mrb[42].mxu1 }
 0x3e9   :  { %20416 = vst [vmem:[#allocation37_spill] sm:$0xff] %v15038_v31  ;;  %v15040_v61 = vpop.f32.mrb[43].mxu1  ;;  %11443 = vmatmul.mubr.msk.f32.gmra.mrb[148].mxu1 %vm2215_vm1, %v14822_v23 }
 0x3ea   :  { %20417 = vst [vmem:[#allocation43_spill] sm:$0xff] %v15040_v61  ;;  %11445 = vmatprep.mubr.msk.f32.mxu1 %vm2215_vm1, %v14825_v29 }
 0x3ec   :  { %v15046_v26 = vpop.f32.mrb[44].mxu1 }
 0x3ed   :  { %20418 = vst [vmem:[#allocation41_spill] sm:$0xff] %v15046_v26  ;;  %v15048_v46 = vpop.f32.mrb[45].mxu1  ;;  %11446 = vmatmul.mubr.msk.f32.gmra.mrb[150].mxu1 %vm2215_vm1, %v14832_v18 }
 0x3ee   :  { %20419 = vst [vmem:[#allocation45_spill] sm:$0xff] %v15048_v46  ;;  %11448 = vmatprep.mubr.msk.f32.mxu1 %vm2215_vm1, %v14835_v0 }
 0x3f0   :  { %v15054_v36 = vpop.f32.mrb[46].mxu1 }
 0x3f1   :  { %20420 = vst [vmem:[#allocation22_spill] sm:$0xff] %v15054_v36  ;;  %v15056_v31 = vpop.f32.mrb[47].mxu1  ;;  %11449 = vmatmul.mubr.msk.f32.gmra.mrb[152].mxu1 %vm2215_vm1, %v14842_v5 }
 0x3f2   :  { %20421 = vst [vmem:[#allocation4_spill] sm:$0xff] %v15056_v31  ;;  %11451 = vmatprep.mubr.msk.f32.mxu1 %vm2215_vm1, %v14845_v19 }
 0x3f4   :  { %v15062_v61 = vpop.f32.mrb[48].mxu1 }
 0x3f5   :  { %20422 = vst [vmem:[#allocation3_spill] sm:$0xff] %v15062_v61  ;;  %v15064_v26 = vpop.f32.mrb[49].mxu1  ;;  %11452 = vmatmul.mubr.msk.f32.gmra.mrb[154].mxu1 %vm2215_vm1, %v14852_v40 }
 0x3f6   :  { %20423 = vst [vmem:[#allocation6_spill] sm:$0xff] %v15064_v26  ;;  %11454 = vmatprep.mubr.msk.f32.mxu1 %vm2215_vm1, %v14855_v10 }
 0x3f8   :  { %v15070_v46 = vpop.f32.mrb[50].mxu1 }
 0x3f9   :  { %20424 = vst [vmem:[#allocation5_spill] sm:$0xff] %v15070_v46  ;;  %v15072_v36 = vpop.f32.mrb[51].mxu1  ;;  %11455 = vmatmul.mubr.msk.f32.gmra.mrb[156].mxu1 %vm2215_vm1, %v14862_v17 }
 0x3fa   :  { %20425 = vst [vmem:[#allocation7_spill] sm:$0xff] %v15072_v36  ;;  %11457 = vmatprep.mubr.msk.f32.mxu1 %vm2215_vm1, %v14865_v7 }
 0x3fc   :  { %v15078_v31 = vpop.f32.mrb[52].mxu1 }
 0x3fd   :  { %20426 = vst [vmem:[#allocation15_spill] sm:$0xff] %v15078_v31  ;;  %v15080_v61 = vpop.f32.mrb[53].mxu1  ;;  %11458 = vmatmul.mubr.msk.f32.gmra.mrb[158].mxu1 %vm2215_vm1, %v14872_v12 }
 0x3fe   :  { %20427 = vst [vmem:[#allocation8_spill] sm:$0xff] %v15080_v61  ;;  %11460 = vmatprep.mubr.msk.f32.mxu1 %vm2215_vm1, %v14875_v32 }
 0x400   :  { %v15086_v26 = vpop.f32.mrb[54].mxu1 }
 0x401   :  { %20428 = vst [vmem:[#allocation10_spill] sm:$0xff] %v15086_v26  ;;  %v15088_v46 = vpop.f32.mrb[55].mxu1  ;;  %11461 = vmatmul.mubr.msk.f32.gmra.mrb[160].mxu1 %vm2215_vm1, %v14882_v50 }
 0x402   :  { %20429 = vst [vmem:[#allocation9_spill] sm:$0xff] %v15088_v46  ;;  %11463 = vmatprep.mubr.msk.f32.mxu1 %vm2215_vm1, %v14885_v43 }
 0x404   :  { %v15094_v36 = vpop.f32.mrb[56].mxu1 }
 0x405   :  { %20430 = vst [vmem:[#allocation11_spill] sm:$0xff] %v15094_v36  ;;  %v15096_v31 = vpop.f32.mrb[57].mxu1  ;;  %11464 = vmatmul.mubr.msk.f32.gmra.mrb[162].mxu1 %vm2215_vm1, %v14892_v9  ;;  %v9997_v36 = vld [vmem:[%s19638_s9 + $0xd0] sm:$0xff] }
 0x406   :  { %20431 = vst [vmem:[#allocation12_spill] sm:$0xff] %v15096_v31  ;;  %11466 = vmatprep.mubr.msk.f32.mxu1 %vm2215_vm1, %v14895_v41  ;;  %v9998_v31 = vld [vmem:[%s19638_s9 + $0xd8] sm:$0xff] }
 0x408   :  { %v15102_v61 = vpop.f32.mrb[58].mxu1 }
 0x409   :  { %20432 = vst [vmem:[#allocation14_spill] sm:$0xff] %v15102_v61  ;;  %v15104_v26 = vpop.f32.mrb[59].mxu1  ;;  %11467 = vmatmul.mubr.msk.f32.gmra.mrb[164].mxu1 %vm2215_vm1, %v14902_v13  ;;  %v12356_v61 = vpack.c.bf16 %v9998_v31, %v9997_v36 }
 0x40a   :  { %20433 = vst [vmem:[#allocation13_spill] sm:$0xff] %v15104_v26  ;;  %11469 = vmatprep.mubr.msk.f32.mxu1 %vm2215_vm1, %v14905_v45  ;;  %v10000_v45 = vld [vmem:[%s19638_s9 + $0xe8] sm:$0xff] }
 0x40c   :  { %v15110_v46 = vpop.f32.mrb[60].mxu1 }
 0x40d   :  { %20434 = vst [vmem:[#allocation16_spill] sm:$0xff] %v15110_v46  ;;  %v15118_v41 = vpop.f32.mrb[61].mxu1  ;;  %11470 = vmatmul.mubr.msk.f32.gmra.mrb[166].mxu1 %vm2215_vm1, %v14912_v4  ;;  %v9999_v46 = vld [vmem:[%s19638_s9 + $0xe0] sm:$0xff] }
 0x40e   :  { %20435 = vst [vmem:[#allocation25_spill] sm:$0xff] %v15118_v41  ;;  %11488 = vmatprep.mubr.msk.f32.mxu1 %vm2215_vm1, %v14440_v34  ;;  %v12360_v36 = vpack.c.bf16 %v10000_v45, %v9999_v46 }
 0x410   :  { %v15124_v26 = vpop.f32.mrb[62].mxu1 }
 0x411   :  { %20436 = vst [vmem:[#allocation23_spill] sm:$0xff] %v15124_v26  ;;  %v15132_v13 = vpop.f32.mrb[63].mxu1  ;;  %11489 = vmatmul.mubr.msk.f32.vlgmr.msra.gmra.mrb[168].mxu1 %vm2215_vm1, %v14387_v33  ;;  %v10001_v26 = vld [vmem:[%s19638_s9 + $0xf0] sm:$0xff] }
 0x412   :  { %20437 = vst [vmem:[#allocation18_spill] sm:$0xff] %v15132_v13  ;;  %12355 = vmatpush3.bf16.msra.mxu1 %v14955_v63  ;;  %11491 = vmatprep.mubr.msk.f32.mxu1 %vm2215_vm1, %v14446_v28  ;;  %v10002_v13 = vld [vmem:[%s19638_s9 + $0xf8] sm:$0xff] }
 0x413   :  { %12357 = vmatprep.subr.bf16.mxu1 %v12356_v61  ;;  %v12364_v46 = vpack.c.bf16 %v10002_v13, %v10001_v26 }
 0x414   :  { %v15139_v31 = vpop.f32.mrb[64].mxu1 }
 0x415   :  { %20438 = vst [vmem:[#allocation30_spill] sm:$0xff] %v15139_v31  ;;  %v15147_v41 = vpop.f32.mrb[65].mxu1  ;;  %11492 = vmatmul.mubr.msk.f32.gmra.mrb[170].mxu1 %vm2215_vm1, %v14464_v6 }
 0x416   :  { %20439 = vst [vmem:[#allocation34_spill] sm:$0xff] %v15147_v41  ;;  %11494 = vmatprep.mubr.msk.f32.mxu1 %vm2215_vm1, %v14467_v39  ;;  %12359 = vmatpush3.bf16.msra.mxu1 %v12356_v61 }
 0x417   :  { %12361 = vmatprep.subr.bf16.mxu1 %v12360_v36 }
 0x418   :  { %v15153_v45 = vpop.f32.mrb[66].mxu1 }
 0x419   :  { %20440 = vst [vmem:[#allocation32_spill] sm:$0xff] %v15153_v45  ;;  %v15155_v63 = vpop.f32.mrb[67].mxu1  ;;  %11495 = vmatmul.mubr.msk.f32.gmra.mrb[172].mxu1 %vm2215_vm1, %v14488_v42 }
 0x41a   :  { %20441 = vst [vmem:[#allocation38_spill] sm:$0xff] %v15155_v63  ;;  %11497 = vmatprep.mubr.msk.f32.mxu1 %vm2215_vm1, %v14495_v58  ;;  %12363 = vmatpush3.bf16.msra.mxu1 %v12360_v36 }
 0x41b   :  { %12365 = vmatprep.subr.bf16.mxu1 %v12364_v46 }
 0x41c   :  { %v15161_v31 = vpop.f32.mrb[68].mxu1 }
 0x41d   :  { %20442 = vst [vmem:[#allocation36_spill] sm:$0xff] %v15161_v31  ;;  %v15163_v41 = vpop.f32.mrb[69].mxu1  ;;  %11498 = vmatmul.mubr.msk.f32.gmra.mrb[174].mxu1 %vm2215_vm1, %v14520_v54 }
 0x41e   :  { %20443 = vst [vmem:[#allocation42_spill] sm:$0xff] %v15163_v41  ;;  %11500 = vmatprep.mubr.msk.f32.mxu1 %vm2215_vm1, %v14527_v27  ;;  %12367 = vmatpush3.bf16.msra.mxu1 %v12364_v46  ;;  %v20474_v41 = vld [vmem:[#allocation35_spill] sm:$0xff] }
 0x420   :  { %v15169_v61 = vpop.f32.mrb[70].mxu1 }
 0x421   :  { %20444 = vst [vmem:[#allocation40_spill] sm:$0xff] %v15169_v61  ;;  %v15171_v26 = vpop.f32.mrb[71].mxu1  ;;  %11501 = vmatmul.mubr.msk.f32.gmra.mrb[176].mxu1 %vm2215_vm1, %v14542_v15 }
 0x422   :  { %20445 = vst [vmem:[#allocation46_spill] sm:$0xff] %v15171_v26  ;;  %11503 = vmatprep.mubr.msk.f32.mxu1 %vm2215_vm1, %v14563_v52 }
 0x424   :  { %v15177_v13 = vpop.f32.mrb[72].mxu1 }
 0x425   :  { %20446 = vst [vmem:[#allocation44_spill] sm:$0xff] %v15177_v13  ;;  %v15179_v36 = vpop.f32.mrb[73].mxu1  ;;  %11504 = vmatmul.mubr.msk.f32.gmra.mrb[178].mxu1 %vm2215_vm1, %v14584_v49 }
 0x426   :  { %20447 = vst [vmem:[#allocation48_spill] sm:$0xff] %v15179_v36  ;;  %11506 = vmatprep.mubr.msk.f32.mxu1 %vm2215_vm1, %v14611_v38 }
 0x428   :  { %v15185_v46 = vpop.f32.mrb[74].mxu1 }
 0x429   :  { %20448 = vst [vmem:[#allocation49_spill] sm:$0xff] %v15185_v46  ;;  %v15187_v61 = vpop.f32.mrb[75].mxu1  ;;  %11507 = vmatmul.mubr.msk.f32.gmra.mrb[180].mxu1 %vm2215_vm1, %v14631_v57 }
 0x42a   :  { %20449 = vst [vmem:[#allocation50_spill] sm:$0xff] %v15187_v61  ;;  %11509 = vmatprep.mubr.msk.f32.mxu1 %vm2215_vm1, %v14633_v47  ;;  %v20454_v61 = vld [vmem:[#allocation28_spill] sm:$0xff] }
 0x42c   :  { %v15193_v26 = vpop.f32.mrb[76].mxu1 }
 0x42d   :  { %20450 = vst [vmem:[#allocation51_spill] sm:$0xff] %v15193_v26  ;;  %v15195_v13 = vpop.f32.mrb[77].mxu1  ;;  %11510 = vmatmul.mubr.msk.f32.gmra.mrb[182].mxu1 %vm2215_vm1, %v14645_v30 }
 0x42e   :  { %20451 = vst [vmem:[#allocation52_spill] sm:$0xff] %v15195_v13  ;;  %11512 = vmatprep.mubr.msk.f32.mxu1 %vm2215_vm1, %v14648_v59 }
 0x430   :  { %v15201_v36 = vpop.f32.mrb[78].mxu1 }
 0x431   :  { %20452 = vst [vmem:[#allocation53_spill] sm:$0xff] %v15201_v36  ;;  %v15203_v46 = vpop.f32.mrb[79].mxu1  ;;  %11513 = vmatmul.mubr.msk.f32.gmra.mrb[184].mxu1 %vm2215_vm1, %v20404_v21 }
 0x432   :  { %20453 = vst [vmem:[#allocation54_spill] sm:$0xff] %v15203_v46  ;;  %11515 = vmatprep.mubr.msk.f32.mxu1 %vm2215_vm1, %v20454_v61 }
 0x434   :  { %v15209_v31 = vpop.f32.mrb[80].mxu1 }
 0x435   :  { %20455 = vst [vmem:[#allocation28_spill] sm:$0xff] %v15209_v31  ;;  %v15211_v26 = vpop.f32.mrb[81].mxu1  ;;  %11516 = vmatmul.mubr.msk.f32.gmra.mrb[186].mxu1 %vm2215_vm1, %v20406_v22 }
 0x436   :  { %20456 = vst [vmem:[#allocation55_spill] sm:$0xff] %v15211_v26  ;;  %11518 = vmatprep.mubr.msk.f32.mxu1 %vm2215_vm1, %v20407_v8 }
 0x438   :  { %v15217_v13 = vpop.f32.mrb[82].mxu1 }
 0x439   :  { %20457 = vst [vmem:[#allocation56_spill] sm:$0xff] %v15217_v13  ;;  %v15219_v36 = vpop.f32.mrb[83].mxu1  ;;  %11519 = vmatmul.mubr.msk.f32.gmra.mrb[188].mxu1 %vm2215_vm1, %v20408_v20 }
 0x43a   :  { %20458 = vst [vmem:[#allocation57_spill] sm:$0xff] %v15219_v36  ;;  %11521 = vmatprep.mubr.msk.f32.mxu1 %vm2215_vm1, %v20409_v24 }
 0x43c   :  { %v15225_v46 = vpop.f32.mrb[84].mxu1 }
 0x43d   :  { %20459 = vst [vmem:[#allocation58_spill] sm:$0xff] %v15225_v46  ;;  %v15227_v31 = vpop.f32.mrb[85].mxu1  ;;  %11522 = vmatmul.mubr.msk.f32.gmra.mrb[190].mxu1 %vm2215_vm1, %v20410_v25 }
 0x43e   :  { %20460 = vst [vmem:[#allocation59_spill] sm:$0xff] %v15227_v31  ;;  %11524 = vmatprep.mubr.msk.f32.mxu1 %vm2215_vm1, %v20411_v35 }
 0x440   :  { %v15233_v26 = vpop.f32.mrb[86].mxu1 }
 0x441   :  { %20461 = vst [vmem:[#allocation60_spill] sm:$0xff] %v15233_v26  ;;  %v15235_v13 = vpop.f32.mrb[87].mxu1  ;;  %11525 = vmatmul.mubr.msk.f32.gmra.mrb[192].mxu1 %vm2215_vm1, %v20412_v1 }
 0x442   :  { %20462 = vst [vmem:[#allocation61_spill] sm:$0xff] %v15235_v13  ;;  %11527 = vmatprep.mubr.msk.f32.mxu1 %vm2215_vm1, %v20413_v56 }
 0x444   :  { %v15241_v36 = vpop.f32.mrb[88].mxu1 }
 0x445   :  { %20463 = vst [vmem:[#allocation62_spill] sm:$0xff] %v15241_v36  ;;  %v15243_v46 = vpop.f32.mrb[89].mxu1  ;;  %11528 = vmatmul.mubr.msk.f32.gmra.mrb[194].mxu1 %vm2215_vm1, %v14729_v16 }
 0x446   :  { %20464 = vst [vmem:[#allocation63_spill] sm:$0xff] %v15243_v46  ;;  %11530 = vmatprep.mubr.msk.f32.mxu1 %vm2215_vm1, %v14732_v48 }
 0x448   :  { %v15249_v31 = vpop.f32.mrb[90].mxu1 }
 0x449   :  { %20465 = vst [vmem:[#allocation64_spill] sm:$0xff] %v15249_v31  ;;  %v15251_v26 = vpop.f32.mrb[91].mxu1  ;;  %11531 = vmatmul.mubr.msk.f32.gmra.mrb[196].mxu1 %vm2215_vm1, %v14743_v37 }
 0x44a   :  { %20466 = vst [vmem:[#allocation65_spill] sm:$0xff] %v15251_v26  ;;  %11533 = vmatprep.mubr.msk.f32.mxu1 %vm2215_vm1, %v14747_v3 }
 0x44c   :  { %v15257_v13 = vpop.f32.mrb[92].mxu1 }
 0x44d   :  { %20467 = vst [vmem:[#allocation66_spill] sm:$0xff] %v15257_v13  ;;  %v15259_v36 = vpop.f32.mrb[93].mxu1  ;;  %11534 = vmatmul.mubr.msk.f32.gmra.mrb[198].mxu1 %vm2215_vm1, %v14753_v53 }
 0x44e   :  { %20468 = vst [vmem:[#allocation67_spill] sm:$0xff] %v15259_v36  ;;  %11536 = vmatprep.mubr.msk.f32.mxu1 %vm2215_vm1, %v14755_v51  ;;  %v20473_v36 = vld [vmem:[#allocation29_spill] sm:$0xff] }
 0x450   :  { %v15265_v46 = vpop.f32.mrb[94].mxu1 }
 0x451   :  { %20469 = vst [vmem:[#allocation68_spill] sm:$0xff] %v15265_v46  ;;  %v15267_v31 = vpop.f32.mrb[95].mxu1  ;;  %11537 = vmatmul.mubr.msk.f32.gmra.mrb[200].mxu1 %vm2215_vm1, %v14762_v2 }
 0x452   :  { %20470 = vst [vmem:[#allocation69_spill] sm:$0xff] %v15267_v31  ;;  %11539 = vmatprep.mubr.msk.f32.mxu1 %vm2215_vm1, %v14765_v44  ;;  %v20477_v31 = vld [vmem:[#allocation33_spill] sm:$0xff] }
 0x454   :  { %v15273_v26 = vpop.f32.mrb[96].mxu1 }
 0x455   :  { %20471 = vst [vmem:[#allocation70_spill] sm:$0xff] %v15273_v26  ;;  %v15275_v13 = vpop.f32.mrb[97].mxu1  ;;  %11540 = vmatmul.mubr.msk.f32.gmra.mrb[202].mxu1 %vm2215_vm1, %v20473_v36 }
 0x456   :  { %20472 = vst [vmem:[#allocation71_spill] sm:$0xff] %v15275_v13  ;;  %11542 = vmatprep.mubr.msk.f32.mxu1 %vm2215_vm1, %v20474_v41  ;;  %v20480_v13 = vld [vmem:[#allocation39_spill] sm:$0xff] }
 0x458   :  { %v15281_v45 = vpop.f32.mrb[98].mxu1 }
 0x459   :  { %20475 = vst [vmem:[#allocation29_spill] sm:$0xff] %v15281_v45  ;;  %v15283_v46 = vpop.f32.mrb[99].mxu1  ;;  %11543 = vmatmul.mubr.msk.f32.gmra.mrb[204].mxu1 %vm2215_vm1, %v14782_v55 }
 0x45a   :  { %20476 = vst [vmem:[#allocation72_spill] sm:$0xff] %v15283_v46  ;;  %11545 = vmatprep.mubr.msk.f32.mxu1 %vm2215_vm1, %v20477_v31  ;;  %v20483_v46 = vld [vmem:[#allocation47_spill] sm:$0xff] }
 0x45c   :  { %v15289_v63 = vpop.f32.mrb[100].mxu1 }
 0x45d   :  { %20478 = vst [vmem:[#allocation73_spill] sm:$0xff] %v15289_v63  ;;  %v15291_v26 = vpop.f32.mrb[101].mxu1  ;;  %11546 = vmatmul.mubr.msk.f32.gmra.mrb[206].mxu1 %vm2215_vm1, %v20480_v13 }
 0x45e   :  { %20479 = vst [vmem:[#allocation74_spill] sm:$0xff] %v15291_v26  ;;  %11548 = vmatprep.mubr.msk.f32.mxu1 %vm2215_vm1, %v14795_v11 }
 0x460   :  { %v15297_v41 = vpop.f32.mrb[102].mxu1 }
 0x461   :  { %20481 = vst [vmem:[#allocation39_spill] sm:$0xff] %v15297_v41  ;;  %v15299_v45 = vpop.f32.mrb[103].mxu1  ;;  %11549 = vmatmul.mubr.msk.f32.gmra.mrb[208].mxu1 %vm2215_vm1, %v14802_v62 }
 0x462   :  { %20482 = vst [vmem:[#allocation75_spill] sm:$0xff] %v15299_v45  ;;  %11551 = vmatprep.mubr.msk.f32.mxu1 %vm2215_vm1, %v20483_v46 }
 0x464   :  { %v15305_v31 = vpop.f32.mrb[104].mxu1 }
 0x465   :  { %20484 = vst [vmem:[#allocation47_spill] sm:$0xff] %v15305_v31  ;;  %v15307_v63 = vpop.f32.mrb[105].mxu1  ;;  %11552 = vmatmul.mubr.msk.f32.gmra.mrb[210].mxu1 %vm2215_vm1, %v14812_v60 }
 0x466   :  { %20485 = vst [vmem:[#allocation76_spill] sm:$0xff] %v15307_v63  ;;  %11554 = vmatprep.mubr.msk.f32.mxu1 %vm2215_vm1, %v14815_v14 }
 0x468   :  { %v15313_v26 = vpop.f32.mrb[106].mxu1 }
 0x469   :  { %20486 = vst [vmem:[#allocation77_spill] sm:$0xff] %v15313_v26  ;;  %v15315_v41 = vpop.f32.mrb[107].mxu1  ;;  %11555 = vmatmul.mubr.msk.f32.gmra.mrb[212].mxu1 %vm2215_vm1, %v14822_v23 }
 0x46a   :  { %20487 = vst [vmem:[#allocation78_spill] sm:$0xff] %v15315_v41  ;;  %11557 = vmatprep.mubr.msk.f32.mxu1 %vm2215_vm1, %v14825_v29 }
 0x46c   :  { %v15321_v45 = vpop.f32.mrb[108].mxu1 }
 0x46d   :  { %20488 = vst [vmem:[#allocation79_spill] sm:$0xff] %v15321_v45  ;;  %v15323_v31 = vpop.f32.mrb[109].mxu1  ;;  %11558 = vmatmul.mubr.msk.f32.gmra.mrb[214].mxu1 %vm2215_vm1, %v14832_v18 }
 0x46e   :  { %20489 = vst [vmem:[#allocation80_spill] sm:$0xff] %v15323_v31  ;;  %11560 = vmatprep.mubr.msk.f32.mxu1 %vm2215_vm1, %v14835_v0 }
 0x470   :  { %v15329_v63 = vpop.f32.mrb[110].mxu1 }
 0x471   :  { %20490 = vst [vmem:[#allocation81_spill] sm:$0xff] %v15329_v63  ;;  %v15331_v26 = vpop.f32.mrb[111].mxu1  ;;  %11561 = vmatmul.mubr.msk.f32.gmra.mrb[216].mxu1 %vm2215_vm1, %v14842_v5 }
 0x472   :  { %20491 = vst [vmem:[#allocation82_spill] sm:$0xff] %v15331_v26  ;;  %11563 = vmatprep.mubr.msk.f32.mxu1 %vm2215_vm1, %v14845_v19 }
 0x474   :  { %v15337_v41 = vpop.f32.mrb[112].mxu1 }
 0x475   :  { %20492 = vst [vmem:[#allocation83_spill] sm:$0xff] %v15337_v41  ;;  %v15339_v45 = vpop.f32.mrb[113].mxu1  ;;  %11564 = vmatmul.mubr.msk.f32.gmra.mrb[218].mxu1 %vm2215_vm1, %v14852_v40 }
 0x476   :  { %20493 = vst [vmem:[#allocation84_spill] sm:$0xff] %v15339_v45  ;;  %11566 = vmatprep.mubr.msk.f32.mxu1 %vm2215_vm1, %v14855_v10 }
 0x478   :  { %v15345_v31 = vpop.f32.mrb[114].mxu1 }
 0x479   :  { %20494 = vst [vmem:[#allocation85_spill] sm:$0xff] %v15345_v31  ;;  %v15347_v63 = vpop.f32.mrb[115].mxu1  ;;  %11567 = vmatmul.mubr.msk.f32.gmra.mrb[220].mxu1 %vm2215_vm1, %v14862_v17 }
 0x47a   :  { %20495 = vst [vmem:[#allocation86_spill] sm:$0xff] %v15347_v63  ;;  %11569 = vmatprep.mubr.msk.f32.mxu1 %vm2215_vm1, %v14865_v7 }
 0x47c   :  { %v15353_v26 = vpop.f32.mrb[116].mxu1 }
 0x47d   :  { %20496 = vst [vmem:[#allocation87_spill] sm:$0xff] %v15353_v26  ;;  %v15355_v41 = vpop.f32.mrb[117].mxu1  ;;  %11570 = vmatmul.mubr.msk.f32.gmra.mrb[222].mxu1 %vm2215_vm1, %v14872_v12 }
 0x47e   :  { %20497 = vst [vmem:[#allocation88_spill] sm:$0xff] %v15355_v41  ;;  %11572 = vmatprep.mubr.msk.f32.mxu1 %vm2215_vm1, %v14875_v32  ;;  %v20502_v41 = vld [vmem:[#allocation21_spill] sm:$0xff] }
 0x480   :  { %v15361_v45 = vpop.f32.mrb[118].mxu1 }
 0x481   :  { %20498 = vst [vmem:[#allocation89_spill] sm:$0xff] %v15361_v45  ;;  %v15363_v31 = vpop.f32.mrb[119].mxu1  ;;  %11573 = vmatmul.mubr.msk.f32.gmra.mrb[224].mxu1 %vm2215_vm1, %v14882_v50  ;;  %v20506_v50 = vld [vmem:[#allocation27_spill] sm:$0xff] }
 0x482   :  { %20499 = vst [vmem:[#allocation90_spill] sm:$0xff] %v15363_v31  ;;  %11575 = vmatprep.mubr.msk.f32.mxu1 %vm2215_vm1, %v14885_v43  ;;  %v20505_v31 = vld [vmem:[#allocation20_spill] sm:$0xff] }
 0x484   :  { %v15369_v63 = vpop.f32.mrb[120].mxu1 }
 0x485   :  { %20500 = vst [vmem:[#allocation91_spill] sm:$0xff] %v15369_v63  ;;  %v15371_v26 = vpop.f32.mrb[121].mxu1  ;;  %11576 = vmatmul.mubr.msk.f32.gmra.mrb[226].mxu1 %vm2215_vm1, %v14892_v9 }
 0x486   :  { %20501 = vst [vmem:[#allocation92_spill] sm:$0xff] %v15371_v26  ;;  %11578 = vmatprep.mubr.msk.f32.mxu1 %vm2215_vm1, %v20502_v41 }
 0x488   :  { %v15377_v32 = vpop.f32.mrb[122].mxu1 }
 0x489   :  { %20503 = vst [vmem:[#allocation21_spill] sm:$0xff] %v15377_v32  ;;  %v15379_v45 = vpop.f32.mrb[123].mxu1  ;;  %11579 = vmatmul.mubr.msk.f32.gmra.mrb[228].mxu1 %vm2215_vm1, %v20505_v31 }
 0x48a   :  { %20504 = vst [vmem:[#allocation93_spill] sm:$0xff] %v15379_v45  ;;  %11581 = vmatprep.mubr.msk.f32.mxu1 %vm2215_vm1, %v20506_v50 }
 0x48c   :  { %v15385_v43 = vpop.f32.mrb[124].mxu1 }
 0x48d   :  { %20507 = vst [vmem:[#allocation20_spill] sm:$0xff] %v15385_v43  ;;  %v15387_v63 = vpop.f32.mrb[125].mxu1  ;;  %11582 = vmatmul.mubr.msk.f32.gmra.mrb[230].mxu1 %vm2215_vm1, %v14912_v4 }
 0x48e   :  { %11600 = vmatprep.mubr.msk.f32.mxu1 %vm2215_vm1, %v14440_v34 }
 0x490   :  { %v15393_v26 = vpop.f32.mrb[126].mxu1 }
 0x491   :  { %20508 = vst [vmem:[#allocation27_spill] sm:$0xff] %v15393_v26  ;;  %v15395_v32 = vpop.f32.mrb[127].mxu1  ;;  %11601 = vmatmul.mubr.msk.f32.vlgmr.msra.gmra.mrb[232].mxu1 %vm2215_vm1, %v14387_v33 }
 0x492   :  { %11603 = vmatprep.mubr.msk.f32.mxu1 %vm2215_vm1, %v14446_v28 }
 0x494   :  { %v15401_v45 = vpop.f32.mrb[128].mxu1 }
 0x495   :  { %v15403_v43 = vpop.f32.mrb[129].mxu1  ;;  %11604 = vmatmul.mubr.msk.f32.gmra.mrb[234].mxu1 %vm2215_vm1, %v14464_v6 }
 0x496   :  { %11606 = vmatprep.mubr.msk.f32.mxu1 %vm2215_vm1, %v14467_v39 }
 0x498   :  { %v15409_v34 = vpop.f32.mrb[130].mxu1 }
 0x499   :  { %v15411_v26 = vpop.f32.mrb[131].mxu1  ;;  %11607 = vmatmul.mubr.msk.f32.gmra.mrb[236].mxu1 %vm2215_vm1, %v14488_v42 }
 0x49a   :  { %11609 = vmatprep.mubr.msk.f32.mxu1 %vm2215_vm1, %v14495_v58 }
 0x49c   :  { %v15417_v33 = vpop.f32.mrb[132].mxu1 }
 0x49d   :  { %20509 = vst [vmem:[#allocation94_spill] sm:$0xff] %v15417_v33  ;;  %v15419_v28 = vpop.f32.mrb[133].mxu1  ;;  %11610 = vmatmul.mubr.msk.f32.gmra.mrb[238].mxu1 %vm2215_vm1, %v14520_v54 }
 0x49e   :  { %20510 = vst [vmem:[#allocation95_spill] sm:$0xff] %v15419_v28  ;;  %11612 = vmatprep.mubr.msk.f32.mxu1 %vm2215_vm1, %v14527_v27 }
 0x4a0   :  { %v15425_v6 = vpop.f32.mrb[134].mxu1 }
 0x4a1   :  { %20511 = vst [vmem:[#allocation96_spill] sm:$0xff] %v15425_v6  ;;  %v15427_v39 = vpop.f32.mrb[135].mxu1  ;;  %11613 = vmatmul.mubr.msk.f32.gmra.mrb[240].mxu1 %vm2215_vm1, %v14542_v15 }
 0x4a2   :  { %20512 = vst [vmem:[#allocation97_spill] sm:$0xff] %v15427_v39  ;;  %11615 = vmatprep.mubr.msk.f32.mxu1 %vm2215_vm1, %v14563_v52 }
 0x4a4   :  { %v15433_v42 = vpop.f32.mrb[136].mxu1 }
 0x4a5   :  { %20513 = vst [vmem:[#allocation98_spill] sm:$0xff] %v15433_v42  ;;  %v15435_v58 = vpop.f32.mrb[137].mxu1  ;;  %11616 = vmatmul.mubr.msk.f32.gmra.mrb[242].mxu1 %vm2215_vm1, %v14584_v49 }
 0x4a6   :  { %20514 = vst [vmem:[#allocation99_spill] sm:$0xff] %v15435_v58  ;;  %11618 = vmatprep.mubr.msk.f32.mxu1 %vm2215_vm1, %v14611_v38 }
 0x4a8   :  { %v15441_v54 = vpop.f32.mrb[138].mxu1 }
 0x4a9   :  { %20515 = vst [vmem:[#allocation100_spill] sm:$0xff] %v15441_v54  ;;  %v15443_v27 = vpop.f32.mrb[139].mxu1  ;;  %11619 = vmatmul.mubr.msk.f32.gmra.mrb[244].mxu1 %vm2215_vm1, %v14631_v57  ;;  %v20593_v54 = vld [vmem:[#allocation31_spill] sm:$0xff] }
 0x4aa   :  { %20516 = vst [vmem:[#allocation101_spill] sm:$0xff] %v15443_v27  ;;  %11621 = vmatprep.mubr.msk.f32.mxu1 %vm2215_vm1, %v14633_v47  ;;  %v20595_v27 = vld [vmem:[#allocation78_spill] sm:$0xff] }
 0x4ac   :  { %v15449_v15 = vpop.f32.mrb[140].mxu1 }
 0x4ad   :  { %20517 = vst [vmem:[#allocation102_spill] sm:$0xff] %v15449_v15  ;;  %v15451_v52 = vpop.f32.mrb[141].mxu1  ;;  %11622 = vmatmul.mubr.msk.f32.gmra.mrb[246].mxu1 %vm2215_vm1, %v14645_v30 }
 0x4ae   :  { %20518 = vst [vmem:[#allocation103_spill] sm:$0xff] %v15451_v52  ;;  %11624 = vmatprep.mubr.msk.f32.mxu1 %vm2215_vm1, %v14648_v59 }
 0x4b0   :  { %v15457_v49 = vpop.f32.mrb[142].mxu1 }
 0x4b1   :  { %20519 = vst [vmem:[#allocation104_spill] sm:$0xff] %v15457_v49  ;;  %v15459_v38 = vpop.f32.mrb[143].mxu1  ;;  %11625 = vmatmul.mubr.msk.f32.gmra.mrb[248].mxu1 %vm2215_vm1, %v20404_v21 }
 0x4b2   :  { %20520 = vst [vmem:[#allocation105_spill] sm:$0xff] %v15459_v38  ;;  %11627 = vmatprep.mubr.msk.f32.mxu1 %vm2215_vm1, %v20454_v61 }
 0x4b4   :  { %v15465_v57 = vpop.f32.mrb[144].mxu1 }
 0x4b5   :  { %20521 = vst [vmem:[#allocation106_spill] sm:$0xff] %v15465_v57  ;;  %v15467_v47 = vpop.f32.mrb[145].mxu1  ;;  %11628 = vmatmul.mubr.msk.f32.gmra.mrb[250].mxu1 %vm2215_vm1, %v20406_v22 }
 0x4b6   :  { %20522 = vst [vmem:[#allocation107_spill] sm:$0xff] %v15467_v47  ;;  %11630 = vmatprep.mubr.msk.f32.mxu1 %vm2215_vm1, %v20407_v8 }
 0x4b8   :  { %v15473_v30 = vpop.f32.mrb[146].mxu1 }
 0x4b9   :  { %20523 = vst [vmem:[#allocation108_spill] sm:$0xff] %v15473_v30  ;;  %v15475_v59 = vpop.f32.mrb[147].mxu1  ;;  %11631 = vmatmul.mubr.msk.f32.gmra.mrb[252].mxu1 %vm2215_vm1, %v20408_v20 }
 0x4ba   :  { %20524 = vst [vmem:[#allocation109_spill] sm:$0xff] %v15475_v59  ;;  %11633 = vmatprep.mubr.msk.f32.mxu1 %vm2215_vm1, %v20409_v24 }
 0x4bc   :  { %v15481_v21 = vpop.f32.mrb[148].mxu1 }
 0x4bd   :  { %20525 = vst [vmem:[#allocation110_spill] sm:$0xff] %v15481_v21  ;;  %v15483_v61 = vpop.f32.mrb[149].mxu1  ;;  %11634 = vmatmul.mubr.msk.f32.gmra.mrb[254].mxu1 %vm2215_vm1, %v20410_v25 }
 0x4be   :  { %20526 = vst [vmem:[#allocation111_spill] sm:$0xff] %v15483_v61  ;;  %11636 = vmatprep.mubr.msk.f32.mxu1 %vm2215_vm1, %v20411_v35 }
 0x4c0   :  { %v15489_v22 = vpop.f32.mrb[150].mxu1 }
 0x4c1   :  { %20527 = vst [vmem:[#allocation112_spill] sm:$0xff] %v15489_v22  ;;  %v15491_v8 = vpop.f32.mrb[151].mxu1  ;;  %11637 = vmatmul.mubr.msk.f32.gmra.mrb[0].mxu1 %vm2215_vm1, %v20412_v1 }
 0x4c2   :  { %20528 = vst [vmem:[#allocation113_spill] sm:$0xff] %v15491_v8  ;;  %11639 = vmatprep.mubr.msk.f32.mxu1 %vm2215_vm1, %v20413_v56 }
 0x4c4   :  { %v15497_v20 = vpop.f32.mrb[152].mxu1 }
 0x4c5   :  { %20529 = vst [vmem:[#allocation114_spill] sm:$0xff] %v15497_v20  ;;  %v15499_v24 = vpop.f32.mrb[153].mxu1  ;;  %11640 = vmatmul.mubr.msk.f32.gmra.mrb[2].mxu1 %vm2215_vm1, %v14729_v16 }
 0x4c6   :  { %20530 = vst [vmem:[#allocation115_spill] sm:$0xff] %v15499_v24  ;;  %11642 = vmatprep.mubr.msk.f32.mxu1 %vm2215_vm1, %v14732_v48 }
 0x4c8   :  { %v15505_v25 = vpop.f32.mrb[154].mxu1 }
 0x4c9   :  { %20531 = vst [vmem:[#allocation116_spill] sm:$0xff] %v15505_v25  ;;  %v15507_v35 = vpop.f32.mrb[155].mxu1  ;;  %11643 = vmatmul.mubr.msk.f32.gmra.mrb[4].mxu1 %vm2215_vm1, %v14743_v37 }
 0x4ca   :  { %20532 = vst [vmem:[#allocation117_spill] sm:$0xff] %v15507_v35  ;;  %11645 = vmatprep.mubr.msk.f32.mxu1 %vm2215_vm1, %v14747_v3 }
 0x4cc   :  { %v15513_v56 = vpop.f32.mrb[156].mxu1 }
 0x4cd   :  { %20533 = vst [vmem:[#allocation118_spill] sm:$0xff] %v15513_v56  ;;  %v15515_v1 = vpop.f32.mrb[157].mxu1  ;;  %11646 = vmatmul.mubr.msk.f32.gmra.mrb[6].mxu1 %vm2215_vm1, %v14753_v53  ;;  %v20539_v53 = vld [vmem:[#allocation35_spill] sm:$0xff] }
 0x4ce   :  { %20534 = vst [vmem:[#allocation119_spill] sm:$0xff] %v15515_v1  ;;  %11648 = vmatprep.mubr.msk.f32.mxu1 %vm2215_vm1, %v14755_v51 }
 0x4d0   :  { %v15521_v16 = vpop.f32.mrb[158].mxu1 }
 0x4d1   :  { %20535 = vst [vmem:[#allocation120_spill] sm:$0xff] %v15521_v16  ;;  %v15523_v48 = vpop.f32.mrb[159].mxu1  ;;  %11649 = vmatmul.mubr.msk.f32.gmra.mrb[8].mxu1 %vm2215_vm1, %v14762_v2  ;;  %v20542_v2 = vld [vmem:[#allocation33_spill] sm:$0xff] }
 0x4d2   :  { %20536 = vst [vmem:[#allocation121_spill] sm:$0xff] %v15523_v48  ;;  %11651 = vmatprep.mubr.msk.f32.mxu1 %vm2215_vm1, %v14765_v44 }
 0x4d4   :  { %v15529_v3 = vpop.f32.mrb[160].mxu1 }
 0x4d5   :  { %20537 = vst [vmem:[#allocation122_spill] sm:$0xff] %v15529_v3  ;;  %v15531_v37 = vpop.f32.mrb[161].mxu1  ;;  %11652 = vmatmul.mubr.msk.f32.gmra.mrb[10].mxu1 %vm2215_vm1, %v20473_v36 }
 0x4d6   :  { %20538 = vst [vmem:[#allocation123_spill] sm:$0xff] %v15531_v37  ;;  %11654 = vmatprep.mubr.msk.f32.mxu1 %vm2215_vm1, %v20539_v53 }
 0x4d8   :  { %v15537_v51 = vpop.f32.mrb[162].mxu1 }
 0x4d9   :  { %20540 = vst [vmem:[#allocation35_spill] sm:$0xff] %v15537_v51  ;;  %v15539_v16 = vpop.f32.mrb[163].mxu1  ;;  %11655 = vmatmul.mubr.msk.f32.gmra.mrb[12].mxu1 %vm2215_vm1, %v14782_v55 }
 0x4da   :  { %20541 = vst [vmem:[#allocation124_spill] sm:$0xff] %v15539_v16  ;;  %11657 = vmatprep.mubr.msk.f32.mxu1 %vm2215_vm1, %v20542_v2 }
 0x4dc   :  { %v15545_v44 = vpop.f32.mrb[164].mxu1 }
 0x4dd   :  { %20543 = vst [vmem:[#allocation33_spill] sm:$0xff] %v15545_v44  ;;  %v15547_v3 = vpop.f32.mrb[165].mxu1  ;;  %11658 = vmatmul.mubr.msk.f32.gmra.mrb[14].mxu1 %vm2215_vm1, %v20480_v13 }
 0x4de   :  { %20544 = vst [vmem:[#allocation125_spill] sm:$0xff] %v15547_v3  ;;  %11660 = vmatprep.mubr.msk.f32.mxu1 %vm2215_vm1, %v14795_v11 }
 0x4e0   :  { %v15553_v36 = vpop.f32.mrb[166].mxu1 }
 0x4e1   :  { %20545 = vst [vmem:[#allocation126_spill] sm:$0xff] %v15553_v36  ;;  %v15555_v53 = vpop.f32.mrb[167].mxu1  ;;  %11661 = vmatmul.mubr.msk.f32.gmra.mrb[16].mxu1 %vm2215_vm1, %v14802_v62 }
 0x4e2   :  { %20546 = vst [vmem:[#allocation127_spill] sm:$0xff] %v15555_v53  ;;  %11663 = vmatprep.mubr.msk.f32.mxu1 %vm2215_vm1, %v20483_v46  ;;  %v20548_v53 = vld [vmem:[#allocation19_spill] sm:$0xff] }
 0x4e4   :  { %v15561_v55 = vpop.f32.mrb[168].mxu1 }
 0x4e5   :  { %v15563_v2 = vpop.f32.mrb[169].mxu1  ;;  %11664 = vmatmul.mubr.msk.f32.gmra.mrb[18].mxu1 %vm2215_vm1, %v14812_v60 }
 0x4e6   :  { %11666 = vmatprep.mubr.msk.f32.mxu1 %vm2215_vm1, %v14815_v14 }
 0x4e8   :  { %v15569_v11 = vpop.f32.mrb[170].mxu1 }
 0x4e9   :  { %v15571_v13 = vpop.f32.mrb[171].mxu1  ;;  %11667 = vmatmul.mubr.msk.f32.gmra.mrb[20].mxu1 %vm2215_vm1, %v14822_v23 }
 0x4ea   :  { %11669 = vmatprep.mubr.msk.f32.mxu1 %vm2215_vm1, %v14825_v29 }
 0x4ec   :  { %v15577_v62 = vpop.f32.mrb[172].mxu1 }
 0x4ed   :  { %v15579_v46 = vpop.f32.mrb[173].mxu1  ;;  %11670 = vmatmul.mubr.msk.f32.gmra.mrb[22].mxu1 %vm2215_vm1, %v14832_v18 }
 0x4ee   :  { %11672 = vmatprep.mubr.msk.f32.mxu1 %vm2215_vm1, %v14835_v0 }
 0x4f0   :  { %v15585_v60 = vpop.f32.mrb[174].mxu1 }
 0x4f1   :  { %v15587_v14 = vpop.f32.mrb[175].mxu1  ;;  %11673 = vmatmul.mubr.msk.f32.gmra.mrb[24].mxu1 %vm2215_vm1, %v14842_v5 }
 0x4f2   :  { %11675 = vmatprep.mubr.msk.f32.mxu1 %vm2215_vm1, %v14845_v19 }
 0x4f4   :  { %v15593_v23 = vpop.f32.mrb[176].mxu1 }
 0x4f5   :  { %v15595_v29 = vpop.f32.mrb[177].mxu1  ;;  %11676 = vmatmul.mubr.msk.f32.gmra.mrb[26].mxu1 %vm2215_vm1, %v14852_v40  ;;  %v20547_v40 = vld [vmem:[#allocation24_spill] sm:$0xff] }
 0x4f6   :  { %11678 = vmatprep.mubr.msk.f32.mxu1 %vm2215_vm1, %v14855_v10 }
 0x4f8   :  { %v15601_v18 = vpop.f32.mrb[178].mxu1 }
 0x4f9   :  { %v15603_v0 = vpop.f32.mrb[179].mxu1  ;;  %11679 = vmatmul.mubr.msk.f32.gmra.mrb[28].mxu1 %vm2215_vm1, %v14862_v17  ;;  %v20549_v17 = vld [vmem:[#allocation17_spill] sm:$0xff] }
 0x4fa   :  { %11681 = vmatprep.mubr.msk.f32.mxu1 %vm2215_vm1, %v14865_v7 }
 0x4fc   :  { %v15609_v5 = vpop.f32.mrb[180].mxu1 }
 0x4fd   :  { %v15611_v19 = vpop.f32.mrb[181].mxu1  ;;  %11682 = vmatmul.mubr.msk.f32.gmra.mrb[30].mxu1 %vm2215_vm1, %v14872_v12 }
 0x4fe   :  { %11684 = vmatprep.mubr.msk.f32.mxu1 %vm2215_vm1, %v20547_v40 }
 0x500   :  { %v15617_v10 = vpop.f32.mrb[182].mxu1 }
 0x501   :  { %v15619_v36 = vpop.f32.mrb[183].mxu1  ;;  %11685 = vmatmul.mubr.msk.f32.gmra.mrb[32].mxu1 %vm2215_vm1, %v20548_v53 }
 0x502   :  { %11687 = vmatprep.mubr.msk.f32.mxu1 %vm2215_vm1, %v20549_v17 }
 0x504   :  { %v15625_v7 = vpop.f32.mrb[184].mxu1 }
 0x505   :  { %v15627_v44 = vpop.f32.mrb[185].mxu1  ;;  %11688 = vmatmul.mubr.msk.f32.gmra.mrb[34].mxu1 %vm2215_vm1, %v14892_v9 }
 0x506   :  { %11690 = vmatprep.mubr.msk.f32.mxu1 %vm2215_vm1, %v20502_v41 }
 0x508   :  { %v15633_v12 = vpop.f32.mrb[186].mxu1 }
 0x509   :  { %v15635_v40 = vpop.f32.mrb[187].mxu1  ;;  %11691 = vmatmul.mubr.msk.f32.gmra.mrb[36].mxu1 %vm2215_vm1, %v20505_v31 }
 0x50a   :  { %11693 = vmatprep.mubr.msk.f32.mxu1 %vm2215_vm1, %v20506_v50 }
 0x50c   :  { %v15641_v53 = vpop.f32.mrb[188].mxu1 }
 0x50d   :  { %v15643_v17 = vpop.f32.mrb[189].mxu1  ;;  %11694 = vmatmul.mubr.msk.f32.gmra.mrb[38].mxu1 %vm2215_vm1, %v14912_v4 }
 0x510   :  { %v15647_v9 = vpop.f32.mrb[190].mxu1 }
 0x511   :  { %v15649_v41 = vpop.f32.mrb[191].mxu1 }
 0x514   :  { %v15651_v3 = vpop.f32.mrb[192].mxu1 }
 0x515   :  { %v15653_v51 = vpop.f32.mrb[193].mxu1 }
 0x518   :  { %v15655_v16 = vpop.f32.mrb[194].mxu1 }
 0x519   :  { %20550 = vst [vmem:[#allocation24_spill] sm:$0xff] %v15655_v16  ;;  %v15657_v31 = vpop.f32.mrb[195].mxu1 }
 0x51c   :  { %v15659_v50 = vpop.f32.mrb[196].mxu1 }
 0x51d   :  { %20551 = vst [vmem:[#allocation19_spill] sm:$0xff] %v15659_v50  ;;  %v15661_v37 = vpop.f32.mrb[197].mxu1  ;;  %v20605_v50 = vld [vmem:[#allocation77_spill] sm:$0xff] }
 0x51e   :  { %20552 = vst [vmem:[#allocation17_spill] sm:$0xff] %v15661_v37 }
 0x520   :  { %v15663_v48 = vpop.f32.mrb[198].mxu1 }
 0x521   :  { %20553 = vst [vmem:[#allocation128_spill] sm:$0xff] %v15663_v48  ;;  %v15665_v56 = vpop.f32.mrb[199].mxu1 }
 0x522   :  { %20554 = vst [vmem:[#allocation129_spill] sm:$0xff] %v15665_v56 }
 0x524   :  { %v15667_v4 = vpop.f32.mrb[200].mxu1 }
 0x525   :  { %20555 = vst [vmem:[#allocation130_spill] sm:$0xff] %v15667_v4  ;;  %v15669_v1 = vpop.f32.mrb[201].mxu1 }
 0x526   :  { %20556 = vst [vmem:[#allocation131_spill] sm:$0xff] %v15669_v1  ;;  %v20599_v1 = vld [vmem:[#allocation43_spill] sm:$0xff] }
 0x528   :  { %v15671_v25 = vpop.f32.mrb[202].mxu1 }
 0x529   :  { %20557 = vst [vmem:[#allocation132_spill] sm:$0xff] %v15671_v25  ;;  %v15673_v35 = vpop.f32.mrb[203].mxu1  ;;  %v20591_v25 = vld [vmem:[#allocation26_spill] sm:$0xff] }
 0x52a   :  { %20558 = vst [vmem:[#allocation133_spill] sm:$0xff] %v15673_v35 }
 0x52c   :  { %v15675_v20 = vpop.f32.mrb[204].mxu1 }
 0x52d   :  { %20559 = vst [vmem:[#allocation134_spill] sm:$0xff] %v15675_v20  ;;  %v15677_v24 = vpop.f32.mrb[205].mxu1 }
 0x52e   :  { %20560 = vst [vmem:[#allocation135_spill] sm:$0xff] %v15677_v24 }
 0x530   :  { %v15679_v22 = vpop.f32.mrb[206].mxu1 }
 0x531   :  { %20561 = vst [vmem:[#allocation136_spill] sm:$0xff] %v15679_v22  ;;  %v15681_v8 = vpop.f32.mrb[207].mxu1 }
 0x532   :  { %20562 = vst [vmem:[#allocation137_spill] sm:$0xff] %v15681_v8 }
 0x534   :  { %v15683_v21 = vpop.f32.mrb[208].mxu1 }
 0x535   :  { %20563 = vst [vmem:[#allocation138_spill] sm:$0xff] %v15683_v21  ;;  %v15685_v61 = vpop.f32.mrb[209].mxu1 }
 0x536   :  { %20564 = vst [vmem:[#allocation139_spill] sm:$0xff] %v15685_v61 }
 0x538   :  { %v15687_v30 = vpop.f32.mrb[210].mxu1 }
 0x539   :  { %20565 = vst [vmem:[#allocation140_spill] sm:$0xff] %v15687_v30  ;;  %v15689_v59 = vpop.f32.mrb[211].mxu1 }
 0x53a   :  { %20566 = vst [vmem:[#allocation141_spill] sm:$0xff] %v15689_v59 }
 0x53c   :  { %v15691_v57 = vpop.f32.mrb[212].mxu1 }
 0x53d   :  { %20567 = vst [vmem:[#allocation142_spill] sm:$0xff] %v15691_v57  ;;  %v15693_v47 = vpop.f32.mrb[213].mxu1 }
 0x53e   :  { %20568 = vst [vmem:[#allocation143_spill] sm:$0xff] %v15693_v47 }
 0x540   :  { %v15695_v49 = vpop.f32.mrb[214].mxu1 }
 0x541   :  { %20569 = vst [vmem:[#allocation144_spill] sm:$0xff] %v15695_v49  ;;  %v15697_v20 = vpop.f32.mrb[215].mxu1 }
 0x542   :  { %20570 = vst [vmem:[#allocation145_spill] sm:$0xff] %v15697_v20 }
 0x544   :  { %v15699_v38 = vpop.f32.mrb[216].mxu1 }
 0x545   :  { %20571 = vst [vmem:[#allocation146_spill] sm:$0xff] %v15699_v38  ;;  %v15701_v22 = vpop.f32.mrb[217].mxu1 }
 0x546   :  { %20572 = vst [vmem:[#allocation147_spill] sm:$0xff] %v15701_v22 }
 0x548   :  { %v15703_v8 = vpop.f32.mrb[218].mxu1 }
 0x549   :  { %20573 = vst [vmem:[#allocation148_spill] sm:$0xff] %v15703_v8  ;;  %v15705_v21 = vpop.f32.mrb[219].mxu1 }
 0x54a   :  { %20574 = vst [vmem:[#allocation149_spill] sm:$0xff] %v15705_v21 }
 0x54c   :  { %v15707_v61 = vpop.f32.mrb[220].mxu1 }
 0x54d   :  { %20575 = vst [vmem:[#allocation150_spill] sm:$0xff] %v15707_v61  ;;  %v15709_v30 = vpop.f32.mrb[221].mxu1 }
 0x54e   :  { %20576 = vst [vmem:[#allocation151_spill] sm:$0xff] %v15709_v30 }
 0x550   :  { %v15711_v59 = vpop.f32.mrb[222].mxu1 }
 0x551   :  { %20577 = vst [vmem:[#allocation152_spill] sm:$0xff] %v15711_v59  ;;  %v15713_v57 = vpop.f32.mrb[223].mxu1 }
 0x552   :  { %20578 = vst [vmem:[#allocation153_spill] sm:$0xff] %v15713_v57 }
 0x554   :  { %v15715_v47 = vpop.f32.mrb[224].mxu1 }
 0x555   :  { %20579 = vst [vmem:[#allocation154_spill] sm:$0xff] %v15715_v47  ;;  %v15717_v49 = vpop.f32.mrb[225].mxu1 }
 0x556   :  { %20580 = vst [vmem:[#allocation155_spill] sm:$0xff] %v15717_v49 }
 0x558   :  { %v15719_v20 = vpop.f32.mrb[226].mxu1 }
 0x559   :  { %20581 = vst [vmem:[#allocation156_spill] sm:$0xff] %v15719_v20  ;;  %v15721_v38 = vpop.f32.mrb[227].mxu1  ;;  %v15738_v20 = vld [vmem:[%s19641_s10] ss:$0 sm:$0xff] }
 0x55a   :  { %20582 = vst [vmem:[#allocation157_spill] sm:$0xff] %v15721_v38  ;;  %v15752_v52 = vadd.f32 %v20591_v25, %v15738_v20  ;;  %v15756_v35 = vadd.f32 %v15738_v20, %v20593_v54  ;;  %v15762_v42 = vadd.f32 %v15738_v20, %v20595_v27  ;;  %v15776_v54 = vadd.f32 %v15738_v20, %v20599_v1 }
 0x55b   :  { %v15813_v39 = vadd.f32 %v20605_v50, %v15738_v20  ;;  %v20609_v50 = vld [vmem:[#allocation80_spill] sm:$0xff] }
 0x55c   :  { %v15723_v22 = vpop.f32.mrb[228].mxu1  ;;  %20592 = vst [vmem:[#allocation26_spill] sm:$0xff] %v15752_v52  ;;  %20594 = vst [vmem:[#allocation31_spill] sm:$0xff] %v15756_v35  ;;  %v4636_v1 = vsel %vm199_vm0, %v15752_v52, 0.0  ;;  %v4635_v6 = vsel %vm199_vm0, %v15756_v35, 0.0  ;;  %v4638_v52 = vsel %vm199_vm0, %v15776_v54, 0.0 }
 0x55d   :  { %20583 = vst [vmem:[#allocation158_spill] sm:$0xff] %v15723_v22  ;;  %v15725_v8 = vpop.f32.mrb[229].mxu1  ;;  %20596 = vst [vmem:[#allocation78_spill] sm:$0xff] %v15762_v42 }
 0x55e   :  { %20584 = vst [vmem:[#allocation159_spill] sm:$0xff] %v15725_v8  ;;  %20600 = vst [vmem:[#allocation43_spill] sm:$0xff] %v15776_v54  ;;  %v15829_v54 = vadd.f32 %v15738_v20, %v20609_v50  ;;  %v15847_v50 = vadd.f32 %v15738_v20, %v15579_v46 }
 0x55f   :  { %20606 = vst [vmem:[#allocation77_spill] sm:$0xff] %v15813_v39 }
 0x560   :  { %v15727_v21 = vpop.f32.mrb[230].mxu1  ;;  %20610 = vst [vmem:[#allocation80_spill] sm:$0xff] %v15829_v54  ;;  %20614 = vst [vmem:[#allocation169_spill] sm:$0xff] %v15847_v50 }
 0x561   :  { %20585 = vst [vmem:[#allocation160_spill] sm:$0xff] %v15727_v21  ;;  %v15729_v61 = vpop.f32.mrb[231].mxu1  ;;  %v20587_v21 = vld [vmem:[#allocation47_spill] sm:$0xff] }
 0x562   :  { %20586 = vst [vmem:[#allocation161_spill] sm:$0xff] %v15729_v61  ;;  %v15744_v8 = vadd.f32 %v20587_v21, %v15738_v20  ;;  %v20589_v61 = vld [vmem:[#allocation76_spill] sm:$0xff]  ;;  %v15766_v21 = vadd.f32 %v15561_v55, %v15738_v20  ;;  %v15784_v55 = vadd.f32 %v15738_v20, %v15571_v13 }
 0x563   :  { %v15748_v38 = vadd.f32 %v15738_v20, %v20589_v61  ;;  %v15770_v61 = vadd.f32 %v15738_v20, %v15563_v2 }
 0x564   :  { %v11602_v30 = vpop.f32.mrb[232].mxu1  ;;  %20588 = vst [vmem:[#allocation47_spill] sm:$0xff] %v15744_v8  ;;  %20597 = vst [vmem:[#allocation162_spill] sm:$0xff] %v15766_v21  ;;  %v4770_v48 = vsel %vm199_vm0, %v15744_v8, 0.0  ;;  %v4904_v13 = vsel %vm199_vm0, %v15766_v21, 0.0 }
 0x565   :  { %v4314_v59 = vpop.f32.mrb[233].mxu1  ;;  %20590 = vst [vmem:[#allocation76_spill] sm:$0xff] %v15748_v38  ;;  %20598 = vst [vmem:[#allocation163_spill] sm:$0xff] %v15770_v61  ;;  %v4769_v27 = vsel %vm199_vm0, %v15748_v38, 0.0  ;;  %v15787_v58 = vadd.f32 %v11602_v30, %v15738_v20  ;;  %v4772_v38 = vsel %vm199_vm0, %v15762_v42, 0.0  ;;  %v4903_v30 = vsel %vm199_vm0, %v15770_v61, 0.0 }
 0x566   :  { %20601 = vst [vmem:[#allocation164_spill] sm:$0xff] %v15784_v55  ;;  %v15790_v2 = vadd.f32 %v15738_v20, %v4314_v59  ;;  %v4771_v35 = vadd.f32 %v4770_v48, %v4769_v27  ;;  %v4906_v42 = vsel %vm199_vm0, %v15784_v55, 0.0  ;;  %v4637_v61 = vadd.f32 %v4636_v1, %v4635_v6  ;;  %v20607_v48 = vld [vmem:[#allocation37_spill] sm:$0xff] }
 0x567   :  { %20602 = vst [vmem:[#allocation165_spill] sm:$0xff] %v15787_v58  ;;  %v5038_v21 = vsel %vm199_vm0, %v15787_v58, 0.0  ;;  %v4905_v37 = vadd.f32 %v4904_v13, %v4903_v30  ;;  %v15825_v27 = vadd.f32 %v20607_v48, %v15738_v20  ;;  %v15833_v55 = vadd.f32 %v15569_v11, %v15738_v20  ;;  %v20612_v13 = vld [vmem:[#allocation45_spill] sm:$0xff] }
 0x568   :  { %v11605_v15 = vpop.f32.mrb[234].mxu1  ;;  %20603 = vst [vmem:[#allocation166_spill] sm:$0xff] %v15790_v2  ;;  %v4773_v33 = vadd.f32 %v4772_v38, %v4771_v35  ;;  %v4639_v38 = vadd.f32 %v4638_v52, %v4637_v61  ;;  %v15841_v30 = vadd.f32 %v15738_v20, %v20612_v13  ;;  %v4774_v48 = vsel %vm199_vm0, %v15813_v39, 0.0 }
 0x569   :  { %v4324_v57 = vpop.f32.mrb[235].mxu1  ;;  %20608 = vst [vmem:[#allocation37_spill] sm:$0xff] %v15825_v27  ;;  %20611 = vst [vmem:[#allocation168_spill] sm:$0xff] %v15833_v55  ;;  %v4907_v35 = vadd.f32 %v4906_v42, %v4905_v37  ;;  %v15850_v11 = vadd.f32 %v11605_v15, %v15738_v20  ;;  %v4640_v42 = vsel %vm199_vm0, %v15825_v27, 0.0  ;;  %v4776_v52 = vsel %vm199_vm0, %v15829_v54, 0.0 }
 0x56a   :  { %v15805_v59 = vadd.f32 %v15738_v20, %v4324_v57  ;;  %v5037_v57 = vsel %vm199_vm0, %v15790_v2, 0.0  ;;  %20613 = vst [vmem:[#allocation45_spill] sm:$0xff] %v15841_v30  ;;  %v4908_v37 = vsel %vm199_vm0, %v15833_v55, 0.0  ;;  %v4641_v15 = vadd.f32 %v4640_v42, %v4639_v38  ;;  %v20619_v38 = vld [vmem:[#allocation41_spill] sm:$0xff]  ;;  %v20621_v42 = vld [vmem:[#allocation82_spill] sm:$0xff] }
 0x56b   :  { %v5039_v1 = vadd.f32 %v5038_v21, %v5037_v57  ;;  %20615 = vst [vmem:[#allocation170_spill] sm:$0xff] %v15850_v11  ;;  %v4909_v61 = vadd.f32 %v4908_v37, %v4907_v35  ;;  %v5042_v13 = vsel %vm199_vm0, %v15850_v11, 0.0  ;;  %v15879_v35 = vadd.f32 %v20619_v38, %v15738_v20 }
 0x56c   :  { %v15731_v24 = vpop.f32.mrb[236].mxu1  ;;  %20604 = vst [vmem:[#allocation167_spill] sm:$0xff] %v15805_v59  ;;  %v5040_v58 = vsel %vm199_vm0, %v15805_v59, 0.0  ;;  %v4775_v59 = vadd.f32 %v4774_v48, %v4773_v33  ;;  %v4642_v33 = vsel %vm199_vm0, %v15841_v30, 0.0  ;;  %v15883_v37 = vadd.f32 %v15738_v20, %v20621_v42 }
 0x56d   :  { %v4334_v47 = vpop.f32.mrb[237].mxu1  ;;  %v5041_v2 = vadd.f32 %v5040_v58, %v5039_v1  ;;  %v20617_v58 = vld [vmem:[#allocation79_spill] sm:$0xff]  ;;  %v4910_v1 = vsel %vm199_vm0, %v15847_v50, 0.0  ;;  %20620 = vst [vmem:[#allocation41_spill] sm:$0xff] %v15879_v35  ;;  %v15901_v42 = vadd.f32 %v15738_v20, %v15587_v14 }
 0x56e   :  { %v15861_v21 = vadd.f32 %v15738_v20, %v4334_v47  ;;  %v15869_v57 = vadd.f32 %v20617_v58, %v15738_v20  ;;  %v4777_v48 = vadd.f32 %v4776_v52, %v4775_v59  ;;  %20622 = vst [vmem:[#allocation82_spill] sm:$0xff] %v15883_v37  ;;  %v15887_v58 = vadd.f32 %v15577_v62, %v15738_v20  ;;  %v20624_v52 = vld [vmem:[#allocation4_spill] sm:$0xff] }
 0x56f   :  { %v5043_v47 = vadd.f32 %v5042_v13, %v5041_v2  ;;  %v4643_v2 = vadd.f32 %v4642_v33, %v4641_v15  ;;  %v4911_v59 = vadd.f32 %v4910_v1, %v4909_v61  ;;  %v15895_v13 = vadd.f32 %v15738_v20, %v20624_v52  ;;  %20626 = vst [vmem:[#allocation173_spill] sm:$0xff] %v15901_v42 }
 0x570   :  { %v15733_v49 = vpop.f32.mrb[238].mxu1  ;;  %20616 = vst [vmem:[#allocation171_spill] sm:$0xff] %v15861_v21  ;;  %20618 = vst [vmem:[#allocation79_spill] sm:$0xff] %v15869_v57  ;;  %v5044_v50 = vsel %vm199_vm0, %v15861_v21, 0.0  ;;  %v4778_v38 = vsel %vm199_vm0, %v15869_v57, 0.0  ;;  %v15905_v62 = vadd.f32 %v15731_v24, %v15738_v20  ;;  %v4644_v15 = vsel %vm199_vm0, %v15879_v35, 0.0 }
 0x571   :  { %v15740_v22 = vpop.f32.mrb[239].mxu1  ;;  %20623 = vst [vmem:[#allocation172_spill] sm:$0xff] %v15887_v58  ;;  %20625 = vst [vmem:[#allocation4_spill] sm:$0xff] %v15895_v13  ;;  %v4779_v21 = vadd.f32 %v4778_v38, %v4777_v48  ;;  %v5045_v54 = vadd.f32 %v5044_v50, %v5043_v47  ;;  %v4780_v61 = vsel %vm199_vm0, %v15883_v37, 0.0  ;;  %v4912_v33 = vsel %vm199_vm0, %v15887_v58, 0.0  ;;  %v20629_v47 = vld [vmem:[#allocation81_spill] sm:$0xff] }
 0x572   :  { %20627 = vst [vmem:[#allocation174_spill] sm:$0xff] %v15905_v62  ;;  %v15917_v14 = vadd.f32 %v15738_v20, %v15740_v22  ;;  %v4645_v24 = vadd.f32 %v4644_v15, %v4643_v2  ;;  %v4913_v48 = vadd.f32 %v4912_v33, %v4911_v59  ;;  %v4646_v50 = vsel %vm199_vm0, %v15895_v13, 0.0  ;;  %v20631_v2 = vld [vmem:[#allocation22_spill] sm:$0xff]  ;;  %v20633_v15 = vld [vmem:[#allocation84_spill] sm:$0xff] }
 0x573   :  { %v15925_v52 = vadd.f32 %v20629_v47, %v15738_v20  ;;  %v4914_v38 = vsel %vm199_vm0, %v15901_v42, 0.0  ;;  %v5046_v58 = vsel %vm199_vm0, %v15905_v62, 0.0  ;;  %v4781_v37 = vadd.f32 %v4780_v61, %v4779_v21 }
 0x574   :  { %v15758_v4 = vpop.f32.mrb[240].mxu1  ;;  %20628 = vst [vmem:[#allocation175_spill] sm:$0xff] %v15917_v14  ;;  %v5047_v22 = vadd.f32 %v5046_v58, %v5045_v54  ;;  %v15935_v59 = vadd.f32 %v20631_v2, %v15738_v20  ;;  %v15939_v33 = vadd.f32 %v15738_v20, %v20633_v15  ;;  %v15943_v47 = vadd.f32 %v15585_v60, %v15738_v20  ;;  %v20636_v58 = vld [vmem:[#allocation6_spill] sm:$0xff] }
 0x575   :  { %v15772_v25 = vpop.f32.mrb[241].mxu1  ;;  %20630 = vst [vmem:[#allocation81_spill] sm:$0xff] %v15925_v52  ;;  %v5048_v42 = vsel %vm199_vm0, %v15917_v14, 0.0  ;;  %v4647_v54 = vadd.f32 %v4646_v50, %v4645_v24  ;;  %v4915_v21 = vadd.f32 %v4914_v38, %v4913_v48  ;;  %v15951_v61 = vadd.f32 %v15738_v20, %v20636_v58 }
 0x576   :  { %20632 = vst [vmem:[#allocation22_spill] sm:$0xff] %v15935_v59  ;;  %20634 = vst [vmem:[#allocation84_spill] sm:$0xff] %v15939_v33  ;;  %v4782_v2 = vsel %vm199_vm0, %v15925_v52, 0.0  ;;  %v15957_v15 = vadd.f32 %v15738_v20, %v15595_v29  ;;  %v15961_v60 = vadd.f32 %v15733_v49, %v15738_v20  ;;  %v5049_v13 = vadd.f32 %v5048_v42, %v5047_v22  ;;  %v20641_v22 = vld [vmem:[#allocation83_spill] sm:$0xff] }
 0x577   :  { %20635 = vst [vmem:[#allocation176_spill] sm:$0xff] %v15943_v47  ;;  %20637 = vst [vmem:[#allocation6_spill] sm:$0xff] %v15951_v61  ;;  %v4783_v14 = vadd.f32 %v4782_v2, %v4781_v37  ;;  %v4648_v24 = vsel %vm199_vm0, %v15935_v59, 0.0  ;;  %v4784_v48 = vsel %vm199_vm0, %v15939_v33, 0.0  ;;  %v4916_v50 = vsel %vm199_vm0, %v15943_v47, 0.0 }
 0x578   :  { %v15796_v8 = vpop.f32.mrb[242].mxu1  ;;  %20638 = vst [vmem:[#allocation177_spill] sm:$0xff] %v15957_v15  ;;  %20639 = vst [vmem:[#allocation178_spill] sm:$0xff] %v15961_v60  ;;  %v15973_v29 = vadd.f32 %v15738_v20, %v15772_v25  ;;  %v4649_v49 = vadd.f32 %v4648_v24, %v4647_v54  ;;  %v4917_v37 = vadd.f32 %v4916_v50, %v4915_v21  ;;  %v4650_v42 = vsel %vm199_vm0, %v15951_v61, 0.0  ;;  %v20643_v54 = vld [vmem:[#allocation3_spill] sm:$0xff]  ;;  %v20645_v24 = vld [vmem:[#allocation86_spill] sm:$0xff] }
 0x579   :  { %v15807_v56 = vpop.f32.mrb[243].mxu1  ;;  %v15981_v58 = vadd.f32 %v20641_v22, %v15738_v20  ;;  %v4918_v2 = vsel %vm199_vm0, %v15957_v15, 0.0  ;;  %v5050_v47 = vsel %vm199_vm0, %v15961_v60, 0.0  ;;  %v4785_v33 = vadd.f32 %v4784_v48, %v4783_v14 }
 0x57a   :  { %20640 = vst [vmem:[#allocation179_spill] sm:$0xff] %v15973_v29  ;;  %v5051_v25 = vadd.f32 %v5050_v47, %v5049_v13  ;;  %v15991_v21 = vadd.f32 %v20643_v54, %v15738_v20  ;;  %v15995_v50 = vadd.f32 %v15738_v20, %v20645_v24  ;;  %v15999_v22 = vadd.f32 %v15593_v23, %v15738_v20  ;;  %v20648_v47 = vld [vmem:[#allocation7_spill] sm:$0xff] }
 0x57b   :  { %20642 = vst [vmem:[#allocation83_spill] sm:$0xff] %v15981_v58  ;;  %v5052_v15 = vsel %vm199_vm0, %v15973_v29, 0.0  ;;  %v4651_v13 = vadd.f32 %v4650_v42, %v4649_v49  ;;  %v4919_v14 = vadd.f32 %v4918_v2, %v4917_v37  ;;  %v16007_v48 = vadd.f32 %v15738_v20, %v20648_v47 }
 0x57c   :  { %v15821_v16 = vpop.f32.mrb[244].mxu1  ;;  %20644 = vst [vmem:[#allocation3_spill] sm:$0xff] %v15991_v21  ;;  %20646 = vst [vmem:[#allocation86_spill] sm:$0xff] %v15995_v50  ;;  %v4786_v54 = vsel %vm199_vm0, %v15981_v58, 0.0  ;;  %v16013_v24 = vadd.f32 %v15738_v20, %v15603_v0  ;;  %v16017_v23 = vadd.f32 %v15758_v4, %v15738_v20  ;;  %v5053_v61 = vadd.f32 %v5052_v15, %v5051_v25  ;;  %v20653_v25 = vld [vmem:[#allocation85_spill] sm:$0xff] }
 0x57d   :  { %v15837_v6 = vpop.f32.mrb[245].mxu1  ;;  %20647 = vst [vmem:[#allocation180_spill] sm:$0xff] %v15999_v22  ;;  %20649 = vst [vmem:[#allocation7_spill] sm:$0xff] %v16007_v48  ;;  %v4787_v29 = vadd.f32 %v4786_v54, %v4785_v33  ;;  %v4652_v49 = vsel %vm199_vm0, %v15991_v21, 0.0  ;;  %v4788_v37 = vsel %vm199_vm0, %v15995_v50, 0.0  ;;  %v4920_v42 = vsel %vm199_vm0, %v15999_v22, 0.0 }
 0x57e   :  { %20650 = vst [vmem:[#allocation181_spill] sm:$0xff] %v16013_v24  ;;  %20651 = vst [vmem:[#allocation182_spill] sm:$0xff] %v16017_v23  ;;  %v16029_v0 = vadd.f32 %v15738_v20, %v15807_v56  ;;  %v4653_v4 = vadd.f32 %v4652_v49, %v4651_v13  ;;  %v4921_v33 = vadd.f32 %v4920_v42, %v4919_v14  ;;  %v4654_v15 = vsel %vm199_vm0, %v16007_v48, 0.0  ;;  %v20655_v13 = vld [vmem:[#allocation5_spill] sm:$0xff]  ;;  %v20657_v49 = vld [vmem:[#allocation88_spill] sm:$0xff] }
 0x57f   :  { %v16037_v47 = vadd.f32 %v20653_v25, %v15738_v20  ;;  %v4922_v54 = vsel %vm199_vm0, %v16013_v24, 0.0  ;;  %v5054_v22 = vsel %vm199_vm0, %v16017_v23, 0.0  ;;  %v4789_v50 = vadd.f32 %v4788_v37, %v4787_v29 }
 0x580   :  { %v15852_v28 = vpop.f32.mrb[246].mxu1  ;;  %20652 = vst [vmem:[#allocation183_spill] sm:$0xff] %v16029_v0  ;;  %v5055_v56 = vadd.f32 %v5054_v22, %v5053_v61  ;;  %v16047_v14 = vadd.f32 %v20655_v13, %v15738_v20  ;;  %v16051_v42 = vadd.f32 %v15738_v20, %v20657_v49  ;;  %v16055_v25 = vadd.f32 %v15601_v18, %v15738_v20  ;;  %v20660_v22 = vld [vmem:[#allocation8_spill] sm:$0xff] }
 0x581   :  { %v15863_v46 = vpop.f32.mrb[247].mxu1  ;;  %20654 = vst [vmem:[#allocation85_spill] sm:$0xff] %v16037_v47  ;;  %v5056_v24 = vsel %vm199_vm0, %v16029_v0, 0.0  ;;  %v4655_v61 = vadd.f32 %v4654_v15, %v4653_v4  ;;  %v4923_v29 = vadd.f32 %v4922_v54, %v4921_v33  ;;  %v16063_v37 = vadd.f32 %v15738_v20, %v20660_v22 }
 0x582   :  { %20656 = vst [vmem:[#allocation5_spill] sm:$0xff] %v16047_v14  ;;  %20658 = vst [vmem:[#allocation88_spill] sm:$0xff] %v16051_v42  ;;  %v4790_v13 = vsel %vm199_vm0, %v16037_v47, 0.0  ;;  %v16069_v49 = vadd.f32 %v15738_v20, %v15611_v19  ;;  %v16073_v18 = vadd.f32 %v15796_v8, %v15738_v20  ;;  %v5057_v48 = vadd.f32 %v5056_v24, %v5055_v56  ;;  %v20665_v56 = vld [vmem:[#allocation87_spill] sm:$0xff] }
 0x583   :  { %20659 = vst [vmem:[#allocation184_spill] sm:$0xff] %v16055_v25  ;;  %20661 = vst [vmem:[#allocation8_spill] sm:$0xff] %v16063_v37  ;;  %v4791_v0 = vadd.f32 %v4790_v13, %v4789_v50  ;;  %v4656_v4 = vsel %vm199_vm0, %v16047_v14, 0.0  ;;  %v4792_v33 = vsel %vm199_vm0, %v16051_v42, 0.0  ;;  %v4924_v15 = vsel %vm199_vm0, %v16055_v25, 0.0 }
 0x584   :  { %v15875_v55 = vpop.f32.mrb[248].mxu1  ;;  %20662 = vst [vmem:[#allocation185_spill] sm:$0xff] %v16069_v49  ;;  %20663 = vst [vmem:[#allocation186_spill] sm:$0xff] %v16073_v18  ;;  %v16085_v19 = vadd.f32 %v15738_v20, %v15837_v6  ;;  %v4657_v8 = vadd.f32 %v4656_v4, %v4655_v61  ;;  %v4925_v50 = vadd.f32 %v4924_v15, %v4923_v29  ;;  %v4658_v24 = vsel %vm199_vm0, %v16063_v37, 0.0  ;;  %v20667_v61 = vld [vmem:[#allocation15_spill] sm:$0xff]  ;;  %v20669_v4 = vld [vmem:[#allocation90_spill] sm:$0xff] }
 0x585   :  { %v15891_v11 = vpop.f32.mrb[249].mxu1  ;;  %v16093_v22 = vadd.f32 %v20665_v56, %v15738_v20  ;;  %v4926_v13 = vsel %vm199_vm0, %v16069_v49, 0.0  ;;  %v5058_v25 = vsel %vm199_vm0, %v16073_v18, 0.0  ;;  %v4793_v42 = vadd.f32 %v4792_v33, %v4791_v0 }
 0x586   :  { %20664 = vst [vmem:[#allocation187_spill] sm:$0xff] %v16085_v19  ;;  %v5059_v6 = vadd.f32 %v5058_v25, %v5057_v48  ;;  %v16103_v29 = vadd.f32 %v20667_v61, %v15738_v20  ;;  %v16107_v15 = vadd.f32 %v15738_v20, %v20669_v4  ;;  %v16111_v56 = vadd.f32 %v15609_v5, %v15738_v20  ;;  %v20672_v25 = vld [vmem:[#allocation9_spill] sm:$0xff] }
 0x587   :  { %20666 = vst [vmem:[#allocation87_spill] sm:$0xff] %v16093_v22  ;;  %v5060_v49 = vsel %vm199_vm0, %v16085_v19, 0.0  ;;  %v4659_v48 = vadd.f32 %v4658_v24, %v4657_v8  ;;  %v4927_v0 = vadd.f32 %v4926_v13, %v4925_v50  ;;  %v16119_v33 = vadd.f32 %v15738_v20, %v20672_v25 }
 0x588   :  { %v15907_v39 = vpop.f32.mrb[250].mxu1  ;;  %20668 = vst [vmem:[#allocation15_spill] sm:$0xff] %v16103_v29  ;;  %20670 = vst [vmem:[#allocation90_spill] sm:$0xff] %v16107_v15  ;;  %v4794_v61 = vsel %vm199_vm0, %v16093_v22, 0.0  ;;  %v16125_v4 = vadd.f32 %v15738_v20, %v15619_v36  ;;  %v16129_v5 = vadd.f32 %v15821_v16, %v15738_v20  ;;  %v5061_v37 = vadd.f32 %v5060_v49, %v5059_v6  ;;  %v20677_v6 = vld [vmem:[#allocation89_spill] sm:$0xff] }
 0x589   :  { %v15919_v1 = vpop.f32.mrb[251].mxu1  ;;  %20671 = vst [vmem:[#allocation188_spill] sm:$0xff] %v16111_v56  ;;  %20673 = vst [vmem:[#allocation9_spill] sm:$0xff] %v16119_v33  ;;  %v4795_v19 = vadd.f32 %v4794_v61, %v4793_v42  ;;  %v4660_v8 = vsel %vm199_vm0, %v16103_v29, 0.0  ;;  %v4796_v50 = vsel %vm199_vm0, %v16107_v15, 0.0  ;;  %v4928_v24 = vsel %vm199_vm0, %v16111_v56, 0.0 }
 0x58a   :  { %20674 = vst [vmem:[#allocation189_spill] sm:$0xff] %v16125_v4  ;;  %20675 = vst [vmem:[#allocation190_spill] sm:$0xff] %v16129_v5  ;;  %v16141_v36 = vadd.f32 %v15738_v20, %v15863_v46  ;;  %v4661_v16 = vadd.f32 %v4660_v8, %v4659_v48  ;;  %v4929_v42 = vadd.f32 %v4928_v24, %v4927_v0  ;;  %v4662_v49 = vsel %vm199_vm0, %v16119_v33, 0.0  ;;  %v20679_v48 = vld [vmem:[#allocation10_spill] sm:$0xff]  ;;  %v20681_v8 = vld [vmem:[#allocation92_spill] sm:$0xff] }
 0x58b   :  { %v16149_v25 = vadd.f32 %v20677_v6, %v15738_v20  ;;  %v4930_v61 = vsel %vm199_vm0, %v16125_v4, 0.0  ;;  %v5062_v56 = vsel %vm199_vm0, %v16129_v5, 0.0  ;;  %v4797_v15 = vadd.f32 %v4796_v50, %v4795_v19 }
 0x58c   :  { %v15931_v57 = vpop.f32.mrb[252].mxu1  ;;  %20676 = vst [vmem:[#allocation191_spill] sm:$0xff] %v16141_v36  ;;  %v5063_v46 = vadd.f32 %v5062_v56, %v5061_v37  ;;  %v16159_v0 = vadd.f32 %v20679_v48, %v15738_v20  ;;  %v16163_v24 = vadd.f32 %v15738_v20, %v20681_v8  ;;  %v16167_v6 = vadd.f32 %v15617_v10, %v15738_v20  ;;  %v20684_v56 = vld [vmem:[#allocation12_spill] sm:$0xff] }
 0x58d   :  { %v15947_v62 = vpop.f32.mrb[253].mxu1  ;;  %20678 = vst [vmem:[#allocation89_spill] sm:$0xff] %v16149_v25  ;;  %v5064_v4 = vsel %vm199_vm0, %v16141_v36, 0.0  ;;  %v4663_v37 = vadd.f32 %v4662_v49, %v4661_v16  ;;  %v4931_v19 = vadd.f32 %v4930_v61, %v4929_v42  ;;  %v16175_v50 = vadd.f32 %v15738_v20, %v20684_v56 }
 0x58e   :  { %20680 = vst [vmem:[#allocation10_spill] sm:$0xff] %v16159_v0  ;;  %20682 = vst [vmem:[#allocation92_spill] sm:$0xff] %v16163_v24  ;;  %v4798_v48 = vsel %vm199_vm0, %v16149_v25, 0.0  ;;  %v16181_v8 = vadd.f32 %v15738_v20, %v15627_v44  ;;  %v16185_v10 = vadd.f32 %v15852_v28, %v15738_v20  ;;  %v5065_v33 = vadd.f32 %v5064_v4, %v5063_v46  ;;  %v20689_v46 = vld [vmem:[#allocation91_spill] sm:$0xff] }
 0x58f   :  { %20683 = vst [vmem:[#allocation192_spill] sm:$0xff] %v16167_v6  ;;  %20685 = vst [vmem:[#allocation12_spill] sm:$0xff] %v16175_v50  ;;  %v4799_v36 = vadd.f32 %v4798_v48, %v4797_v15  ;;  %v4664_v16 = vsel %vm199_vm0, %v16159_v0, 0.0  ;;  %v4800_v42 = vsel %vm199_vm0, %v16163_v24, 0.0  ;;  %v4932_v49 = vsel %vm199_vm0, %v16167_v6, 0.0 }
 0x590   :  { %v15963_v35 = vpop.f32.mrb[254].mxu1  ;;  %20686 = vst [vmem:[#allocation193_spill] sm:$0xff] %v16181_v8  ;;  %20687 = vst [vmem:[#allocation194_spill] sm:$0xff] %v16185_v10  ;;  %v16197_v44 = vadd.f32 %v15738_v20, %v15891_v11  ;;  %v4665_v28 = vadd.f32 %v4664_v16, %v4663_v37  ;;  %v4933_v15 = vadd.f32 %v4932_v49, %v4931_v19  ;;  %v4666_v4 = vsel %vm199_vm0, %v16175_v50, 0.0  ;;  %v20691_v37 = vld [vmem:[#allocation11_spill] sm:$0xff]  ;;  %v20693_v16 = vld [vmem:[#allocation93_spill] sm:$0xff] }
 0x591   :  { %v15975_v38 = vpop.f32.mrb[255].mxu1  ;;  %v16205_v56 = vadd.f32 %v20689_v46, %v15738_v20  ;;  %v4934_v48 = vsel %vm199_vm0, %v16181_v8, 0.0  ;;  %v5066_v6 = vsel %vm199_vm0, %v16185_v10, 0.0  ;;  %v4801_v24 = vadd.f32 %v4800_v42, %v4799_v36 }
 0x592   :  { %20688 = vst [vmem:[#allocation195_spill] sm:$0xff] %v16197_v44  ;;  %v5067_v11 = vadd.f32 %v5066_v6, %v5065_v33  ;;  %v16215_v19 = vadd.f32 %v20691_v37, %v15738_v20  ;;  %v16219_v49 = vadd.f32 %v15738_v20, %v20693_v16  ;;  %v16223_v46 = vadd.f32 %v15625_v7, %v15738_v20  ;;  %v20696_v6 = vld [vmem:[#allocation13_spill] sm:$0xff] }
 0x593   :  { %20690 = vst [vmem:[#allocation91_spill] sm:$0xff] %v16205_v56  ;;  %v5068_v8 = vsel %vm199_vm0, %v16197_v44, 0.0  ;;  %v4667_v33 = vadd.f32 %v4666_v4, %v4665_v28  ;;  %v4935_v36 = vadd.f32 %v4934_v48, %v4933_v15  ;;  %v16231_v42 = vadd.f32 %v15738_v20, %v20696_v6 }
 0x594   :  { %v15987_v52 = vpop.f32.mrb[0].mxu1  ;;  %20692 = vst [vmem:[#allocation11_spill] sm:$0xff] %v16215_v19  ;;  %20694 = vst [vmem:[#allocation93_spill] sm:$0xff] %v16219_v49  ;;  %v4802_v37 = vsel %vm199_vm0, %v16205_v56, 0.0  ;;  %v16237_v16 = vadd.f32 %v15738_v20, %v15635_v40  ;;  %v16241_v7 = vadd.f32 %v15875_v55, %v15738_v20  ;;  %v5069_v50 = vadd.f32 %v5068_v8, %v5067_v11  ;;  %v20701_v11 = vld [vmem:[#allocation21_spill] sm:$0xff] }
 0x595   :  { %v16003_v60 = vpop.f32.mrb[1].mxu1  ;;  %20695 = vst [vmem:[#allocation196_spill] sm:$0xff] %v16223_v46  ;;  %20697 = vst [vmem:[#allocation13_spill] sm:$0xff] %v16231_v42  ;;  %v4803_v44 = vadd.f32 %v4802_v37, %v4801_v24  ;;  %v4668_v28 = vsel %vm199_vm0, %v16215_v19, 0.0  ;;  %v4804_v15 = vsel %vm199_vm0, %v16219_v49, 0.0  ;;  %v4936_v4 = vsel %vm199_vm0, %v16223_v46, 0.0 }
 0x596   :  { %20698 = vst [vmem:[#allocation197_spill] sm:$0xff] %v16237_v16  ;;  %20699 = vst [vmem:[#allocation198_spill] sm:$0xff] %v16241_v7  ;;  %v16253_v40 = vadd.f32 %v15738_v20, %v15919_v1  ;;  %v4669_v55 = vadd.f32 %v4668_v28, %v4667_v33  ;;  %v4937_v24 = vadd.f32 %v4936_v4, %v4935_v36  ;;  %v4670_v8 = vsel %vm199_vm0, %v16231_v42, 0.0  ;;  %v20703_v33 = vld [vmem:[#allocation14_spill] sm:$0xff] }
 0x597   :  { %v16261_v6 = vadd.f32 %v20701_v11, %v15738_v20  ;;  %v4938_v37 = vsel %vm199_vm0, %v16237_v16, 0.0  ;;  %v5070_v46 = vsel %vm199_vm0, %v16241_v7, 0.0  ;;  %v4805_v49 = vadd.f32 %v4804_v15, %v4803_v44 }
 0x598   :  { %v16019_v59 = vpop.f32.mrb[2].mxu1  ;;  %20700 = vst [vmem:[#allocation199_spill] sm:$0xff] %v16253_v40  ;;  %v5071_v1 = vadd.f32 %v5070_v46, %v5069_v50  ;;  %v16271_v36 = vadd.f32 %v20703_v33, %v15738_v20  ;;  %v16275_v28 = vadd.f32 %v15738_v20, %v15387_v63  ;;  %v16279_v4 = vadd.f32 %v15633_v12, %v15738_v20  ;;  %v20707_v46 = vld [vmem:[#allocation25_spill] sm:$0xff] }
 0x599   :  { %v16031_v2 = vpop.f32.mrb[3].mxu1  ;;  %20702 = vst [vmem:[#allocation21_spill] sm:$0xff] %v16261_v6  ;;  %v5072_v11 = vsel %vm199_vm0, %v16253_v40, 0.0  ;;  %v4671_v50 = vadd.f32 %v4670_v8, %v4669_v55  ;;  %v4939_v44 = vadd.f32 %v4938_v37, %v4937_v24  ;;  %v16287_v15 = vadd.f32 %v15738_v20, %v20707_v46 }
 0x59a   :  { %20704 = vst [vmem:[#allocation14_spill] sm:$0xff] %v16271_v36  ;;  %20705 = vst [vmem:[#allocation200_spill] sm:$0xff] %v16275_v28  ;;  %v4806_v33 = vsel %vm199_vm0, %v16261_v6, 0.0  ;;  %v16293_v63 = vadd.f32 %v15738_v20, %v15643_v17  ;;  %v16297_v12 = vadd.f32 %v15907_v39, %v15738_v20  ;;  %v5073_v16 = vadd.f32 %v5072_v11, %v5071_v1  ;;  %v20712_v11 = vld [vmem:[#allocation20_spill] sm:$0xff] }
 0x59b   :  { %20706 = vst [vmem:[#allocation201_spill] sm:$0xff] %v16279_v4  ;;  %20708 = vst [vmem:[#allocation25_spill] sm:$0xff] %v16287_v15  ;;  %v4807_v40 = vadd.f32 %v4806_v33, %v4805_v49  ;;  %v4672_v55 = vsel %vm199_vm0, %v16271_v36, 0.0  ;;  %v4808_v24 = vsel %vm199_vm0, %v16275_v28, 0.0  ;;  %v4940_v8 = vsel %vm199_vm0, %v16279_v4, 0.0 }
 0x59c   :  { %v16043_v58 = vpop.f32.mrb[4].mxu1  ;;  %20709 = vst [vmem:[#allocation202_spill] sm:$0xff] %v16293_v63  ;;  %20710 = vst [vmem:[#allocation203_spill] sm:$0xff] %v16297_v12  ;;  %v16309_v17 = vadd.f32 %v15738_v20, %v15947_v62  ;;  %v4673_v39 = vadd.f32 %v4672_v55, %v4671_v50  ;;  %v4941_v49 = vadd.f32 %v4940_v8, %v4939_v44  ;;  %v4674_v1 = vsel %vm199_vm0, %v16287_v15, 0.0  ;;  %v20714_v50 = vld [vmem:[#allocation16_spill] sm:$0xff] }
 0x59d   :  { %v16059_v23 = vpop.f32.mrb[5].mxu1  ;;  %v16317_v46 = vadd.f32 %v20712_v11, %v15738_v20  ;;  %v4942_v33 = vsel %vm199_vm0, %v16293_v63, 0.0  ;;  %v5074_v4 = vsel %vm199_vm0, %v16297_v12, 0.0  ;;  %v4809_v28 = vadd.f32 %v4808_v24, %v4807_v40 }
 0x59e   :  { %20711 = vst [vmem:[#allocation204_spill] sm:$0xff] %v16309_v17  ;;  %v5075_v62 = vadd.f32 %v5074_v4, %v5073_v16  ;;  %v16327_v44 = vadd.f32 %v20714_v50, %v15738_v20  ;;  %v16331_v55 = vadd.f32 %v15738_v20, %v15395_v32  ;;  %v16335_v8 = vadd.f32 %v15641_v53, %v15738_v20  ;;  %v20718_v4 = vld [vmem:[#allocation18_spill] sm:$0xff] }
 0x59f   :  { %20713 = vst [vmem:[#allocation20_spill] sm:$0xff] %v16317_v46  ;;  %v5076_v11 = vsel %vm199_vm0, %v16309_v17, 0.0  ;;  %v4675_v16 = vadd.f32 %v4674_v1, %v4673_v39  ;;  %v4943_v40 = vadd.f32 %v4942_v33, %v4941_v49  ;;  %v16343_v24 = vadd.f32 %v15738_v20, %v20718_v4 }
 0x5a0   :  { %v16075_v21 = vpop.f32.mrb[6].mxu1  ;;  %20715 = vst [vmem:[#allocation16_spill] sm:$0xff] %v16327_v44  ;;  %20716 = vst [vmem:[#allocation205_spill] sm:$0xff] %v16331_v55  ;;  %v4810_v50 = vsel %vm199_vm0, %v16317_v46, 0.0  ;;  %v16349_v32 = vadd.f32 %v15738_v20, %v15649_v41  ;;  %v16353_v53 = vadd.f32 %v15931_v57, %v15738_v20  ;;  %v5077_v63 = vadd.f32 %v5076_v11, %v5075_v62  ;;  %v20723_v11 = vld [vmem:[#allocation27_spill] sm:$0xff] }
 0x5a1   :  { %v16087_v54 = vpop.f32.mrb[7].mxu1  ;;  %20717 = vst [vmem:[#allocation206_spill] sm:$0xff] %v16335_v8  ;;  %20719 = vst [vmem:[#allocation18_spill] sm:$0xff] %v16343_v24  ;;  %v4811_v17 = vadd.f32 %v4810_v50, %v4809_v28  ;;  %v4676_v39 = vsel %vm199_vm0, %v16327_v44, 0.0  ;;  %v4812_v49 = vsel %vm199_vm0, %v16331_v55, 0.0  ;;  %v4944_v1 = vsel %vm199_vm0, %v16335_v8, 0.0 }
 0x5a2   :  { %20720 = vst [vmem:[#allocation207_spill] sm:$0xff] %v16349_v32  ;;  %20721 = vst [vmem:[#allocation208_spill] sm:$0xff] %v16353_v53  ;;  %v16365_v41 = vadd.f32 %v15738_v20, %v15975_v38  ;;  %v4677_v57 = vadd.f32 %v4676_v39, %v4675_v16  ;;  %v4945_v28 = vadd.f32 %v4944_v1, %v4943_v40  ;;  %v4678_v62 = vsel %vm199_vm0, %v16343_v24, 0.0  ;;  %v20725_v16 = vld [vmem:[#allocation23_spill] sm:$0xff] }
 0x5a3   :  { %v16373_v4 = vadd.f32 %v20723_v11, %v15738_v20  ;;  %v4946_v50 = vsel %vm199_vm0, %v16349_v32, 0.0  ;;  %v5078_v8 = vsel %vm199_vm0, %v16353_v53, 0.0  ;;  %v4813_v55 = vadd.f32 %v4812_v49, %v4811_v17 }
 0x5a4   :  { %v16099_v47 = vpop.f32.mrb[8].mxu1  ;;  %20722 = vst [vmem:[#allocation209_spill] sm:$0xff] %v16365_v41  ;;  %v5079_v38 = vadd.f32 %v5078_v8, %v5077_v63  ;;  %v16383_v40 = vadd.f32 %v20725_v16, %v15738_v20  ;;  %v16387_v39 = vadd.f32 %v15738_v20, %v15403_v43  ;;  %v16391_v1 = vadd.f32 %v15647_v9, %v15738_v20  ;;  %v20728_v8 = vld [vmem:[#allocation34_spill] sm:$0xff] }
 0x5a5   :  { %v16115_v18 = vpop.f32.mrb[9].mxu1  ;;  %20724 = vst [vmem:[#allocation27_spill] sm:$0xff] %v16373_v4  ;;  %v5080_v11 = vsel %vm199_vm0, %v16365_v41, 0.0  ;;  %v4679_v63 = vadd.f32 %v4678_v62, %v4677_v57  ;;  %v4947_v17 = vadd.f32 %v4946_v50, %v4945_v28  ;;  %v16399_v49 = vadd.f32 %v15738_v20, %v20728_v8 }
 0x5a6   :  { %20726 = vst [vmem:[#allocation23_spill] sm:$0xff] %v16387_v39  ;;  %20727 = vst [vmem:[#allocation210_spill] sm:$0xff] %v16391_v1  ;;  %v4814_v16 = vsel %vm199_vm0, %v16373_v4, 0.0  ;;  %v16405_v43 = vadd.f32 %v15738_v20, %v15653_v51  ;;  %v16409_v9 = vadd.f32 %v15963_v35, %v15738_v20  ;;  %v5081_v32 = vadd.f32 %v5080_v11, %v5079_v38 }
 0x5a7   :  { %20729 = vst [vmem:[#allocation34_spill] sm:$0xff] %v16399_v49  ;;  %v4815_v41 = vadd.f32 %v4814_v16, %v4813_v55  ;;  %v4680_v57 = vsel %vm199_vm0, %v16383_v40, 0.0  ;;  %v4816_v28 = vsel %vm199_vm0, %v16387_v39, 0.0  ;;  %v4948_v62 = vsel %vm199_vm0, %v16391_v1, 0.0 }
 0x5a8   :  { %v16131_v14 = vpop.f32.mrb[10].mxu1  ;;  %20730 = vst [vmem:[#allocation211_spill] sm:$0xff] %v16405_v43  ;;  %20731 = vst [vmem:[#allocation212_spill] sm:$0xff] %v16409_v9  ;;  %v16421_v51 = vadd.f32 %v15738_v20, %v16003_v60  ;;  %v4681_v35 = vadd.f32 %v4680_v57, %v4679_v63  ;;  %v4949_v55 = vadd.f32 %v4948_v62, %v4947_v17  ;;  %v4682_v38 = vsel %vm199_vm0, %v16399_v49, 0.0  ;;  %v20734_v63 = vld [vmem:[#allocation30_spill] sm:$0xff] }
 0x5a9   :  { %v16143_v13 = vpop.f32.mrb[11].mxu1  ;;  %v16429_v11 = vadd.f32 %v15401_v45, %v15738_v20  ;;  %v4950_v8 = vsel %vm199_vm0, %v16405_v43, 0.0  ;;  %v5082_v16 = vsel %vm199_vm0, %v16409_v9, 0.0  ;;  %v4817_v1 = vadd.f32 %v4816_v28, %v4815_v41  ;;  %v20738_v28 = vld [vmem:[#allocation38_spill] sm:$0xff] }
 0x5aa   :  { %20732 = vst [vmem:[#allocation213_spill] sm:$0xff] %v16421_v51  ;;  %v5083_v60 = vadd.f32 %v5082_v16, %v5081_v32  ;;  %v16439_v17 = vadd.f32 %v20734_v63, %v15738_v20  ;;  %v16443_v57 = vadd.f32 %v15738_v20, %v15411_v26  ;;  %v16447_v45 = vadd.f32 %v15651_v3, %v15738_v20 }
 0x5ab   :  { %20733 = vst [vmem:[#allocation214_spill] sm:$0xff] %v16429_v11  ;;  %v5084_v62 = vsel %vm199_vm0, %v16421_v51, 0.0  ;;  %v4683_v32 = vadd.f32 %v4682_v38, %v4681_v35  ;;  %v4951_v41 = vadd.f32 %v4950_v8, %v4949_v55  ;;  %v16455_v16 = vadd.f32 %v15738_v20, %v20738_v28 }
 0x5ac   :  { %v16155_v22 = vpop.f32.mrb[12].mxu1  ;;  %20735 = vst [vmem:[#allocation30_spill] sm:$0xff] %v16439_v17  ;;  %20736 = vst [vmem:[#allocation215_spill] sm:$0xff] %v16443_v57  ;;  %v4818_v63 = vsel %vm199_vm0, %v16429_v11, 0.0  ;;  %v16461_v26 = vadd.f32 %v15738_v20, %v15657_v31  ;;  %v16465_v3 = vadd.f32 %v15987_v52, %v15738_v20  ;;  %v5085_v43 = vadd.f32 %v5084_v62, %v5083_v60 }
 0x5ad   :  { %v16171_v5 = vpop.f32.mrb[13].mxu1  ;;  %20737 = vst [vmem:[#allocation216_spill] sm:$0xff] %v16447_v45  ;;  %20739 = vst [vmem:[#allocation38_spill] sm:$0xff] %v16455_v16  ;;  %v4819_v51 = vadd.f32 %v4818_v63, %v4817_v1  ;;  %v4684_v35 = vsel %vm199_vm0, %v16439_v17, 0.0  ;;  %v4820_v55 = vsel %vm199_vm0, %v16443_v57, 0.0  ;;  %v4952_v38 = vsel %vm199_vm0, %v16447_v45, 0.0 }
 0x5ae   :  { %20740 = vst [vmem:[#allocation217_spill] sm:$0xff] %v16461_v26  ;;  %20741 = vst [vmem:[#allocation218_spill] sm:$0xff] %v16465_v3  ;;  %v16477_v31 = vadd.f32 %v15738_v20, %v16031_v2  ;;  %v4685_v52 = vadd.f32 %v4684_v35, %v4683_v32  ;;  %v4953_v1 = vadd.f32 %v4952_v38, %v4951_v41  ;;  %v4686_v60 = vsel %vm199_vm0, %v16455_v16, 0.0  ;;  %v20744_v32 = vld [vmem:[#allocation32_spill] sm:$0xff]  ;;  %v20746_v35 = vld [vmem:[#allocation95_spill] sm:$0xff] }
 0x5af   :  { %v16485_v62 = vadd.f32 %v15409_v34, %v15738_v20  ;;  %v4954_v28 = vsel %vm199_vm0, %v16461_v26, 0.0  ;;  %v5086_v63 = vsel %vm199_vm0, %v16465_v3, 0.0  ;;  %v4821_v45 = vadd.f32 %v4820_v55, %v4819_v51  ;;  %v20748_v34 = vld [vmem:[#allocation24_spill] sm:$0xff]  ;;  %v20750_v55 = vld [vmem:[#allocation42_spill] sm:$0xff] }
 0x5b0   :  { %v16187_v29 = vpop.f32.mrb[14].mxu1  ;;  %20742 = vst [vmem:[#allocation219_spill] sm:$0xff] %v16477_v31  ;;  %v5087_v2 = vadd.f32 %v5086_v63, %v5085_v43  ;;  %v16495_v41 = vadd.f32 %v20744_v32, %v15738_v20  ;;  %v16499_v38 = vadd.f32 %v15738_v20, %v20746_v35  ;;  %v16503_v11 = vadd.f32 %v20748_v34, %v15738_v20  ;;  %v20752_v35 = vld [vmem:[#allocation17_spill] sm:$0xff] }
 0x5b1   :  { %v16199_v61 = vpop.f32.mrb[15].mxu1  ;;  %20743 = vst [vmem:[#allocation220_spill] sm:$0xff] %v16485_v62  ;;  %v5088_v26 = vsel %vm199_vm0, %v16477_v31, 0.0  ;;  %v4687_v43 = vadd.f32 %v4686_v60, %v4685_v52  ;;  %v4955_v51 = vadd.f32 %v4954_v28, %v4953_v1  ;;  %v16511_v63 = vadd.f32 %v15738_v20, %v20750_v55 }
 0x5b2   :  { %20745 = vst [vmem:[#allocation32_spill] sm:$0xff] %v16495_v41  ;;  %20747 = vst [vmem:[#allocation95_spill] sm:$0xff] %v16499_v38  ;;  %v4822_v32 = vsel %vm199_vm0, %v16485_v62, 0.0  ;;  %v16517_v16 = vadd.f32 %v15738_v20, %v20752_v35  ;;  %v16521_v34 = vadd.f32 %v16019_v59, %v15738_v20  ;;  %v5089_v17 = vadd.f32 %v5088_v26, %v5087_v2  ;;  %v20756_v2 = vld [vmem:[#allocation94_spill] sm:$0xff]  ;;  %v20758_v62 = vld [vmem:[#allocation36_spill] sm:$0xff] }
 0x5b3   :  { %20749 = vst [vmem:[#allocation24_spill] sm:$0xff] %v16503_v11  ;;  %20751 = vst [vmem:[#allocation42_spill] sm:$0xff] %v16511_v63  ;;  %v4823_v31 = vadd.f32 %v4822_v32, %v4821_v45  ;;  %v4688_v52 = vsel %vm199_vm0, %v16495_v41, 0.0  ;;  %v4824_v1 = vsel %vm199_vm0, %v16499_v38, 0.0  ;;  %v4956_v60 = vsel %vm199_vm0, %v16503_v11, 0.0 }
 0x5b4   :  { %v16211_v25 = vpop.f32.mrb[16].mxu1  ;;  %20753 = vst [vmem:[#allocation17_spill] sm:$0xff] %v16517_v16  ;;  %20754 = vst [vmem:[#allocation221_spill] sm:$0xff] %v16521_v34  ;;  %v16533_v28 = vadd.f32 %v15738_v20, %v16059_v23  ;;  %v4689_v59 = vadd.f32 %v4688_v52, %v4687_v43  ;;  %v4957_v45 = vadd.f32 %v4956_v60, %v4955_v51  ;;  %v4690_v26 = vsel %vm199_vm0, %v16511_v63, 0.0  ;;  %v20759_v43 = vld [vmem:[#allocation97_spill] sm:$0xff]  ;;  %v20761_v52 = vld [vmem:[#allocation19_spill] sm:$0xff] }
 0x5b5   :  { %v16227_v10 = vpop.f32.mrb[17].mxu1  ;;  %v16541_v32 = vadd.f32 %v20756_v2, %v15738_v20  ;;  %v4958_v35 = vsel %vm199_vm0, %v16517_v16, 0.0  ;;  %v5090_v11 = vsel %vm199_vm0, %v16521_v34, 0.0  ;;  %v4825_v38 = vadd.f32 %v4824_v1, %v4823_v31  ;;  %v20763_v34 = vld [vmem:[#allocation46_spill] sm:$0xff]  ;;  %v20764_v31 = vld [vmem:[#allocation129_spill] sm:$0xff] }
 0x5b6   :  { %20755 = vst [vmem:[#allocation222_spill] sm:$0xff] %v16533_v28  ;;  %v5091_v23 = vadd.f32 %v5090_v11, %v5089_v17  ;;  %v16549_v41 = vadd.f32 %v20758_v62, %v15738_v20  ;;  %v16553_v51 = vadd.f32 %v15738_v20, %v20759_v43  ;;  %v16557_v60 = vadd.f32 %v20761_v52, %v15738_v20 }
 0x5b7   :  { %20757 = vst [vmem:[#allocation94_spill] sm:$0xff] %v16541_v32  ;;  %v5092_v2 = vsel %vm199_vm0, %v16533_v28, 0.0  ;;  %v4691_v16 = vadd.f32 %v4690_v26, %v4689_v59  ;;  %v4959_v63 = vadd.f32 %v4958_v35, %v4957_v45  ;;  %v16563_v11 = vadd.f32 %v15738_v20, %v20763_v34 }
 0x5b8   :  { %v16243_v0 = vpop.f32.mrb[18].mxu1  ;;  %20760 = vst [vmem:[#allocation36_spill] sm:$0xff] %v16553_v51  ;;  %20762 = vst [vmem:[#allocation97_spill] sm:$0xff] %v16557_v60  ;;  %v4826_v17 = vsel %vm199_vm0, %v16541_v32, 0.0  ;;  %v16569_v62 = vadd.f32 %v15738_v20, %v20764_v31  ;;  %v16573_v1 = vadd.f32 %v16043_v58, %v15738_v20  ;;  %v5093_v52 = vadd.f32 %v5092_v2, %v5091_v23 }
 0x5b9   :  { %v16255_v48 = vpop.f32.mrb[19].mxu1  ;;  %v4827_v43 = vadd.f32 %v4826_v17, %v4825_v38  ;;  %v4692_v59 = vsel %vm199_vm0, %v16549_v41, 0.0  ;;  %v4828_v34 = vsel %vm199_vm0, %v16553_v51, 0.0  ;;  %v4960_v45 = vsel %vm199_vm0, %v16557_v60, 0.0  ;;  %v20768_v38 = vld [vmem:[#allocation96_spill] sm:$0xff] }
 0x5ba   :  { %20765 = vst [vmem:[#allocation19_spill] sm:$0xff] %v16569_v62  ;;  %20766 = vst [vmem:[#allocation46_spill] sm:$0xff] %v16573_v1  ;;  %v16583_v26 = vadd.f32 %v15738_v20, %v16087_v54  ;;  %v4693_v35 = vadd.f32 %v4692_v59, %v4691_v16  ;;  %v4961_v31 = vadd.f32 %v4960_v45, %v4959_v63  ;;  %v4694_v58 = vsel %vm199_vm0, %v16563_v11, 0.0  ;;  %v20770_v54 = vld [vmem:[#allocation40_spill] sm:$0xff]  ;;  %v20771_v16 = vld [vmem:[#allocation99_spill] sm:$0xff] }
 0x5bb   :  { %v16589_v23 = vadd.f32 %v20768_v38, %v15738_v20  ;;  %v4962_v2 = vsel %vm199_vm0, %v16569_v62, 0.0  ;;  %v5094_v17 = vsel %vm199_vm0, %v16573_v1, 0.0  ;;  %v4829_v28 = vadd.f32 %v4828_v34, %v4827_v43  ;;  %v20773_v59 = vld [vmem:[#allocation128_spill] sm:$0xff]  ;;  %v20776_v34 = vld [vmem:[#allocation131_spill] sm:$0xff] }
 0x5bc   :  { %v16267_v56 = vpop.f32.mrb[20].mxu1  ;;  %20767 = vst [vmem:[#allocation129_spill] sm:$0xff] %v16583_v26  ;;  %v5095_v60 = vadd.f32 %v5094_v17, %v5093_v52  ;;  %v16597_v51 = vadd.f32 %v20770_v54, %v15738_v20  ;;  %v16601_v63 = vadd.f32 %v15738_v20, %v20771_v16  ;;  %v16605_v45 = vadd.f32 %v20773_v59, %v15738_v20  ;;  %v20775_v1 = vld [vmem:[#allocation48_spill] sm:$0xff] }
 0x5bd   :  { %v16283_v7 = vpop.f32.mrb[21].mxu1  ;;  %20769 = vst [vmem:[#allocation96_spill] sm:$0xff] %v16589_v23  ;;  %v5096_v38 = vsel %vm199_vm0, %v16583_v26, 0.0  ;;  %v4695_v62 = vadd.f32 %v4694_v58, %v4693_v35  ;;  %v4963_v32 = vadd.f32 %v4962_v2, %v4961_v31  ;;  %v16611_v43 = vadd.f32 %v15738_v20, %v20775_v1 }
 0x5be   :  { %20772 = vst [vmem:[#allocation40_spill] sm:$0xff] %v16601_v63  ;;  %20774 = vst [vmem:[#allocation99_spill] sm:$0xff] %v16605_v45  ;;  %v4830_v52 = vsel %vm199_vm0, %v16589_v23, 0.0  ;;  %v16617_v17 = vadd.f32 %v15738_v20, %v20776_v34  ;;  %v16621_v54 = vadd.f32 %v16075_v21, %v15738_v20  ;;  %v5097_v59 = vadd.f32 %v5096_v38, %v5095_v60 }
 0x5bf   :  { %v4831_v16 = vadd.f32 %v4830_v52, %v4829_v28  ;;  %v4696_v35 = vsel %vm199_vm0, %v16597_v51, 0.0  ;;  %v4832_v1 = vsel %vm199_vm0, %v16601_v63, 0.0  ;;  %v4964_v31 = vsel %vm199_vm0, %v16605_v45, 0.0  ;;  %v20780_v28 = vld [vmem:[#allocation98_spill] sm:$0xff] }
 0x5c0   :  { %v16299_v42 = vpop.f32.mrb[22].mxu1  ;;  %20777 = vst [vmem:[#allocation128_spill] sm:$0xff] %v16617_v17  ;;  %20778 = vst [vmem:[#allocation48_spill] sm:$0xff] %v16621_v54  ;;  %v16631_v58 = vadd.f32 %v15738_v20, %v16115_v18  ;;  %v4697_v2 = vadd.f32 %v4696_v35, %v4695_v62  ;;  %v4965_v34 = vadd.f32 %v4964_v31, %v4963_v32  ;;  %v4698_v21 = vsel %vm199_vm0, %v16611_v43, 0.0  ;;  %v20782_v18 = vld [vmem:[#allocation44_spill] sm:$0xff]  ;;  %v20783_v32 = vld [vmem:[#allocation101_spill] sm:$0xff] }
 0x5c1   :  { %v16311_v37 = vpop.f32.mrb[23].mxu1  ;;  %v16637_v60 = vadd.f32 %v20780_v28, %v15738_v20  ;;  %v4966_v38 = vsel %vm199_vm0, %v16617_v17, 0.0  ;;  %v5098_v52 = vsel %vm199_vm0, %v16621_v54, 0.0  ;;  %v4833_v26 = vadd.f32 %v4832_v1, %v4831_v16  ;;  %v20785_v35 = vld [vmem:[#allocation130_spill] sm:$0xff]  ;;  %v20788_v1 = vld [vmem:[#allocation133_spill] sm:$0xff] }
 0x5c2   :  { %20779 = vst [vmem:[#allocation131_spill] sm:$0xff] %v16631_v58  ;;  %v5099_v45 = vadd.f32 %v5098_v52, %v5097_v59  ;;  %v16645_v63 = vadd.f32 %v20782_v18, %v15738_v20  ;;  %v16649_v62 = vadd.f32 %v15738_v20, %v20783_v32  ;;  %v16653_v31 = vadd.f32 %v20785_v35, %v15738_v20  ;;  %v20787_v54 = vld [vmem:[#allocation50_spill] sm:$0xff] }
 0x5c3   :  { %20781 = vst [vmem:[#allocation98_spill] sm:$0xff] %v16637_v60  ;;  %v5100_v28 = vsel %vm199_vm0, %v16631_v58, 0.0  ;;  %v4699_v17 = vadd.f32 %v4698_v21, %v4697_v2  ;;  %v4967_v23 = vadd.f32 %v4966_v38, %v4965_v34  ;;  %v16659_v16 = vadd.f32 %v15738_v20, %v20787_v54 }
 0x5c4   :  { %v16323_v6 = vpop.f32.mrb[24].mxu1  ;;  %20784 = vst [vmem:[#allocation44_spill] sm:$0xff] %v16649_v62  ;;  %20786 = vst [vmem:[#allocation101_spill] sm:$0xff] %v16653_v31  ;;  %v4834_v59 = vsel %vm199_vm0, %v16637_v60, 0.0  ;;  %v16665_v52 = vadd.f32 %v15738_v20, %v20788_v1  ;;  %v16669_v18 = vadd.f32 %v16099_v47, %v15738_v20  ;;  %v5101_v35 = vadd.f32 %v5100_v28, %v5099_v45 }
 0x5c5   :  { %v16339_v12 = vpop.f32.mrb[25].mxu1  ;;  %v4835_v32 = vadd.f32 %v4834_v59, %v4833_v26  ;;  %v4700_v2 = vsel %vm199_vm0, %v16645_v63, 0.0  ;;  %v4836_v54 = vsel %vm199_vm0, %v16649_v62, 0.0  ;;  %v4968_v34 = vsel %vm199_vm0, %v16653_v31, 0.0  ;;  %v20792_v26 = vld [vmem:[#allocation100_spill] sm:$0xff] }
 0x5c6   :  { %20789 = vst [vmem:[#allocation130_spill] sm:$0xff] %v16665_v52  ;;  %20790 = vst [vmem:[#allocation50_spill] sm:$0xff] %v16669_v18  ;;  %v16679_v21 = vadd.f32 %v15738_v20, %v16143_v13  ;;  %v4701_v38 = vadd.f32 %v4700_v2, %v4699_v17  ;;  %v4969_v1 = vadd.f32 %v4968_v34, %v4967_v23  ;;  %v4702_v47 = vsel %vm199_vm0, %v16659_v16, 0.0  ;;  %v20794_v13 = vld [vmem:[#allocation49_spill] sm:$0xff]  ;;  %v20795_v23 = vld [vmem:[#allocation103_spill] sm:$0xff] }
 0x5c7   :  { %v16685_v45 = vadd.f32 %v20792_v26, %v15738_v20  ;;  %v4970_v28 = vsel %vm199_vm0, %v16665_v52, 0.0  ;;  %v5102_v59 = vsel %vm199_vm0, %v16669_v18, 0.0  ;;  %v4837_v58 = vadd.f32 %v4836_v54, %v4835_v32  ;;  %v20797_v2 = vld [vmem:[#allocation132_spill] sm:$0xff]  ;;  %v20800_v54 = vld [vmem:[#allocation135_spill] sm:$0xff] }
 0x5c8   :  { %v16355_v15 = vpop.f32.mrb[26].mxu1  ;;  %20791 = vst [vmem:[#allocation133_spill] sm:$0xff] %v16679_v21  ;;  %v5103_v31 = vadd.f32 %v5102_v59, %v5101_v35  ;;  %v16693_v62 = vadd.f32 %v20794_v13, %v15738_v20  ;;  %v16697_v17 = vadd.f32 %v15738_v20, %v20795_v23  ;;  %v16701_v34 = vadd.f32 %v20797_v2, %v15738_v20  ;;  %v20799_v18 = vld [vmem:[#allocation52_spill] sm:$0xff] }
 0x5c9   :  { %v16367_v33 = vpop.f32.mrb[27].mxu1  ;;  %20793 = vst [vmem:[#allocation100_spill] sm:$0xff] %v16685_v45  ;;  %v5104_v26 = vsel %vm199_vm0, %v16679_v21, 0.0  ;;  %v4703_v52 = vadd.f32 %v4702_v47, %v4701_v38  ;;  %v4971_v60 = vadd.f32 %v4970_v28, %v4969_v1  ;;  %v16707_v32 = vadd.f32 %v15738_v20, %v20799_v18 }
 0x5ca   :  { %20796 = vst [vmem:[#allocation49_spill] sm:$0xff] %v16697_v17  ;;  %20798 = vst [vmem:[#allocation103_spill] sm:$0xff] %v16701_v34  ;;  %v4838_v35 = vsel %vm199_vm0, %v16685_v45, 0.0  ;;  %v16713_v59 = vadd.f32 %v15738_v20, %v20800_v54  ;;  %v16717_v13 = vadd.f32 %v16131_v14, %v15738_v20  ;;  %v5105_v2 = vadd.f32 %v5104_v26, %v5103_v31 }
 0x5cb   :  { %v4839_v23 = vadd.f32 %v4838_v35, %v4837_v58  ;;  %v4704_v38 = vsel %vm199_vm0, %v16693_v62, 0.0  ;;  %v4840_v18 = vsel %vm199_vm0, %v16697_v17, 0.0  ;;  %v4972_v1 = vsel %vm199_vm0, %v16701_v34, 0.0  ;;  %v20804_v58 = vld [vmem:[#allocation102_spill] sm:$0xff] }
 0x5cc   :  { %v16379_v46 = vpop.f32.mrb[28].mxu1  ;;  %20801 = vst [vmem:[#allocation132_spill] sm:$0xff] %v16713_v59  ;;  %20802 = vst [vmem:[#allocation52_spill] sm:$0xff] %v16717_v13  ;;  %v16727_v47 = vadd.f32 %v15738_v20, %v16171_v5  ;;  %v4705_v28 = vadd.f32 %v4704_v38, %v4703_v52  ;;  %v4973_v54 = vadd.f32 %v4972_v1, %v4971_v60  ;;  %v4706_v14 = vsel %vm199_vm0, %v16707_v32, 0.0  ;;  %v20806_v5 = vld [vmem:[#allocation51_spill] sm:$0xff]  ;;  %v20807_v60 = vld [vmem:[#allocation105_spill] sm:$0xff] }
 0x5cd   :  { %v16395_v53 = vpop.f32.mrb[29].mxu1  ;;  %v16733_v31 = vadd.f32 %v20804_v58, %v15738_v20  ;;  %v4974_v26 = vsel %vm199_vm0, %v16713_v59, 0.0  ;;  %v5106_v35 = vsel %vm199_vm0, %v16717_v13, 0.0  ;;  %v4841_v21 = vadd.f32 %v4840_v18, %v4839_v23  ;;  %v20809_v38 = vld [vmem:[#allocation134_spill] sm:$0xff]  ;;  %v20812_v18 = vld [vmem:[#allocation137_spill] sm:$0xff] }
 0x5ce   :  { %20803 = vst [vmem:[#allocation135_spill] sm:$0xff] %v16727_v47  ;;  %v5107_v34 = vadd.f32 %v5106_v35, %v5105_v2  ;;  %v16741_v17 = vadd.f32 %v20806_v5, %v15738_v20  ;;  %v16745_v52 = vadd.f32 %v15738_v20, %v20807_v60  ;;  %v16749_v1 = vadd.f32 %v20809_v38, %v15738_v20  ;;  %v20811_v13 = vld [vmem:[#allocation54_spill] sm:$0xff] }
 0x5cf   :  { %20805 = vst [vmem:[#allocation102_spill] sm:$0xff] %v16733_v31  ;;  %v5108_v58 = vsel %vm199_vm0, %v16727_v47, 0.0  ;;  %v4707_v59 = vadd.f32 %v4706_v14, %v4705_v28  ;;  %v4975_v45 = vadd.f32 %v4974_v26, %v4973_v54  ;;  %v16755_v23 = vadd.f32 %v15738_v20, %v20811_v13 }
 0x5d0   :  { %v16411_v24 = vpop.f32.mrb[30].mxu1  ;;  %20808 = vst [vmem:[#allocation51_spill] sm:$0xff] %v16745_v52  ;;  %20810 = vst [vmem:[#allocation105_spill] sm:$0xff] %v16749_v1  ;;  %v4842_v2 = vsel %vm199_vm0, %v16733_v31, 0.0  ;;  %v16761_v35 = vadd.f32 %v15738_v20, %v20812_v18  ;;  %v16765_v5 = vadd.f32 %v16155_v22, %v15738_v20  ;;  %v5109_v38 = vadd.f32 %v5108_v58, %v5107_v34  ;;  %v20816_v34 = vld [vmem:[#allocation104_spill] sm:$0xff] }
 0x5d1   :  { %v16423_v50 = vpop.f32.mrb[31].mxu1  ;;  %v4843_v60 = vadd.f32 %v4842_v2, %v4841_v21  ;;  %v4708_v28 = vsel %vm199_vm0, %v16741_v17, 0.0  ;;  %v4844_v13 = vsel %vm199_vm0, %v16745_v52, 0.0  ;;  %v4976_v54 = vsel %vm199_vm0, %v16749_v1, 0.0  ;;  %v16782_v21 = vld [vmem:[%s19641_s10] ss:$0 sm:$0xff] }
 0x5d2   :  { %20813 = vst [vmem:[#allocation134_spill] sm:$0xff] %v16761_v35  ;;  %20814 = vst [vmem:[#allocation54_spill] sm:$0xff] %v16765_v5  ;;  %v16775_v14 = vadd.f32 %v15738_v20, %v16199_v61  ;;  %v4709_v26 = vadd.f32 %v4708_v28, %v4707_v59  ;;  %v4977_v18 = vadd.f32 %v4976_v54, %v4975_v45  ;;  %v4710_v22 = vsel %vm199_vm0, %v16755_v23, 0.0  ;;  %v20818_v59 = vld [vmem:[#allocation53_spill] sm:$0xff]  ;;  %v20819_v54 = vld [vmem:[#allocation107_spill] sm:$0xff] }
 0x5d3   :  { %v16786_v58 = vadd.f32 %v16782_v21, %v20816_v34  ;;  %v4978_v2 = vsel %vm199_vm0, %v16761_v35, 0.0  ;;  %v5110_v20 = vsel %vm199_vm0, %v16765_v5, 0.0  ;;  %v4845_v61 = vadd.f32 %v4844_v13, %v4843_v60  ;;  %v20821_v1 = vld [vmem:[#allocation136_spill] sm:$0xff]  ;;  %v20823_v5 = vld [vmem:[#allocation55_spill] sm:$0xff] }
 0x5d4   :  { %v16435_v39 = vpop.f32.mrb[32].mxu1  ;;  %20815 = vst [vmem:[#allocation137_spill] sm:$0xff] %v16775_v14  ;;  %v5111_v45 = vadd.f32 %v5110_v20, %v5109_v38  ;;  %v16794_v28 = vadd.f32 %v16782_v21, %v20818_v59  ;;  %v16798_v47 = vadd.f32 %v16782_v21, %v20819_v54  ;;  %v16802_v34 = vadd.f32 %v16782_v21, %v20821_v1  ;;  %v20824_v13 = vld [vmem:[#allocation139_spill] sm:$0xff] }
 0x5d5   :  { %v16451_v9 = vpop.f32.mrb[33].mxu1  ;;  %20817 = vst [vmem:[#allocation104_spill] sm:$0xff] %v16786_v58  ;;  %v5112_v35 = vsel %vm199_vm0, %v16775_v14, 0.0  ;;  %v4711_v52 = vadd.f32 %v4710_v22, %v4709_v26  ;;  %v4979_v31 = vadd.f32 %v4978_v2, %v4977_v18  ;;  %v16808_v60 = vadd.f32 %v16782_v21, %v20823_v5 }
 0x5d6   :  { %20820 = vst [vmem:[#allocation53_spill] sm:$0xff] %v16798_v47  ;;  %20822 = vst [vmem:[#allocation107_spill] sm:$0xff] %v16802_v34  ;;  %v4846_v38 = vsel %vm199_vm0, %v16786_v58, 0.0  ;;  %v16814_v20 = vadd.f32 %v16782_v21, %v20824_v13  ;;  %v16818_v1 = vadd.f32 %v16782_v21, %v16187_v29  ;;  %v5113_v54 = vadd.f32 %v5112_v35, %v5111_v45 }
 0x5d7   :  { %v4847_v59 = vadd.f32 %v4846_v38, %v4845_v61  ;;  %v4712_v26 = vsel %vm199_vm0, %v16794_v28, 0.0  ;;  %v4848_v5 = vsel %vm199_vm0, %v16798_v47, 0.0  ;;  %v4980_v18 = vsel %vm199_vm0, %v16802_v34, 0.0  ;;  %v20828_v61 = vld [vmem:[#allocation106_spill] sm:$0xff]  ;;  %v20830_v47 = vld [vmem:[#allocation28_spill] sm:$0xff] }
 0x5d8   :  { %v16467_v4 = vpop.f32.mrb[34].mxu1  ;;  %20825 = vst [vmem:[#allocation136_spill] sm:$0xff] %v16814_v20  ;;  %20826 = vst [vmem:[#allocation55_spill] sm:$0xff] %v16818_v1  ;;  %v16828_v22 = vadd.f32 %v16782_v21, %v16227_v10  ;;  %v4713_v2 = vadd.f32 %v4712_v26, %v4711_v52  ;;  %v4981_v13 = vadd.f32 %v4980_v18, %v4979_v31  ;;  %v4714_v29 = vsel %vm199_vm0, %v16808_v60, 0.0  ;;  %v20831_v31 = vld [vmem:[#allocation109_spill] sm:$0xff]  ;;  %v20833_v26 = vld [vmem:[#allocation138_spill] sm:$0xff] }
 0x5d9   :  { %v16479_v8 = vpop.f32.mrb[35].mxu1  ;;  %v16834_v35 = vadd.f32 %v16782_v21, %v20828_v61  ;;  %v4982_v45 = vsel %vm199_vm0, %v16814_v20, 0.0  ;;  %v5114_v38 = vsel %vm199_vm0, %v16818_v1, 0.0  ;;  %v4849_v14 = vadd.f32 %v4848_v5, %v4847_v59  ;;  %v20835_v1 = vld [vmem:[#allocation57_spill] sm:$0xff] }
 0x5da   :  { %20827 = vst [vmem:[#allocation139_spill] sm:$0xff] %v16828_v22  ;;  %v5115_v34 = vadd.f32 %v5114_v38, %v5113_v54  ;;  %v16842_v10 = vadd.f32 %v16782_v21, %v20830_v47  ;;  %v16846_v52 = vadd.f32 %v16782_v21, %v20831_v31  ;;  %v16850_v18 = vadd.f32 %v16782_v21, %v20833_v26  ;;  %v20836_v54 = vld [vmem:[#allocation141_spill] sm:$0xff] }
 0x5db   :  { %20829 = vst [vmem:[#allocation106_spill] sm:$0xff] %v16834_v35  ;;  %v5116_v61 = vsel %vm199_vm0, %v16828_v22, 0.0  ;;  %v4715_v20 = vadd.f32 %v4714_v29, %v4713_v2  ;;  %v4983_v58 = vadd.f32 %v4982_v45, %v4981_v13  ;;  %v16856_v59 = vadd.f32 %v16782_v21, %v20835_v1 }
 0x5dc   :  { %v16491_v57 = vpop.f32.mrb[36].mxu1  ;;  %20832 = vst [vmem:[#allocation28_spill] sm:$0xff] %v16846_v52  ;;  %20834 = vst [vmem:[#allocation109_spill] sm:$0xff] %v16850_v18  ;;  %v4850_v47 = vsel %vm199_vm0, %v16834_v35, 0.0  ;;  %v16862_v5 = vadd.f32 %v16782_v21, %v20836_v54  ;;  %v16866_v38 = vadd.f32 %v16782_v21, %v16211_v25  ;;  %v5117_v26 = vadd.f32 %v5116_v61, %v5115_v34 }
 0x5dd   :  { %v16507_v3 = vpop.f32.mrb[37].mxu1  ;;  %v4851_v31 = vadd.f32 %v4850_v47, %v4849_v14  ;;  %v4716_v2 = vsel %vm199_vm0, %v16842_v10, 0.0  ;;  %v4852_v1 = vsel %vm199_vm0, %v16846_v52, 0.0  ;;  %v4984_v13 = vsel %vm199_vm0, %v16850_v18, 0.0  ;;  %v20840_v14 = vld [vmem:[#allocation108_spill] sm:$0xff] }
 0x5de   :  { %20837 = vst [vmem:[#allocation138_spill] sm:$0xff] %v16862_v5  ;;  %20838 = vst [vmem:[#allocation57_spill] sm:$0xff] %v16866_v38  ;;  %v16876_v29 = vadd.f32 %v16782_v21, %v16255_v48  ;;  %v4717_v45 = vadd.f32 %v4716_v2, %v4715_v20  ;;  %v4985_v54 = vadd.f32 %v4984_v13, %v4983_v58  ;;  %v4718_v25 = vsel %vm199_vm0, %v16856_v59, 0.0  ;;  %v20842_v52 = vld [vmem:[#allocation56_spill] sm:$0xff]  ;;  %v20843_v58 = vld [vmem:[#allocation111_spill] sm:$0xff] }
 0x5df   :  { %v16882_v34 = vadd.f32 %v16782_v21, %v20840_v14  ;;  %v4986_v61 = vsel %vm199_vm0, %v16862_v5, 0.0  ;;  %v5118_v47 = vsel %vm199_vm0, %v16866_v38, 0.0  ;;  %v4853_v22 = vadd.f32 %v4852_v1, %v4851_v31  ;;  %v20845_v2 = vld [vmem:[#allocation140_spill] sm:$0xff]  ;;  %v20847_v38 = vld [vmem:[#allocation59_spill] sm:$0xff] }
 0x5e0   :  { %v16523_v49 = vpop.f32.mrb[38].mxu1  ;;  %20839 = vst [vmem:[#allocation141_spill] sm:$0xff] %v16876_v29  ;;  %v5119_v18 = vadd.f32 %v5118_v47, %v5117_v26  ;;  %v16890_v48 = vadd.f32 %v16782_v21, %v20842_v52  ;;  %v16894_v20 = vadd.f32 %v16782_v21, %v20843_v58  ;;  %v16898_v13 = vadd.f32 %v16782_v21, %v20845_v2  ;;  %v20848_v26 = vld [vmem:[#allocation143_spill] sm:$0xff] }
 0x5e1   :  { %v16535_v55 = vpop.f32.mrb[39].mxu1  ;;  %20841 = vst [vmem:[#allocation108_spill] sm:$0xff] %v16882_v34  ;;  %v5120_v14 = vsel %vm199_vm0, %v16876_v29, 0.0  ;;  %v4719_v5 = vadd.f32 %v4718_v25, %v4717_v45  ;;  %v4987_v35 = vadd.f32 %v4986_v61, %v4985_v54  ;;  %v16904_v31 = vadd.f32 %v16782_v21, %v20847_v38 }
 0x5e2   :  { %20844 = vst [vmem:[#allocation56_spill] sm:$0xff] %v16894_v20  ;;  %20846 = vst [vmem:[#allocation111_spill] sm:$0xff] %v16898_v13  ;;  %v4854_v52 = vsel %vm199_vm0, %v16882_v34, 0.0  ;;  %v16910_v1 = vadd.f32 %v16782_v21, %v20848_v26  ;;  %v16914_v47 = vadd.f32 %v16782_v21, %v16243_v0  ;;  %v5121_v2 = vadd.f32 %v5120_v14, %v5119_v18 }
 0x5e3   :  { %v4855_v58 = vadd.f32 %v4854_v52, %v4853_v22  ;;  %v4720_v45 = vsel %vm199_vm0, %v16890_v48, 0.0  ;;  %v4856_v38 = vsel %vm199_vm0, %v16894_v20, 0.0  ;;  %v4988_v54 = vsel %vm199_vm0, %v16898_v13, 0.0  ;;  %v20852_v22 = vld [vmem:[#allocation110_spill] sm:$0xff] }
 0x5e4   :  { %20849 = vst [vmem:[#allocation140_spill] sm:$0xff] %v16910_v1  ;;  %20850 = vst [vmem:[#allocation59_spill] sm:$0xff] %v16914_v47  ;;  %v16924_v25 = vadd.f32 %v16782_v21, %v16283_v7  ;;  %v4721_v61 = vadd.f32 %v4720_v45, %v4719_v5  ;;  %v4989_v26 = vadd.f32 %v4988_v54, %v4987_v35  ;;  %v4722_v0 = vsel %vm199_vm0, %v16904_v31, 0.0  ;;  %v20854_v20 = vld [vmem:[#allocation58_spill] sm:$0xff]  ;;  %v20855_v35 = vld [vmem:[#allocation113_spill] sm:$0xff] }
 0x5e5   :  { %v16930_v18 = vadd.f32 %v16782_v21, %v20852_v22  ;;  %v4990_v14 = vsel %vm199_vm0, %v16910_v1, 0.0  ;;  %v5122_v52 = vsel %vm199_vm0, %v16914_v47, 0.0  ;;  %v4857_v29 = vadd.f32 %v4856_v38, %v4855_v58  ;;  %v20857_v45 = vld [vmem:[#allocation142_spill] sm:$0xff]  ;;  %v20859_v47 = vld [vmem:[#allocation61_spill] sm:$0xff] }
 0x5e6   :  { %20851 = vst [vmem:[#allocation143_spill] sm:$0xff] %v16924_v25  ;;  %v5123_v13 = vadd.f32 %v5122_v52, %v5121_v2  ;;  %v16938_v7 = vadd.f32 %v16782_v21, %v20854_v20  ;;  %v16942_v5 = vadd.f32 %v16782_v21, %v20855_v35  ;;  %v16946_v54 = vadd.f32 %v16782_v21, %v20857_v45  ;;  %v20860_v2 = vld [vmem:[#allocation145_spill] sm:$0xff] }
 0x5e7   :  { %20853 = vst [vmem:[#allocation110_spill] sm:$0xff] %v16930_v18  ;;  %v5124_v22 = vsel %vm199_vm0, %v16924_v25, 0.0  ;;  %v4723_v1 = vadd.f32 %v4722_v0, %v4721_v61  ;;  %v4991_v34 = vadd.f32 %v4990_v14, %v4989_v26  ;;  %v16952_v58 = vadd.f32 %v16782_v21, %v20859_v47 }
 0x5e8   :  { %20856 = vst [vmem:[#allocation58_spill] sm:$0xff] %v16942_v5  ;;  %20858 = vst [vmem:[#allocation113_spill] sm:$0xff] %v16946_v54  ;;  %v4858_v20 = vsel %vm199_vm0, %v16930_v18, 0.0  ;;  %v16958_v38 = vadd.f32 %v16782_v21, %v20860_v2  ;;  %v16962_v52 = vadd.f32 %v16782_v21, %v16267_v56  ;;  %v5125_v45 = vadd.f32 %v5124_v22, %v5123_v13 }
 0x5e9   :  { %v4859_v35 = vadd.f32 %v4858_v20, %v4857_v29  ;;  %v4724_v61 = vsel %vm199_vm0, %v16938_v7, 0.0  ;;  %v4860_v47 = vsel %vm199_vm0, %v16942_v5, 0.0  ;;  %v4992_v26 = vsel %vm199_vm0, %v16946_v54, 0.0  ;;  %v20864_v29 = vld [vmem:[#allocation112_spill] sm:$0xff] }
 0x5ea   :  { %20861 = vst [vmem:[#allocation142_spill] sm:$0xff] %v16958_v38  ;;  %20862 = vst [vmem:[#allocation61_spill] sm:$0xff] %v16962_v52  ;;  %v16972_v0 = vadd.f32 %v16782_v21, %v16311_v37  ;;  %v4725_v14 = vadd.f32 %v4724_v61, %v4723_v1  ;;  %v4993_v2 = vadd.f32 %v4992_v26, %v4991_v34  ;;  %v4726_v56 = vsel %vm199_vm0, %v16952_v58, 0.0  ;;  %v20866_v5 = vld [vmem:[#allocation60_spill] sm:$0xff]  ;;  %v20868_v34 = vld [vmem:[#allocation115_spill] sm:$0xff] }
 0x5eb   :  { %v16978_v13 = vadd.f32 %v16782_v21, %v20864_v29  ;;  %v4994_v22 = vsel %vm199_vm0, %v16958_v38, 0.0  ;;  %v5126_v20 = vsel %vm199_vm0, %v16962_v52, 0.0  ;;  %v4861_v25 = vadd.f32 %v4860_v47, %v4859_v35  ;;  %v20870_v61 = vld [vmem:[#allocation144_spill] sm:$0xff]  ;;  %v20872_v52 = vld [vmem:[#allocation63_spill] sm:$0xff] }
 0x5ec   :  { %20863 = vst [vmem:[#allocation145_spill] sm:$0xff] %v16972_v0  ;;  %v5127_v54 = vadd.f32 %v5126_v20, %v5125_v45  ;;  %v16986_v37 = vadd.f32 %v16782_v21, %v20866_v5  ;;  %v16990_v1 = vadd.f32 %v16782_v21, %v20868_v34  ;;  %v16994_v26 = vadd.f32 %v16782_v21, %v20870_v61  ;;  %v20874_v45 = vld [vmem:[#allocation147_spill] sm:$0xff] }
 0x5ed   :  { %20865 = vst [vmem:[#allocation112_spill] sm:$0xff] %v16978_v13  ;;  %v5128_v29 = vsel %vm199_vm0, %v16972_v0, 0.0  ;;  %v4727_v38 = vadd.f32 %v4726_v56, %v4725_v14  ;;  %v4995_v18 = vadd.f32 %v4994_v22, %v4993_v2  ;;  %v17000_v35 = vadd.f32 %v16782_v21, %v20872_v52 }
 0x5ee   :  { %20867 = vst [vmem:[#allocation60_spill] sm:$0xff] %v16986_v37  ;;  %20869 = vst [vmem:[#allocation115_spill] sm:$0xff] %v16990_v1  ;;  %v4862_v5 = vsel %vm199_vm0, %v16978_v13, 0.0  ;;  %v17006_v47 = vadd.f32 %v16782_v21, %v20874_v45  ;;  %v17010_v20 = vadd.f32 %v16782_v21, %v16299_v42  ;;  %v5129_v61 = vadd.f32 %v5128_v29, %v5127_v54 }
 0x5ef   :  { %20871 = vst [vmem:[#allocation144_spill] sm:$0xff] %v16994_v26  ;;  %20873 = vst [vmem:[#allocation63_spill] sm:$0xff] %v17000_v35  ;;  %v4863_v34 = vadd.f32 %v4862_v5, %v4861_v25  ;;  %v4728_v14 = vsel %vm199_vm0, %v16986_v37, 0.0  ;;  %v4864_v52 = vsel %vm199_vm0, %v16990_v1, 0.0  ;;  %v4996_v2 = vsel %vm199_vm0, %v16994_v26, 0.0  ;;  %v20878_v25 = vld [vmem:[#allocation114_spill] sm:$0xff] }
 0x5f0   :  { %20875 = vst [vmem:[#allocation147_spill] sm:$0xff] %v17006_v47  ;;  %20876 = vst [vmem:[#allocation223_spill] sm:$0xff] %v17010_v20  ;;  %v17020_v56 = vadd.f32 %v16782_v21, %v16339_v12  ;;  %v4729_v22 = vadd.f32 %v4728_v14, %v4727_v38  ;;  %v4997_v45 = vadd.f32 %v4996_v2, %v4995_v18  ;;  %v4730_v42 = vsel %vm199_vm0, %v17000_v35, 0.0  ;;  %v20880_v1 = vld [vmem:[#allocation62_spill] sm:$0xff]  ;;  %v20882_v18 = vld [vmem:[#allocation117_spill] sm:$0xff] }
 0x5f1   :  { %v17026_v54 = vadd.f32 %v16782_v21, %v20878_v25  ;;  %v4998_v29 = vsel %vm199_vm0, %v17006_v47, 0.0  ;;  %v5130_v5 = vsel %vm199_vm0, %v17010_v20, 0.0  ;;  %v4865_v0 = vadd.f32 %v4864_v52, %v4863_v34  ;;  %v20884_v14 = vld [vmem:[#allocation146_spill] sm:$0xff]  ;;  %v20886_v20 = vld [vmem:[#allocation65_spill] sm:$0xff] }
 0x5f2   :  { %20877 = vst [vmem:[#allocation224_spill] sm:$0xff] %v17020_v56  ;;  %v5131_v26 = vadd.f32 %v5130_v5, %v5129_v61  ;;  %v17034_v12 = vadd.f32 %v16782_v21, %v20880_v1  ;;  %v17038_v38 = vadd.f32 %v16782_v21, %v20882_v18  ;;  %v17042_v2 = vadd.f32 %v16782_v21, %v20884_v14  ;;  %v20888_v61 = vld [vmem:[#allocation149_spill] sm:$0xff] }
 0x5f3   :  { %20879 = vst [vmem:[#allocation114_spill] sm:$0xff] %v17026_v54  ;;  %v5132_v25 = vsel %vm199_vm0, %v17020_v56, 0.0  ;;  %v4731_v47 = vadd.f32 %v4730_v42, %v4729_v22  ;;  %v4999_v13 = vadd.f32 %v4998_v29, %v4997_v45  ;;  %v17048_v34 = vadd.f32 %v16782_v21, %v20886_v20 }
 0x5f4   :  { %20881 = vst [vmem:[#allocation62_spill] sm:$0xff] %v17034_v12  ;;  %20883 = vst [vmem:[#allocation117_spill] sm:$0xff] %v17038_v38  ;;  %v4866_v1 = vsel %vm199_vm0, %v17026_v54, 0.0  ;;  %v17054_v52 = vadd.f32 %v16782_v21, %v20888_v61  ;;  %v17058_v5 = vadd.f32 %v16782_v21, %v16323_v6  ;;  %v5133_v14 = vadd.f32 %v5132_v25, %v5131_v26 }
 0x5f5   :  { %20885 = vst [vmem:[#allocation146_spill] sm:$0xff] %v17042_v2  ;;  %20887 = vst [vmem:[#allocation65_spill] sm:$0xff] %v17048_v34  ;;  %v4867_v18 = vadd.f32 %v4866_v1, %v4865_v0  ;;  %v4732_v22 = vsel %vm199_vm0, %v17034_v12, 0.0  ;;  %v4868_v20 = vsel %vm199_vm0, %v17038_v38, 0.0  ;;  %v5000_v45 = vsel %vm199_vm0, %v17042_v2, 0.0  ;;  %v20892_v0 = vld [vmem:[#allocation116_spill] sm:$0xff] }
 0x5f6   :  { %20889 = vst [vmem:[#allocation149_spill] sm:$0xff] %v17054_v52  ;;  %20890 = vst [vmem:[#allocation225_spill] sm:$0xff] %v17058_v5  ;;  %v17068_v42 = vadd.f32 %v16782_v21, %v16367_v33  ;;  %v4733_v29 = vadd.f32 %v4732_v22, %v4731_v47  ;;  %v5001_v61 = vadd.f32 %v5000_v45, %v4999_v13  ;;  %v4734_v6 = vsel %vm199_vm0, %v17048_v34, 0.0  ;;  %v20894_v38 = vld [vmem:[#allocation64_spill] sm:$0xff]  ;;  %v20896_v13 = vld [vmem:[#allocation119_spill] sm:$0xff] }
 0x5f7   :  { %v17074_v26 = vadd.f32 %v16782_v21, %v20892_v0  ;;  %v5002_v25 = vsel %vm199_vm0, %v17054_v52, 0.0  ;;  %v5134_v1 = vsel %vm199_vm0, %v17058_v5, 0.0  ;;  %v4869_v56 = vadd.f32 %v4868_v20, %v4867_v18  ;;  %v20898_v22 = vld [vmem:[#allocation148_spill] sm:$0xff]  ;;  %v20900_v5 = vld [vmem:[#allocation67_spill] sm:$0xff] }
 0x5f8   :  { %20891 = vst [vmem:[#allocation226_spill] sm:$0xff] %v17068_v42  ;;  %v5135_v2 = vadd.f32 %v5134_v1, %v5133_v14  ;;  %v17082_v33 = vadd.f32 %v16782_v21, %v20894_v38  ;;  %v17086_v47 = vadd.f32 %v16782_v21, %v20896_v13  ;;  %v17090_v45 = vadd.f32 %v16782_v21, %v20898_v22  ;;  %v20902_v14 = vld [vmem:[#allocation151_spill] sm:$0xff] }
 0x5f9   :  { %20893 = vst [vmem:[#allocation116_spill] sm:$0xff] %v17074_v26  ;;  %v5136_v0 = vsel %vm199_vm0, %v17068_v42, 0.0  ;;  %v4735_v52 = vadd.f32 %v4734_v6, %v4733_v29  ;;  %v5003_v54 = vadd.f32 %v5002_v25, %v5001_v61  ;;  %v17096_v18 = vadd.f32 %v16782_v21, %v20900_v5 }
 0x5fa   :  { %20895 = vst [vmem:[#allocation64_spill] sm:$0xff] %v17082_v33  ;;  %20897 = vst [vmem:[#allocation119_spill] sm:$0xff] %v17086_v47  ;;  %v4870_v38 = vsel %vm199_vm0, %v17074_v26, 0.0  ;;  %v17102_v20 = vadd.f32 %v16782_v21, %v20902_v14  ;;  %v17106_v1 = vadd.f32 %v16782_v21, %v16355_v15  ;;  %v5137_v22 = vadd.f32 %v5136_v0, %v5135_v2 }
 0x5fb   :  { %20899 = vst [vmem:[#allocation148_spill] sm:$0xff] %v17090_v45  ;;  %20901 = vst [vmem:[#allocation67_spill] sm:$0xff] %v17096_v18  ;;  %v4871_v13 = vadd.f32 %v4870_v38, %v4869_v56  ;;  %v4736_v29 = vsel %vm199_vm0, %v17082_v33, 0.0  ;;  %v4872_v5 = vsel %vm199_vm0, %v17086_v47, 0.0  ;;  %v5004_v61 = vsel %vm199_vm0, %v17090_v45, 0.0  ;;  %v20906_v56 = vld [vmem:[#allocation118_spill] sm:$0xff] }
 0x5fc   :  { %20903 = vst [vmem:[#allocation151_spill] sm:$0xff] %v17102_v20  ;;  %20904 = vst [vmem:[#allocation227_spill] sm:$0xff] %v17106_v1  ;;  %v17116_v6 = vadd.f32 %v16782_v21, %v16395_v53  ;;  %v4737_v25 = vadd.f32 %v4736_v29, %v4735_v52  ;;  %v5005_v14 = vadd.f32 %v5004_v61, %v5003_v54  ;;  %v4738_v15 = vsel %vm199_vm0, %v17096_v18, 0.0  ;;  %v20908_v47 = vld [vmem:[#allocation66_spill] sm:$0xff]  ;;  %v20910_v54 = vld [vmem:[#allocation121_spill] sm:$0xff] }
 0x5fd   :  { %v17122_v2 = vadd.f32 %v16782_v21, %v20906_v56  ;;  %v5006_v0 = vsel %vm199_vm0, %v17102_v20, 0.0  ;;  %v5138_v38 = vsel %vm199_vm0, %v17106_v1, 0.0  ;;  %v4873_v42 = vadd.f32 %v4872_v5, %v4871_v13  ;;  %v20912_v29 = vld [vmem:[#allocation150_spill] sm:$0xff]  ;;  %v20914_v1 = vld [vmem:[#allocation69_spill] sm:$0xff] }
 0x5fe   :  { %20905 = vst [vmem:[#allocation228_spill] sm:$0xff] %v17116_v6  ;;  %v5139_v45 = vadd.f32 %v5138_v38, %v5137_v22  ;;  %v17130_v53 = vadd.f32 %v16782_v21, %v20908_v47  ;;  %v17134_v52 = vadd.f32 %v16782_v21, %v20910_v54  ;;  %v17138_v61 = vadd.f32 %v16782_v21, %v20912_v29  ;;  %v20916_v22 = vld [vmem:[#allocation153_spill] sm:$0xff] }
 0x5ff   :  { %20907 = vst [vmem:[#allocation118_spill] sm:$0xff] %v17122_v2  ;;  %v5140_v56 = vsel %vm199_vm0, %v17116_v6, 0.0  ;;  %v4739_v20 = vadd.f32 %v4738_v15, %v4737_v25  ;;  %v5007_v26 = vadd.f32 %v5006_v0, %v5005_v14  ;;  %v17144_v13 = vadd.f32 %v16782_v21, %v20914_v1 }
 0x600   :  { %20909 = vst [vmem:[#allocation66_spill] sm:$0xff] %v17130_v53  ;;  %20911 = vst [vmem:[#allocation121_spill] sm:$0xff] %v17134_v52  ;;  %v4874_v47 = vsel %vm199_vm0, %v17122_v2, 0.0  ;;  %v17150_v5 = vadd.f32 %v16782_v21, %v20916_v22  ;;  %v17154_v38 = vadd.f32 %v16782_v21, %v16379_v46  ;;  %v5141_v29 = vadd.f32 %v5140_v56, %v5139_v45 }
 0x601   :  { %20913 = vst [vmem:[#allocation150_spill] sm:$0xff] %v17138_v61  ;;  %20915 = vst [vmem:[#allocation69_spill] sm:$0xff] %v17144_v13  ;;  %v4875_v54 = vadd.f32 %v4874_v47, %v4873_v42  ;;  %v4740_v25 = vsel %vm199_vm0, %v17130_v53, 0.0  ;;  %v4876_v1 = vsel %vm199_vm0, %v17134_v52, 0.0  ;;  %v5008_v14 = vsel %vm199_vm0, %v17138_v61, 0.0  ;;  %v20920_v42 = vld [vmem:[#allocation120_spill] sm:$0xff] }
 0x602   :  { %20917 = vst [vmem:[#allocation153_spill] sm:$0xff] %v17150_v5  ;;  %20918 = vst [vmem:[#allocation229_spill] sm:$0xff] %v17154_v38  ;;  %v17164_v15 = vadd.f32 %v16782_v21, %v16423_v50  ;;  %v4741_v0 = vadd.f32 %v4740_v25, %v4739_v20  ;;  %v5009_v22 = vadd.f32 %v5008_v14, %v5007_v26  ;;  %v4742_v46 = vsel %vm199_vm0, %v17144_v13, 0.0  ;;  %v20922_v52 = vld [vmem:[#allocation68_spill] sm:$0xff]  ;;  %v20924_v26 = vld [vmem:[#allocation123_spill] sm:$0xff] }
 0x603   :  { %v17170_v45 = vadd.f32 %v16782_v21, %v20920_v42  ;;  %v5010_v56 = vsel %vm199_vm0, %v17150_v5, 0.0  ;;  %v5142_v47 = vsel %vm199_vm0, %v17154_v38, 0.0  ;;  %v4877_v6 = vadd.f32 %v4876_v1, %v4875_v54  ;;  %v20926_v25 = vld [vmem:[#allocation152_spill] sm:$0xff]  ;;  %v20928_v38 = vld [vmem:[#allocation71_spill] sm:$0xff] }
 0x604   :  { %20919 = vst [vmem:[#allocation230_spill] sm:$0xff] %v17164_v15  ;;  %v5143_v61 = vadd.f32 %v5142_v47, %v5141_v29  ;;  %v17178_v50 = vadd.f32 %v16782_v21, %v20922_v52  ;;  %v17182_v20 = vadd.f32 %v16782_v21, %v20924_v26  ;;  %v17186_v14 = vadd.f32 %v16782_v21, %v20926_v25  ;;  %v20930_v29 = vld [vmem:[#allocation155_spill] sm:$0xff] }
 0x605   :  { %20921 = vst [vmem:[#allocation120_spill] sm:$0xff] %v17170_v45  ;;  %v5144_v42 = vsel %vm199_vm0, %v17164_v15, 0.0  ;;  %v4743_v5 = vadd.f32 %v4742_v46, %v4741_v0  ;;  %v5011_v13 = vadd.f32 %v5010_v56, %v5009_v22  ;;  %v17192_v54 = vadd.f32 %v16782_v21, %v20928_v38  ;;  %v21018_v53 = vld [vmem:[#allocation83_spill] sm:$0xff] }
 0x606   :  { %20923 = vst [vmem:[#allocation68_spill] sm:$0xff] %v17178_v50  ;;  %20925 = vst [vmem:[#allocation123_spill] sm:$0xff] %v17182_v20  ;;  %v4878_v52 = vsel %vm199_vm0, %v17170_v45, 0.0  ;;  %v17198_v1 = vadd.f32 %v16782_v21, %v20930_v29  ;;  %v17202_v47 = vadd.f32 %v16782_v21, %v16411_v24  ;;  %v5145_v25 = vadd.f32 %v5144_v42, %v5143_v61 }
 0x607   :  { %20927 = vst [vmem:[#allocation152_spill] sm:$0xff] %v17186_v14  ;;  %20929 = vst [vmem:[#allocation71_spill] sm:$0xff] %v17192_v54  ;;  %v4879_v26 = vadd.f32 %v4878_v52, %v4877_v6  ;;  %v4744_v0 = vsel %vm199_vm0, %v17178_v50, 0.0  ;;  %v4880_v38 = vsel %vm199_vm0, %v17182_v20, 0.0  ;;  %v5012_v22 = vsel %vm199_vm0, %v17186_v14, 0.0  ;;  %v20934_v6 = vld [vmem:[#allocation122_spill] sm:$0xff] }
 0x608   :  { %20931 = vst [vmem:[#allocation155_spill] sm:$0xff] %v17198_v1  ;;  %20932 = vst [vmem:[#allocation231_spill] sm:$0xff] %v17202_v47  ;;  %v17212_v46 = vadd.f32 %v16782_v21, %v16451_v9  ;;  %v4745_v56 = vadd.f32 %v4744_v0, %v4743_v5  ;;  %v5013_v29 = vadd.f32 %v5012_v22, %v5011_v13  ;;  %v4746_v24 = vsel %vm199_vm0, %v17192_v54, 0.0  ;;  %v20936_v20 = vld [vmem:[#allocation70_spill] sm:$0xff]  ;;  %v20938_v13 = vld [vmem:[#allocation124_spill] sm:$0xff] }
 0x609   :  { %v17218_v61 = vadd.f32 %v16782_v21, %v20934_v6  ;;  %v5014_v42 = vsel %vm199_vm0, %v17198_v1, 0.0  ;;  %v5146_v52 = vsel %vm199_vm0, %v17202_v47, 0.0  ;;  %v4881_v15 = vadd.f32 %v4880_v38, %v4879_v26  ;;  %v20940_v0 = vld [vmem:[#allocation154_spill] sm:$0xff]  ;;  %v20942_v47 = vld [vmem:[#allocation72_spill] sm:$0xff] }
 0x60a   :  { %20933 = vst [vmem:[#allocation232_spill] sm:$0xff] %v17212_v46  ;;  %v5147_v14 = vadd.f32 %v5146_v52, %v5145_v25  ;;  %v17226_v9 = vadd.f32 %v16782_v21, %v20936_v20  ;;  %v17230_v5 = vadd.f32 %v16782_v21, %v20938_v13  ;;  %v17234_v22 = vadd.f32 %v16782_v21, %v20940_v0  ;;  %v20944_v25 = vld [vmem:[#allocation157_spill] sm:$0xff] }
 0x60b   :  { %20935 = vst [vmem:[#allocation122_spill] sm:$0xff] %v17218_v61  ;;  %v5148_v6 = vsel %vm199_vm0, %v17212_v46, 0.0  ;;  %v4747_v1 = vadd.f32 %v4746_v24, %v4745_v56  ;;  %v5015_v54 = vadd.f32 %v5014_v42, %v5013_v29  ;;  %v17240_v26 = vadd.f32 %v16782_v21, %v20942_v47 }
 0x60c   :  { %20937 = vst [vmem:[#allocation70_spill] sm:$0xff] %v17226_v9  ;;  %20939 = vst [vmem:[#allocation124_spill] sm:$0xff] %v17230_v5  ;;  %v4882_v20 = vsel %vm199_vm0, %v17218_v61, 0.0  ;;  %v17246_v38 = vadd.f32 %v16782_v21, %v20944_v25  ;;  %v17250_v52 = vadd.f32 %v16782_v21, %v16435_v39  ;;  %v5149_v0 = vadd.f32 %v5148_v6, %v5147_v14 }
 0x60d   :  { %20941 = vst [vmem:[#allocation154_spill] sm:$0xff] %v17234_v22  ;;  %20943 = vst [vmem:[#allocation72_spill] sm:$0xff] %v17240_v26  ;;  %v4883_v13 = vadd.f32 %v4882_v20, %v4881_v15  ;;  %v4748_v56 = vsel %vm199_vm0, %v17226_v9, 0.0  ;;  %v4884_v47 = vsel %vm199_vm0, %v17230_v5, 0.0  ;;  %v5016_v29 = vsel %vm199_vm0, %v17234_v22, 0.0  ;;  %v20948_v15 = vld [vmem:[#allocation35_spill] sm:$0xff] }
 0x60e   :  { %20945 = vst [vmem:[#allocation157_spill] sm:$0xff] %v17246_v38  ;;  %20946 = vst [vmem:[#allocation233_spill] sm:$0xff] %v17250_v52  ;;  %v17260_v24 = vadd.f32 %v16782_v21, %v16479_v8  ;;  %v4749_v42 = vadd.f32 %v4748_v56, %v4747_v1  ;;  %v5017_v25 = vadd.f32 %v5016_v29, %v5015_v54  ;;  %v4750_v39 = vsel %vm199_vm0, %v17240_v26, 0.0  ;;  %v20950_v5 = vld [vmem:[#allocation29_spill] sm:$0xff]  ;;  %v20954_v56 = vld [vmem:[#allocation156_spill] sm:$0xff] }
 0x60f   :  { %v17266_v14 = vadd.f32 %v16782_v21, %v20948_v15  ;;  %v5018_v6 = vsel %vm199_vm0, %v17246_v38, 0.0  ;;  %v5150_v20 = vsel %vm199_vm0, %v17250_v52, 0.0  ;;  %v4885_v46 = vadd.f32 %v4884_v47, %v4883_v13  ;;  %v20952_v54 = vld [vmem:[#allocation125_spill] sm:$0xff]  ;;  %v20956_v52 = vld [vmem:[#allocation74_spill] sm:$0xff] }
 0x610   :  { %20947 = vst [vmem:[#allocation234_spill] sm:$0xff] %v17260_v24  ;;  %v5151_v22 = vadd.f32 %v5150_v20, %v5149_v0  ;;  %v17274_v8 = vadd.f32 %v16782_v21, %v20950_v5  ;;  %v17278_v1 = vadd.f32 %v16782_v21, %v20952_v54  ;;  %v17282_v29 = vadd.f32 %v16782_v21, %v20954_v56  ;;  %v20958_v0 = vld [vmem:[#allocation159_spill] sm:$0xff] }
 0x611   :  { %20949 = vst [vmem:[#allocation35_spill] sm:$0xff] %v17266_v14  ;;  %v5152_v15 = vsel %vm199_vm0, %v17260_v24, 0.0  ;;  %v4751_v38 = vadd.f32 %v4750_v39, %v4749_v42  ;;  %v5019_v26 = vadd.f32 %v5018_v6, %v5017_v25  ;;  %v17288_v13 = vadd.f32 %v16782_v21, %v20956_v52 }
 0x612   :  { %20951 = vst [vmem:[#allocation29_spill] sm:$0xff] %v17274_v8  ;;  %20953 = vst [vmem:[#allocation125_spill] sm:$0xff] %v17278_v1  ;;  %v4886_v5 = vsel %vm199_vm0, %v17266_v14, 0.0  ;;  %v17294_v47 = vadd.f32 %v16782_v21, %v20958_v0  ;;  %v17298_v20 = vadd.f32 %v16782_v21, %v16467_v4  ;;  %v5153_v56 = vadd.f32 %v5152_v15, %v5151_v22 }
 0x613   :  { %20955 = vst [vmem:[#allocation156_spill] sm:$0xff] %v17282_v29  ;;  %20957 = vst [vmem:[#allocation74_spill] sm:$0xff] %v17288_v13  ;;  %v4887_v54 = vadd.f32 %v4886_v5, %v4885_v46  ;;  %v4752_v42 = vsel %vm199_vm0, %v17274_v8, 0.0  ;;  %v4888_v52 = vsel %vm199_vm0, %v17278_v1, 0.0  ;;  %v5020_v25 = vsel %vm199_vm0, %v17282_v29, 0.0  ;;  %v20962_v46 = vld [vmem:[#allocation33_spill] sm:$0xff] }
 0x614   :  { %20959 = vst [vmem:[#allocation159_spill] sm:$0xff] %v17294_v47  ;;  %20960 = vst [vmem:[#allocation235_spill] sm:$0xff] %v17298_v20  ;;  %v17308_v39 = vadd.f32 %v16782_v21, %v16507_v3  ;;  %v4753_v6 = vadd.f32 %v4752_v42, %v4751_v38  ;;  %v5021_v0 = vadd.f32 %v5020_v25, %v5019_v26  ;;  %v4754_v4 = vsel %vm199_vm0, %v17288_v13, 0.0  ;;  %v20964_v1 = vld [vmem:[#allocation73_spill] sm:$0xff]  ;;  %v20966_v26 = vld [vmem:[#allocation127_spill] sm:$0xff] }
 0x615   :  { %v17314_v22 = vadd.f32 %v16782_v21, %v20962_v46  ;;  %v5022_v15 = vsel %vm199_vm0, %v17294_v47, 0.0  ;;  %v5154_v5 = vsel %vm199_vm0, %v17298_v20, 0.0  ;;  %v4889_v24 = vadd.f32 %v4888_v52, %v4887_v54  ;;  %v20968_v42 = vld [vmem:[#allocation158_spill] sm:$0xff]  ;;  %v20970_v20 = vld [vmem:[#allocation75_spill] sm:$0xff]  ;;  %v21010_v8 = vld [vmem:[#allocation12_spill] sm:$0xff] }
 0x616   :  { %20961 = vst [vmem:[#allocation236_spill] sm:$0xff] %v17308_v39  ;;  %v5155_v29 = vadd.f32 %v5154_v5, %v5153_v56  ;;  %v17322_v3 = vadd.f32 %v16782_v21, %v20964_v1  ;;  %v17326_v38 = vadd.f32 %v16782_v21, %v20966_v26  ;;  %v17330_v25 = vadd.f32 %v16782_v21, %v20968_v42  ;;  %v20972_v56 = vld [vmem:[#allocation161_spill] sm:$0xff] }
 0x617   :  { %20963 = vst [vmem:[#allocation33_spill] sm:$0xff] %v17314_v22  ;;  %v5156_v46 = vsel %vm199_vm0, %v17308_v39, 0.0  ;;  %v4755_v47 = vadd.f32 %v4754_v4, %v4753_v6  ;;  %v5023_v13 = vadd.f32 %v5022_v15, %v5021_v0  ;;  %v17336_v54 = vadd.f32 %v16782_v21, %v20970_v20 }
 0x618   :  { %20965 = vst [vmem:[#allocation73_spill] sm:$0xff] %v17322_v3  ;;  %20967 = vst [vmem:[#allocation127_spill] sm:$0xff] %v17326_v38  ;;  %v4890_v1 = vsel %vm199_vm0, %v17314_v22, 0.0  ;;  %v17342_v52 = vadd.f32 %v16782_v21, %v20972_v56  ;;  %v17346_v5 = vadd.f32 %v16782_v21, %v16491_v57  ;;  %v5157_v42 = vadd.f32 %v5156_v46, %v5155_v29 }
 0x619   :  { %20969 = vst [vmem:[#allocation158_spill] sm:$0xff] %v17330_v25  ;;  %20971 = vst [vmem:[#allocation75_spill] sm:$0xff] %v17336_v54  ;;  %v4891_v26 = vadd.f32 %v4890_v1, %v4889_v24  ;;  %v4756_v6 = vsel %vm199_vm0, %v17322_v3, 0.0  ;;  %v4892_v20 = vsel %vm199_vm0, %v17326_v38, 0.0  ;;  %v5024_v0 = vsel %vm199_vm0, %v17330_v25, 0.0  ;;  %v20976_v24 = vld [vmem:[#allocation126_spill] sm:$0xff] }
 0x61a   :  { %20973 = vst [vmem:[#allocation161_spill] sm:$0xff] %v17342_v52  ;;  %20974 = vst [vmem:[#allocation237_spill] sm:$0xff] %v17346_v5  ;;  %v17356_v4 = vadd.f32 %v16782_v21, %v16535_v55  ;;  %v4757_v15 = vadd.f32 %v4756_v6, %v4755_v47  ;;  %v5025_v56 = vadd.f32 %v5024_v0, %v5023_v13  ;;  %v4758_v57 = vsel %vm199_vm0, %v17336_v54, 0.0  ;;  %v20978_v38 = vld [vmem:[#allocation39_spill] sm:$0xff]  ;;  %v20980_v13 = vld [vmem:[#allocation160_spill] sm:$0xff] }
 0x61b   :  { %v17362_v29 = vadd.f32 %v16782_v21, %v20976_v24  ;;  %v5026_v46 = vsel %vm199_vm0, %v17342_v52, 0.0  ;;  %v5158_v1 = vsel %vm199_vm0, %v17346_v5, 0.0  ;;  %v4893_v39 = vadd.f32 %v4892_v20, %v4891_v26 }
 0x61c   :  { %20975 = vst [vmem:[#allocation238_spill] sm:$0xff] %v17356_v4  ;;  %v5159_v25 = vadd.f32 %v5158_v1, %v5157_v42  ;;  %v17370_v55 = vadd.f32 %v16782_v21, %v20978_v38  ;;  %v17374_v47 = vadd.f32 %v16782_v21, %v20980_v13  ;;  %v5160_v6 = vsel %vm199_vm0, %v17356_v4, 0.0 }
 0x61d   :  { %20977 = vst [vmem:[#allocation126_spill] sm:$0xff] %v17362_v29  ;;  %v4759_v0 = vadd.f32 %v4758_v57, %v4757_v15  ;;  %v5027_v24 = vadd.f32 %v5026_v46, %v5025_v56  ;;  %v4894_v52 = vsel %vm199_vm0, %v17362_v29, 0.0  ;;  %v17382_v26 = vadd.f32 %v16782_v21, %v16523_v49 }
 0x61e   :  { %20979 = vst [vmem:[#allocation39_spill] sm:$0xff] %v17370_v55  ;;  %20981 = vst [vmem:[#allocation160_spill] sm:$0xff] %v17374_v47  ;;  %v4895_v42 = vadd.f32 %v4894_v52, %v4893_v39  ;;  %v5161_v20 = vadd.f32 %v5160_v6, %v5159_v25  ;;  %v4760_v38 = vsel %vm199_vm0, %v17370_v55, 0.0  ;;  %v5028_v1 = vsel %vm199_vm0, %v17374_v47, 0.0 }
 0x61f   :  { %20982 = vst [vmem:[#allocation239_spill] sm:$0xff] %v17382_v26  ;;  %v4761_v13 = vadd.f32 %v4760_v38, %v4759_v0  ;;  %v5029_v5 = vadd.f32 %v5028_v1, %v5027_v24  ;;  %v5162_v15 = vsel %vm199_vm0, %v17382_v26, 0.0 }
 0x620   :  { %v4896_v56 = vrot.slane %v4895_v42, 4  ;;  %v5163_v57 = vadd.f32 %v5162_v15, %v5161_v20 }
 0x621   :  { %v4762_v46 = vrot.slane %v4761_v13, 4  ;;  %v5030_v4 = vrot.slane %v5029_v5, 4 }
 0x622   :  { %v4897_v29 = vadd.f32 %v4896_v56, %v4895_v42  ;;  %v5164_v49 = vrot.slane %v5163_v57, 4 }
 0x623   :  { %v4763_v21 = vadd.f32 %v4762_v46, %v4761_v13  ;;  %v5031_v39 = vadd.f32 %v5030_v4, %v5029_v5  ;;  %v20984_v46 = vld [vmem:[#allocation26_spill] sm:$0xff] }
 0x624   :  { %v4898_v25 = vrot.slane %v4897_v29, 2  ;;  %v5165_v52 = vadd.f32 %v5164_v49, %v5163_v57  ;;  %v20983_v57 = vld [vmem:[#allocation31_spill] sm:$0xff] }
 0x625   :  { %v4764_v6 = vrot.slane %v4763_v21, 2  ;;  %v5032_v55 = vrot.slane %v5031_v39, 2 }
 0x626   :  { %v4899_v54 = vadd.f32 %v4898_v25, %v4897_v29  ;;  %v5166_v22 = vrot.slane %v5165_v52, 2 }
 0x627   :  { %v4765_v47 = vadd.f32 %v4764_v6, %v4763_v21  ;;  %v5033_v0 = vadd.f32 %v5032_v55, %v5031_v39  ;;  %v20985_v21 = vld [vmem:[#allocation43_spill] sm:$0xff] }
 0x628   :  { %v4900_v24 = vrot.slane %v4899_v54, 1  ;;  %v5167_v38 = vadd.f32 %v5166_v22, %v5165_v52  ;;  %v20987_v39 = vld [vmem:[#allocation47_spill] sm:$0xff] }
 0x629   :  { %v4766_v1 = vrot.slane %v4765_v47, 1  ;;  %v5034_v26 = vrot.slane %v5033_v0, 1 }
 0x62a   :  { %v4901_v3 = vadd.f32 %v4900_v24, %v4899_v54  ;;  %v5168_v20 = vrot.slane %v5167_v38, 1 }
 0x62b   :  { %v4767_v15 = vadd.f32 %v4766_v1, %v4765_v47  ;;  %v5035_v14 = vadd.f32 %v5034_v26, %v5033_v0 }
 0x62c   :  { %v5169_v56 = vadd.f32 %v5168_v20, %v5167_v38 }
 0x62d   :  { %v4902_v42 = vadd.f32 %v4901_v3, %v4767_v15 }
 0x62f   :  { %v5036_v13 = vadd.f32 %v5035_v14, %v4902_v42  ;;  %v20986_v14 = vld [vmem:[#allocation76_spill] sm:$0xff]  ;;  %v20988_v42 = vld [vmem:[#allocation78_spill] sm:$0xff] }
 0x631   :  { %v5170_v5 = vadd.f32 %v5169_v56, %v5036_v13  ;;  %v20989_v13 = vld [vmem:[#allocation163_spill] sm:$0xff] }
 0x633   :  { %v17390_v4 = vmul.f32 0.00048828125, %v5170_v5 }
 0x635   :  { %v5172_v29 = vsub.f32 %v20983_v57, %v17390_v4  ;;  %v5173_v55 = vsub.f32 %v20984_v46, %v17390_v4  ;;  %v5174_v54 = vsub.f32 %v20985_v21, %v17390_v4  ;;  %v5434_v26 = vsub.f32 %v20986_v14, %v17390_v4 }
 0x636   :  { %v5435_v25 = vsub.f32 %v20987_v39, %v17390_v4  ;;  %v5175_v52 = vsub.f32 %v15825_v27, %v17390_v4  ;;  %v5176_v1 = vsub.f32 %v15841_v30, %v17390_v4  ;;  %v5436_v56 = vsub.f32 %v20988_v42, %v17390_v4 }
 0x637   :  { %v5236_v49 = vmul.f32 %v5172_v29, %v5172_v29  ;;  %v5237_v22 = vmul.f32 %v5173_v55, %v5173_v55  ;;  %v5238_v6 = vmul.f32 %v5174_v54, %v5174_v54  ;;  %v5498_v24 = vmul.f32 %v5434_v26, %v5434_v26  ;;  %v20990_v29 = vld [vmem:[#allocation162_spill] sm:$0xff] }
 0x638   :  { %v5499_v38 = vmul.f32 %v5435_v25, %v5435_v25  ;;  %v5239_v20 = vmul.f32 %v5175_v52, %v5175_v52  ;;  %v5696_v5 = vsub.f32 %v20989_v13, %v17390_v4  ;;  %v5697_v55 = vsub.f32 %v20990_v29, %v17390_v4  ;;  %v20992_v52 = vld [vmem:[#allocation77_spill] sm:$0xff] }
 0x639   :  { %v5300_v47 = vsel %vm199_vm0, %v5236_v49, 0.0  ;;  %v5301_v3 = vsel %vm199_vm0, %v5237_v22, 0.0  ;;  %v5303_v15 = vsel %vm199_vm0, %v5238_v6, 0.0  ;;  %v5562_v22 = vsel %vm199_vm0, %v5498_v24, 0.0  ;;  %v20994_v24 = vld [vmem:[#allocation4_spill] sm:$0xff] }
 0x63a   :  { %v5302_v0 = vadd.f32 %v5301_v3, %v5300_v47  ;;  %v5563_v54 = vsel %vm199_vm0, %v5499_v38, 0.0  ;;  %v20991_v47 = vld [vmem:[#allocation41_spill] sm:$0xff]  ;;  %v5240_v26 = vmul.f32 %v5176_v1, %v5176_v1  ;;  %v5305_v25 = vsel %vm199_vm0, %v5239_v20, 0.0  ;;  %v20995_v1 = vld [vmem:[#allocation80_spill] sm:$0xff] }
 0x63b   :  { %v5177_v3 = vsub.f32 %v20991_v47, %v17390_v4  ;;  %v5437_v6 = vsub.f32 %v20992_v52, %v17390_v4  ;;  %v5500_v42 = vmul.f32 %v5436_v56, %v5436_v56  ;;  %v5760_v39 = vmul.f32 %v5696_v5, %v5696_v5 }
 0x63c   :  { %v5304_v49 = vadd.f32 %v5303_v15, %v5302_v0  ;;  %v5761_v13 = vmul.f32 %v5697_v55, %v5697_v55  ;;  %v5564_v30 = vadd.f32 %v5563_v54, %v5562_v22  ;;  %v20993_v0 = vld [vmem:[#allocation164_spill] sm:$0xff]  ;;  %v5178_v38 = vsub.f32 %v20994_v24, %v17390_v4 }
 0x63d   :  { %v5698_v15 = vsub.f32 %v20993_v0, %v17390_v4  ;;  %v5241_v29 = vmul.f32 %v5177_v3, %v5177_v3  ;;  %v5307_v47 = vsel %vm199_vm0, %v5240_v26, 0.0  ;;  %v5438_v20 = vsub.f32 %v20995_v1, %v17390_v4  ;;  %v20996_v22 = vld [vmem:[#allocation168_spill] sm:$0xff]  ;;  %v20997_v3 = vld [vmem:[#allocation22_spill] sm:$0xff] }
 0x63e   :  { %v5306_v14 = vadd.f32 %v5305_v25, %v5304_v49  ;;  %v5501_v27 = vmul.f32 %v5437_v6, %v5437_v6  ;;  %v5565_v52 = vsel %vm199_vm0, %v5500_v42, 0.0  ;;  %v5824_v56 = vsel %vm199_vm0, %v5760_v39, 0.0  ;;  %v20998_v6 = vld [vmem:[#allocation79_spill] sm:$0xff] }
 0x63f   :  { %v5825_v5 = vsel %vm199_vm0, %v5761_v13, 0.0  ;;  %v5566_v49 = vadd.f32 %v5565_v52, %v5564_v30  ;;  %v5699_v54 = vsub.f32 %v20996_v22, %v17390_v4  ;;  %v5762_v25 = vmul.f32 %v5698_v15, %v5698_v15  ;;  %v21000_v52 = vld [vmem:[#allocation3_spill] sm:$0xff]  ;;  %v21001_v22 = vld [vmem:[#allocation169_spill] sm:$0xff] }
 0x640   :  { %v5308_v55 = vadd.f32 %v5307_v47, %v5306_v14  ;;  %v5179_v0 = vsub.f32 %v20997_v3, %v17390_v4  ;;  %v5242_v26 = vmul.f32 %v5178_v38, %v5178_v38  ;;  %v5826_v24 = vadd.f32 %v5825_v5, %v5824_v56  ;;  %v20999_v14 = vld [vmem:[#allocation6_spill] sm:$0xff]  ;;  %v21002_v5 = vld [vmem:[#allocation7_spill] sm:$0xff] }
 0x641   :  { %v5309_v1 = vsel %vm199_vm0, %v5241_v29, 0.0  ;;  %v5439_v42 = vsub.f32 %v20998_v6, %v17390_v4  ;;  %v5502_v21 = vmul.f32 %v5438_v20, %v5438_v20  ;;  %v5567_v39 = vsel %vm199_vm0, %v5501_v27, 0.0  ;;  %v21003_v20 = vld [vmem:[#allocation5_spill] sm:$0xff] }
 0x642   :  { %v5180_v30 = vsub.f32 %v20999_v14, %v17390_v4  ;;  %v5310_v13 = vadd.f32 %v5309_v1, %v5308_v55  ;;  %v5568_v47 = vadd.f32 %v5567_v39, %v5566_v49  ;;  %v5181_v15 = vsub.f32 %v21000_v52, %v17390_v4  ;;  %v21004_v55 = vld [vmem:[#allocation82_spill] sm:$0xff] }
 0x643   :  { %v5700_v38 = vsub.f32 %v21001_v22, %v17390_v4  ;;  %v5763_v56 = vmul.f32 %v5699_v54, %v5699_v54  ;;  %v5827_v29 = vsel %vm199_vm0, %v5762_v25, 0.0  ;;  %v5182_v6 = vsub.f32 %v21002_v5, %v17390_v4  ;;  %v21005_v54 = vld [vmem:[#allocation8_spill] sm:$0xff]  ;;  %v21006_v25 = vld [vmem:[#allocation15_spill] sm:$0xff] }
 0x644   :  { %v5183_v27 = vsub.f32 %v21003_v20, %v17390_v4  ;;  %v5243_v3 = vmul.f32 %v5179_v0, %v5179_v0  ;;  %v5828_v46 = vadd.f32 %v5827_v29, %v5826_v24  ;;  %v5311_v1 = vsel %vm199_vm0, %v5242_v26, 0.0  ;;  %v21007_v20 = vld [vmem:[#allocation9_spill] sm:$0xff]  ;;  %v21008_v24 = vld [vmem:[#allocation172_spill] sm:$0xff] }
 0x645   :  { %v5440_v49 = vsub.f32 %v21004_v55, %v17390_v4  ;;  %v5503_v39 = vmul.f32 %v5439_v42, %v5439_v42  ;;  %v5569_v52 = vsel %vm199_vm0, %v5502_v21, 0.0  ;;  %v5184_v22 = vsub.f32 %v21005_v54, %v17390_v4  ;;  %v21009_v42 = vld [vmem:[#allocation10_spill] sm:$0xff] }
 0x646   :  { %v5185_v14 = vsub.f32 %v21006_v25, %v17390_v4  ;;  %v5312_v5 = vadd.f32 %v5311_v1, %v5310_v13  ;;  %v5570_v57 = vadd.f32 %v5569_v52, %v5568_v47  ;;  %v5186_v0 = vsub.f32 %v21007_v20, %v17390_v4  ;;  %v21011_v47 = vld [vmem:[#allocation81_spill] sm:$0xff] }
 0x647   :  { %v5701_v26 = vsub.f32 %v21008_v24, %v17390_v4  ;;  %v5764_v29 = vmul.f32 %v5700_v38, %v5700_v38  ;;  %v5829_v55 = vsel %vm199_vm0, %v5763_v56, 0.0  ;;  %v5187_v21 = vsub.f32 %v21009_v42, %v17390_v4  ;;  %v21012_v56 = vld [vmem:[#allocation13_spill] sm:$0xff] }
 0x648   :  { %v5188_v54 = vsub.f32 %v21010_v8, %v17390_v4  ;;  %v5244_v61 = vmul.f32 %v5180_v30, %v5180_v30  ;;  %v5830_v9 = vadd.f32 %v5829_v55, %v5828_v46  ;;  %v5313_v13 = vsel %vm199_vm0, %v5243_v3, 0.0  ;;  %v21013_v46 = vld [vmem:[#allocation173_spill] sm:$0xff] }
 0x649   :  { %v5441_v52 = vsub.f32 %v21011_v47, %v17390_v4  ;;  %v5504_v1 = vmul.f32 %v5440_v49, %v5440_v49  ;;  %v5571_v20 = vsel %vm199_vm0, %v5503_v39, 0.0  ;;  %v5189_v38 = vsub.f32 %v16215_v19, %v17390_v4  ;;  %v21014_v49 = vld [vmem:[#allocation25_spill] sm:$0xff] }
 0x64a   :  { %v5190_v24 = vsub.f32 %v21012_v56, %v17390_v4  ;;  %v5314_v42 = vadd.f32 %v5313_v13, %v5312_v5  ;;  %v5572_v25 = vadd.f32 %v5571_v20, %v5570_v57  ;;  %v5191_v30 = vsub.f32 %v16271_v36, %v17390_v4  ;;  %v21015_v20 = vld [vmem:[#allocation84_spill] sm:$0xff] }
 0x64b   :  { %v5702_v3 = vsub.f32 %v21013_v46, %v17390_v4  ;;  %v5765_v55 = vmul.f32 %v5701_v26, %v5701_v26  ;;  %v5831_v47 = vsel %vm199_vm0, %v5764_v29, 0.0  ;;  %v17483_v39 = vsub.f32 %v21014_v49, %v17390_v4  ;;  %v21016_v29 = vld [vmem:[#allocation18_spill] sm:$0xff] }
 0x64c   :  { %v17487_v19 = vsub.f32 %v16327_v44, %v17390_v4  ;;  %v5245_v56 = vmul.f32 %v5181_v15, %v5181_v15  ;;  %v5832_v5 = vadd.f32 %v5831_v47, %v5830_v9  ;;  %v5315_v57 = vsel %vm199_vm0, %v5244_v61, 0.0  ;;  %v21017_v44 = vld [vmem:[#allocation176_spill] sm:$0xff] }
 0x64d   :  { %v5442_v13 = vsub.f32 %v21015_v20, %v17390_v4  ;;  %v5505_v36 = vmul.f32 %v5441_v52, %v5441_v52  ;;  %v5573_v26 = vsel %vm199_vm0, %v5504_v1, 0.0  ;;  %v17495_v46 = vsub.f32 %v21016_v29, %v17390_v4 }
 0x64e   :  { %v5246_v49 = vmul.f32 %v5182_v6, %v5182_v6  ;;  %v5316_v8 = vadd.f32 %v5315_v57, %v5314_v42  ;;  %v5574_v45 = vadd.f32 %v5573_v26, %v5572_v25  ;;  %v5247_v50 = vmul.f32 %v5183_v27, %v5183_v27 }
 0x64f   :  { %v5703_v15 = vsub.f32 %v21017_v44, %v17390_v4  ;;  %v5766_v9 = vmul.f32 %v5702_v3, %v5702_v3  ;;  %v5833_v61 = vsel %vm199_vm0, %v5765_v55, 0.0  ;;  %v5248_v47 = vmul.f32 %v5184_v22, %v5184_v22  ;;  %v21019_v3 = vld [vmem:[#allocation177_spill] sm:$0xff] }
 0x650   :  { %v5249_v2 = vmul.f32 %v5185_v14, %v5185_v14  ;;  %v5250_v20 = vmul.f32 %v5186_v0, %v5186_v0  ;;  %v5834_v52 = vadd.f32 %v5833_v61, %v5832_v5  ;;  %v5317_v1 = vsel %vm199_vm0, %v5245_v56, 0.0 }
 0x651   :  { %v5443_v29 = vsub.f32 %v21018_v53, %v17390_v4  ;;  %v5506_v18 = vmul.f32 %v5442_v13, %v5442_v13  ;;  %v5575_v6 = vsel %vm199_vm0, %v5505_v36, 0.0  ;;  %v5251_v25 = vmul.f32 %v5187_v21, %v5187_v21  ;;  %v21020_v36 = vld [vmem:[#allocation86_spill] sm:$0xff] }
 0x652   :  { %v5252_v27 = vmul.f32 %v5188_v54, %v5188_v54  ;;  %v5318_v42 = vadd.f32 %v5317_v1, %v5316_v8  ;;  %v5576_v57 = vadd.f32 %v5575_v6, %v5574_v45  ;;  %v5253_v26 = vmul.f32 %v5189_v38, %v5189_v38  ;;  %v21022_v1 = vld [vmem:[#allocation85_spill] sm:$0xff] }
 0x653   :  { %v5704_v55 = vsub.f32 %v21019_v3, %v17390_v4  ;;  %v5767_v22 = vmul.f32 %v5703_v15, %v5703_v15  ;;  %v5835_v14 = vsel %vm199_vm0, %v5766_v9, 0.0  ;;  %v5254_v0 = vmul.f32 %v5190_v24, %v5190_v24 }
 0x654   :  { %v17507_v5 = vmul.f32 %v5191_v30, %v5191_v30  ;;  %v5319_v56 = vsel %vm199_vm0, %v5246_v49, 0.0  ;;  %v5836_v61 = vadd.f32 %v5835_v14, %v5834_v52  ;;  %v5321_v13 = vsel %vm199_vm0, %v5247_v50, 0.0  ;;  %v21021_v49 = vld [vmem:[#allocation180_spill] sm:$0xff] }
 0x655   :  { %v5444_v54 = vsub.f32 %v21020_v36, %v17390_v4  ;;  %v5507_v8 = vmul.f32 %v5443_v29, %v5443_v29  ;;  %v5577_v45 = vsel %vm199_vm0, %v5506_v18, 0.0  ;;  %v5320_v21 = vadd.f32 %v5319_v56, %v5318_v42 }
 0x656   :  { %v5323_v38 = vsel %vm199_vm0, %v5248_v47, 0.0  ;;  %v17516_v15 = vsel %vm199_vm0, %v5249_v2, 0.0  ;;  %v5578_v24 = vadd.f32 %v5577_v45, %v5576_v57  ;;  %v17519_v30 = vsel %vm199_vm0, %v5250_v20, 0.0  ;;  %v21023_v57 = vld [vmem:[#allocation166_spill] sm:$0xff]  ;;  %v21026_v45 = vld [vmem:[#allocation181_spill] sm:$0xff] }
 0x657   :  { %v5705_v9 = vsub.f32 %v21021_v49, %v17390_v4  ;;  %v5768_v50 = vmul.f32 %v5704_v55, %v5704_v55  ;;  %v5837_v52 = vsel %vm199_vm0, %v5767_v22, 0.0  ;;  %v17525_v29 = vsel %vm199_vm0, %v5251_v25, 0.0  ;;  %v21027_v49 = vld [vmem:[#allocation87_spill] sm:$0xff] }
 0x658   :  { %v17528_v18 = vsel %vm199_vm0, %v5252_v27, 0.0  ;;  %v17531_v47 = vsel %vm199_vm0, %v5253_v26, 0.0  ;;  %v5838_v2 = vadd.f32 %v5837_v52, %v5836_v61  ;;  %v5445_v20 = vsub.f32 %v21022_v1, %v17390_v4  ;;  %v21024_v27 = vld [vmem:[#allocation165_spill] sm:$0xff]  ;;  %v21025_v26 = vld [vmem:[#allocation88_spill] sm:$0xff]  ;;  %v21032_v1 = vld [vmem:[#allocation170_spill] sm:$0xff] }
 0x659   :  { %v5508_v6 = vmul.f32 %v5444_v54, %v5444_v54  ;;  %v5579_v42 = vsel %vm199_vm0, %v5507_v8, 0.0  ;;  %v5958_v55 = vsub.f32 %v21023_v57, %v17390_v4  ;;  %v5322_v22 = vadd.f32 %v5321_v13, %v5320_v21  ;;  %v21028_v13 = vld [vmem:[#allocation90_spill] sm:$0xff] }
 0x65a   :  { %v17539_v25 = vsel %vm199_vm0, %v5254_v0, 0.0  ;;  %v5580_v14 = vadd.f32 %v5579_v42, %v5578_v24  ;;  %v5959_v56 = vsub.f32 %v21024_v27, %v17390_v4  ;;  %v5446_v61 = vsub.f32 %v21025_v26, %v17390_v4  ;;  %v21029_v24 = vld [vmem:[#allocation167_spill] sm:$0xff]  ;;  %v21030_v27 = vld [vmem:[#allocation89_spill] sm:$0xff] }
 0x65b   :  { %v5706_v52 = vsub.f32 %v21026_v45, %v17390_v4  ;;  %v5769_v54 = vmul.f32 %v5705_v9, %v5705_v9  ;;  %v5839_v8 = vsel %vm199_vm0, %v5768_v50, 0.0  ;;  %v5447_v57 = vsub.f32 %v21027_v49, %v17390_v4  ;;  %v21031_v50 = vld [vmem:[#allocation92_spill] sm:$0xff] }
 0x65c   :  { %v5448_v0 = vsub.f32 %v21028_v13, %v17390_v4  ;;  %v5840_v21 = vadd.f32 %v5839_v8, %v5838_v2  ;;  %v5960_v42 = vsub.f32 %v21029_v24, %v17390_v4  ;;  %v17556_v3 = vsub.f32 %v21030_v27, %v17390_v4  ;;  %v21033_v24 = vld [vmem:[#allocation184_spill] sm:$0xff] }
 0x65d   :  { %v5509_v44 = vmul.f32 %v5445_v20, %v5445_v20  ;;  %v5581_v45 = vsel %vm199_vm0, %v5508_v6, 0.0  ;;  %v6022_v9 = vmul.f32 %v5958_v55, %v5958_v55  ;;  %v17561_v26 = vsub.f32 %v21031_v50, %v17390_v4  ;;  %v21034_v20 = vld [vmem:[#allocation91_spill] sm:$0xff] }
 0x65e   :  { %v5582_v49 = vadd.f32 %v5581_v45, %v5580_v14  ;;  %v5961_v13 = vsub.f32 %v21032_v1, %v17390_v4  ;;  %v6023_v2 = vmul.f32 %v5959_v56, %v5959_v56  ;;  %v5324_v8 = vadd.f32 %v5323_v38, %v5322_v22  ;;  %v21035_v50 = vld [vmem:[#allocation171_spill] sm:$0xff]  ;;  %v21036_v45 = vld [vmem:[#allocation93_spill] sm:$0xff] }
 0x65f   :  { %v5707_v36 = vsub.f32 %v21033_v24, %v17390_v4  ;;  %v5770_v53 = vmul.f32 %v5706_v52, %v5706_v52  ;;  %v5841_v27 = vsel %vm199_vm0, %v5769_v54, 0.0  ;;  %v17570_v6 = vsub.f32 %v21034_v20, %v17390_v4  ;;  %v21037_v54 = vld [vmem:[#allocation174_spill] sm:$0xff] }
 0x660   :  { %v5842_v55 = vadd.f32 %v5841_v27, %v5840_v21  ;;  %v5962_v33 = vsub.f32 %v21035_v50, %v17390_v4  ;;  %v6024_v14 = vmul.f32 %v5960_v42, %v5960_v42  ;;  %v17576_v1 = vsub.f32 %v21036_v45, %v17390_v4  ;;  %v21038_v21 = vld [vmem:[#allocation185_spill] sm:$0xff] }
 0x661   :  { %v5510_v38 = vmul.f32 %v5446_v61, %v5446_v61  ;;  %v5583_v22 = vsel %vm199_vm0, %v5509_v44, 0.0  ;;  %v6086_v56 = vsel %vm199_vm0, %v6022_v9, 0.0  ;;  %v5963_v24 = vsub.f32 %v21037_v54, %v17390_v4  ;;  %v21039_v61 = vld [vmem:[#allocation175_spill] sm:$0xff]  ;;  %v21040_v9 = vld [vmem:[#allocation21_spill] sm:$0xff] }
 0x662   :  { %v5584_v52 = vadd.f32 %v5583_v22, %v5582_v49  ;;  %v6025_v20 = vmul.f32 %v5961_v13, %v5961_v13  ;;  %v6087_v27 = vsel %vm199_vm0, %v6023_v2, 0.0  ;;  %v5708_v50 = vsub.f32 %v21038_v21, %v17390_v4 }
 0x663   :  { %v5771_v42 = vmul.f32 %v5707_v36, %v5707_v36  ;;  %v5843_v34 = vsel %vm199_vm0, %v5770_v53, 0.0  ;;  %v6088_v45 = vadd.f32 %v6087_v27, %v6086_v56  ;;  %v5964_v44 = vsub.f32 %v21039_v61, %v17390_v4  ;;  %v21041_v36 = vld [vmem:[#allocation178_spill] sm:$0xff] }
 0x664   :  { %v5844_v12 = vadd.f32 %v5843_v34, %v5842_v55  ;;  %v6026_v35 = vmul.f32 %v5962_v33, %v5962_v33  ;;  %v6089_v49 = vsel %vm199_vm0, %v6024_v14, 0.0  ;;  %v17591_v22 = vsub.f32 %v21040_v9, %v17390_v4  ;;  %v21042_v55 = vld [vmem:[#allocation188_spill] sm:$0xff] }
 0x665   :  { %v5511_v13 = vmul.f32 %v5447_v57, %v5447_v57  ;;  %v5585_v2 = vsel %vm199_vm0, %v5510_v38, 0.0  ;;  %v6090_v54 = vadd.f32 %v6089_v49, %v6088_v45  ;;  %v5965_v53 = vsub.f32 %v21041_v36, %v17390_v4  ;;  %v21043_v57 = vld [vmem:[#allocation179_spill] sm:$0xff]  ;;  %v21044_v36 = vld [vmem:[#allocation182_spill] sm:$0xff] }
 0x666   :  { %v5586_v21 = vadd.f32 %v5585_v2, %v5584_v52  ;;  %v6027_v56 = vmul.f32 %v5963_v24, %v5963_v24  ;;  %v6091_v34 = vsel %vm199_vm0, %v6025_v20, 0.0  ;;  %v5709_v33 = vsub.f32 %v21042_v55, %v17390_v4 }
 0x667   :  { %v5772_v27 = vmul.f32 %v5708_v50, %v5708_v50  ;;  %v5845_v14 = vsel %vm199_vm0, %v5771_v42, 0.0  ;;  %v6092_v61 = vadd.f32 %v6091_v34, %v6090_v54  ;;  %v5966_v37 = vsub.f32 %v21043_v57, %v17390_v4 }
 0x668   :  { %v5846_v9 = vadd.f32 %v5845_v14, %v5844_v12  ;;  %v6028_v38 = vmul.f32 %v5964_v44, %v5964_v44  ;;  %v6093_v45 = vsel %vm199_vm0, %v6026_v35, 0.0  ;;  %v5326_v52 = vadd.f32 %v17516_v15, %v5324_v8  ;;  %v21045_v12 = vld [vmem:[#allocation189_spill] sm:$0xff]  ;;  %v21046_v15 = vld [vmem:[#allocation183_spill] sm:$0xff] }
 0x669   :  { %v5512_v49 = vmul.f32 %v5448_v0, %v5448_v0  ;;  %v5587_v24 = vsel %vm199_vm0, %v5511_v13, 0.0  ;;  %v6094_v20 = vadd.f32 %v6093_v45, %v6092_v61  ;;  %v5967_v50 = vsub.f32 %v21044_v36, %v17390_v4 }
 0x66a   :  { %v5588_v2 = vadd.f32 %v5587_v24, %v5586_v21  ;;  %v6029_v55 = vmul.f32 %v5965_v53, %v5965_v53  ;;  %v6095_v54 = vsel %vm199_vm0, %v6027_v56, 0.0  ;;  %v5710_v42 = vsub.f32 %v21045_v12, %v17390_v4 }
 0x66b   :  { %v5773_v34 = vmul.f32 %v5709_v33, %v5709_v33  ;;  %v5847_v44 = vsel %vm199_vm0, %v5772_v27, 0.0  ;;  %v6096_v35 = vadd.f32 %v6095_v54, %v6094_v20  ;;  %v5968_v0 = vsub.f32 %v21046_v15, %v17390_v4  ;;  %v21047_v33 = vld [vmem:[#allocation186_spill] sm:$0xff]  ;;  %v21048_v20 = vld [vmem:[#allocation192_spill] sm:$0xff] }
 0x66c   :  { %v5848_v14 = vadd.f32 %v5847_v44, %v5846_v9  ;;  %v6030_v8 = vmul.f32 %v5966_v37, %v5966_v37  ;;  %v6097_v21 = vsel %vm199_vm0, %v6028_v38, 0.0  ;;  %v5328_v61 = vadd.f32 %v17519_v30, %v5326_v52 }
 0x66d   :  { %v5513_v13 = vmul.f32 %v17556_v3, %v17556_v3  ;;  %v5589_v53 = vsel %vm199_vm0, %v5512_v49, 0.0  ;;  %v6098_v56 = vadd.f32 %v6097_v21, %v6096_v35  ;;  %v5969_v27 = vsub.f32 %v21047_v33, %v17390_v4  ;;  %v21049_v3 = vld [vmem:[#allocation187_spill] sm:$0xff] }
 0x66e   :  { %v5590_v45 = vadd.f32 %v5589_v53, %v5588_v2  ;;  %v6031_v24 = vmul.f32 %v5967_v50, %v5967_v50  ;;  %v6099_v9 = vsel %vm199_vm0, %v6029_v55, 0.0  ;;  %v5711_v37 = vsub.f32 %v21048_v20, %v17390_v4 }
 0x66f   :  { %v5774_v54 = vmul.f32 %v5710_v42, %v5710_v42  ;;  %v5849_v38 = vsel %vm199_vm0, %v5773_v34, 0.0  ;;  %v6100_v30 = vadd.f32 %v6099_v9, %v6098_v56  ;;  %v5970_v44 = vsub.f32 %v21049_v3, %v17390_v4  ;;  %v21050_v42 = vld [vmem:[#allocation190_spill] sm:$0xff]  ;;  %v21051_v9 = vld [vmem:[#allocation193_spill] sm:$0xff] }
 0x670   :  { %v5850_v52 = vadd.f32 %v5849_v38, %v5848_v14  ;;  %v6032_v49 = vmul.f32 %v5968_v0, %v5968_v0  ;;  %v6101_v2 = vsel %vm199_vm0, %v6030_v8, 0.0  ;;  %v5330_v35 = vadd.f32 %v17525_v29, %v5328_v61 }
 0x671   :  { %v5514_v50 = vmul.f32 %v17561_v26, %v17561_v26  ;;  %v5591_v55 = vsel %vm199_vm0, %v5513_v13, 0.0  ;;  %v6102_v21 = vadd.f32 %v6101_v2, %v6100_v30  ;;  %v5971_v34 = vsub.f32 %v21050_v42, %v17390_v4  ;;  %v21052_v26 = vld [vmem:[#allocation191_spill] sm:$0xff] }
 0x672   :  { %v5592_v53 = vadd.f32 %v5591_v55, %v5590_v45  ;;  %v6033_v56 = vmul.f32 %v5969_v27, %v5969_v27  ;;  %v6103_v14 = vsel %vm199_vm0, %v6031_v24, 0.0  ;;  %v5712_v0 = vsub.f32 %v21051_v9, %v17390_v4 }
 0x673   :  { %v5775_v38 = vmul.f32 %v5711_v37, %v5711_v37  ;;  %v5851_v8 = vsel %vm199_vm0, %v5774_v54, 0.0  ;;  %v6104_v29 = vadd.f32 %v6103_v14, %v6102_v21  ;;  %v5972_v3 = vsub.f32 %v21052_v26, %v17390_v4  ;;  %v21053_v37 = vld [vmem:[#allocation194_spill] sm:$0xff]  ;;  %v21054_v14 = vld [vmem:[#allocation196_spill] sm:$0xff] }
 0x674   :  { %v5852_v61 = vadd.f32 %v5851_v8, %v5850_v52  ;;  %v6034_v13 = vmul.f32 %v5970_v44, %v5970_v44  ;;  %v6105_v45 = vsel %vm199_vm0, %v6032_v49, 0.0  ;;  %v5332_v30 = vadd.f32 %v17528_v18, %v5330_v35 }
 0x675   :  { %v5515_v27 = vmul.f32 %v17570_v6, %v17570_v6  ;;  %v5593_v24 = vsel %vm199_vm0, %v5514_v50, 0.0  ;;  %v6106_v2 = vadd.f32 %v6105_v45, %v6104_v29  ;;  %v5973_v54 = vsub.f32 %v21053_v37, %v17390_v4  ;;  %v21055_v6 = vld [vmem:[#allocation195_spill] sm:$0xff] }
 0x676   :  { %v5594_v55 = vadd.f32 %v5593_v24, %v5592_v53  ;;  %v6035_v21 = vmul.f32 %v5971_v34, %v5971_v34  ;;  %v6107_v52 = vsel %vm199_vm0, %v6033_v56, 0.0  ;;  %v5713_v44 = vsub.f32 %v21054_v14, %v17390_v4 }
 0x677   :  { %v5776_v8 = vmul.f32 %v5712_v0, %v5712_v0  ;;  %v5853_v49 = vsel %vm199_vm0, %v5775_v38, 0.0  ;;  %v6108_v18 = vadd.f32 %v6107_v52, %v6106_v2  ;;  %v5974_v26 = vsub.f32 %v21055_v6, %v17390_v4  ;;  %v21056_v0 = vld [vmem:[#allocation197_spill] sm:$0xff] }
 0x678   :  { %v5854_v35 = vadd.f32 %v5853_v49, %v5852_v61  ;;  %v6036_v50 = vmul.f32 %v5972_v3, %v5972_v3  ;;  %v6109_v53 = vsel %vm199_vm0, %v6034_v13, 0.0  ;;  %v5334_v29 = vadd.f32 %v17531_v47, %v5332_v30  ;;  %v21057_v13 = vld [vmem:[#allocation198_spill] sm:$0xff]  ;;  %v21058_v30 = vld [vmem:[#allocation200_spill] sm:$0xff] }
 0x679   :  { %v5516_v34 = vmul.f32 %v17576_v1, %v17576_v1  ;;  %v5595_v56 = vsel %vm199_vm0, %v5515_v27, 0.0  ;;  %v6110_v45 = vadd.f32 %v6109_v53, %v6108_v18  ;;  %v5714_v38 = vsub.f32 %v21056_v0, %v17390_v4  ;;  %v21059_v53 = vld [vmem:[#allocation201_spill] sm:$0xff] }
 0x67a   :  { %v5596_v24 = vadd.f32 %v5595_v56, %v5594_v55  ;;  %v6037_v2 = vmul.f32 %v5973_v54, %v5973_v54  ;;  %v6111_v61 = vsel %vm199_vm0, %v6035_v21, 0.0  ;;  %v5777_v52 = vmul.f32 %v5713_v44, %v5713_v44 }
 0x67b   :  { %v5855_v3 = vsel %vm199_vm0, %v5776_v8, 0.0  ;;  %v5975_v49 = vsub.f32 %v21057_v13, %v17390_v4  ;;  %v6112_v47 = vadd.f32 %v6111_v61, %v6110_v45  ;;  %v5454_v1 = vsub.f32 %v21058_v30, %v17390_v4 }
 0x67c   :  { %v5856_v6 = vadd.f32 %v5855_v3, %v5854_v35  ;;  %v6038_v27 = vmul.f32 %v5974_v26, %v5974_v26  ;;  %v6113_v55 = vsel %vm199_vm0, %v6036_v50, 0.0  ;;  %v5336_v18 = vadd.f32 %v17539_v25, %v5334_v29  ;;  %v21060_v26 = vld [vmem:[#allocation199_spill] sm:$0xff] }
 0x67d   :  { %v5517_v54 = vmul.f32 %v17591_v22, %v17591_v22  ;;  %v5597_v21 = vsel %vm199_vm0, %v5516_v34, 0.0  ;;  %v6114_v44 = vadd.f32 %v6113_v55, %v6112_v47  ;;  %v5715_v56 = vsub.f32 %v21059_v53, %v17390_v4 }
 0x67e   :  { %v5598_v8 = vadd.f32 %v5597_v21, %v5596_v24  ;;  %v5778_v45 = vmul.f32 %v5714_v38, %v5714_v38  ;;  %v6115_v61 = vsel %vm199_vm0, %v6037_v2, 0.0  ;;  %v5857_v35 = vsel %vm199_vm0, %v5777_v52, 0.0  ;;  %v21061_v38 = vld [vmem:[#allocation20_spill] sm:$0xff] }
 0x67f   :  { %v5976_v50 = vsub.f32 %v21060_v26, %v17390_v4  ;;  %v6039_v3 = vmul.f32 %v5975_v49, %v5975_v49  ;;  %v6116_v25 = vadd.f32 %v6115_v61, %v6114_v44  ;;  %v5256_v22 = vmul.f32 %v17483_v39, %v17483_v39  ;;  %v21062_v49 = vld [vmem:[#allocation202_spill] sm:$0xff] }
 0x680   :  { %v5337_v29 = vsel %vm199_vm0, %v17507_v5, 0.0  ;;  %v5858_v34 = vadd.f32 %v5857_v35, %v5856_v6  ;;  %v6117_v24 = vsel %vm199_vm0, %v6038_v27, 0.0  ;;  %v5455_v47 = vsub.f32 %v21061_v38, %v17390_v4  ;;  %v21063_v5 = vld [vmem:[#allocation203_spill] sm:$0xff] }
 0x681   :  { %v5518_v2 = vmul.f32 %v5454_v1, %v5454_v1  ;;  %v5599_v52 = vsel %vm199_vm0, %v5517_v54, 0.0  ;;  %v6118_v55 = vadd.f32 %v6117_v24, %v6116_v25  ;;  %v5338_v21 = vadd.f32 %v5337_v29, %v5336_v18 }
 0x682   :  { %v5600_v26 = vadd.f32 %v5599_v52, %v5598_v8  ;;  %v5716_v44 = vsub.f32 %v21062_v49, %v17390_v4  ;;  %v5779_v61 = vmul.f32 %v5715_v56, %v5715_v56  ;;  %v5859_v39 = vsel %vm199_vm0, %v5778_v45, 0.0  ;;  %v21064_v56 = vld [vmem:[#allocation205_spill] sm:$0xff] }
 0x683   :  { %v5977_v6 = vsub.f32 %v21063_v5, %v17390_v4  ;;  %v6040_v35 = vmul.f32 %v5976_v50, %v5976_v50  ;;  %v6119_v27 = vsel %vm199_vm0, %v6039_v3, 0.0  ;;  %v5195_v1 = vsub.f32 %v16383_v40, %v17390_v4  ;;  %v21065_v3 = vld [vmem:[#allocation206_spill] sm:$0xff] }
 0x684   :  { %v5257_v54 = vmul.f32 %v17487_v19, %v17487_v19  ;;  %v5860_v18 = vadd.f32 %v5859_v39, %v5858_v34  ;;  %v6120_v8 = vadd.f32 %v6119_v27, %v6118_v55  ;;  %v5339_v25 = vsel %vm199_vm0, %v5256_v22, 0.0  ;;  %v21066_v19 = vld [vmem:[#allocation204_spill] sm:$0xff]  ;;  %v21067_v39 = vld [vmem:[#allocation34_spill] sm:$0xff] }
 0x685   :  { %v5456_v29 = vsub.f32 %v21064_v56, %v17390_v4  ;;  %v5519_v45 = vmul.f32 %v5455_v47, %v5455_v47  ;;  %v5601_v24 = vsel %vm199_vm0, %v5518_v2, 0.0  ;;  %v5340_v52 = vadd.f32 %v5339_v25, %v5338_v21 }
 0x686   :  { %v5602_v50 = vadd.f32 %v5601_v24, %v5600_v26  ;;  %v5717_v5 = vsub.f32 %v21065_v3, %v17390_v4  ;;  %v5780_v13 = vmul.f32 %v5716_v44, %v5716_v44  ;;  %v5861_v37 = vsel %vm199_vm0, %v5779_v61, 0.0  ;;  %v21068_v44 = vld [vmem:[#allocation27_spill] sm:$0xff] }
 0x687   :  { %v5978_v34 = vsub.f32 %v21066_v19, %v17390_v4  ;;  %v6041_v55 = vmul.f32 %v5977_v6, %v5977_v6  ;;  %v6121_v22 = vsel %vm199_vm0, %v6040_v35, 0.0  ;;  %v5196_v27 = vsub.f32 %v21067_v39, %v17390_v4  ;;  %v21069_v35 = vld [vmem:[#allocation207_spill] sm:$0xff] }
 0x688   :  { %v5258_v47 = vmul.f32 %v17495_v46, %v17495_v46  ;;  %v5862_v2 = vadd.f32 %v5861_v37, %v5860_v18  ;;  %v6122_v26 = vadd.f32 %v6121_v22, %v6120_v8  ;;  %v5341_v21 = vsel %vm199_vm0, %v5257_v54, 0.0  ;;  %v21070_v46 = vld [vmem:[#allocation208_spill] sm:$0xff]  ;;  %v21071_v8 = vld [vmem:[#allocation30_spill] sm:$0xff] }
 0x689   :  { %v5457_v25 = vsub.f32 %v21068_v44, %v17390_v4  ;;  %v5520_v61 = vmul.f32 %v5456_v29, %v5456_v29  ;;  %v5603_v24 = vsel %vm199_vm0, %v5519_v45, 0.0  ;;  %v5342_v19 = vadd.f32 %v5341_v21, %v5340_v52 }
 0x68a   :  { %v5604_v6 = vadd.f32 %v5603_v24, %v5602_v50  ;;  %v5718_v42 = vsub.f32 %v21069_v35, %v17390_v4  ;;  %v5781_v33 = vmul.f32 %v5717_v5, %v5717_v5  ;;  %v5863_v15 = vsel %vm199_vm0, %v5780_v13, 0.0  ;;  %v21072_v50 = vld [vmem:[#allocation23_spill] sm:$0xff] }
 0x68b   :  { %v5979_v37 = vsub.f32 %v21070_v46, %v17390_v4  ;;  %v6042_v18 = vmul.f32 %v5978_v34, %v5978_v34  ;;  %v6123_v54 = vsel %vm199_vm0, %v6041_v55, 0.0  ;;  %v5197_v22 = vsub.f32 %v21071_v8, %v17390_v4  ;;  %v21073_v34 = vld [vmem:[#allocation210_spill] sm:$0xff] }
 0x68c   :  { %v5259_v29 = vmul.f32 %v5195_v1, %v5195_v1  ;;  %v5864_v36 = vadd.f32 %v5863_v15, %v5862_v2  ;;  %v6124_v45 = vadd.f32 %v6123_v54, %v6122_v26  ;;  %v5343_v52 = vsel %vm199_vm0, %v5258_v47, 0.0  ;;  %v21074_v1 = vld [vmem:[#allocation209_spill] sm:$0xff]  ;;  %v21075_v26 = vld [vmem:[#allocation38_spill] sm:$0xff] }
 0x68d   :  { %v5458_v21 = vsub.f32 %v21072_v50, %v17390_v4  ;;  %v5521_v5 = vmul.f32 %v5457_v25, %v5457_v25  ;;  %v5605_v13 = vsel %vm199_vm0, %v5520_v61, 0.0  ;;  %v5344_v24 = vadd.f32 %v5343_v52, %v5342_v19 }
 0x68e   :  { %v5606_v57 = vadd.f32 %v5605_v13, %v5604_v6  ;;  %v5719_v46 = vsub.f32 %v21073_v34, %v17390_v4  ;;  %v5782_v55 = vmul.f32 %v5718_v42, %v5718_v42  ;;  %v5865_v35 = vsel %vm199_vm0, %v5781_v33, 0.0  ;;  %v21076_v6 = vld [vmem:[#allocation214_spill] sm:$0xff] }
 0x68f   :  { %v5980_v15 = vsub.f32 %v21074_v1, %v17390_v4  ;;  %v6043_v2 = vmul.f32 %v5979_v37, %v5979_v37  ;;  %v6125_v47 = vsel %vm199_vm0, %v6042_v18, 0.0  ;;  %v5198_v54 = vsub.f32 %v21075_v26, %v17390_v4  ;;  %v21077_v37 = vld [vmem:[#allocation211_spill] sm:$0xff] }
 0x690   :  { %v5260_v25 = vmul.f32 %v5196_v27, %v5196_v27  ;;  %v5866_v3 = vadd.f32 %v5865_v35, %v5864_v36  ;;  %v6126_v61 = vadd.f32 %v6125_v47, %v6124_v45  ;;  %v5345_v19 = vsel %vm199_vm0, %v5259_v29, 0.0  ;;  %v21078_v27 = vld [vmem:[#allocation212_spill] sm:$0xff] }
 0x691   :  { %v5459_v52 = vsub.f32 %v21076_v6, %v17390_v4  ;;  %v5522_v42 = vmul.f32 %v5458_v21, %v5458_v21  ;;  %v5607_v33 = vsel %vm199_vm0, %v5521_v5, 0.0  ;;  %v5346_v13 = vadd.f32 %v5345_v19, %v5344_v24  ;;  %v21079_v45 = vld [vmem:[#allocation32_spill] sm:$0xff]  ;;  %v21080_v24 = vld [vmem:[#allocation215_spill] sm:$0xff] }
 0x692   :  { %v5608_v34 = vadd.f32 %v5607_v33, %v5606_v57  ;;  %v5720_v1 = vsub.f32 %v21077_v37, %v17390_v4  ;;  %v5783_v18 = vmul.f32 %v5719_v46, %v5719_v46  ;;  %v5867_v49 = vsel %vm199_vm0, %v5782_v55, 0.0 }
 0x693   :  { %v5981_v36 = vsub.f32 %v21078_v27, %v17390_v4  ;;  %v6044_v35 = vmul.f32 %v5980_v15, %v5980_v15  ;;  %v6127_v29 = vsel %vm199_vm0, %v6043_v2, 0.0  ;;  %v5199_v47 = vsub.f32 %v21079_v45, %v17390_v4  ;;  %v21081_v15 = vld [vmem:[#allocation216_spill] sm:$0xff] }
 0x694   :  { %v5261_v21 = vmul.f32 %v5197_v22, %v5197_v22  ;;  %v5868_v53 = vadd.f32 %v5867_v49, %v5866_v3  ;;  %v6128_v5 = vadd.f32 %v6127_v29, %v6126_v61  ;;  %v5347_v57 = vsel %vm199_vm0, %v5260_v25, 0.0  ;;  %v21082_v22 = vld [vmem:[#allocation213_spill] sm:$0xff]  ;;  %v21083_v61 = vld [vmem:[#allocation42_spill] sm:$0xff] }
 0x695   :  { %v5460_v19 = vsub.f32 %v21080_v24, %v17390_v4  ;;  %v5523_v46 = vmul.f32 %v5459_v52, %v5459_v52  ;;  %v5609_v55 = vsel %vm199_vm0, %v5522_v42, 0.0  ;;  %v5348_v33 = vadd.f32 %v5347_v57, %v5346_v13  ;;  %v21084_v13 = vld [vmem:[#allocation220_spill] sm:$0xff] }
 0x696   :  { %v5610_v37 = vadd.f32 %v5609_v55, %v5608_v34  ;;  %v5721_v27 = vsub.f32 %v21081_v15, %v17390_v4  ;;  %v5784_v2 = vmul.f32 %v5720_v1, %v5720_v1  ;;  %v5869_v0 = vsel %vm199_vm0, %v5783_v18, 0.0 }
 0x697   :  { %v5982_v49 = vsub.f32 %v21082_v22, %v17390_v4  ;;  %v6045_v3 = vmul.f32 %v5981_v36, %v5981_v36  ;;  %v6129_v25 = vsel %vm199_vm0, %v6044_v35, 0.0  ;;  %v5200_v29 = vsub.f32 %v21083_v61, %v17390_v4  ;;  %v21085_v36 = vld [vmem:[#allocation217_spill] sm:$0xff] }
 0x698   :  { %v5262_v52 = vmul.f32 %v5198_v54, %v5198_v54  ;;  %v5870_v14 = vadd.f32 %v5869_v0, %v5868_v53  ;;  %v6130_v42 = vadd.f32 %v6129_v25, %v6128_v5  ;;  %v5349_v34 = vsel %vm199_vm0, %v5261_v21, 0.0  ;;  %v21086_v54 = vld [vmem:[#allocation218_spill] sm:$0xff] }
 0x699   :  { %v5461_v57 = vsub.f32 %v21084_v13, %v17390_v4  ;;  %v5524_v1 = vmul.f32 %v5460_v19, %v5460_v19  ;;  %v5611_v18 = vsel %vm199_vm0, %v5523_v46, 0.0  ;;  %v5350_v55 = vadd.f32 %v5349_v34, %v5348_v33  ;;  %v21087_v33 = vld [vmem:[#allocation95_spill] sm:$0xff] }
 0x69a   :  { %v5612_v15 = vadd.f32 %v5611_v18, %v5610_v37  ;;  %v5722_v22 = vsub.f32 %v21085_v36, %v17390_v4  ;;  %v5785_v35 = vmul.f32 %v5721_v27, %v5721_v27  ;;  %v5871_v9 = vsel %vm199_vm0, %v5784_v2, 0.0 }
 0x69b   :  { %v5983_v0 = vsub.f32 %v21086_v54, %v17390_v4  ;;  %v6046_v53 = vmul.f32 %v5982_v49, %v5982_v49  ;;  %v6131_v21 = vsel %vm199_vm0, %v6045_v3, 0.0  ;;  %v5201_v5 = vsub.f32 %v16549_v41, %v17390_v4  ;;  %v21088_v49 = vld [vmem:[#allocation24_spill] sm:$0xff] }
 0x69c   :  { %v5263_v19 = vmul.f32 %v5199_v47, %v5199_v47  ;;  %v5872_v25 = vadd.f32 %v5871_v9, %v5870_v14  ;;  %v6132_v46 = vadd.f32 %v6131_v21, %v6130_v42  ;;  %v5351_v37 = vsel %vm199_vm0, %v5262_v52, 0.0  ;;  %v21089_v47 = vld [vmem:[#allocation219_spill] sm:$0xff] }
 0x69d   :  { %v5462_v34 = vsub.f32 %v21087_v33, %v17390_v4  ;;  %v5525_v27 = vmul.f32 %v5461_v57, %v5461_v57  ;;  %v5613_v2 = vsel %vm199_vm0, %v5524_v1, 0.0  ;;  %v5352_v18 = vadd.f32 %v5351_v37, %v5350_v55  ;;  %v21090_v55 = vld [vmem:[#allocation94_spill] sm:$0xff] }
 0x69e   :  { %v5614_v36 = vadd.f32 %v5613_v2, %v5612_v15  ;;  %v5723_v54 = vsub.f32 %v21088_v49, %v17390_v4  ;;  %v5786_v3 = vmul.f32 %v5722_v22, %v5722_v22  ;;  %v5873_v20 = vsel %vm199_vm0, %v5785_v35, 0.0 }
 0x69f   :  { %v5984_v9 = vsub.f32 %v21089_v47, %v17390_v4  ;;  %v6047_v14 = vmul.f32 %v5983_v0, %v5983_v0  ;;  %v6133_v52 = vsel %vm199_vm0, %v6046_v53, 0.0  ;;  %v5202_v42 = vsub.f32 %v16563_v11, %v17390_v4  ;;  %v21091_v0 = vld [vmem:[#allocation17_spill] sm:$0xff] }
 0x6a0   :  { %v5264_v57 = vmul.f32 %v5200_v29, %v5200_v29  ;;  %v5874_v21 = vadd.f32 %v5873_v20, %v5872_v25  ;;  %v6134_v1 = vadd.f32 %v6133_v52, %v6132_v46  ;;  %v5353_v15 = vsel %vm199_vm0, %v5263_v19, 0.0  ;;  %v21092_v29 = vld [vmem:[#allocation221_spill] sm:$0xff] }
 0x6a1   :  { %v5463_v37 = vsub.f32 %v21090_v55, %v17390_v4  ;;  %v5526_v22 = vmul.f32 %v5462_v34, %v5462_v34  ;;  %v5615_v35 = vsel %vm199_vm0, %v5525_v27, 0.0  ;;  %v5354_v2 = vadd.f32 %v5353_v15, %v5352_v18  ;;  %v21093_v18 = vld [vmem:[#allocation36_spill] sm:$0xff] }
 0x6a2   :  { %v5616_v49 = vadd.f32 %v5615_v35, %v5614_v36  ;;  %v5724_v47 = vsub.f32 %v21091_v0, %v17390_v4  ;;  %v5787_v53 = vmul.f32 %v5723_v54, %v5723_v54  ;;  %v5875_v12 = vsel %vm199_vm0, %v5786_v3, 0.0 }
 0x6a3   :  { %v5985_v20 = vsub.f32 %v21092_v29, %v17390_v4  ;;  %v6048_v25 = vmul.f32 %v5984_v9, %v5984_v9  ;;  %v6135_v19 = vsel %vm199_vm0, %v6047_v14, 0.0  ;;  %v5203_v46 = vsub.f32 %v16597_v51, %v17390_v4  ;;  %v21094_v9 = vld [vmem:[#allocation97_spill] sm:$0xff] }
 0x6a4   :  { %v5265_v34 = vmul.f32 %v5201_v5, %v5201_v5  ;;  %v5876_v52 = vadd.f32 %v5875_v12, %v5874_v21  ;;  %v6136_v27 = vadd.f32 %v6135_v19, %v6134_v1  ;;  %v5355_v36 = vsel %vm199_vm0, %v5264_v57, 0.0  ;;  %v21095_v5 = vld [vmem:[#allocation222_spill] sm:$0xff] }
 0x6a5   :  { %v5464_v15 = vsub.f32 %v21093_v18, %v17390_v4  ;;  %v5527_v54 = vmul.f32 %v5463_v37, %v5463_v37  ;;  %v5617_v3 = vsel %vm199_vm0, %v5526_v22, 0.0  ;;  %v5356_v35 = vadd.f32 %v5355_v36, %v5354_v2  ;;  %v21096_v2 = vld [vmem:[#allocation96_spill] sm:$0xff] }
 0x6a6   :  { %v5618_v0 = vadd.f32 %v5617_v3, %v5616_v49  ;;  %v5725_v29 = vsub.f32 %v21094_v9, %v17390_v4  ;;  %v5788_v14 = vmul.f32 %v5724_v47, %v5724_v47  ;;  %v5877_v55 = vsel %vm199_vm0, %v5787_v53, 0.0 }
 0x6a7   :  { %v5986_v12 = vsub.f32 %v21095_v5, %v17390_v4  ;;  %v6049_v21 = vmul.f32 %v5985_v20, %v5985_v20  ;;  %v6137_v57 = vsel %vm199_vm0, %v6048_v25, 0.0  ;;  %v5204_v1 = vsub.f32 %v16611_v43, %v17390_v4  ;;  %v21097_v20 = vld [vmem:[#allocation19_spill] sm:$0xff] }
 0x6a8   :  { %v5266_v37 = vmul.f32 %v5202_v42, %v5202_v42  ;;  %v5878_v19 = vadd.f32 %v5877_v55, %v5876_v52  ;;  %v6138_v22 = vadd.f32 %v6137_v57, %v6136_v27  ;;  %v5357_v49 = vsel %vm199_vm0, %v5265_v34, 0.0  ;;  %v21098_v42 = vld [vmem:[#allocation46_spill] sm:$0xff] }
 0x6a9   :  { %v5465_v36 = vsub.f32 %v21096_v2, %v17390_v4  ;;  %v5528_v47 = vmul.f32 %v5464_v15, %v5464_v15  ;;  %v5619_v53 = vsel %vm199_vm0, %v5527_v54, 0.0  ;;  %v5358_v3 = vadd.f32 %v5357_v49, %v5356_v35  ;;  %v21099_v35 = vld [vmem:[#allocation40_spill] sm:$0xff] }
 0x6aa   :  { %v5620_v9 = vadd.f32 %v5619_v53, %v5618_v0  ;;  %v5726_v5 = vsub.f32 %v21097_v20, %v17390_v4  ;;  %v5789_v25 = vmul.f32 %v5725_v29, %v5725_v29  ;;  %v5879_v18 = vsel %vm199_vm0, %v5788_v14, 0.0 }
 0x6ab   :  { %v5987_v55 = vsub.f32 %v21098_v42, %v17390_v4  ;;  %v6050_v52 = vmul.f32 %v5986_v12, %v5986_v12  ;;  %v6139_v34 = vsel %vm199_vm0, %v6049_v21, 0.0  ;;  %v5205_v27 = vsub.f32 %v16645_v63, %v17390_v4  ;;  %v21100_v12 = vld [vmem:[#allocation99_spill] sm:$0xff] }
 0x6ac   :  { %v5267_v15 = vmul.f32 %v5203_v46, %v5203_v46  ;;  %v5880_v57 = vadd.f32 %v5879_v18, %v5878_v19  ;;  %v6140_v54 = vadd.f32 %v6139_v34, %v6138_v22  ;;  %v5359_v0 = vsel %vm199_vm0, %v5266_v37, 0.0  ;;  %v21101_v46 = vld [vmem:[#allocation129_spill] sm:$0xff] }
 0x6ad   :  { %v5466_v49 = vsub.f32 %v21099_v35, %v17390_v4  ;;  %v5529_v29 = vmul.f32 %v5465_v36, %v5465_v36  ;;  %v5621_v14 = vsel %vm199_vm0, %v5528_v47, 0.0  ;;  %v5360_v53 = vadd.f32 %v5359_v0, %v5358_v3  ;;  %v21102_v3 = vld [vmem:[#allocation98_spill] sm:$0xff] }
 0x6ae   :  { %v5622_v20 = vadd.f32 %v5621_v14, %v5620_v9  ;;  %v5727_v42 = vsub.f32 %v21100_v12, %v17390_v4  ;;  %v5790_v21 = vmul.f32 %v5726_v5, %v5726_v5  ;;  %v5881_v2 = vsel %vm199_vm0, %v5789_v25, 0.0 }
 0x6af   :  { %v5988_v18 = vsub.f32 %v21101_v46, %v17390_v4  ;;  %v6051_v19 = vmul.f32 %v5987_v55, %v5987_v55  ;;  %v6141_v37 = vsel %vm199_vm0, %v6050_v52, 0.0  ;;  %v5206_v22 = vsub.f32 %v16659_v16, %v17390_v4  ;;  %v21103_v55 = vld [vmem:[#allocation128_spill] sm:$0xff] }
 0x6b0   :  { %v5268_v36 = vmul.f32 %v5204_v1, %v5204_v1  ;;  %v5882_v34 = vadd.f32 %v5881_v2, %v5880_v57  ;;  %v6142_v47 = vadd.f32 %v6141_v37, %v6140_v54  ;;  %v5361_v9 = vsel %vm199_vm0, %v5267_v15, 0.0  ;;  %v21104_v1 = vld [vmem:[#allocation48_spill] sm:$0xff] }
 0x6b1   :  { %v5467_v0 = vsub.f32 %v21102_v3, %v17390_v4  ;;  %v5530_v5 = vmul.f32 %v5466_v49, %v5466_v49  ;;  %v5623_v25 = vsel %vm199_vm0, %v5529_v29, 0.0  ;;  %v5362_v14 = vadd.f32 %v5361_v9, %v5360_v53  ;;  %v21105_v53 = vld [vmem:[#allocation44_spill] sm:$0xff] }
 0x6b2   :  { %v5624_v12 = vadd.f32 %v5623_v25, %v5622_v20  ;;  %v5728_v46 = vsub.f32 %v21103_v55, %v17390_v4  ;;  %v5791_v52 = vmul.f32 %v5727_v42, %v5727_v42  ;;  %v5883_v35 = vsel %vm199_vm0, %v5790_v21, 0.0 }
 0x6b3   :  { %v5989_v2 = vsub.f32 %v21104_v1, %v17390_v4  ;;  %v6052_v57 = vmul.f32 %v5988_v18, %v5988_v18  ;;  %v6143_v15 = vsel %vm199_vm0, %v6051_v19, 0.0  ;;  %v5207_v54 = vsub.f32 %v16693_v62, %v17390_v4  ;;  %v21106_v18 = vld [vmem:[#allocation101_spill] sm:$0xff] }
 0x6b4   :  { %v5269_v49 = vmul.f32 %v5205_v27, %v5205_v27  ;;  %v5884_v37 = vadd.f32 %v5883_v35, %v5882_v34  ;;  %v6144_v29 = vadd.f32 %v6143_v15, %v6142_v47  ;;  %v5363_v20 = vsel %vm199_vm0, %v5268_v36, 0.0  ;;  %v21107_v27 = vld [vmem:[#allocation131_spill] sm:$0xff] }
 0x6b5   :  { %v5468_v9 = vsub.f32 %v21105_v53, %v17390_v4  ;;  %v5531_v42 = vmul.f32 %v5467_v0, %v5467_v0  ;;  %v5625_v21 = vsel %vm199_vm0, %v5530_v5, 0.0  ;;  %v5364_v25 = vadd.f32 %v5363_v20, %v5362_v14  ;;  %v21108_v14 = vld [vmem:[#allocation100_spill] sm:$0xff] }
 0x6b6   :  { %v5626_v55 = vadd.f32 %v5625_v21, %v5624_v12  ;;  %v5729_v1 = vsub.f32 %v21106_v18, %v17390_v4  ;;  %v5792_v19 = vmul.f32 %v5728_v46, %v5728_v46  ;;  %v5885_v3 = vsel %vm199_vm0, %v5791_v52, 0.0 }
 0x6b7   :  { %v5990_v35 = vsub.f32 %v21107_v27, %v17390_v4  ;;  %v6053_v34 = vmul.f32 %v5989_v2, %v5989_v2  ;;  %v6145_v36 = vsel %vm199_vm0, %v6052_v57, 0.0  ;;  %v5208_v47 = vsub.f32 %v16707_v32, %v17390_v4  ;;  %v21109_v2 = vld [vmem:[#allocation130_spill] sm:$0xff] }
 0x6b8   :  { %v5270_v0 = vmul.f32 %v5206_v22, %v5206_v22  ;;  %v5886_v15 = vadd.f32 %v5885_v3, %v5884_v37  ;;  %v6146_v5 = vadd.f32 %v6145_v36, %v6144_v29  ;;  %v5365_v12 = vsel %vm199_vm0, %v5269_v49, 0.0  ;;  %v21110_v22 = vld [vmem:[#allocation50_spill] sm:$0xff] }
 0x6b9   :  { %v5469_v20 = vsub.f32 %v21108_v14, %v17390_v4  ;;  %v5532_v46 = vmul.f32 %v5468_v9, %v5468_v9  ;;  %v5627_v52 = vsel %vm199_vm0, %v5531_v42, 0.0  ;;  %v5366_v21 = vadd.f32 %v5365_v12, %v5364_v25  ;;  %v21111_v25 = vld [vmem:[#allocation49_spill] sm:$0xff] }
 0x6ba   :  { %v5628_v18 = vadd.f32 %v5627_v52, %v5626_v55  ;;  %v5730_v27 = vsub.f32 %v21109_v2, %v17390_v4  ;;  %v5793_v57 = vmul.f32 %v5729_v1, %v5729_v1  ;;  %v5887_v53 = vsel %vm199_vm0, %v5792_v19, 0.0 }
 0x6bb   :  { %v5991_v3 = vsub.f32 %v21110_v22, %v17390_v4  ;;  %v6054_v37 = vmul.f32 %v5990_v35, %v5990_v35  ;;  %v6147_v49 = vsel %vm199_vm0, %v6053_v34, 0.0  ;;  %v5209_v29 = vsub.f32 %v16741_v17, %v17390_v4  ;;  %v21112_v35 = vld [vmem:[#allocation103_spill] sm:$0xff] }
 0x6bc   :  { %v5271_v9 = vmul.f32 %v5207_v54, %v5207_v54  ;;  %v5888_v36 = vadd.f32 %v5887_v53, %v5886_v15  ;;  %v6148_v42 = vadd.f32 %v6147_v49, %v6146_v5  ;;  %v5367_v55 = vsel %vm199_vm0, %v5270_v0, 0.0  ;;  %v21113_v54 = vld [vmem:[#allocation133_spill] sm:$0xff] }
 0x6bd   :  { %v5470_v12 = vsub.f32 %v21111_v25, %v17390_v4  ;;  %v5533_v1 = vmul.f32 %v5469_v20, %v5469_v20  ;;  %v5629_v19 = vsel %vm199_vm0, %v5532_v46, 0.0  ;;  %v5368_v52 = vadd.f32 %v5367_v55, %v5366_v21  ;;  %v21114_v21 = vld [vmem:[#allocation102_spill] sm:$0xff] }
 0x6be   :  { %v5630_v2 = vadd.f32 %v5629_v19, %v5628_v18  ;;  %v5731_v22 = vsub.f32 %v21112_v35, %v17390_v4  ;;  %v5794_v34 = vmul.f32 %v5730_v27, %v5730_v27  ;;  %v5889_v14 = vsel %vm199_vm0, %v5793_v57, 0.0 }
 0x6bf   :  { %v5992_v53 = vsub.f32 %v21113_v54, %v17390_v4  ;;  %v6055_v15 = vmul.f32 %v5991_v3, %v5991_v3  ;;  %v6149_v0 = vsel %vm199_vm0, %v6054_v37, 0.0  ;;  %v5210_v5 = vsub.f32 %v16755_v23, %v17390_v4  ;;  %v21115_v3 = vld [vmem:[#allocation132_spill] sm:$0xff] }
 0x6c0   :  { %v5272_v20 = vmul.f32 %v5208_v47, %v5208_v47  ;;  %v5890_v49 = vadd.f32 %v5889_v14, %v5888_v36  ;;  %v6150_v46 = vadd.f32 %v6149_v0, %v6148_v42  ;;  %v5369_v18 = vsel %vm199_vm0, %v5271_v9, 0.0  ;;  %v21116_v47 = vld [vmem:[#allocation52_spill] sm:$0xff] }
 0x6c1   :  { %v5471_v55 = vsub.f32 %v21114_v21, %v17390_v4  ;;  %v5534_v27 = vmul.f32 %v5470_v12, %v5470_v12  ;;  %v5631_v57 = vsel %vm199_vm0, %v5533_v1, 0.0  ;;  %v5370_v19 = vadd.f32 %v5369_v18, %v5368_v52  ;;  %v21117_v52 = vld [vmem:[#allocation51_spill] sm:$0xff] }
 0x6c2   :  { %v5632_v35 = vadd.f32 %v5631_v57, %v5630_v2  ;;  %v5732_v54 = vsub.f32 %v21115_v3, %v17390_v4  ;;  %v5795_v37 = vmul.f32 %v5731_v22, %v5731_v22  ;;  %v5891_v25 = vsel %vm199_vm0, %v5794_v34, 0.0 }
 0x6c3   :  { %v5993_v14 = vsub.f32 %v21116_v47, %v17390_v4  ;;  %v6056_v36 = vmul.f32 %v5992_v53, %v5992_v53  ;;  %v6151_v9 = vsel %vm199_vm0, %v6055_v15, 0.0  ;;  %v5211_v42 = vsub.f32 %v16794_v28, %v17390_v4  ;;  %v21118_v53 = vld [vmem:[#allocation105_spill] sm:$0xff] }
 0x6c4   :  { %v5273_v12 = vmul.f32 %v5209_v29, %v5209_v29  ;;  %v5892_v0 = vadd.f32 %v5891_v25, %v5890_v49  ;;  %v6152_v1 = vadd.f32 %v6151_v9, %v6150_v46  ;;  %v5371_v2 = vsel %vm199_vm0, %v5272_v20, 0.0  ;;  %v21119_v29 = vld [vmem:[#allocation135_spill] sm:$0xff] }
 0x6c5   :  { %v5472_v18 = vsub.f32 %v21117_v52, %v17390_v4  ;;  %v5535_v22 = vmul.f32 %v5471_v55, %v5471_v55  ;;  %v5633_v34 = vsel %vm199_vm0, %v5534_v27, 0.0  ;;  %v5372_v57 = vadd.f32 %v5371_v2, %v5370_v19  ;;  %v21120_v19 = vld [vmem:[#allocation104_spill] sm:$0xff] }
 0x6c6   :  { %v5634_v3 = vadd.f32 %v5633_v34, %v5632_v35  ;;  %v5733_v47 = vsub.f32 %v21118_v53, %v17390_v4  ;;  %v5796_v15 = vmul.f32 %v5732_v54, %v5732_v54  ;;  %v5893_v21 = vsel %vm199_vm0, %v5795_v37, 0.0 }
 0x6c7   :  { %v5994_v25 = vsub.f32 %v21119_v29, %v17390_v4  ;;  %v6057_v49 = vmul.f32 %v5993_v14, %v5993_v14  ;;  %v6153_v20 = vsel %vm199_vm0, %v6056_v36, 0.0  ;;  %v5212_v46 = vsub.f32 %v16808_v60, %v17390_v4  ;;  %v21121_v14 = vld [vmem:[#allocation134_spill] sm:$0xff] }
 0x6c8   :  { %v5274_v55 = vmul.f32 %v5210_v5, %v5210_v5  ;;  %v5894_v9 = vadd.f32 %v5893_v21, %v5892_v0  ;;  %v6154_v27 = vadd.f32 %v6153_v20, %v6152_v1  ;;  %v5373_v35 = vsel %vm199_vm0, %v5273_v12, 0.0  ;;  %v21122_v5 = vld [vmem:[#allocation54_spill] sm:$0xff] }
 0x6c9   :  { %v5473_v2 = vsub.f32 %v21120_v19, %v17390_v4  ;;  %v5536_v54 = vmul.f32 %v5472_v18, %v5472_v18  ;;  %v5635_v37 = vsel %vm199_vm0, %v5535_v22, 0.0  ;;  %v5374_v34 = vadd.f32 %v5373_v35, %v5372_v57  ;;  %v21123_v57 = vld [vmem:[#allocation53_spill] sm:$0xff] }
 0x6ca   :  { %v5636_v53 = vadd.f32 %v5635_v37, %v5634_v3  ;;  %v5734_v29 = vsub.f32 %v21121_v14, %v17390_v4  ;;  %v5797_v36 = vmul.f32 %v5733_v47, %v5733_v47  ;;  %v5895_v52 = vsel %vm199_vm0, %v5796_v15, 0.0 }
 0x6cb   :  { %v5995_v21 = vsub.f32 %v21122_v5, %v17390_v4  ;;  %v6058_v0 = vmul.f32 %v5994_v25, %v5994_v25  ;;  %v6155_v12 = vsel %vm199_vm0, %v6057_v49, 0.0  ;;  %v5213_v1 = vsub.f32 %v16842_v10, %v17390_v4  ;;  %v21124_v25 = vld [vmem:[#allocation107_spill] sm:$0xff] }
 0x6cc   :  { %v5275_v18 = vmul.f32 %v5211_v42, %v5211_v42  ;;  %v5896_v20 = vadd.f32 %v5895_v52, %v5894_v9  ;;  %v6156_v22 = vadd.f32 %v6155_v12, %v6154_v27  ;;  %v5375_v3 = vsel %vm199_vm0, %v5274_v55, 0.0  ;;  %v21125_v42 = vld [vmem:[#allocation137_spill] sm:$0xff] }
 0x6cd   :  { %v5474_v35 = vsub.f32 %v21123_v57, %v17390_v4  ;;  %v5537_v47 = vmul.f32 %v5473_v2, %v5473_v2  ;;  %v5637_v15 = vsel %vm199_vm0, %v5536_v54, 0.0  ;;  %v5376_v37 = vadd.f32 %v5375_v3, %v5374_v34  ;;  %v21126_v34 = vld [vmem:[#allocation106_spill] sm:$0xff] }
 0x6ce   :  { %v5638_v14 = vadd.f32 %v5637_v15, %v5636_v53  ;;  %v5735_v5 = vsub.f32 %v21124_v25, %v17390_v4  ;;  %v5798_v49 = vmul.f32 %v5734_v29, %v5734_v29  ;;  %v5897_v19 = vsel %vm199_vm0, %v5797_v36, 0.0 }
 0x6cf   :  { %v5996_v52 = vsub.f32 %v21125_v42, %v17390_v4  ;;  %v6059_v9 = vmul.f32 %v5995_v21, %v5995_v21  ;;  %v6157_v55 = vsel %vm199_vm0, %v6058_v0, 0.0  ;;  %v5214_v27 = vsub.f32 %v16856_v59, %v17390_v4  ;;  %v21127_v21 = vld [vmem:[#allocation136_spill] sm:$0xff] }
 0x6d0   :  { %v5276_v2 = vmul.f32 %v5212_v46, %v5212_v46  ;;  %v5898_v12 = vadd.f32 %v5897_v19, %v5896_v20  ;;  %v6158_v54 = vadd.f32 %v6157_v55, %v6156_v22  ;;  %v5377_v53 = vsel %vm199_vm0, %v5275_v18, 0.0  ;;  %v21128_v46 = vld [vmem:[#allocation55_spill] sm:$0xff] }
 0x6d1   :  { %v5475_v3 = vsub.f32 %v21126_v34, %v17390_v4  ;;  %v5538_v29 = vmul.f32 %v5474_v35, %v5474_v35  ;;  %v5639_v36 = vsel %vm199_vm0, %v5537_v47, 0.0  ;;  %v5378_v15 = vadd.f32 %v5377_v53, %v5376_v37  ;;  %v21129_v37 = vld [vmem:[#allocation28_spill] sm:$0xff] }
 0x6d2   :  { %v5640_v25 = vadd.f32 %v5639_v36, %v5638_v14  ;;  %v5736_v42 = vsub.f32 %v21127_v21, %v17390_v4  ;;  %v5799_v0 = vmul.f32 %v5735_v5, %v5735_v5  ;;  %v5899_v57 = vsel %vm199_vm0, %v5798_v49, 0.0 }
 0x6d3   :  { %v5997_v19 = vsub.f32 %v21128_v46, %v17390_v4  ;;  %v6060_v20 = vmul.f32 %v5996_v52, %v5996_v52  ;;  %v6159_v18 = vsel %vm199_vm0, %v6059_v9, 0.0  ;;  %v5215_v22 = vsub.f32 %v16890_v48, %v17390_v4  ;;  %v21130_v52 = vld [vmem:[#allocation109_spill] sm:$0xff] }
 0x6d4   :  { %v5277_v35 = vmul.f32 %v5213_v1, %v5213_v1  ;;  %v5900_v55 = vadd.f32 %v5899_v57, %v5898_v12  ;;  %v6160_v47 = vadd.f32 %v6159_v18, %v6158_v54  ;;  %v5379_v14 = vsel %vm199_vm0, %v5276_v2, 0.0  ;;  %v21131_v1 = vld [vmem:[#allocation139_spill] sm:$0xff] }
 0x6d5   :  { %v5476_v53 = vsub.f32 %v21129_v37, %v17390_v4  ;;  %v5539_v5 = vmul.f32 %v5475_v3, %v5475_v3  ;;  %v5641_v49 = vsel %vm199_vm0, %v5538_v29, 0.0  ;;  %v5380_v36 = vadd.f32 %v5379_v14, %v5378_v15  ;;  %v21132_v15 = vld [vmem:[#allocation108_spill] sm:$0xff] }
 0x6d6   :  { %v5642_v21 = vadd.f32 %v5641_v49, %v5640_v25  ;;  %v5737_v46 = vsub.f32 %v21130_v52, %v17390_v4  ;;  %v5800_v9 = vmul.f32 %v5736_v42, %v5736_v42  ;;  %v5901_v34 = vsel %vm199_vm0, %v5799_v0, 0.0 }
 0x6d7   :  { %v5998_v57 = vsub.f32 %v21131_v1, %v17390_v4  ;;  %v6061_v12 = vmul.f32 %v5997_v19, %v5997_v19  ;;  %v6161_v2 = vsel %vm199_vm0, %v6060_v20, 0.0  ;;  %v5216_v54 = vsub.f32 %v16904_v31, %v17390_v4  ;;  %v21133_v19 = vld [vmem:[#allocation138_spill] sm:$0xff] }
 0x6d8   :  { %v5278_v3 = vmul.f32 %v5214_v27, %v5214_v27  ;;  %v5902_v18 = vadd.f32 %v5901_v34, %v5900_v55  ;;  %v6162_v29 = vadd.f32 %v6161_v2, %v6160_v47  ;;  %v5381_v25 = vsel %vm199_vm0, %v5277_v35, 0.0  ;;  %v21134_v27 = vld [vmem:[#allocation57_spill] sm:$0xff] }
 0x6d9   :  { %v5477_v14 = vsub.f32 %v21132_v15, %v17390_v4  ;;  %v5540_v42 = vmul.f32 %v5476_v53, %v5476_v53  ;;  %v5643_v0 = vsel %vm199_vm0, %v5539_v5, 0.0  ;;  %v5382_v49 = vadd.f32 %v5381_v25, %v5380_v36  ;;  %v21135_v36 = vld [vmem:[#allocation56_spill] sm:$0xff] }
 0x6da   :  { %v5644_v52 = vadd.f32 %v5643_v0, %v5642_v21  ;;  %v5738_v1 = vsub.f32 %v21133_v19, %v17390_v4  ;;  %v5801_v20 = vmul.f32 %v5737_v46, %v5737_v46  ;;  %v5903_v37 = vsel %vm199_vm0, %v5800_v9, 0.0 }
 0x6db   :  { %v5999_v34 = vsub.f32 %v21134_v27, %v17390_v4  ;;  %v6062_v55 = vmul.f32 %v5998_v57, %v5998_v57  ;;  %v6163_v35 = vsel %vm199_vm0, %v6061_v12, 0.0  ;;  %v5217_v47 = vsub.f32 %v16938_v7, %v17390_v4  ;;  %v21136_v57 = vld [vmem:[#allocation111_spill] sm:$0xff] }
 0x6dc   :  { %v5279_v53 = vmul.f32 %v5215_v22, %v5215_v22  ;;  %v5904_v2 = vadd.f32 %v5903_v37, %v5902_v18  ;;  %v6164_v5 = vadd.f32 %v6163_v35, %v6162_v29  ;;  %v5383_v21 = vsel %vm199_vm0, %v5278_v3, 0.0  ;;  %v21137_v22 = vld [vmem:[#allocation141_spill] sm:$0xff] }
 0x6dd   :  { %v5478_v25 = vsub.f32 %v21135_v36, %v17390_v4  ;;  %v5541_v46 = vmul.f32 %v5477_v14, %v5477_v14  ;;  %v5645_v9 = vsel %vm199_vm0, %v5540_v42, 0.0  ;;  %v5384_v0 = vadd.f32 %v5383_v21, %v5382_v49  ;;  %v21138_v49 = vld [vmem:[#allocation110_spill] sm:$0xff] }
 0x6de   :  { %v5646_v19 = vadd.f32 %v5645_v9, %v5644_v52  ;;  %v5739_v27 = vsub.f32 %v21136_v57, %v17390_v4  ;;  %v5802_v12 = vmul.f32 %v5738_v1, %v5738_v1  ;;  %v5905_v15 = vsel %vm199_vm0, %v5801_v20, 0.0 }
 0x6df   :  { %v6000_v37 = vsub.f32 %v21137_v22, %v17390_v4  ;;  %v6063_v18 = vmul.f32 %v5999_v34, %v5999_v34  ;;  %v6165_v3 = vsel %vm199_vm0, %v6062_v55, 0.0  ;;  %v5218_v29 = vsub.f32 %v16952_v58, %v17390_v4  ;;  %v21139_v34 = vld [vmem:[#allocation140_spill] sm:$0xff] }
 0x6e0   :  { %v5280_v14 = vmul.f32 %v5216_v54, %v5216_v54  ;;  %v5906_v35 = vadd.f32 %v5905_v15, %v5904_v2  ;;  %v6166_v42 = vadd.f32 %v6165_v3, %v6164_v5  ;;  %v5385_v52 = vsel %vm199_vm0, %v5279_v53, 0.0  ;;  %v21140_v54 = vld [vmem:[#allocation59_spill] sm:$0xff]  ;;  %v21141_v5 = vld [vmem:[#allocation60_spill] sm:$0xff] }
 0x6e1   :  { %v5479_v21 = vsub.f32 %v21138_v49, %v17390_v4  ;;  %v5542_v1 = vmul.f32 %v5478_v25, %v5478_v25  ;;  %v5647_v20 = vsel %vm199_vm0, %v5541_v46, 0.0  ;;  %v5386_v9 = vadd.f32 %v5385_v52, %v5384_v0  ;;  %v21142_v0 = vld [vmem:[#allocation58_spill] sm:$0xff] }
 0x6e2   :  { %v5648_v57 = vadd.f32 %v5647_v20, %v5646_v19  ;;  %v5740_v22 = vsub.f32 %v21139_v34, %v17390_v4  ;;  %v5803_v55 = vmul.f32 %v5739_v27, %v5739_v27  ;;  %v5907_v36 = vsel %vm199_vm0, %v5802_v12, 0.0 }
 0x6e3   :  { %v6001_v15 = vsub.f32 %v21140_v54, %v17390_v4  ;;  %v6064_v2 = vmul.f32 %v6000_v37, %v6000_v37  ;;  %v6167_v53 = vsel %vm199_vm0, %v6063_v18, 0.0  ;;  %v5219_v3 = vsub.f32 %v21141_v5, %v17390_v4  ;;  %v21143_v37 = vld [vmem:[#allocation113_spill] sm:$0xff] }
 0x6e4   :  { %v5281_v25 = vmul.f32 %v5217_v47, %v5217_v47  ;;  %v5908_v49 = vadd.f32 %v5907_v36, %v5906_v35  ;;  %v6168_v46 = vadd.f32 %v6167_v53, %v6166_v42  ;;  %v5387_v19 = vsel %vm199_vm0, %v5280_v14, 0.0  ;;  %v21144_v47 = vld [vmem:[#allocation143_spill] sm:$0xff] }
 0x6e5   :  { %v5480_v52 = vsub.f32 %v21142_v0, %v17390_v4  ;;  %v5543_v27 = vmul.f32 %v5479_v21, %v5479_v21  ;;  %v5649_v12 = vsel %vm199_vm0, %v5542_v1, 0.0  ;;  %v5388_v20 = vadd.f32 %v5387_v19, %v5386_v9  ;;  %v21145_v42 = vld [vmem:[#allocation63_spill] sm:$0xff]  ;;  %v21146_v9 = vld [vmem:[#allocation112_spill] sm:$0xff] }
 0x6e6   :  { %v5650_v34 = vadd.f32 %v5649_v12, %v5648_v57  ;;  %v5741_v54 = vsub.f32 %v21143_v37, %v17390_v4  ;;  %v5804_v18 = vmul.f32 %v5740_v22, %v5740_v22  ;;  %v5909_v33 = vsel %vm199_vm0, %v5803_v55, 0.0 }
 0x6e7   :  { %v6002_v36 = vsub.f32 %v21144_v47, %v17390_v4  ;;  %v6065_v35 = vmul.f32 %v6001_v15, %v6001_v15  ;;  %v6169_v14 = vsel %vm199_vm0, %v6064_v2, 0.0  ;;  %v5220_v53 = vsub.f32 %v21145_v42, %v17390_v4  ;;  %v21147_v15 = vld [vmem:[#allocation142_spill] sm:$0xff] }
 0x6e8   :  { %v5282_v21 = vmul.f32 %v5218_v29, %v5218_v29  ;;  %v5910_v0 = vadd.f32 %v5909_v33, %v5908_v49  ;;  %v6170_v1 = vadd.f32 %v6169_v14, %v6168_v46  ;;  %v5389_v57 = vsel %vm199_vm0, %v5281_v25, 0.0  ;;  %v21148_v29 = vld [vmem:[#allocation61_spill] sm:$0xff]  ;;  %v21149_v46 = vld [vmem:[#allocation62_spill] sm:$0xff] }
 0x6e9   :  { %v5481_v19 = vsub.f32 %v21146_v9, %v17390_v4  ;;  %v5544_v22 = vmul.f32 %v5480_v52, %v5480_v52  ;;  %v5651_v55 = vsel %vm199_vm0, %v5543_v27, 0.0  ;;  %v5390_v12 = vadd.f32 %v5389_v57, %v5388_v20  ;;  %v21150_v20 = vld [vmem:[#allocation115_spill] sm:$0xff] }
 0x6ea   :  { %v5652_v37 = vadd.f32 %v5651_v55, %v5650_v34  ;;  %v5742_v47 = vsub.f32 %v21147_v15, %v17390_v4  ;;  %v5805_v2 = vmul.f32 %v5741_v54, %v5741_v54  ;;  %v5911_v13 = vsel %vm199_vm0, %v5804_v18, 0.0 }
 0x6eb   :  { %v6003_v33 = vsub.f32 %v21148_v29, %v17390_v4  ;;  %v6066_v49 = vmul.f32 %v6002_v36, %v6002_v36  ;;  %v6171_v25 = vsel %vm199_vm0, %v6065_v35, 0.0  ;;  %v5221_v14 = vsub.f32 %v21149_v46, %v17390_v4  ;;  %v21151_v36 = vld [vmem:[#allocation144_spill] sm:$0xff] }
 0x6ec   :  { %v5283_v52 = vmul.f32 %v5219_v3, %v5219_v3  ;;  %v5912_v9 = vadd.f32 %v5911_v13, %v5910_v0  ;;  %v6172_v27 = vadd.f32 %v6171_v25, %v6170_v1  ;;  %v5391_v34 = vsel %vm199_vm0, %v5282_v21, 0.0  ;;  %v21152_v3 = vld [vmem:[#allocation145_spill] sm:$0xff] }
 0x6ed   :  { %v5482_v57 = vsub.f32 %v21150_v20, %v17390_v4  ;;  %v5545_v54 = vmul.f32 %v5481_v19, %v5481_v19  ;;  %v5653_v18 = vsel %vm199_vm0, %v5544_v22, 0.0  ;;  %v5392_v55 = vadd.f32 %v5391_v34, %v5390_v12  ;;  %v21153_v1 = vld [vmem:[#allocation65_spill] sm:$0xff]  ;;  %v21154_v12 = vld [vmem:[#allocation114_spill] sm:$0xff] }
 0x6ee   :  { %v5654_v15 = vadd.f32 %v5653_v18, %v5652_v37  ;;  %v5743_v29 = vsub.f32 %v21151_v36, %v17390_v4  ;;  %v5806_v35 = vmul.f32 %v5742_v47, %v5742_v47  ;;  %v5913_v24 = vsel %vm199_vm0, %v5805_v2, 0.0 }
 0x6ef   :  { %v6004_v13 = vsub.f32 %v21152_v3, %v17390_v4  ;;  %v6067_v0 = vmul.f32 %v6003_v33, %v6003_v33  ;;  %v6173_v21 = vsel %vm199_vm0, %v6066_v49, 0.0  ;;  %v5222_v25 = vsub.f32 %v21153_v1, %v17390_v4  ;;  %v21155_v33 = vld [vmem:[#allocation147_spill] sm:$0xff] }
 0x6f0   :  { %v5284_v19 = vmul.f32 %v5220_v53, %v5220_v53  ;;  %v5914_v20 = vadd.f32 %v5913_v24, %v5912_v9  ;;  %v6174_v22 = vadd.f32 %v6173_v21, %v6172_v27  ;;  %v5393_v37 = vsel %vm199_vm0, %v5283_v52, 0.0  ;;  %v21156_v53 = vld [vmem:[#allocation223_spill] sm:$0xff]  ;;  %v21157_v27 = vld [vmem:[#allocation64_spill] sm:$0xff] }
 0x6f1   :  { %v5483_v34 = vsub.f32 %v21154_v12, %v17390_v4  ;;  %v5546_v47 = vmul.f32 %v5482_v57, %v5482_v57  ;;  %v5655_v2 = vsel %vm199_vm0, %v5545_v54, 0.0  ;;  %v5394_v18 = vadd.f32 %v5393_v37, %v5392_v55  ;;  %v21158_v55 = vld [vmem:[#allocation117_spill] sm:$0xff] }
 0x6f2   :  { %v5656_v36 = vadd.f32 %v5655_v2, %v5654_v15  ;;  %v5744_v3 = vsub.f32 %v21155_v33, %v17390_v4  ;;  %v5807_v49 = vmul.f32 %v5743_v29, %v5743_v29  ;;  %v5915_v6 = vsel %vm199_vm0, %v5806_v35, 0.0 }
 0x6f3   :  { %v6005_v24 = vsub.f32 %v21156_v53, %v17390_v4  ;;  %v6068_v9 = vmul.f32 %v6004_v13, %v6004_v13  ;;  %v6175_v52 = vsel %vm199_vm0, %v6067_v0, 0.0  ;;  %v5223_v21 = vsub.f32 %v21157_v27, %v17390_v4  ;;  %v21159_v13 = vld [vmem:[#allocation146_spill] sm:$0xff] }
 0x6f4   :  { %v5285_v57 = vmul.f32 %v5221_v14, %v5221_v14  ;;  %v5916_v12 = vadd.f32 %v5915_v6, %v5914_v20  ;;  %v6176_v54 = vadd.f32 %v6175_v52, %v6174_v22  ;;  %v5395_v15 = vsel %vm199_vm0, %v5284_v19, 0.0  ;;  %v21160_v14 = vld [vmem:[#allocation224_spill] sm:$0xff]  ;;  %v21161_v22 = vld [vmem:[#allocation67_spill] sm:$0xff] }
 0x6f5   :  { %v5484_v37 = vsub.f32 %v21158_v55, %v17390_v4  ;;  %v5547_v29 = vmul.f32 %v5483_v34, %v5483_v34  ;;  %v5657_v35 = vsel %vm199_vm0, %v5546_v47, 0.0  ;;  %v5396_v2 = vadd.f32 %v5395_v15, %v5394_v18  ;;  %v21162_v18 = vld [vmem:[#allocation116_spill] sm:$0xff] }
 0x6f6   :  { %v5658_v33 = vadd.f32 %v5657_v35, %v5656_v36  ;;  %v5745_v53 = vsub.f32 %v21159_v13, %v17390_v4  ;;  %v5808_v0 = vmul.f32 %v5744_v3, %v5744_v3  ;;  %v5917_v50 = vsel %vm199_vm0, %v5807_v49, 0.0 }
 0x6f7   :  { %v6006_v6 = vsub.f32 %v21160_v14, %v17390_v4  ;;  %v6069_v20 = vmul.f32 %v6005_v24, %v6005_v24  ;;  %v6177_v19 = vsel %vm199_vm0, %v6068_v9, 0.0  ;;  %v5224_v52 = vsub.f32 %v21161_v22, %v17390_v4  ;;  %v21163_v24 = vld [vmem:[#allocation149_spill] sm:$0xff] }
 0x6f8   :  { %v5286_v34 = vmul.f32 %v5222_v25, %v5222_v25  ;;  %v5918_v55 = vadd.f32 %v5917_v50, %v5916_v12  ;;  %v6178_v47 = vadd.f32 %v6177_v19, %v6176_v54  ;;  %v5397_v36 = vsel %vm199_vm0, %v5285_v57, 0.0  ;;  %v21164_v25 = vld [vmem:[#allocation225_spill] sm:$0xff] }
 0x6f9   :  { %v5485_v15 = vsub.f32 %v21162_v18, %v17390_v4  ;;  %v5548_v3 = vmul.f32 %v5484_v37, %v5484_v37  ;;  %v5659_v49 = vsel %vm199_vm0, %v5547_v29, 0.0  ;;  %v5398_v35 = vadd.f32 %v5397_v36, %v5396_v2  ;;  %v21165_v29 = vld [vmem:[#allocation119_spill] sm:$0xff] }
 0x6fa   :  { %v5660_v13 = vadd.f32 %v5659_v49, %v5658_v33  ;;  %v5746_v14 = vsub.f32 %v21163_v24, %v17390_v4  ;;  %v5809_v9 = vmul.f32 %v5745_v53, %v5745_v53  ;;  %v5919_v44 = vsel %vm199_vm0, %v5808_v0, 0.0  ;;  %v21166_v53 = vld [vmem:[#allocation148_spill] sm:$0xff] }
 0x6fb   :  { %v6007_v50 = vsub.f32 %v21164_v25, %v17390_v4  ;;  %v6070_v12 = vmul.f32 %v6006_v6, %v6006_v6  ;;  %v6179_v57 = vsel %vm199_vm0, %v6069_v20, 0.0  ;;  %v5287_v54 = vmul.f32 %v5223_v21, %v5223_v21  ;;  %v7007_v6 = vld [vmem:[%s19642_s13] sm:$0xff]  ;;  %v7008_v21 = vld [vmem:[%s19642_s13 + $0x8] sm:$0xff] }
 0x6fc   :  { %v5399_v19 = vsel %vm199_vm0, %v5286_v34, 0.0  ;;  %v5920_v37 = vadd.f32 %v5919_v44, %v5918_v55  ;;  %v6180_v18 = vadd.f32 %v6179_v57, %v6178_v47  ;;  %v5486_v33 = vsub.f32 %v21165_v29, %v17390_v4  ;;  %v21168_v25 = vld [vmem:[#allocation66_spill] sm:$0xff] }
 0x6fd   :  { %v5549_v2 = vmul.f32 %v5485_v15, %v5485_v15  ;;  %v5661_v36 = vsel %vm199_vm0, %v5548_v3, 0.0  ;;  %v5747_v0 = vsub.f32 %v21166_v53, %v17390_v4  ;;  %v5400_v20 = vadd.f32 %v5399_v19, %v5398_v35  ;;  %v21167_v15 = vld [vmem:[#allocation226_spill] sm:$0xff] }
 0x6fe   :  { %v5662_v44 = vadd.f32 %v5661_v36, %v5660_v13  ;;  %v5810_v55 = vmul.f32 %v5746_v14, %v5746_v14  ;;  %v12368_v34 = vpack.c.bf16 %v7008_v21, %v7007_v6  ;;  %v5921_v47 = vsel %vm199_vm0, %v5809_v9, 0.0  ;;  %v21169_v13 = vld [vmem:[#allocation118_spill] sm:$0xff] }
 0x6ff   :  { %v6008_v3 = vsub.f32 %v21167_v15, %v17390_v4  ;;  %v6071_v49 = vmul.f32 %v6007_v50, %v6007_v50  ;;  %v6181_v57 = vsel %vm199_vm0, %v6070_v12, 0.0  ;;  %v5225_v53 = vsub.f32 %v21168_v25, %v17390_v4  ;;  %v21170_v12 = vld [vmem:[#allocation151_spill] sm:$0xff] }
 0x700   :  { %v5288_v24 = vmul.f32 %v5224_v52, %v5224_v52  ;;  %v5922_v29 = vadd.f32 %v5921_v47, %v5920_v37  ;;  %v6182_v56 = vadd.f32 %v6181_v57, %v6180_v18  ;;  %12369 = vmatprep.subr.bf16.mxu0 %v12368_v34  ;;  %v5401_v35 = vsel %vm199_vm0, %v5287_v54, 0.0  ;;  %v21171_v18 = vld [vmem:[#allocation227_spill] sm:$0xff]  ;;  %v21172_v57 = vld [vmem:[#allocation69_spill] sm:$0xff] }
 0x701   :  { %v5487_v14 = vsub.f32 %v21169_v13, %v17390_v4  ;;  %v5550_v19 = vmul.f32 %v5486_v33, %v5486_v33  ;;  %v5663_v9 = vsel %vm199_vm0, %v5549_v2, 0.0  ;;  %12371 = vmatpush3.bf16.msra.mxu0 %v12368_v34  ;;  %v5402_v36 = vadd.f32 %v5401_v35, %v5400_v20 }
 0x702   :  { %v5664_v50 = vadd.f32 %v5663_v9, %v5662_v44  ;;  %v5748_v6 = vsub.f32 %v21170_v12, %v17390_v4  ;;  %v5811_v21 = vmul.f32 %v5747_v0, %v5747_v0  ;;  %v5923_v52 = vsel %vm199_vm0, %v5810_v55, 0.0  ;;  %v21173_v44 = vld [vmem:[#allocation121_spill] sm:$0xff] }
 0x703   :  { %v6009_v37 = vsub.f32 %v21171_v18, %v17390_v4  ;;  %v6072_v47 = vmul.f32 %v6008_v3, %v6008_v3  ;;  %v6183_v54 = vsel %vm199_vm0, %v6071_v49, 0.0  ;;  %v5226_v33 = vsub.f32 %v21172_v57, %v17390_v4  ;;  %v21174_v3 = vld [vmem:[#allocation150_spill] sm:$0xff] }
 0x704   :  { %v5289_v15 = vmul.f32 %v5225_v53, %v5225_v53  ;;  %v5924_v2 = vadd.f32 %v5923_v52, %v5922_v29  ;;  %v6184_v34 = vadd.f32 %v6183_v54, %v6182_v56  ;;  %v5403_v20 = vsel %vm199_vm0, %v5288_v24, 0.0  ;;  %v21175_v53 = vld [vmem:[#allocation228_spill] sm:$0xff] }
 0x705   :  { %v5488_v35 = vsub.f32 %v21173_v44, %v17390_v4  ;;  %v5551_v0 = vmul.f32 %v5487_v14, %v5487_v14  ;;  %v5665_v55 = vsel %vm199_vm0, %v5550_v19, 0.0  ;;  %v5404_v9 = vadd.f32 %v5403_v20, %v5402_v36  ;;  %v21176_v52 = vld [vmem:[#allocation68_spill] sm:$0xff] }
 0x706   :  { %v5666_v12 = vadd.f32 %v5665_v55, %v5664_v50  ;;  %v5749_v18 = vsub.f32 %v21174_v3, %v17390_v4  ;;  %v5812_v49 = vmul.f32 %v5748_v6, %v5748_v6  ;;  %v5925_v13 = vsel %vm199_vm0, %v5811_v21, 0.0  ;;  %v21177_v50 = vld [vmem:[#allocation120_spill] sm:$0xff] }
 0x707   :  { %v6010_v29 = vsub.f32 %v21175_v53, %v17390_v4  ;;  %v6073_v56 = vmul.f32 %v6009_v37, %v6009_v37  ;;  %v6185_v24 = vsel %vm199_vm0, %v6072_v47, 0.0  ;;  %v5227_v54 = vsub.f32 %v21176_v52, %v17390_v4  ;;  %v21178_v37 = vld [vmem:[#allocation153_spill] sm:$0xff] }
 0x708   :  { %v5290_v14 = vmul.f32 %v5226_v33, %v5226_v33  ;;  %v5926_v44 = vadd.f32 %v5925_v13, %v5924_v2  ;;  %v6186_v19 = vadd.f32 %v6185_v24, %v6184_v34  ;;  %v5405_v36 = vsel %vm199_vm0, %v5289_v15, 0.0  ;;  %v21179_v33 = vld [vmem:[#allocation229_spill] sm:$0xff]  ;;  %v21180_v34 = vld [vmem:[#allocation71_spill] sm:$0xff] }
 0x709   :  { %v5489_v20 = vsub.f32 %v21177_v50, %v17390_v4  ;;  %v5552_v6 = vmul.f32 %v5488_v35, %v5488_v35  ;;  %v5667_v21 = vsel %vm199_vm0, %v5551_v0, 0.0  ;;  %v5406_v55 = vadd.f32 %v5405_v36, %v5404_v9  ;;  %v21181_v9 = vld [vmem:[#allocation123_spill] sm:$0xff] }
 0x70a   :  { %v5668_v3 = vadd.f32 %v5667_v21, %v5666_v12  ;;  %v5750_v53 = vsub.f32 %v21178_v37, %v17390_v4  ;;  %v5813_v47 = vmul.f32 %v5749_v18, %v5749_v18  ;;  %v5927_v38 = vsel %vm199_vm0, %v5812_v49, 0.0 }
 0x70b   :  { %v6011_v13 = vsub.f32 %v21179_v33, %v17390_v4  ;;  %v6074_v2 = vmul.f32 %v6010_v29, %v6010_v29  ;;  %v6187_v15 = vsel %vm199_vm0, %v6073_v56, 0.0  ;;  %v5228_v24 = vsub.f32 %v21180_v34, %v17390_v4  ;;  %v21182_v29 = vld [vmem:[#allocation152_spill] sm:$0xff] }
 0x70c   :  { %v5291_v35 = vmul.f32 %v5227_v54, %v5227_v54  ;;  %v5928_v50 = vadd.f32 %v5927_v38, %v5926_v44  ;;  %v6188_v0 = vadd.f32 %v6187_v15, %v6186_v19  ;;  %v5407_v12 = vsel %vm199_vm0, %v5290_v14, 0.0  ;;  %v21183_v54 = vld [vmem:[#allocation230_spill] sm:$0xff] }
 0x70d   :  { %v5490_v36 = vsub.f32 %v21181_v9, %v17390_v4  ;;  %v5553_v18 = vmul.f32 %v5489_v20, %v5489_v20  ;;  %v5669_v49 = vsel %vm199_vm0, %v5552_v6, 0.0  ;;  %v5408_v21 = vadd.f32 %v5407_v12, %v5406_v55  ;;  %v21184_v19 = vld [vmem:[#allocation70_spill] sm:$0xff] }
 0x70e   :  { %v5670_v37 = vadd.f32 %v5669_v49, %v5668_v3  ;;  %v5751_v33 = vsub.f32 %v21182_v29, %v17390_v4  ;;  %v5814_v56 = vmul.f32 %v5750_v53, %v5750_v53  ;;  %v5929_v30 = vsel %vm199_vm0, %v5813_v47, 0.0  ;;  %v21185_v55 = vld [vmem:[#allocation122_spill] sm:$0xff] }
 0x70f   :  { %v6012_v38 = vsub.f32 %v21183_v54, %v17390_v4  ;;  %v6075_v44 = vmul.f32 %v6011_v13, %v6011_v13  ;;  %v6189_v14 = vsel %vm199_vm0, %v6074_v2, 0.0  ;;  %v5229_v15 = vsub.f32 %v21184_v19, %v17390_v4  ;;  %v21186_v13 = vld [vmem:[#allocation155_spill] sm:$0xff] }
 0x710   :  { %v5292_v20 = vmul.f32 %v5228_v24, %v5228_v24  ;;  %v5930_v9 = vadd.f32 %v5929_v30, %v5928_v50  ;;  %v6190_v6 = vadd.f32 %v6189_v14, %v6188_v0  ;;  %v5409_v3 = vsel %vm199_vm0, %v5291_v35, 0.0  ;;  %v21187_v24 = vld [vmem:[#allocation231_spill] sm:$0xff]  ;;  %v21188_v0 = vld [vmem:[#allocation72_spill] sm:$0xff] }
 0x711   :  { %v5491_v12 = vsub.f32 %v21185_v55, %v17390_v4  ;;  %v5554_v53 = vmul.f32 %v5490_v36, %v5490_v36  ;;  %v5671_v47 = vsel %vm199_vm0, %v5553_v18, 0.0  ;;  %v5410_v49 = vadd.f32 %v5409_v3, %v5408_v21  ;;  %v21189_v21 = vld [vmem:[#allocation124_spill] sm:$0xff] }
 0x712   :  { %v5672_v29 = vadd.f32 %v5671_v47, %v5670_v37  ;;  %v5752_v54 = vsub.f32 %v21186_v13, %v17390_v4  ;;  %v5815_v2 = vmul.f32 %v5751_v33, %v5751_v33  ;;  %v5931_v34 = vsel %vm199_vm0, %v5814_v56, 0.0 }
 0x713   :  { %v6013_v30 = vsub.f32 %v21187_v24, %v17390_v4  ;;  %v6076_v50 = vmul.f32 %v6012_v38, %v6012_v38  ;;  %v6191_v35 = vsel %vm199_vm0, %v6075_v44, 0.0  ;;  %v5230_v14 = vsub.f32 %v21188_v0, %v17390_v4  ;;  %v21190_v38 = vld [vmem:[#allocation154_spill] sm:$0xff] }
 0x714   :  { %v5293_v36 = vmul.f32 %v5229_v15, %v5229_v15  ;;  %v5932_v55 = vadd.f32 %v5931_v34, %v5930_v9  ;;  %v6192_v18 = vadd.f32 %v6191_v35, %v6190_v6  ;;  %v5411_v37 = vsel %vm199_vm0, %v5292_v20, 0.0  ;;  %v21191_v15 = vld [vmem:[#allocation232_spill] sm:$0xff]  ;;  %v21192_v6 = vld [vmem:[#allocation29_spill] sm:$0xff] }
 0x715   :  { %v5492_v3 = vsub.f32 %v21189_v21, %v17390_v4  ;;  %v5555_v33 = vmul.f32 %v5491_v12, %v5491_v12  ;;  %v5673_v56 = vsel %vm199_vm0, %v5554_v53, 0.0  ;;  %v5412_v47 = vadd.f32 %v5411_v37, %v5410_v49  ;;  %v21193_v49 = vld [vmem:[#allocation35_spill] sm:$0xff] }
 0x716   :  { %v5674_v13 = vadd.f32 %v5673_v56, %v5672_v29  ;;  %v5753_v24 = vsub.f32 %v21190_v38, %v17390_v4  ;;  %v5816_v44 = vmul.f32 %v5752_v54, %v5752_v54  ;;  %v5933_v19 = vsel %vm199_vm0, %v5815_v2, 0.0 }
 0x717   :  { %v6014_v34 = vsub.f32 %v21191_v15, %v17390_v4  ;;  %v6077_v9 = vmul.f32 %v6013_v30, %v6013_v30  ;;  %v6193_v20 = vsel %vm199_vm0, %v6076_v50, 0.0  ;;  %v5231_v35 = vsub.f32 %v21192_v6, %v17390_v4  ;;  %v21194_v30 = vld [vmem:[#allocation157_spill] sm:$0xff] }
 0x718   :  { %v5294_v12 = vmul.f32 %v5230_v14, %v5230_v14  ;;  %v5934_v21 = vadd.f32 %v5933_v19, %v5932_v55  ;;  %v6194_v53 = vadd.f32 %v6193_v20, %v6192_v18  ;;  %v5413_v29 = vsel %vm199_vm0, %v5293_v36, 0.0  ;;  %v21195_v14 = vld [vmem:[#allocation233_spill] sm:$0xff]  ;;  %v21196_v18 = vld [vmem:[#allocation74_spill] sm:$0xff] }
 0x719   :  { %v5493_v37 = vsub.f32 %v21193_v49, %v17390_v4  ;;  %v5556_v54 = vmul.f32 %v5492_v3, %v5492_v3  ;;  %v5675_v2 = vsel %vm199_vm0, %v5555_v33, 0.0  ;;  %v5414_v56 = vadd.f32 %v5413_v29, %v5412_v47  ;;  %v21197_v47 = vld [vmem:[#allocation125_spill] sm:$0xff] }
 0x71a   :  { %v5676_v38 = vadd.f32 %v5675_v2, %v5674_v13  ;;  %v5754_v15 = vsub.f32 %v21194_v30, %v17390_v4  ;;  %v5817_v50 = vmul.f32 %v5753_v24, %v5753_v24  ;;  %v5935_v0 = vsel %vm199_vm0, %v5816_v44, 0.0 }
 0x71b   :  { %v6015_v19 = vsub.f32 %v21195_v14, %v17390_v4  ;;  %v6078_v55 = vmul.f32 %v6014_v34, %v6014_v34  ;;  %v6195_v36 = vsel %vm199_vm0, %v6077_v9, 0.0  ;;  %v5232_v20 = vsub.f32 %v21196_v18, %v17390_v4  ;;  %v21198_v34 = vld [vmem:[#allocation156_spill] sm:$0xff] }
 0x71c   :  { %v5295_v3 = vmul.f32 %v5231_v35, %v5231_v35  ;;  %v5936_v49 = vadd.f32 %v5935_v0, %v5934_v21  ;;  %v6196_v33 = vadd.f32 %v6195_v36, %v6194_v53  ;;  %v5415_v13 = vsel %vm199_vm0, %v5294_v12, 0.0  ;;  %v21199_v35 = vld [vmem:[#allocation234_spill] sm:$0xff]  ;;  %v21200_v53 = vld [vmem:[#allocation73_spill] sm:$0xff] }
 0x71d   :  { %v5494_v29 = vsub.f32 %v21197_v47, %v17390_v4  ;;  %v5557_v24 = vmul.f32 %v5493_v37, %v5493_v37  ;;  %v5677_v44 = vsel %vm199_vm0, %v5556_v54, 0.0  ;;  %v5416_v2 = vadd.f32 %v5415_v13, %v5414_v56  ;;  %v21201_v56 = vld [vmem:[#allocation33_spill] sm:$0xff] }
 0x71e   :  { %v5678_v30 = vadd.f32 %v5677_v44, %v5676_v38  ;;  %v5755_v14 = vsub.f32 %v21198_v34, %v17390_v4  ;;  %v5818_v9 = vmul.f32 %v5754_v15, %v5754_v15  ;;  %v5937_v6 = vsel %vm199_vm0, %v5817_v50, 0.0 }
 0x71f   :  { %v6016_v0 = vsub.f32 %v21199_v35, %v17390_v4  ;;  %v6079_v21 = vmul.f32 %v6015_v19, %v6015_v19  ;;  %v6197_v12 = vsel %vm199_vm0, %v6078_v55, 0.0  ;;  %v5233_v36 = vsub.f32 %v21200_v53, %v17390_v4  ;;  %v21202_v19 = vld [vmem:[#allocation159_spill] sm:$0xff] }
 0x720   :  { %v5296_v37 = vmul.f32 %v5232_v20, %v5232_v20  ;;  %v5938_v47 = vadd.f32 %v5937_v6, %v5936_v49  ;;  %v6198_v54 = vadd.f32 %v6197_v12, %v6196_v33  ;;  %v5417_v38 = vsel %vm199_vm0, %v5295_v3, 0.0  ;;  %v21203_v20 = vld [vmem:[#allocation235_spill] sm:$0xff] }
 0x721   :  { %v5495_v13 = vsub.f32 %v21201_v56, %v17390_v4  ;;  %v5558_v15 = vmul.f32 %v5494_v29, %v5494_v29  ;;  %v5679_v50 = vsel %vm199_vm0, %v5557_v24, 0.0  ;;  %v5418_v44 = vadd.f32 %v5417_v38, %v5416_v2  ;;  %v21204_v33 = vld [vmem:[#allocation75_spill] sm:$0xff] }
 0x722   :  { %v5680_v34 = vadd.f32 %v5679_v50, %v5678_v30  ;;  %v5756_v35 = vsub.f32 %v21202_v19, %v17390_v4  ;;  %v5819_v55 = vmul.f32 %v5755_v14, %v5755_v14  ;;  %v5939_v18 = vsel %vm199_vm0, %v5818_v9, 0.0  ;;  %v21205_v2 = vld [vmem:[#allocation127_spill] sm:$0xff] }
 0x723   :  { %v6017_v6 = vsub.f32 %v21203_v20, %v17390_v4  ;;  %v6080_v49 = vmul.f32 %v6016_v0, %v6016_v0  ;;  %v6199_v3 = vsel %vm199_vm0, %v6079_v21, 0.0  ;;  %v5234_v12 = vsub.f32 %v21204_v33, %v17390_v4  ;;  %v21206_v0 = vld [vmem:[#allocation158_spill] sm:$0xff] }
 0x724   :  { %v5297_v29 = vmul.f32 %v5233_v36, %v5233_v36  ;;  %v5940_v56 = vadd.f32 %v5939_v18, %v5938_v47  ;;  %v6200_v24 = vadd.f32 %v6199_v3, %v6198_v54  ;;  %v5419_v30 = vsel %vm199_vm0, %v5296_v37, 0.0  ;;  %v21207_v36 = vld [vmem:[#allocation236_spill] sm:$0xff]  ;;  %v21208_v54 = vld [vmem:[#allocation39_spill] sm:$0xff] }
 0x725   :  { %v5496_v38 = vsub.f32 %v21205_v2, %v17390_v4  ;;  %v5559_v14 = vmul.f32 %v5495_v13, %v5495_v13  ;;  %v5681_v9 = vsel %vm199_vm0, %v5558_v15, 0.0  ;;  %v5420_v50 = vadd.f32 %v5419_v30, %v5418_v44  ;;  %v21209_v44 = vld [vmem:[#allocation126_spill] sm:$0xff] }
 0x726   :  { %v5682_v19 = vadd.f32 %v5681_v9, %v5680_v34  ;;  %v5757_v20 = vsub.f32 %v21206_v0, %v17390_v4  ;;  %v5820_v21 = vmul.f32 %v5756_v35, %v5756_v35  ;;  %v5941_v53 = vsel %vm199_vm0, %v5819_v55, 0.0 }
 0x727   :  { %v6018_v18 = vsub.f32 %v21207_v36, %v17390_v4  ;;  %v6081_v47 = vmul.f32 %v6017_v6, %v6017_v6  ;;  %v6201_v37 = vsel %vm199_vm0, %v6080_v49, 0.0  ;;  %v5235_v3 = vsub.f32 %v21208_v54, %v17390_v4  ;;  %v21210_v6 = vld [vmem:[#allocation161_spill] sm:$0xff] }
 0x728   :  { %v5298_v13 = vmul.f32 %v5234_v12, %v5234_v12  ;;  %v5942_v2 = vadd.f32 %v5941_v53, %v5940_v56  ;;  %v6202_v15 = vadd.f32 %v6201_v37, %v6200_v24  ;;  %v5421_v34 = vsel %vm199_vm0, %v5297_v29, 0.0  ;;  %v21211_v12 = vld [vmem:[#allocation237_spill] sm:$0xff] }
 0x729   :  { %v5497_v30 = vsub.f32 %v21209_v44, %v17390_v4  ;;  %v5560_v35 = vmul.f32 %v5496_v38, %v5496_v38  ;;  %v5683_v55 = vsel %vm199_vm0, %v5559_v14, 0.0  ;;  %v5422_v9 = vadd.f32 %v5421_v34, %v5420_v50 }
 0x72a   :  { %v5684_v0 = vadd.f32 %v5683_v55, %v5682_v19  ;;  %v5758_v36 = vsub.f32 %v21210_v6, %v17390_v4  ;;  %v5821_v49 = vmul.f32 %v5757_v20, %v5757_v20  ;;  %v5943_v33 = vsel %vm199_vm0, %v5820_v21, 0.0  ;;  %v21212_v20 = vld [vmem:[#allocation160_spill] sm:$0xff] }
 0x72b   :  { %v6019_v53 = vsub.f32 %v21211_v12, %v17390_v4  ;;  %v6082_v56 = vmul.f32 %v6018_v18, %v6018_v18  ;;  %v6203_v29 = vsel %vm199_vm0, %v6081_v47, 0.0  ;;  %v5944_v24 = vadd.f32 %v5943_v33, %v5942_v2  ;;  %v21213_v18 = vld [vmem:[#allocation238_spill] sm:$0xff] }
 0x72c   :  { %v6204_v37 = vadd.f32 %v6203_v29, %v6202_v15  ;;  %v5299_v44 = vmul.f32 %v5235_v3, %v5235_v3  ;;  %v5423_v38 = vsel %vm199_vm0, %v5298_v13, 0.0  ;;  %v5561_v14 = vmul.f32 %v5497_v30, %v5497_v30 }
 0x72d   :  { %v5685_v19 = vsel %vm199_vm0, %v5560_v35, 0.0  ;;  %v5424_v50 = vadd.f32 %v5423_v38, %v5422_v9  ;;  %v5759_v55 = vsub.f32 %v21212_v20, %v17390_v4  ;;  %v5822_v21 = vmul.f32 %v5758_v36, %v5758_v36  ;;  %v21214_v36 = vld [vmem:[#allocation239_spill] sm:$0xff] }
 0x72e   :  { %v5686_v34 = vadd.f32 %v5685_v19, %v5684_v0  ;;  %v5945_v6 = vsel %vm199_vm0, %v5821_v49, 0.0  ;;  %v6020_v12 = vsub.f32 %v21213_v18, %v17390_v4  ;;  %v6083_v47 = vmul.f32 %v6019_v53, %v6019_v53 }
 0x72f   :  { %v6205_v33 = vsel %vm199_vm0, %v6082_v56, 0.0  ;;  %v5946_v2 = vadd.f32 %v5945_v6, %v5944_v24  ;;  %v5425_v13 = vsel %vm199_vm0, %v5299_v44, 0.0  ;;  %v5687_v15 = vsel %vm199_vm0, %v5561_v14, 0.0 }
 0x730   :  { %v6206_v3 = vadd.f32 %v6205_v33, %v6204_v37  ;;  %v5426_v30 = vadd.f32 %v5425_v13, %v5424_v50  ;;  %v5688_v0 = vadd.f32 %v5687_v15, %v5686_v34  ;;  %v5823_v35 = vmul.f32 %v5759_v55, %v5759_v55 }
 0x731   :  { %v5947_v9 = vsel %vm199_vm0, %v5822_v21, 0.0  ;;  %v6021_v49 = vsub.f32 %v21214_v36, %v17390_v4  ;;  %v6084_v29 = vmul.f32 %v6020_v12, %v6020_v12  ;;  %v6207_v38 = vsel %vm199_vm0, %v6083_v47, 0.0 }
 0x732   :  { %v5948_v53 = vadd.f32 %v5947_v9, %v5946_v2  ;;  %v6208_v19 = vadd.f32 %v6207_v38, %v6206_v3  ;;  %v5427_v56 = vrot.slane %v5426_v30, 4  ;;  %v5689_v6 = vrot.slane %v5688_v0, 4 }
 0x733   :  { %v5949_v24 = vsel %vm199_vm0, %v5823_v35, 0.0  ;;  %v6085_v44 = vmul.f32 %v6021_v49, %v6021_v49  ;;  %v6209_v37 = vsel %vm199_vm0, %v6084_v29, 0.0 }
 0x734   :  { %v5950_v14 = vadd.f32 %v5949_v24, %v5948_v53  ;;  %v6210_v50 = vadd.f32 %v6209_v37, %v6208_v19  ;;  %v5428_v34 = vadd.f32 %v5427_v56, %v5426_v30  ;;  %v5690_v55 = vadd.f32 %v5689_v6, %v5688_v0 }
 0x735   :  { %v6211_v21 = vsel %vm199_vm0, %v6085_v44, 0.0 }
 0x736   :  { %v5951_v33 = vrot.slane %v5950_v14, 4  ;;  %v6212_v13 = vadd.f32 %v6211_v21, %v6210_v50  ;;  %v5429_v12 = vrot.slane %v5428_v34, 2  ;;  %v5691_v15 = vrot.slane %v5690_v55, 2 }
 0x738   :  { %v5952_v47 = vadd.f32 %v5951_v33, %v5950_v14  ;;  %v6213_v2 = vrot.slane %v6212_v13, 4  ;;  %v5430_v3 = vadd.f32 %v5429_v12, %v5428_v34  ;;  %v5692_v9 = vadd.f32 %v5691_v15, %v5690_v55  ;;  %v4633_v55 = vld [vmem:[%s19643_s11] sm:$0x1] }
 0x739   :  { %v21215_v12 = vld [vmem:[#allocation2_spill] sm:$0xff] }
 0x73a   :  { %v5953_v38 = vrot.slane %v5952_v47, 2  ;;  %v6214_v36 = vadd.f32 %v6213_v2, %v6212_v13  ;;  %v5431_v35 = vrot.slane %v5430_v3, 1  ;;  %v5693_v49 = vrot.slane %v5692_v9, 1  ;;  %v21216_v2 = vld [vmem:[#allocation31_spill] sm:$0xff] }
 0x73c   :  { %v5954_v18 = vadd.f32 %v5953_v38, %v5952_v47  ;;  %v6215_v29 = vrot.slane %v6214_v36, 2  ;;  %v5432_v53 = vadd.f32 %v5431_v35, %v5430_v3  ;;  %v5694_v19 = vadd.f32 %v5693_v49, %v5692_v9  ;;  %v21217_v9 = vld [vmem:[#allocation26_spill] sm:$0xff]  ;;  %v7010_v49 = vld [vmem:[%s19642_s13 + $0x18] sm:$0xff] }
 0x73e   :  { %v5955_v30 = vrot.slane %v5954_v18, 1  ;;  %v6216_v0 = vadd.f32 %v6215_v29, %v6214_v36  ;;  %v5695_v56 = vadd.f32 %v5694_v19, %v5432_v53  ;;  %v4634_v36 = vld [vmem:[%s19644_s12] sm:$0x1]  ;;  %v10133_v19 = vld [vmem:[%s19642_s13 + $0x28] sm:$0xff] }
 0x73f   :  { %v10132_v53 = vld [vmem:[%s19642_s13 + $0x20] sm:$0xff] }
 0x740   :  { %v5956_v6 = vadd.f32 %v5955_v30, %v5954_v18  ;;  %v6217_v24 = vrot.slane %v6216_v0, 1  ;;  %v21218_v30 = vld [vmem:[#allocation43_spill] sm:$0xff] }
 0x742   :  { %v5957_v44 = vadd.f32 %v5956_v6, %v5695_v56  ;;  %v6218_v37 = vadd.f32 %v6217_v24, %v6216_v0 }
 0x744   :  { %v6219_v50 = vadd.f32 %v6218_v37, %v5957_v44  ;;  %v12376_v44 = vpack.c.bf16 %v10133_v19, %v10132_v53  ;;  %v21219_v37 = vld [vmem:[#allocation37_spill] sm:$0xff]  ;;  %v21223_v53 = vld [vmem:[#allocation22_spill] sm:$0xff] }
 0x746   :  { %v6220_v14 = vmul.f32 0.00048828125, %v6219_v50 }
 0x748   :  { %v6221_v21 = vadd.f32 1e-05, %v6220_v14 }
 0x74a   :  { %12692 = vrsqrt.f32 %v6221_v21  ;;  %v21220_v21 = vld [vmem:[#allocation45_spill] sm:$0xff] }
 0x754   :  { %v12693_v34 = vpop.eup %12692 }
 0x755   :  { %v6223_v33 = vmul.f32 %v12693_v34, %v4633_v55 }
 0x757   :  { %v6224_v13 = vmul.f32 %v6223_v33, %v17390_v4  ;;  %v18227_v15 = vrot.slane %v6223_v33, %v21215_v12  ;;  %v7009_v4 = vld [vmem:[%s19642_s13 + $0x10] sm:$0xff] }
 0x758   :  { %v12372_v56 = vpack.c.bf16 %v7010_v49, %v7009_v4 }
 0x759   :  { %v6225_v18 = vsub.f32 %v4634_v36, %v6224_v13  ;;  %v6232_v3 = vmul.f32 %v18227_v15, %v21216_v2  ;;  %v6233_v38 = vmul.f32 %v18227_v15, %v21217_v9  ;;  %v6234_v0 = vmul.f32 %v18227_v15, %v21218_v30  ;;  %v21221_v36 = vld [vmem:[#allocation41_spill] sm:$0xff]  ;;  %v21224_v30 = vld [vmem:[#allocation6_spill] sm:$0xff] }
 0x75a   :  { %v6235_v50 = vmul.f32 %v18227_v15, %v21219_v37  ;;  %12373 = vmatprep.subr.bf16.mxu0 %v12372_v56  ;;  %v6236_v34 = vmul.f32 %v18227_v15, %v21220_v21  ;;  %v10135_v2 = vld [vmem:[%s19642_s13 + $0x38] sm:$0xff]  ;;  %v6239_v19 = vmul.f32 %v18227_v15, %v21223_v53  ;;  %v21225_v37 = vld [vmem:[#allocation3_spill] sm:$0xff] }
 0x75b   :  { %v18230_v47 = vrot.slane %v6225_v18, %v21215_v12  ;;  %12375 = vmatpush3.bf16.msra.mxu0 %v12372_v56  ;;  %v6237_v18 = vmul.f32 %v18227_v15, %v21221_v36  ;;  %v10134_v12 = vld [vmem:[%s19642_s13 + $0x30] sm:$0xff]  ;;  %v10201_v21 = vld [vmem:[%s19642_s13 + $0x48] sm:$0xff] }
 0x75c   :  { %12377 = vmatprep.subr.bf16.mxu0 %v12376_v44  ;;  %v21229_v53 = vld [vmem:[#allocation15_spill] sm:$0xff] }
 0x75d   :  { %v6302_v35 = vadd.f32 %v18230_v47, %v6232_v3  ;;  %v6303_v29 = vadd.f32 %v18230_v47, %v6233_v38  ;;  %v6304_v24 = vadd.f32 %v18230_v47, %v6234_v0  ;;  %v6305_v55 = vadd.f32 %v18230_v47, %v6235_v50  ;;  %v21222_v3 = vld [vmem:[#allocation4_spill] sm:$0xff] }
 0x75e   :  { %v6306_v33 = vadd.f32 %v18230_v47, %v6236_v34  ;;  %v6238_v9 = vmul.f32 %v18227_v15, %v21222_v3  ;;  %v6307_v38 = vadd.f32 %v18230_v47, %v6237_v18  ;;  %v6240_v0 = vmul.f32 %v18227_v15, %v21224_v30  ;;  %v21226_v34 = vld [vmem:[#allocation7_spill] sm:$0xff]  ;;  %v21230_v30 = vld [vmem:[#allocation9_spill] sm:$0xff] }
 0x75f   :  { %v6366_v6 = vmax.f32 %v6302_v35, 0.0  ;;  %v6367_v14 = vmax.f32 %v6303_v29, 0.0  ;;  %v6368_v13 = vmax.f32 %v6304_v24, 0.0  ;;  %v6369_v35 = vmax.f32 %v6305_v55, 0.0 }
 0x760   :  { %v6308_v4 = vadd.f32 %v18230_v47, %v6238_v9  ;;  %v6370_v49 = vmax.f32 %v6306_v33, 0.0  ;;  %v12380_v29 = vpack.c.bf16 %v10135_v2, %v10134_v12  ;;  %v6309_v56 = vadd.f32 %v18230_v47, %v6239_v19  ;;  %v21227_v2 = vld [vmem:[#allocation5_spill] sm:$0xff]  ;;  %v21228_v9 = vld [vmem:[#allocation8_spill] sm:$0xff] }
 0x761   :  { %11704 = vmatprep.mubr.msk.f32.mxu0 %vm199_vm0, %v6366_v6  ;;  %v6371_v6 = vmax.f32 %v6307_v38, 0.0  ;;  %v6310_v24 = vadd.f32 %v18230_v47, %v6240_v0  ;;  %v6241_v50 = vmul.f32 %v18227_v15, %v21225_v37  ;;  %v6242_v55 = vmul.f32 %v18227_v15, %v21226_v34  ;;  %v21231_v37 = vld [vmem:[#allocation10_spill] sm:$0xff] }
 0x762   :  { %11705 = vmatmul.mubr.msk.f32.vlgmr.msra.gmra.mrb[40].mxu0 %vm199_vm0, %v6367_v14  ;;  %v10200_v14 = vld [vmem:[%s19642_s13 + $0x40] sm:$0xff]  ;;  %v6243_v3 = vmul.f32 %v18227_v15, %v21227_v2  ;;  %v6244_v38 = vmul.f32 %v18227_v15, %v21228_v9  ;;  %v6245_v19 = vmul.f32 %v18227_v15, %v21229_v53  ;;  %v6246_v0 = vmul.f32 %v18227_v15, %v21230_v30  ;;  %v21234_v2 = vld [vmem:[#allocation13_spill] sm:$0xff] }
 0x763   :  { %12379 = vmatpush3.bf16.msra.mxu0 %v12376_v44  ;;  %11707 = vmatprep.mubr.msk.f32.mxu0 %vm199_vm0, %v6368_v13  ;;  %v6372_v44 = vmax.f32 %v6308_v4, 0.0  ;;  %v6311_v33 = vadd.f32 %v18230_v47, %v6241_v50  ;;  %v6373_v13 = vmax.f32 %v6309_v56, 0.0  ;;  %v6312_v36 = vadd.f32 %v18230_v47, %v6242_v55  ;;  %v21236_v53 = vld [vmem:[#allocation25_spill] sm:$0xff] }
 0x764   :  { %12381 = vmatprep.subr.bf16.mxu0 %v12380_v29  ;;  %v6374_v18 = vmax.f32 %v6310_v24, 0.0  ;;  %v18296_v12 = vpack.c.bf16 %v10201_v21, %v10200_v14  ;;  %v6315_v56 = vadd.f32 %v18230_v47, %v6245_v19  ;;  %v6316_v24 = vadd.f32 %v18230_v47, %v6246_v0  ;;  %v21232_v14 = vld [vmem:[#allocation12_spill] sm:$0xff] }
 0x765   :  { %v6375_v4 = vmax.f32 %v6311_v33, 0.0  ;;  %v6247_v50 = vmul.f32 %v18227_v15, %v21231_v37  ;;  %v6248_v21 = vmul.f32 %v18227_v15, %v21232_v14  ;;  %v6252_v19 = vmul.f32 %v18227_v15, %v21236_v53  ;;  %v21238_v37 = vld [vmem:[#allocation18_spill] sm:$0xff] }
 0x766   :  { %11708 = vmatmul.mubr.msk.f32.gmra.mrb[42].mxu0 %vm199_vm0, %v6369_v35  ;;  %v6313_v35 = vadd.f32 %v18230_v47, %v6243_v3  ;;  %v6379_v55 = vmax.f32 %v6315_v56, 0.0  ;;  %v6250_v3 = vmul.f32 %v18227_v15, %v21234_v2 }
 0x767   :  { %11710 = vmatprep.mubr.msk.f32.mxu0 %vm199_vm0, %v6370_v49  ;;  %12383 = vmatpush3.bf16.msra.mxu0 %v12380_v29  ;;  %v6314_v49 = vadd.f32 %v18230_v47, %v6244_v38  ;;  %v6376_v29 = vmax.f32 %v6312_v36, 0.0  ;;  %v6317_v34 = vadd.f32 %v18230_v47, %v6247_v50  ;;  %v6318_v33 = vadd.f32 %v18230_v47, %v6248_v21  ;;  %v21233_v36 = vld [vmem:[#allocation11_spill] sm:$0xff] }
 0x768   :  { %12385 = vmatprep.subr.bf16.mxu0 %v18296_v12  ;;  %v6322_v56 = vadd.f32 %v18230_v47, %v6252_v19  ;;  %v6254_v50 = vmul.f32 %v18227_v15, %v21238_v37 }
 0x769   :  { %v6381_v38 = vmax.f32 %v6317_v34, 0.0 }
 0x76a   :  { %11711 = vmatmul.mubr.msk.f32.gmra.mrb[44].mxu0 %vm199_vm0, %v6371_v6  ;;  %v6377_v6 = vmax.f32 %v6313_v35, 0.0  ;;  %v6320_v35 = vadd.f32 %v18230_v47, %v6250_v3  ;;  %v6324_v34 = vadd.f32 %v18230_v47, %v6254_v50 }
 0x76b   :  { %11713 = vmatprep.mubr.msk.f32.mxu0 %vm199_vm0, %v6372_v44  ;;  %v6378_v44 = vmax.f32 %v6314_v49, 0.0  ;;  %v21235_v49 = vld [vmem:[#allocation14_spill] sm:$0xff] }
 0x76c   :  { %v6388_v3 = vmax.f32 %v6324_v34, 0.0 }
 0x76e   :  { %11714 = vmatmul.mubr.msk.f32.gmra.mrb[46].mxu0 %vm199_vm0, %v6373_v13  ;;  %v6380_v13 = vmax.f32 %v6316_v24, 0.0  ;;  %v21237_v24 = vld [vmem:[#allocation16_spill] sm:$0xff] }
 0x76f   :  { %11716 = vmatprep.mubr.msk.f32.mxu0 %vm199_vm0, %v6374_v18  ;;  %v6249_v18 = vmul.f32 %v18227_v15, %v21233_v36 }
 0x771   :  { %v6319_v9 = vadd.f32 %v18230_v47, %v6249_v18 }
 0x772   :  { %11717 = vmatmul.mubr.msk.f32.gmra.mrb[48].mxu0 %vm199_vm0, %v6375_v4  ;;  %v6382_v4 = vmax.f32 %v6318_v33, 0.0  ;;  %v6255_v33 = vmul.f32 %v18227_v15, %v16383_v40  ;;  %v6258_v40 = vmul.f32 %v18227_v15, %v21075_v26 }
 0x773   :  { %11719 = vmatprep.mubr.msk.f32.mxu0 %vm199_vm0, %v6376_v29  ;;  %v6251_v29 = vmul.f32 %v18227_v15, %v21235_v49  ;;  %v6383_v0 = vmax.f32 %v6319_v9, 0.0  ;;  %v6257_v9 = vmul.f32 %v18227_v15, %v21071_v8  ;;  %v6259_v49 = vmul.f32 %v18227_v15, %v21079_v45 }
 0x774   :  { %v6325_v36 = vadd.f32 %v18230_v47, %v6255_v33  ;;  %v6260_v8 = vmul.f32 %v18227_v15, %v21083_v61  ;;  %v6262_v45 = vmul.f32 %v18227_v15, %v16563_v11  ;;  %v6267_v33 = vmul.f32 %v18227_v15, %v16693_v62 }
 0x775   :  { %v6321_v30 = vadd.f32 %v18230_v47, %v6251_v29  ;;  %v6329_v26 = vadd.f32 %v18230_v47, %v6259_v49  ;;  %v6270_v62 = vmul.f32 %v18227_v15, %v16755_v23  ;;  %v6273_v49 = vmul.f32 %v18227_v15, %v16842_v10 }
 0x776   :  { %11720 = vmatmul.mubr.msk.f32.gmra.mrb[50].mxu0 %vm199_vm0, %v6377_v6  ;;  %v6384_v6 = vmax.f32 %v6320_v35, 0.0  ;;  %v6328_v35 = vadd.f32 %v18230_v47, %v6258_v40  ;;  %v6330_v53 = vadd.f32 %v18230_v47, %v6260_v8  ;;  %v6276_v10 = vmul.f32 %v18227_v15, %v16904_v31 }
 0x777   :  { %11722 = vmatprep.mubr.msk.f32.mxu0 %vm199_vm0, %v6378_v44  ;;  %v6253_v44 = vmul.f32 %v18227_v15, %v21237_v24  ;;  %v6385_v21 = vmax.f32 %v6321_v30, 0.0  ;;  %v6261_v30 = vmul.f32 %v18227_v15, %v16549_v41  ;;  %v6263_v24 = vmul.f32 %v18227_v15, %v16597_v51 }
 0x778   :  { %v6392_v19 = vmax.f32 %v6328_v35, 0.0  ;;  %v6264_v41 = vmul.f32 %v18227_v15, %v16611_v43  ;;  %v6266_v51 = vmul.f32 %v18227_v15, %v16659_v16  ;;  %v6337_v16 = vadd.f32 %v18230_v47, %v6267_v33 }
 0x779   :  { %v6323_v14 = vadd.f32 %v18230_v47, %v6253_v44  ;;  %v6331_v61 = vadd.f32 %v18230_v47, %v6261_v30  ;;  %v6333_v11 = vadd.f32 %v18230_v47, %v6263_v24  ;;  %v6346_v30 = vadd.f32 %v18230_v47, %v6276_v10 }
 0x77a   :  { %11723 = vmatmul.mubr.msk.f32.gmra.mrb[52].mxu0 %vm199_vm0, %v6379_v55  ;;  %v6386_v55 = vmax.f32 %v6322_v56, 0.0  ;;  %v6332_v56 = vadd.f32 %v18230_v47, %v6262_v45  ;;  %v6334_v37 = vadd.f32 %v18230_v47, %v6264_v41  ;;  %v6336_v34 = vadd.f32 %v18230_v47, %v6266_v51 }
 0x77b   :  { %11725 = vmatprep.mubr.msk.f32.mxu0 %vm199_vm0, %v6380_v13  ;;  %v6256_v13 = vmul.f32 %v18227_v15, %v21067_v39  ;;  %v6387_v18 = vmax.f32 %v6323_v14, 0.0  ;;  %v6327_v39 = vadd.f32 %v18230_v47, %v6257_v9  ;;  %v6395_v44 = vmax.f32 %v6331_v61, 0.0 }
 0x77c   :  { %v6396_v50 = vmax.f32 %v6332_v56, 0.0  ;;  %v6265_v14 = vmul.f32 %v18227_v15, %v16645_v63  ;;  %v6268_v63 = vmul.f32 %v18227_v15, %v16707_v32  ;;  %v6340_v9 = vadd.f32 %v18230_v47, %v6270_v62 }
 0x77d   :  { %v6326_v2 = vadd.f32 %v18230_v47, %v6256_v13  ;;  %v6391_v29 = vmax.f32 %v6327_v39, 0.0  ;;  %v6271_v39 = vmul.f32 %v18227_v15, %v16794_v28  ;;  %v6274_v28 = vmul.f32 %v18227_v15, %v16856_v59 }
 0x77e   :  { %11726 = vmatmul.mubr.msk.f32.gmra.mrb[54].mxu0 %vm199_vm0, %v6381_v38  ;;  %v6389_v38 = vmax.f32 %v6325_v36, 0.0  ;;  %v6335_v43 = vadd.f32 %v18230_v47, %v6265_v14  ;;  %v6338_v36 = vadd.f32 %v18230_v47, %v6268_v63  ;;  %v6277_v61 = vmul.f32 %v18227_v15, %v16938_v7 }
 0x77f   :  { %11728 = vmatprep.mubr.msk.f32.mxu0 %vm199_vm0, %v6382_v4  ;;  %v6390_v4 = vmax.f32 %v6326_v2, 0.0  ;;  %v6269_v2 = vmul.f32 %v18227_v15, %v16741_v17  ;;  %v6272_v17 = vmul.f32 %v18227_v15, %v16808_v60  ;;  %v6341_v23 = vadd.f32 %v18230_v47, %v6271_v39 }
 0x780   :  { %v6399_v13 = vmax.f32 %v6335_v43, 0.0  ;;  %v6402_v40 = vmax.f32 %v6338_v36, 0.0  ;;  %v6343_v60 = vadd.f32 %v18230_v47, %v6273_v49  ;;  %v6347_v31 = vadd.f32 %v18230_v47, %v6277_v61  ;;  %v21243_v49 = vld [vmem:[#allocation74_spill] sm:$0xff] }
 0x781   :  { %v6339_v32 = vadd.f32 %v18230_v47, %v6269_v2  ;;  %v6342_v35 = vadd.f32 %v18230_v47, %v6272_v17  ;;  %v6405_v8 = vmax.f32 %v6341_v23, 0.0  ;;  %v6279_v24 = vmul.f32 %v18227_v15, %v21141_v5 }
 0x782   :  { %11729 = vmatmul.mubr.msk.f32.gmra.mrb[56].mxu0 %vm199_vm0, %v6383_v0  ;;  %v6393_v0 = vmax.f32 %v6329_v26, 0.0  ;;  %v6344_v26 = vadd.f32 %v18230_v47, %v6274_v28  ;;  %v6280_v7 = vmul.f32 %v18227_v15, %v21145_v42  ;;  %v6411_v41 = vmax.f32 %v6347_v31, 0.0 }
 0x783   :  { %11731 = vmatprep.mubr.msk.f32.mxu0 %vm199_vm0, %v6384_v6  ;;  %v6394_v6 = vmax.f32 %v6330_v53, 0.0  ;;  %v6275_v53 = vmul.f32 %v18227_v15, %v16890_v48  ;;  %v6278_v48 = vmul.f32 %v18227_v15, %v16952_v58  ;;  %v6349_v58 = vadd.f32 %v18230_v47, %v6279_v24 }
 0x784   :  { %v6408_v45 = vmax.f32 %v6344_v26, 0.0  ;;  %v6282_v5 = vmul.f32 %v18227_v15, %v21153_v1  ;;  %v6283_v43 = vmul.f32 %v18227_v15, %v21157_v27  ;;  %v6285_v33 = vmul.f32 %v18227_v15, %v21168_v25 }
 0x785   :  { %v6345_v59 = vadd.f32 %v18230_v47, %v6275_v53  ;;  %v6348_v56 = vadd.f32 %v18230_v47, %v6278_v48  ;;  %v6286_v27 = vmul.f32 %v18227_v15, %v21172_v57  ;;  %v6287_v36 = vmul.f32 %v18227_v15, %v21176_v52  ;;  %v21244_v53 = vld [vmem:[#allocation73_spill] sm:$0xff] }
 0x786   :  { %11732 = vmatmul.mubr.msk.f32.gmra.mrb[58].mxu0 %vm199_vm0, %v6385_v21  ;;  %v6397_v21 = vmax.f32 %v6333_v11, 0.0  ;;  %v6350_v11 = vadd.f32 %v18230_v47, %v6280_v7  ;;  %v6352_v14 = vadd.f32 %v18230_v47, %v6282_v5  ;;  %v6353_v1 = vadd.f32 %v18230_v47, %v6283_v43  ;;  %v21249_v43 = vld [vmem:[#allocation77_spill] sm:$0xff] }
 0x787   :  { %11734 = vmatprep.mubr.msk.f32.mxu0 %vm199_vm0, %v6386_v55  ;;  %v6398_v55 = vmax.f32 %v6334_v37, 0.0  ;;  %v6281_v37 = vmul.f32 %v18227_v15, %v21149_v46  ;;  %v6284_v46 = vmul.f32 %v18227_v15, %v21161_v22  ;;  %v6355_v22 = vadd.f32 %v18230_v47, %v6285_v33 }
 0x788   :  { %v6414_v51 = vmax.f32 %v6350_v11, 0.0  ;;  %v6417_v63 = vmax.f32 %v6353_v1, 0.0  ;;  %v6357_v57 = vadd.f32 %v18230_v47, %v6287_v36  ;;  %v6292_v28 = vmul.f32 %v18227_v15, %v21243_v49  ;;  %v21250_v1 = vld [vmem:[#allocation80_spill] sm:$0xff]  ;;  %v21256_v49 = vld [vmem:[#allocation86_spill] sm:$0xff] }
 0x789   :  { %v6351_v42 = vadd.f32 %v18230_v47, %v6281_v37  ;;  %v6419_v2 = vmax.f32 %v6355_v22, 0.0  ;;  %v6293_v10 = vmul.f32 %v18227_v15, %v21244_v53  ;;  %v6295_v31 = vmul.f32 %v18227_v15, %v21208_v54  ;;  %v21257_v53 = vld [vmem:[#allocation85_spill] sm:$0xff] }
 0x78a   :  { %11735 = vmatmul.mubr.msk.f32.gmra.mrb[60].mxu0 %vm199_vm0, %v6387_v18  ;;  %v6400_v18 = vmax.f32 %v6336_v34, 0.0  ;;  %v6354_v34 = vadd.f32 %v18230_v47, %v6284_v46  ;;  %v6421_v17 = vmax.f32 %v6357_v57, 0.0  ;;  %v6362_v26 = vadd.f32 %v18230_v47, %v6292_v28 }
 0x78b   :  { %11737 = vmatprep.mubr.msk.f32.mxu0 %vm199_vm0, %v6388_v3  ;;  %v6401_v3 = vmax.f32 %v6337_v16, 0.0  ;;  %v6356_v16 = vadd.f32 %v18230_v47, %v6286_v27  ;;  %v6433_v46 = vmul.f32 %v18227_v15, %v21249_v43  ;;  %v6440_v28 = vmul.f32 %v18227_v15, %v21256_v49 }
 0x78c   :  { %v6426_v48 = vmax.f32 %v6362_v26, 0.0 }
 0x78d   :  { %v6504_v26 = vadd.f32 %v6440_v28, %v18230_v47 }
 0x78e   :  { %11738 = vmatmul.mubr.msk.f32.gmra.mrb[62].mxu0 %vm199_vm0, %v6389_v38  ;;  %v6403_v38 = vmax.f32 %v6339_v32, 0.0  ;;  %v6420_v32 = vmax.f32 %v6356_v16, 0.0  ;;  %v10269_v16 = vld [vmem:[%s19642_s13 + $0x68] sm:$0xff] }
 0x78f   :  { %11740 = vmatprep.mubr.msk.f32.mxu0 %vm199_vm0, %v6390_v4  ;;  %v6404_v4 = vmax.f32 %v6340_v9, 0.0 }
 0x792   :  { %11741 = vmatmul.mubr.msk.f32.gmra.mrb[64].mxu0 %vm199_vm0, %v6391_v29  ;;  %v6406_v29 = vmax.f32 %v6342_v35, 0.0  ;;  %v21242_v35 = vld [vmem:[#allocation29_spill] sm:$0xff] }
 0x793   :  { %11743 = vmatprep.mubr.msk.f32.mxu0 %vm199_vm0, %v6392_v19  ;;  %v6407_v19 = vmax.f32 %v6343_v60, 0.0 }
 0x796   :  { %11744 = vmatmul.mubr.msk.f32.gmra.mrb[66].mxu0 %vm199_vm0, %v6393_v0  ;;  %v6409_v0 = vmax.f32 %v6345_v59, 0.0  ;;  %v21245_v59 = vld [vmem:[#allocation75_spill] sm:$0xff] }
 0x797   :  { %11746 = vmatprep.mubr.msk.f32.mxu0 %vm199_vm0, %v6394_v6  ;;  %v6410_v6 = vmax.f32 %v6346_v30, 0.0  ;;  %v6363_v30 = vadd.f32 %v18230_v47, %v6293_v10  ;;  %v6441_v10 = vmul.f32 %v18227_v15, %v21257_v53 }
 0x799   :  { %v6427_v24 = vmax.f32 %v6363_v30, 0.0  ;;  %v6505_v30 = vadd.f32 %v6441_v10, %v18230_v47 }
 0x79a   :  { %11747 = vmatmul.mubr.msk.f32.gmra.mrb[68].mxu0 %vm199_vm0, %v6395_v44  ;;  %v6412_v44 = vmax.f32 %v6348_v56, 0.0 }
 0x79b   :  { %11749 = vmatprep.mubr.msk.f32.mxu0 %vm199_vm0, %v6396_v50  ;;  %v6413_v50 = vmax.f32 %v6349_v58, 0.0 }
 0x79e   :  { %11750 = vmatmul.mubr.msk.f32.gmra.mrb[70].mxu0 %vm199_vm0, %v6397_v21  ;;  %v6415_v21 = vmax.f32 %v6351_v42, 0.0 }
 0x79f   :  { %11752 = vmatprep.mubr.msk.f32.mxu0 %vm199_vm0, %v6398_v55  ;;  %v6416_v55 = vmax.f32 %v6352_v14, 0.0  ;;  %v10202_v14 = vld [vmem:[%s19642_s13 + $0x50] sm:$0xff] }
 0x7a2   :  { %11753 = vmatmul.mubr.msk.f32.gmra.mrb[72].mxu0 %vm199_vm0, %v6399_v13  ;;  %v6418_v13 = vmax.f32 %v6354_v34, 0.0  ;;  %v6497_v34 = vadd.f32 %v6433_v46, %v18230_v47  ;;  %v21264_v46 = vld [vmem:[#allocation93_spill] sm:$0xff] }
 0x7a3   :  { %11755 = vmatprep.mubr.msk.f32.mxu0 %vm199_vm0, %v6400_v18  ;;  %v21239_v18 = vld [vmem:[#allocation71_spill] sm:$0xff] }
 0x7a4   :  { %v6288_v25 = vmul.f32 %v18227_v15, %v21239_v18  ;;  %v21252_v18 = vld [vmem:[#allocation82_spill] sm:$0xff] }
 0x7a6   :  { %11756 = vmatmul.mubr.msk.f32.gmra.mrb[74].mxu0 %vm199_vm0, %v6401_v3  ;;  %v6358_v62 = vadd.f32 %v18230_v47, %v6288_v25  ;;  %v21240_v3 = vld [vmem:[#allocation70_spill] sm:$0xff]  ;;  %v6436_v25 = vmul.f32 %v18227_v15, %v21252_v18 }
 0x7a7   :  { %11758 = vmatprep.mubr.msk.f32.mxu0 %vm199_vm0, %v6402_v40  ;;  %v6289_v9 = vmul.f32 %v18227_v15, %v21240_v3  ;;  %v21241_v40 = vld [vmem:[#allocation72_spill] sm:$0xff] }
 0x7a8   :  { %v6290_v52 = vmul.f32 %v18227_v15, %v21241_v40 }
 0x7a9   :  { %v6359_v39 = vadd.f32 %v18230_v47, %v6289_v9  ;;  %v21253_v9 = vld [vmem:[#allocation81_spill] sm:$0xff] }
 0x7aa   :  { %11759 = vmatmul.mubr.msk.f32.gmra.mrb[76].mxu0 %vm199_vm0, %v6403_v38  ;;  %v6360_v23 = vadd.f32 %v18230_v47, %v6290_v52  ;;  %v6422_v38 = vmax.f32 %v6358_v62, 0.0  ;;  %v6437_v40 = vmul.f32 %v18227_v15, %v21253_v9  ;;  %v21254_v52 = vld [vmem:[#allocation84_spill] sm:$0xff] }
 0x7ab   :  { %11761 = vmatprep.mubr.msk.f32.mxu0 %vm199_vm0, %v6404_v4  ;;  %v6291_v4 = vmul.f32 %v18227_v15, %v21242_v35  ;;  %v21255_v35 = vld [vmem:[#allocation83_spill] sm:$0xff] }
 0x7ad   :  { %v6361_v60 = vadd.f32 %v18230_v47, %v6291_v4  ;;  %v6439_v4 = vmul.f32 %v18227_v15, %v21255_v35 }
 0x7ae   :  { %11762 = vmatmul.mubr.msk.f32.gmra.mrb[78].mxu0 %vm199_vm0, %v6405_v8  ;;  %v6423_v8 = vmax.f32 %v6359_v39, 0.0  ;;  %v6438_v39 = vmul.f32 %v18227_v15, %v21254_v52 }
 0x7af   :  { %11764 = vmatprep.mubr.msk.f32.mxu0 %vm199_vm0, %v6406_v29  ;;  %v6424_v29 = vmax.f32 %v6360_v23, 0.0 }
 0x7b0   :  { %v6502_v23 = vadd.f32 %v6438_v39, %v18230_v47 }
 0x7b2   :  { %11765 = vmatmul.mubr.msk.f32.gmra.mrb[80].mxu0 %vm199_vm0, %v6407_v19  ;;  %v6294_v19 = vmul.f32 %v18227_v15, %v21245_v59  ;;  %v21258_v59 = vld [vmem:[#allocation88_spill] sm:$0xff] }
 0x7b3   :  { %11767 = vmatprep.mubr.msk.f32.mxu0 %vm199_vm0, %v6408_v45  ;;  %v6425_v45 = vmax.f32 %v6361_v60, 0.0  ;;  %v6503_v60 = vadd.f32 %v6439_v4, %v18230_v47 }
 0x7b4   :  { %v6364_v61 = vadd.f32 %v18230_v47, %v6294_v19  ;;  %v6442_v19 = vmul.f32 %v18227_v15, %v21258_v59 }
 0x7b6   :  { %11768 = vmatmul.mubr.msk.f32.gmra.mrb[82].mxu0 %vm199_vm0, %v6409_v0  ;;  %v21246_v0 = vld [vmem:[#allocation76_spill] sm:$0xff]  ;;  %v6428_v58 = vmax.f32 %v6364_v61, 0.0  ;;  %v6506_v61 = vadd.f32 %v6442_v19, %v18230_v47 }
 0x7b7   :  { %11770 = vmatprep.mubr.msk.f32.mxu0 %vm199_vm0, %v6410_v6  ;;  %v6430_v56 = vmul.f32 %v18227_v15, %v21246_v0  ;;  %v6365_v6 = vadd.f32 %v18230_v47, %v6295_v31  ;;  %v21259_v31 = vld [vmem:[#allocation87_spill] sm:$0xff] }
 0x7b8   :  { %v6443_v0 = vmul.f32 %v18227_v15, %v21259_v31 }
 0x7b9   :  { %v6494_v7 = vadd.f32 %v6430_v56, %v18230_v47  ;;  %v6429_v5 = vmax.f32 %v6365_v6, 0.0  ;;  %v21260_v56 = vld [vmem:[#allocation90_spill] sm:$0xff] }
 0x7ba   :  { %11771 = vmatmul.mubr.msk.f32.gmra.mrb[84].mxu0 %vm199_vm0, %v6411_v41  ;;  %v21247_v41 = vld [vmem:[#allocation47_spill] sm:$0xff]  ;;  %v6444_v6 = vmul.f32 %v18227_v15, %v21260_v56 }
 0x7bb   :  { %11773 = vmatprep.mubr.msk.f32.mxu0 %vm199_vm0, %v6412_v44  ;;  %v6431_v11 = vmul.f32 %v18227_v15, %v21247_v41  ;;  %v21248_v44 = vld [vmem:[#allocation78_spill] sm:$0xff]  ;;  %v6570_v41 = vmax.f32 %v6506_v61, 0.0  ;;  %v21274_v61 = vld [vmem:[#allocation95_spill] sm:$0xff] }
 0x7bc   :  { %v6432_v54 = vmul.f32 %v18227_v15, %v21248_v44 }
 0x7bd   :  { %v6495_v37 = vadd.f32 %v6431_v11, %v18230_v47  ;;  %v21261_v11 = vld [vmem:[#allocation89_spill] sm:$0xff] }
 0x7be   :  { %11774 = vmatmul.mubr.msk.f32.gmra.mrb[86].mxu0 %vm199_vm0, %v6413_v50  ;;  %v6496_v42 = vadd.f32 %v6432_v54, %v18230_v47  ;;  %v6558_v50 = vmax.f32 %v6494_v7, 0.0  ;;  %v6569_v7 = vmax.f32 %v6505_v30, 0.0  ;;  %v6445_v44 = vmul.f32 %v18227_v15, %v21261_v11  ;;  %v21262_v54 = vld [vmem:[#allocation92_spill] sm:$0xff] }
 0x7bf   :  { %11776 = vmatprep.mubr.msk.f32.mxu0 %vm199_vm0, %v6414_v51  ;;  %v10203_v51 = vld [vmem:[%s19642_s13 + $0x58] sm:$0xff]  ;;  %v21273_v30 = vld [vmem:[#allocation220_spill] sm:$0xff] }
 0x7c0   :  { %v12388_v33 = vpack.c.bf16 %v10203_v51, %v10202_v14  ;;  %v6560_v22 = vmax.f32 %v6496_v42, 0.0  ;;  %v21263_v51 = vld [vmem:[#allocation91_spill] sm:$0xff] }
 0x7c1   :  { %v6447_v43 = vmul.f32 %v18227_v15, %v21263_v51 }
 0x7c2   :  { %11777 = vmatmul.mubr.msk.f32.gmra.mrb[88].mxu0 %vm199_vm0, %v6415_v21  ;;  %v6434_v21 = vmul.f32 %v18227_v15, %v21250_v1  ;;  %v6448_v1 = vmul.f32 %v18227_v15, %v21264_v46 }
 0x7c3   :  { %11779 = vmatprep.mubr.msk.f32.mxu0 %vm199_vm0, %v6416_v55  ;;  %v6559_v55 = vmax.f32 %v6495_v37, 0.0  ;;  %v6446_v37 = vmul.f32 %v18227_v15, %v21262_v54 }
 0x7c4   :  { %v6498_v27 = vadd.f32 %v6434_v21, %v18230_v47  ;;  %v6511_v21 = vadd.f32 %v6447_v43, %v18230_v47 }
 0x7c6   :  { %11780 = vmatmul.mubr.msk.f32.gmra.mrb[90].mxu0 %vm199_vm0, %v6417_v63  ;;  %v10268_v63 = vld [vmem:[%s19642_s13 + $0x60] sm:$0xff]  ;;  %v6562_v3 = vmax.f32 %v6498_v27, 0.0  ;;  %v21265_v27 = vld [vmem:[#allocation21_spill] sm:$0xff] }
 0x7c7   :  { %11782 = vmatprep.mubr.msk.f32.mxu0 %vm199_vm0, %v6418_v13  ;;  %v21251_v13 = vld [vmem:[#allocation79_spill] sm:$0xff]  ;;  %v18551_v62 = vpack.c.bf16 %v10269_v16, %v10268_v63  ;;  %v21266_v63 = vld [vmem:[#allocation200_spill] sm:$0xff] }
 0x7c8   :  { %v6435_v36 = vmul.f32 %v18227_v15, %v21251_v13  ;;  %v6450_v16 = vmul.f32 %v18227_v15, %v21266_v63 }
 0x7ca   :  { %11783 = vmatmul.mubr.msk.f32.gmra.mrb[92].mxu0 %vm199_vm0, %v6419_v2  ;;  %v6499_v57 = vadd.f32 %v6435_v36, %v18230_v47  ;;  %v6561_v2 = vmax.f32 %v6497_v34, 0.0  ;;  %v6575_v36 = vmax.f32 %v6511_v21, 0.0  ;;  %v6514_v18 = vadd.f32 %v6450_v16, %v18230_v47  ;;  %v21279_v21 = vld [vmem:[#allocation98_spill] sm:$0xff] }
 0x7cb   :  { %11785 = vmatprep.mubr.msk.f32.mxu0 %vm199_vm0, %v6420_v32  ;;  %v6500_v32 = vadd.f32 %v6436_v25, %v18230_v47 }
 0x7cc   :  { %v6578_v39 = vmax.f32 %v6514_v18, 0.0  ;;  %v21282_v18 = vld [vmem:[#allocation49_spill] sm:$0xff] }
 0x7ce   :  { %11786 = vmatmul.mubr.msk.f32.gmra.mrb[94].mxu0 %vm199_vm0, %v6421_v17  ;;  %v6563_v17 = vmax.f32 %v6499_v57, 0.0  ;;  %v21267_v57 = vld [vmem:[#allocation20_spill] sm:$0xff] }
 0x7cf   :  { %11788 = vmatprep.mubr.msk.f32.mxu0 %vm199_vm0, %v6422_v38  ;;  %v6564_v38 = vmax.f32 %v6500_v32, 0.0  ;;  %v21268_v32 = vld [vmem:[#allocation205_spill] sm:$0xff] }
 0x7d2   :  { %11789 = vmatmul.mubr.msk.f32.gmra.mrb[96].mxu0 %vm199_vm0, %v6423_v8 }
 0x7d3   :  { %11791 = vmatprep.mubr.msk.f32.mxu0 %vm199_vm0, %v6424_v29  ;;  %v6566_v29 = vmax.f32 %v6502_v23, 0.0  ;;  %v21270_v23 = vld [vmem:[#allocation23_spill] sm:$0xff] }
 0x7d6   :  { %11792 = vmatmul.mubr.msk.f32.gmra.mrb[98].mxu0 %vm199_vm0, %v6425_v45  ;;  %v6567_v45 = vmax.f32 %v6503_v60, 0.0  ;;  %v21271_v60 = vld [vmem:[#allocation214_spill] sm:$0xff] }
 0x7d7   :  { %11794 = vmatprep.mubr.msk.f32.mxu0 %vm199_vm0, %v6426_v48  ;;  %v6568_v48 = vmax.f32 %v6504_v26, 0.0  ;;  %v21272_v26 = vld [vmem:[#allocation215_spill] sm:$0xff] }
 0x7da   :  { %11795 = vmatmul.mubr.msk.f32.gmra.mrb[100].mxu0 %vm199_vm0, %v6427_v24  ;;  %v6507_v24 = vadd.f32 %v6443_v0, %v18230_v47 }
 0x7db   :  { %11797 = vmatprep.mubr.msk.f32.mxu0 %vm199_vm0, %v6428_v58  ;;  %v6508_v58 = vadd.f32 %v6444_v6, %v18230_v47 }
 0x7dc   :  { %v6571_v42 = vmax.f32 %v6507_v24, 0.0  ;;  %v21275_v24 = vld [vmem:[#allocation94_spill] sm:$0xff] }
 0x7dd   :  { %v6572_v14 = vmax.f32 %v6508_v58, 0.0  ;;  %v21276_v58 = vld [vmem:[#allocation36_spill] sm:$0xff] }
 0x7de   :  { %11798 = vmatmul.mubr.msk.f32.gmra.mrb[102].mxu0 %vm199_vm0, %v6429_v5  ;;  %v6509_v5 = vadd.f32 %v6445_v44, %v18230_v47 }
 0x7df   :  { %11808 = vmatprep.mubr.msk.f32.mxu0 %vm199_vm0, %v6558_v50  ;;  %v6510_v50 = vadd.f32 %v6446_v37, %v18230_v47 }
 0x7e0   :  { %v6573_v34 = vmax.f32 %v6509_v5, 0.0  ;;  %v21277_v5 = vld [vmem:[#allocation96_spill] sm:$0xff] }
 0x7e2   :  { %11809 = vmatmul.mubr.msk.f32.vlgmr.msra.gmra.mrb[40].mxu0 %vm199_vm0, %v6559_v55  ;;  %v6512_v55 = vadd.f32 %v6448_v1, %v18230_v47 }
 0x7e3   :  { %12387 = vmatpush3.bf16.msra.mxu0 %v18296_v12  ;;  %11811 = vmatprep.mubr.msk.f32.mxu0 %vm199_vm0, %v6560_v22  ;;  %v6501_v12 = vadd.f32 %v6437_v40, %v18230_v47  ;;  %v6449_v22 = vmul.f32 %v18227_v15, %v21265_v27 }
 0x7e4   :  { %12389 = vmatprep.subr.bf16.mxu0 %v12388_v33  ;;  %v6576_v25 = vmax.f32 %v6512_v55, 0.0  ;;  %v21280_v55 = vld [vmem:[#allocation44_spill] sm:$0xff] }
 0x7e5   :  { %v6565_v8 = vmax.f32 %v6501_v12, 0.0  ;;  %v6513_v13 = vadd.f32 %v6449_v22, %v18230_v47  ;;  %v21269_v12 = vld [vmem:[#allocation27_spill] sm:$0xff] }
 0x7e6   :  { %11812 = vmatmul.mubr.msk.f32.gmra.mrb[42].mxu0 %vm199_vm0, %v6561_v2  ;;  %v6451_v2 = vmul.f32 %v18227_v15, %v21267_v57 }
 0x7e7   :  { %11814 = vmatprep.mubr.msk.f32.mxu0 %vm199_vm0, %v6562_v3  ;;  %12391 = vmatpush3.bf16.msra.mxu0 %v12388_v33  ;;  %v6574_v33 = vmax.f32 %v6510_v50, 0.0  ;;  %v6452_v3 = vmul.f32 %v18227_v15, %v21268_v32  ;;  %v6577_v40 = vmax.f32 %v6513_v13, 0.0  ;;  %v21278_v50 = vld [vmem:[#allocation40_spill] sm:$0xff] }
 0x7e8   :  { %12393 = vmatprep.subr.bf16.mxu0 %v18551_v62  ;;  %v6515_v9 = vadd.f32 %v6451_v2, %v18230_v47  ;;  %v21281_v13 = vld [vmem:[#allocation100_spill] sm:$0xff] }
 0x7e9   :  { %v6516_v52 = vadd.f32 %v6452_v3, %v18230_v47 }
 0x7ea   :  { %11815 = vmatmul.mubr.msk.f32.gmra.mrb[44].mxu0 %vm199_vm0, %v6563_v17  ;;  %v6453_v17 = vmul.f32 %v18227_v15, %v21269_v12  ;;  %v6579_v4 = vmax.f32 %v6515_v9, 0.0  ;;  %v21283_v9 = vld [vmem:[#allocation102_spill] sm:$0xff] }
 0x7eb   :  { %11817 = vmatprep.mubr.msk.f32.mxu0 %vm199_vm0, %v6564_v38  ;;  %v6454_v38 = vmul.f32 %v18227_v15, %v21270_v23  ;;  %v6580_v28 = vmax.f32 %v6516_v52, 0.0  ;;  %v21284_v52 = vld [vmem:[#allocation51_spill] sm:$0xff] }
 0x7ec   :  { %v6517_v35 = vadd.f32 %v6453_v17, %v18230_v47 }
 0x7ed   :  { %v6518_v49 = vadd.f32 %v6454_v38, %v18230_v47 }
 0x7ee   :  { %11818 = vmatmul.mubr.msk.f32.gmra.mrb[46].mxu0 %vm199_vm0, %v6565_v8  ;;  %v6455_v8 = vmul.f32 %v18227_v15, %v21271_v60  ;;  %v6581_v10 = vmax.f32 %v6517_v35, 0.0  ;;  %v21285_v35 = vld [vmem:[#allocation104_spill] sm:$0xff] }
 0x7ef   :  { %11820 = vmatprep.mubr.msk.f32.mxu0 %vm199_vm0, %v6566_v29  ;;  %v6456_v29 = vmul.f32 %v18227_v15, %v21272_v26  ;;  %v6582_v19 = vmax.f32 %v6518_v49, 0.0  ;;  %v21286_v49 = vld [vmem:[#allocation53_spill] sm:$0xff] }
 0x7f0   :  { %v6519_v53 = vadd.f32 %v6455_v8, %v18230_v47 }
 0x7f1   :  { %v6520_v59 = vadd.f32 %v6456_v29, %v18230_v47 }
 0x7f2   :  { %11821 = vmatmul.mubr.msk.f32.gmra.mrb[48].mxu0 %vm199_vm0, %v6567_v45  ;;  %v6457_v45 = vmul.f32 %v18227_v15, %v21273_v30  ;;  %v6583_v0 = vmax.f32 %v6519_v53, 0.0  ;;  %v21287_v53 = vld [vmem:[#allocation106_spill] sm:$0xff] }
 0x7f3   :  { %11823 = vmatprep.mubr.msk.f32.mxu0 %vm199_vm0, %v6568_v48  ;;  %v6458_v48 = vmul.f32 %v18227_v15, %v21274_v61  ;;  %v6584_v6 = vmax.f32 %v6520_v59, 0.0  ;;  %v21288_v59 = vld [vmem:[#allocation28_spill] sm:$0xff] }
 0x7f4   :  { %v6521_v31 = vadd.f32 %v6457_v45, %v18230_v47 }
 0x7f5   :  { %v6522_v56 = vadd.f32 %v6458_v48, %v18230_v47 }
 0x7f6   :  { %11824 = vmatmul.mubr.msk.f32.gmra.mrb[50].mxu0 %vm199_vm0, %v6569_v7  ;;  %v6459_v7 = vmul.f32 %v18227_v15, %v21275_v24  ;;  %v6585_v44 = vmax.f32 %v6521_v31, 0.0  ;;  %v21289_v31 = vld [vmem:[#allocation108_spill] sm:$0xff] }
 0x7f7   :  { %11826 = vmatprep.mubr.msk.f32.mxu0 %vm199_vm0, %v6570_v41  ;;  %v6460_v41 = vmul.f32 %v18227_v15, %v21276_v58  ;;  %v6586_v37 = vmax.f32 %v6522_v56, 0.0  ;;  %v21290_v56 = vld [vmem:[#allocation56_spill] sm:$0xff] }
 0x7f8   :  { %v6523_v11 = vadd.f32 %v6459_v7, %v18230_v47 }
 0x7f9   :  { %v6524_v54 = vadd.f32 %v6460_v41, %v18230_v47 }
 0x7fa   :  { %11827 = vmatmul.mubr.msk.f32.gmra.mrb[52].mxu0 %vm199_vm0, %v6571_v42  ;;  %v6461_v42 = vmul.f32 %v18227_v15, %v21277_v5  ;;  %v6587_v43 = vmax.f32 %v6523_v11, 0.0  ;;  %v21291_v11 = vld [vmem:[#allocation110_spill] sm:$0xff] }
 0x7fb   :  { %11829 = vmatprep.mubr.msk.f32.mxu0 %vm199_vm0, %v6572_v14  ;;  %v6462_v14 = vmul.f32 %v18227_v15, %v21278_v50  ;;  %v6588_v1 = vmax.f32 %v6524_v54, 0.0  ;;  %v21292_v54 = vld [vmem:[#allocation58_spill] sm:$0xff] }
 0x7fc   :  { %v6525_v51 = vadd.f32 %v6461_v42, %v18230_v47 }
 0x7fd   :  { %v6526_v46 = vadd.f32 %v6462_v14, %v18230_v47 }
 0x7fe   :  { %11830 = vmatmul.mubr.msk.f32.gmra.mrb[54].mxu0 %vm199_vm0, %v6573_v34  ;;  %v6463_v34 = vmul.f32 %v18227_v15, %v21279_v21  ;;  %v6589_v22 = vmax.f32 %v6525_v51, 0.0  ;;  %v21293_v51 = vld [vmem:[#allocation112_spill] sm:$0xff] }
 0x7ff   :  { %11832 = vmatprep.mubr.msk.f32.mxu0 %vm199_vm0, %v6574_v33  ;;  %v6464_v33 = vmul.f32 %v18227_v15, %v21280_v55  ;;  %v6590_v16 = vmax.f32 %v6526_v46, 0.0  ;;  %v21294_v46 = vld [vmem:[#allocation115_spill] sm:$0xff] }
 0x800   :  { %v6527_v27 = vadd.f32 %v6463_v34, %v18230_v47 }
 0x801   :  { %v6528_v63 = vadd.f32 %v6464_v33, %v18230_v47 }
 0x802   :  { %11833 = vmatmul.mubr.msk.f32.gmra.mrb[56].mxu0 %vm199_vm0, %v6575_v36  ;;  %v6465_v36 = vmul.f32 %v18227_v15, %v21281_v13  ;;  %v6591_v2 = vmax.f32 %v6527_v27, 0.0  ;;  %v21295_v27 = vld [vmem:[#allocation114_spill] sm:$0xff] }
 0x803   :  { %11835 = vmatprep.mubr.msk.f32.mxu0 %vm199_vm0, %v6576_v25  ;;  %v6466_v25 = vmul.f32 %v18227_v15, %v21282_v18  ;;  %v6592_v3 = vmax.f32 %v6528_v63, 0.0  ;;  %v21296_v63 = vld [vmem:[#allocation117_spill] sm:$0xff] }
 0x804   :  { %v6529_v57 = vadd.f32 %v6465_v36, %v18230_v47 }
 0x805   :  { %v6530_v32 = vadd.f32 %v6466_v25, %v18230_v47 }
 0x806   :  { %11836 = vmatmul.mubr.msk.f32.gmra.mrb[58].mxu0 %vm199_vm0, %v6577_v40  ;;  %v6467_v40 = vmul.f32 %v18227_v15, %v21283_v9  ;;  %v6593_v17 = vmax.f32 %v6529_v57, 0.0  ;;  %v21297_v57 = vld [vmem:[#allocation116_spill] sm:$0xff] }
 0x807   :  { %11838 = vmatprep.mubr.msk.f32.mxu0 %vm199_vm0, %v6578_v39  ;;  %v6468_v39 = vmul.f32 %v18227_v15, %v21284_v52  ;;  %v6594_v38 = vmax.f32 %v6530_v32, 0.0  ;;  %v21298_v32 = vld [vmem:[#allocation119_spill] sm:$0xff] }
 0x808   :  { %v6531_v12 = vadd.f32 %v6467_v40, %v18230_v47 }
 0x809   :  { %v6532_v23 = vadd.f32 %v6468_v39, %v18230_v47 }
 0x80a   :  { %11839 = vmatmul.mubr.msk.f32.gmra.mrb[60].mxu0 %vm199_vm0, %v6579_v4  ;;  %v6469_v4 = vmul.f32 %v18227_v15, %v21285_v35  ;;  %v6595_v8 = vmax.f32 %v6531_v12, 0.0  ;;  %v21299_v12 = vld [vmem:[#allocation118_spill] sm:$0xff] }
 0x80b   :  { %11841 = vmatprep.mubr.msk.f32.mxu0 %vm199_vm0, %v6580_v28  ;;  %v6470_v28 = vmul.f32 %v18227_v15, %v21286_v49  ;;  %v6596_v29 = vmax.f32 %v6532_v23, 0.0  ;;  %v21300_v23 = vld [vmem:[#allocation121_spill] sm:$0xff] }
 0x80c   :  { %v6533_v60 = vadd.f32 %v6469_v4, %v18230_v47 }
 0x80d   :  { %v6534_v26 = vadd.f32 %v6470_v28, %v18230_v47 }
 0x80e   :  { %11842 = vmatmul.mubr.msk.f32.gmra.mrb[62].mxu0 %vm199_vm0, %v6581_v10  ;;  %v6471_v10 = vmul.f32 %v18227_v15, %v21287_v53  ;;  %v6597_v45 = vmax.f32 %v6533_v60, 0.0  ;;  %v21301_v60 = vld [vmem:[#allocation120_spill] sm:$0xff] }
 0x80f   :  { %11844 = vmatprep.mubr.msk.f32.mxu0 %vm199_vm0, %v6582_v19  ;;  %v6472_v19 = vmul.f32 %v18227_v15, %v21288_v59  ;;  %v6598_v48 = vmax.f32 %v6534_v26, 0.0  ;;  %v21302_v26 = vld [vmem:[#allocation123_spill] sm:$0xff] }
 0x810   :  { %v6535_v30 = vadd.f32 %v6471_v10, %v18230_v47 }
 0x811   :  { %v6536_v61 = vadd.f32 %v6472_v19, %v18230_v47 }
 0x812   :  { %11845 = vmatmul.mubr.msk.f32.gmra.mrb[64].mxu0 %vm199_vm0, %v6583_v0  ;;  %v6473_v0 = vmul.f32 %v18227_v15, %v21289_v31  ;;  %v6599_v7 = vmax.f32 %v6535_v30, 0.0  ;;  %v21303_v30 = vld [vmem:[#allocation122_spill] sm:$0xff] }
 0x813   :  { %11847 = vmatprep.mubr.msk.f32.mxu0 %vm199_vm0, %v6584_v6  ;;  %v6474_v6 = vmul.f32 %v18227_v15, %v21290_v56  ;;  %v6600_v41 = vmax.f32 %v6536_v61, 0.0  ;;  %v21304_v61 = vld [vmem:[#allocation124_spill] sm:$0xff] }
 0x814   :  { %v6537_v24 = vadd.f32 %v6473_v0, %v18230_v47 }
 0x815   :  { %v6538_v58 = vadd.f32 %v6474_v6, %v18230_v47 }
 0x816   :  { %11848 = vmatmul.mubr.msk.f32.gmra.mrb[66].mxu0 %vm199_vm0, %v6585_v44  ;;  %v6475_v44 = vmul.f32 %v18227_v15, %v21291_v11  ;;  %v6601_v42 = vmax.f32 %v6537_v24, 0.0  ;;  %v21305_v24 = vld [vmem:[#allocation35_spill] sm:$0xff] }
 0x817   :  { %11850 = vmatprep.mubr.msk.f32.mxu0 %vm199_vm0, %v6586_v37  ;;  %v6476_v37 = vmul.f32 %v18227_v15, %v21292_v54  ;;  %v6602_v14 = vmax.f32 %v6538_v58, 0.0  ;;  %v21306_v58 = vld [vmem:[#allocation125_spill] sm:$0xff] }
 0x818   :  { %v6539_v5 = vadd.f32 %v6475_v44, %v18230_v47 }
 0x819   :  { %v6540_v50 = vadd.f32 %v6476_v37, %v18230_v47 }
 0x81a   :  { %11851 = vmatmul.mubr.msk.f32.gmra.mrb[68].mxu0 %vm199_vm0, %v6587_v43  ;;  %v6477_v43 = vmul.f32 %v18227_v15, %v21293_v51  ;;  %v6603_v34 = vmax.f32 %v6539_v5, 0.0  ;;  %v21307_v5 = vld [vmem:[#allocation33_spill] sm:$0xff] }
 0x81b   :  { %11853 = vmatprep.mubr.msk.f32.mxu0 %vm199_vm0, %v6588_v1  ;;  %v6478_v1 = vmul.f32 %v18227_v15, %v21294_v46  ;;  %v6604_v33 = vmax.f32 %v6540_v50, 0.0  ;;  %v21308_v50 = vld [vmem:[#allocation127_spill] sm:$0xff] }
 0x81c   :  { %v6541_v21 = vadd.f32 %v6477_v43, %v18230_v47 }
 0x81d   :  { %v6542_v55 = vadd.f32 %v6478_v1, %v18230_v47 }
 0x81e   :  { %11854 = vmatmul.mubr.msk.f32.gmra.mrb[70].mxu0 %vm199_vm0, %v6589_v22  ;;  %v6479_v22 = vmul.f32 %v18227_v15, %v21295_v27  ;;  %v6605_v36 = vmax.f32 %v6541_v21, 0.0  ;;  %v21309_v21 = vld [vmem:[#allocation126_spill] sm:$0xff] }
 0x81f   :  { %11856 = vmatprep.mubr.msk.f32.mxu0 %vm199_vm0, %v6590_v16  ;;  %v6480_v16 = vmul.f32 %v18227_v15, %v21296_v63  ;;  %v6606_v25 = vmax.f32 %v6542_v55, 0.0  ;;  %v21310_v55 = vld [vmem:[#allocation163_spill] sm:$0xff] }
 0x820   :  { %v6543_v13 = vadd.f32 %v6479_v22, %v18230_v47 }
 0x821   :  { %v6544_v18 = vadd.f32 %v6480_v16, %v18230_v47 }
 0x822   :  { %11857 = vmatmul.mubr.msk.f32.gmra.mrb[72].mxu0 %vm199_vm0, %v6591_v2  ;;  %v6481_v2 = vmul.f32 %v18227_v15, %v21297_v57  ;;  %v6607_v40 = vmax.f32 %v6543_v13, 0.0  ;;  %v21311_v13 = vld [vmem:[#allocation162_spill] sm:$0xff] }
 0x823   :  { %11859 = vmatprep.mubr.msk.f32.mxu0 %vm199_vm0, %v6592_v3  ;;  %v6482_v3 = vmul.f32 %v18227_v15, %v21298_v32  ;;  %v6608_v39 = vmax.f32 %v6544_v18, 0.0  ;;  %v21312_v18 = vld [vmem:[#allocation164_spill] sm:$0xff] }
 0x824   :  { %v6545_v9 = vadd.f32 %v6481_v2, %v18230_v47 }
 0x825   :  { %v6546_v52 = vadd.f32 %v6482_v3, %v18230_v47 }
 0x826   :  { %11860 = vmatmul.mubr.msk.f32.gmra.mrb[74].mxu0 %vm199_vm0, %v6593_v17  ;;  %v6483_v17 = vmul.f32 %v18227_v15, %v21299_v12  ;;  %v6609_v4 = vmax.f32 %v6545_v9, 0.0  ;;  %v10270_v9 = vld [vmem:[%s19642_s13 + $0x70] sm:$0xff]  ;;  %v21314_v12 = vld [vmem:[#allocation169_spill] sm:$0xff] }
 0x827   :  { %11862 = vmatprep.mubr.msk.f32.mxu0 %vm199_vm0, %v6594_v38  ;;  %v6484_v38 = vmul.f32 %v18227_v15, %v21300_v23  ;;  %v6610_v28 = vmax.f32 %v6546_v52, 0.0  ;;  %v21313_v52 = vld [vmem:[#allocation168_spill] sm:$0xff] }
 0x828   :  { %v6547_v35 = vadd.f32 %v6483_v17, %v18230_v47  ;;  %v6626_v17 = vmul.f32 %v18227_v15, %v21314_v12 }
 0x829   :  { %v6548_v49 = vadd.f32 %v6484_v38, %v18230_v47 }
 0x82a   :  { %11863 = vmatmul.mubr.msk.f32.gmra.mrb[76].mxu0 %vm199_vm0, %v6595_v8  ;;  %v6485_v8 = vmul.f32 %v18227_v15, %v21301_v60  ;;  %v6611_v10 = vmax.f32 %v6547_v35, 0.0 }
 0x82b   :  { %11865 = vmatprep.mubr.msk.f32.mxu0 %vm199_vm0, %v6596_v29  ;;  %v6486_v29 = vmul.f32 %v18227_v15, %v21302_v26  ;;  %v6612_v19 = vmax.f32 %v6548_v49, 0.0 }
 0x82c   :  { %v6549_v53 = vadd.f32 %v6485_v8, %v18230_v47  ;;  %v21316_v8 = vld [vmem:[#allocation173_spill] sm:$0xff] }
 0x82d   :  { %v6550_v59 = vadd.f32 %v6486_v29, %v18230_v47  ;;  %v6628_v26 = vmul.f32 %v18227_v15, %v21316_v8 }
 0x82e   :  { %11866 = vmatmul.mubr.msk.f32.gmra.mrb[78].mxu0 %vm199_vm0, %v6597_v45  ;;  %v6487_v45 = vmul.f32 %v18227_v15, %v21303_v30  ;;  %v6613_v0 = vmax.f32 %v6549_v53, 0.0 }
 0x82f   :  { %11868 = vmatprep.mubr.msk.f32.mxu0 %vm199_vm0, %v6598_v48  ;;  %v6488_v48 = vmul.f32 %v18227_v15, %v21304_v61  ;;  %v6614_v6 = vmax.f32 %v6550_v59, 0.0 }
 0x830   :  { %v6551_v31 = vadd.f32 %v6487_v45, %v18230_v47  ;;  %v21318_v45 = vld [vmem:[#allocation177_spill] sm:$0xff] }
 0x831   :  { %v6552_v56 = vadd.f32 %v6488_v48, %v18230_v47  ;;  %v6630_v61 = vmul.f32 %v18227_v15, %v21318_v45 }
 0x832   :  { %11869 = vmatmul.mubr.msk.f32.gmra.mrb[80].mxu0 %vm199_vm0, %v6599_v7  ;;  %v6489_v7 = vmul.f32 %v18227_v15, %v21305_v24  ;;  %v6615_v44 = vmax.f32 %v6551_v31, 0.0  ;;  %v21320_v24 = vld [vmem:[#allocation181_spill] sm:$0xff] }
 0x833   :  { %11871 = vmatprep.mubr.msk.f32.mxu0 %vm199_vm0, %v6600_v41  ;;  %v6490_v41 = vmul.f32 %v18227_v15, %v21306_v58  ;;  %v6616_v37 = vmax.f32 %v6552_v56, 0.0  ;;  %v6694_v31 = vadd.f32 %v6630_v61, %v18230_v47  ;;  %v21319_v56 = vld [vmem:[#allocation180_spill] sm:$0xff]  ;;  %v21333_v61 = vld [vmem:[#allocation210_spill] sm:$0xff] }
 0x834   :  { %v6553_v11 = vadd.f32 %v6489_v7, %v18230_v47  ;;  %v6632_v7 = vmul.f32 %v18227_v15, %v21320_v24 }
 0x835   :  { %v6554_v54 = vadd.f32 %v6490_v41, %v18230_v47 }
 0x836   :  { %11872 = vmatmul.mubr.msk.f32.gmra.mrb[82].mxu0 %vm199_vm0, %v6601_v42  ;;  %v6491_v42 = vmul.f32 %v18227_v15, %v21307_v5  ;;  %v6617_v43 = vmax.f32 %v6553_v11, 0.0  ;;  %v6696_v11 = vadd.f32 %v6632_v7, %v18230_v47  ;;  %v21322_v5 = vld [vmem:[#allocation185_spill] sm:$0xff]  ;;  %v21335_v7 = vld [vmem:[#allocation216_spill] sm:$0xff] }
 0x837   :  { %11874 = vmatprep.mubr.msk.f32.mxu0 %vm199_vm0, %v6602_v14  ;;  %v6492_v14 = vmul.f32 %v18227_v15, %v21308_v50  ;;  %v6618_v1 = vmax.f32 %v6554_v54, 0.0  ;;  %v21321_v54 = vld [vmem:[#allocation184_spill] sm:$0xff] }
 0x838   :  { %v6555_v51 = vadd.f32 %v6491_v42, %v18230_v47  ;;  %v6634_v42 = vmul.f32 %v18227_v15, %v21322_v5 }
 0x839   :  { %v6556_v46 = vadd.f32 %v6492_v14, %v18230_v47 }
 0x83a   :  { %11875 = vmatmul.mubr.msk.f32.gmra.mrb[84].mxu0 %vm199_vm0, %v6603_v34  ;;  %v6493_v34 = vmul.f32 %v18227_v15, %v21309_v21  ;;  %v6619_v22 = vmax.f32 %v6555_v51, 0.0  ;;  %v6698_v51 = vadd.f32 %v6634_v42, %v18230_v47  ;;  %v21324_v21 = vld [vmem:[#allocation189_spill] sm:$0xff]  ;;  %v21337_v42 = vld [vmem:[#allocation24_spill] sm:$0xff] }
 0x83b   :  { %11877 = vmatprep.mubr.msk.f32.mxu0 %vm199_vm0, %v6604_v33  ;;  %v6622_v33 = vmul.f32 %v18227_v15, %v21310_v55  ;;  %v6620_v16 = vmax.f32 %v6556_v46, 0.0  ;;  %v21323_v46 = vld [vmem:[#allocation188_spill] sm:$0xff] }
 0x83c   :  { %v6557_v27 = vadd.f32 %v6493_v34, %v18230_v47  ;;  %v6636_v34 = vmul.f32 %v18227_v15, %v21324_v21 }
 0x83d   :  { %v6686_v63 = vadd.f32 %v6622_v33, %v18230_v47 }
 0x83e   :  { %11878 = vmatmul.mubr.msk.f32.gmra.mrb[86].mxu0 %vm199_vm0, %v6605_v36  ;;  %v6623_v36 = vmul.f32 %v18227_v15, %v21311_v13  ;;  %v6621_v2 = vmax.f32 %v6557_v27, 0.0  ;;  %v6700_v27 = vadd.f32 %v6636_v34, %v18230_v47  ;;  %v21326_v13 = vld [vmem:[#allocation193_spill] sm:$0xff] }
 0x83f   :  { %11880 = vmatprep.mubr.msk.f32.mxu0 %vm199_vm0, %v6606_v25  ;;  %v6624_v25 = vmul.f32 %v18227_v15, %v21312_v18  ;;  %v6750_v3 = vmax.f32 %v6686_v63, 0.0  ;;  %v21325_v63 = vld [vmem:[#allocation192_spill] sm:$0xff]  ;;  %v21339_v34 = vld [vmem:[#allocation97_spill] sm:$0xff] }
 0x840   :  { %v6687_v57 = vadd.f32 %v6623_v36, %v18230_v47  ;;  %v6638_v36 = vmul.f32 %v18227_v15, %v21326_v13 }
 0x841   :  { %v6688_v32 = vadd.f32 %v6624_v25, %v18230_v47 }
 0x842   :  { %11881 = vmatmul.mubr.msk.f32.gmra.mrb[88].mxu0 %vm199_vm0, %v6607_v40  ;;  %v10271_v40 = vld [vmem:[%s19642_s13 + $0x78] sm:$0xff]  ;;  %v6751_v38 = vmax.f32 %v6687_v57, 0.0  ;;  %v6702_v57 = vadd.f32 %v6638_v36, %v18230_v47  ;;  %v21341_v36 = vld [vmem:[#allocation99_spill] sm:$0xff] }
 0x843   :  { %11883 = vmatprep.mubr.msk.f32.mxu0 %vm199_vm0, %v6608_v39  ;;  %v6625_v39 = vmul.f32 %v18227_v15, %v21313_v52  ;;  %v12396_v35 = vpack.c.bf16 %v10271_v40, %v10270_v9  ;;  %v6752_v49 = vmax.f32 %v6688_v32, 0.0  ;;  %v21327_v32 = vld [vmem:[#allocation196_spill] sm:$0xff]  ;;  %v21328_v9 = vld [vmem:[#allocation197_spill] sm:$0xff] }
 0x844   :  { %v6640_v40 = vmul.f32 %v18227_v15, %v21328_v9 }
 0x845   :  { %v6689_v23 = vadd.f32 %v6625_v39, %v18230_v47 }
 0x846   :  { %11884 = vmatmul.mubr.msk.f32.gmra.mrb[90].mxu0 %vm199_vm0, %v6609_v4  ;;  %v6690_v4 = vadd.f32 %v6626_v17, %v18230_v47  ;;  %v6704_v12 = vadd.f32 %v6640_v40, %v18230_v47  ;;  %v6766_v17 = vmax.f32 %v6702_v57, 0.0  ;;  %v21343_v40 = vld [vmem:[#allocation101_spill] sm:$0xff] }
 0x847   :  { %11886 = vmatprep.mubr.msk.f32.mxu0 %vm199_vm0, %v6610_v28  ;;  %v21315_v28 = vld [vmem:[#allocation172_spill] sm:$0xff]  ;;  %v6753_v53 = vmax.f32 %v6689_v23, 0.0  ;;  %v21329_v23 = vld [vmem:[#allocation201_spill] sm:$0xff] }
 0x848   :  { %v6627_v60 = vmul.f32 %v18227_v15, %v21315_v28  ;;  %v6754_v59 = vmax.f32 %v6690_v4, 0.0  ;;  %v6768_v8 = vmax.f32 %v6704_v12, 0.0 }
 0x84a   :  { %11887 = vmatmul.mubr.msk.f32.gmra.mrb[92].mxu0 %vm199_vm0, %v6611_v10  ;;  %v6691_v29 = vadd.f32 %v6627_v60, %v18230_v47  ;;  %v6692_v10 = vadd.f32 %v6628_v26, %v18230_v47  ;;  %v21331_v26 = vld [vmem:[#allocation206_spill] sm:$0xff] }
 0x84b   :  { %11889 = vmatprep.mubr.msk.f32.mxu0 %vm199_vm0, %v6612_v19  ;;  %v21317_v19 = vld [vmem:[#allocation176_spill] sm:$0xff] }
 0x84c   :  { %v6629_v30 = vmul.f32 %v18227_v15, %v21317_v19  ;;  %v6755_v48 = vmax.f32 %v6691_v29, 0.0  ;;  %v6643_v29 = vmul.f32 %v18227_v15, %v21331_v26 }
 0x84e   :  { %11890 = vmatmul.mubr.msk.f32.gmra.mrb[94].mxu0 %vm199_vm0, %v6613_v0  ;;  %v6756_v0 = vmax.f32 %v6692_v10, 0.0 }
 0x84f   :  { %11892 = vmatprep.mubr.msk.f32.mxu0 %vm199_vm0, %v6614_v6  ;;  %v6631_v6 = vmul.f32 %v18227_v15, %v21319_v56 }
 0x851   :  { %v6695_v58 = vadd.f32 %v6631_v6, %v18230_v47 }
 0x852   :  { %11893 = vmatmul.mubr.msk.f32.gmra.mrb[96].mxu0 %vm199_vm0, %v6615_v44  ;;  %v6758_v44 = vmax.f32 %v6694_v31, 0.0 }
 0x853   :  { %11895 = vmatprep.mubr.msk.f32.mxu0 %vm199_vm0, %v6616_v37  ;;  %v6633_v37 = vmul.f32 %v18227_v15, %v21321_v54  ;;  %v6759_v14 = vmax.f32 %v6695_v58, 0.0  ;;  %v6647_v58 = vmul.f32 %v18227_v15, %v21335_v7 }
 0x855   :  { %v6697_v50 = vadd.f32 %v6633_v37, %v18230_v47 }
 0x856   :  { %11896 = vmatmul.mubr.msk.f32.gmra.mrb[98].mxu0 %vm199_vm0, %v6617_v43  ;;  %v6760_v43 = vmax.f32 %v6696_v11, 0.0 }
 0x857   :  { %11898 = vmatprep.mubr.msk.f32.mxu0 %vm199_vm0, %v6618_v1  ;;  %v6635_v1 = vmul.f32 %v18227_v15, %v21323_v46  ;;  %v6761_v33 = vmax.f32 %v6697_v50, 0.0  ;;  %v6649_v50 = vmul.f32 %v18227_v15, %v21337_v42 }
 0x859   :  { %v6699_v55 = vadd.f32 %v6635_v1, %v18230_v47 }
 0x85a   :  { %11899 = vmatmul.mubr.msk.f32.gmra.mrb[100].mxu0 %vm199_vm0, %v6619_v22  ;;  %v6762_v22 = vmax.f32 %v6698_v51, 0.0 }
 0x85b   :  { %11901 = vmatprep.mubr.msk.f32.mxu0 %vm199_vm0, %v6620_v16  ;;  %v6637_v16 = vmul.f32 %v18227_v15, %v21325_v63  ;;  %v6763_v25 = vmax.f32 %v6699_v55, 0.0  ;;  %v6651_v55 = vmul.f32 %v18227_v15, %v21339_v34 }
 0x85d   :  { %v6701_v18 = vadd.f32 %v6637_v16, %v18230_v47 }
 0x85e   :  { %11902 = vmatmul.mubr.msk.f32.gmra.mrb[102].mxu0 %vm199_vm0, %v6621_v2  ;;  %v6764_v2 = vmax.f32 %v6700_v27, 0.0 }
 0x85f   :  { %11912 = vmatprep.mubr.msk.f32.mxu0 %vm199_vm0, %v6750_v3  ;;  %v6639_v3 = vmul.f32 %v18227_v15, %v21327_v32  ;;  %v6765_v39 = vmax.f32 %v6701_v18, 0.0  ;;  %v6653_v18 = vmul.f32 %v18227_v15, %v21341_v36 }
 0x861   :  { %v6703_v52 = vadd.f32 %v6639_v3, %v18230_v47 }
 0x862   :  { %11913 = vmatmul.mubr.msk.f32.vlgmr.msra.gmra.mrb[40].mxu0 %vm199_vm0, %v6751_v38  ;;  %v6641_v38 = vmul.f32 %v18227_v15, %v21329_v23 }
 0x863   :  { %12395 = vmatpush3.bf16.msra.mxu0 %v18551_v62  ;;  %11915 = vmatprep.mubr.msk.f32.mxu0 %vm199_vm0, %v6752_v49  ;;  %v6693_v62 = vadd.f32 %v6629_v30, %v18230_v47  ;;  %v6767_v28 = vmax.f32 %v6703_v52, 0.0  ;;  %v6655_v52 = vmul.f32 %v18227_v15, %v21343_v40 }
 0x864   :  { %12397 = vmatprep.subr.bf16.mxu0 %v12396_v35  ;;  %v6705_v49 = vadd.f32 %v6641_v38, %v18230_v47 }
 0x865   :  { %v6757_v41 = vmax.f32 %v6693_v62, 0.0  ;;  %v6645_v62 = vmul.f32 %v18227_v15, %v21333_v61 }
 0x866   :  { %11916 = vmatmul.mubr.msk.f32.gmra.mrb[42].mxu0 %vm199_vm0, %v6753_v53  ;;  %v21332_v53 = vld [vmem:[#allocation207_spill] sm:$0xff]  ;;  %v6769_v19 = vmax.f32 %v6705_v49, 0.0 }
 0x867   :  { %11918 = vmatprep.mubr.msk.f32.mxu0 %vm199_vm0, %v6754_v59  ;;  %12399 = vmatpush3.bf16.msra.mxu0 %v12396_v35  ;;  %v21330_v35 = vld [vmem:[#allocation202_spill] sm:$0xff]  ;;  %v6644_v10 = vmul.f32 %v18227_v15, %v21332_v53  ;;  %v6707_v59 = vadd.f32 %v6643_v29, %v18230_v47 }
 0x868   :  { %v6642_v4 = vmul.f32 %v18227_v15, %v21330_v35 }
 0x869   :  { %v6708_v30 = vadd.f32 %v6644_v10, %v18230_v47  ;;  %v6771_v56 = vmax.f32 %v6707_v59, 0.0  ;;  %v21347_v10 = vld [vmem:[#allocation105_spill] sm:$0xff] }
 0x86a   :  { %11919 = vmatmul.mubr.msk.f32.gmra.mrb[44].mxu0 %vm199_vm0, %v6755_v48  ;;  %v6706_v60 = vadd.f32 %v6642_v4, %v18230_v47  ;;  %v21334_v48 = vld [vmem:[#allocation211_spill] sm:$0xff]  ;;  %v6659_v59 = vmul.f32 %v18227_v15, %v21347_v10 }
 0x86b   :  { %11921 = vmatprep.mubr.msk.f32.mxu0 %vm199_vm0, %v6756_v0  ;;  %v6646_v31 = vmul.f32 %v18227_v15, %v21334_v48  ;;  %v6709_v0 = vadd.f32 %v6645_v62, %v18230_v47  ;;  %v6772_v24 = vmax.f32 %v6708_v30, 0.0  ;;  %v21345_v4 = vld [vmem:[#allocation103_spill] sm:$0xff] }
 0x86c   :  { %v6770_v45 = vmax.f32 %v6706_v60, 0.0  ;;  %v6657_v49 = vmul.f32 %v18227_v15, %v21345_v4 }
 0x86d   :  { %v6710_v6 = vadd.f32 %v6646_v31, %v18230_v47  ;;  %v6773_v54 = vmax.f32 %v6709_v0, 0.0  ;;  %v21349_v31 = vld [vmem:[#allocation107_spill] sm:$0xff] }
 0x86e   :  { %11922 = vmatmul.mubr.msk.f32.gmra.mrb[46].mxu0 %vm199_vm0, %v6757_v41  ;;  %v21336_v41 = vld [vmem:[#allocation217_spill] sm:$0xff]  ;;  %v6661_v0 = vmul.f32 %v18227_v15, %v21349_v31 }
 0x86f   :  { %11924 = vmatprep.mubr.msk.f32.mxu0 %vm199_vm0, %v6758_v44  ;;  %v6648_v11 = vmul.f32 %v18227_v15, %v21336_v41  ;;  %v6711_v44 = vadd.f32 %v6647_v58, %v18230_v47  ;;  %v6774_v5 = vmax.f32 %v6710_v6, 0.0 }
 0x871   :  { %v6712_v37 = vadd.f32 %v6648_v11, %v18230_v47  ;;  %v6775_v46 = vmax.f32 %v6711_v44, 0.0  ;;  %v21351_v11 = vld [vmem:[#allocation109_spill] sm:$0xff] }
 0x872   :  { %11925 = vmatmul.mubr.msk.f32.gmra.mrb[48].mxu0 %vm199_vm0, %v6759_v14  ;;  %v21338_v14 = vld [vmem:[#allocation17_spill] sm:$0xff]  ;;  %v6663_v44 = vmul.f32 %v18227_v15, %v21351_v11 }
 0x873   :  { %11927 = vmatprep.mubr.msk.f32.mxu0 %vm199_vm0, %v6760_v43  ;;  %v6650_v51 = vmul.f32 %v18227_v15, %v21338_v14  ;;  %v6713_v43 = vadd.f32 %v6649_v50, %v18230_v47  ;;  %v6776_v21 = vmax.f32 %v6712_v37, 0.0 }
 0x875   :  { %v6714_v1 = vadd.f32 %v6650_v51, %v18230_v47  ;;  %v6777_v63 = vmax.f32 %v6713_v43, 0.0  ;;  %v21353_v51 = vld [vmem:[#allocation111_spill] sm:$0xff] }
 0x876   :  { %11928 = vmatmul.mubr.msk.f32.gmra.mrb[50].mxu0 %vm199_vm0, %v6761_v33  ;;  %v21340_v33 = vld [vmem:[#allocation19_spill] sm:$0xff]  ;;  %v6665_v43 = vmul.f32 %v18227_v15, %v21353_v51 }
 0x877   :  { %11930 = vmatprep.mubr.msk.f32.mxu0 %vm199_vm0, %v6762_v22  ;;  %v6652_v27 = vmul.f32 %v18227_v15, %v21340_v33  ;;  %v6715_v22 = vadd.f32 %v6651_v55, %v18230_v47  ;;  %v6778_v13 = vmax.f32 %v6714_v1, 0.0 }
 0x879   :  { %v6716_v16 = vadd.f32 %v6652_v27, %v18230_v47  ;;  %v6779_v32 = vmax.f32 %v6715_v22, 0.0  ;;  %v21355_v27 = vld [vmem:[#allocation113_spill] sm:$0xff] }
 0x87a   :  { %11931 = vmatmul.mubr.msk.f32.gmra.mrb[52].mxu0 %vm199_vm0, %v6763_v25  ;;  %v21342_v25 = vld [vmem:[#allocation128_spill] sm:$0xff]  ;;  %v6667_v22 = vmul.f32 %v18227_v15, %v21355_v27 }
 0x87b   :  { %11933 = vmatprep.mubr.msk.f32.mxu0 %vm199_vm0, %v6764_v2  ;;  %v6654_v57 = vmul.f32 %v18227_v15, %v21342_v25  ;;  %v6717_v2 = vadd.f32 %v6653_v18, %v18230_v47  ;;  %v6780_v9 = vmax.f32 %v6716_v16, 0.0 }
 0x87d   :  { %v6718_v3 = vadd.f32 %v6654_v57, %v18230_v47  ;;  %v6781_v23 = vmax.f32 %v6717_v2, 0.0  ;;  %v21357_v57 = vld [vmem:[#allocation144_spill] sm:$0xff] }
 0x87e   :  { %11934 = vmatmul.mubr.msk.f32.gmra.mrb[54].mxu0 %vm199_vm0, %v6765_v39  ;;  %v21344_v39 = vld [vmem:[#allocation130_spill] sm:$0xff]  ;;  %v6669_v2 = vmul.f32 %v18227_v15, %v21357_v57 }
 0x87f   :  { %11936 = vmatprep.mubr.msk.f32.mxu0 %vm199_vm0, %v6766_v17  ;;  %v6656_v12 = vmul.f32 %v18227_v15, %v21344_v39  ;;  %v6719_v17 = vadd.f32 %v6655_v52, %v18230_v47  ;;  %v6782_v35 = vmax.f32 %v6718_v3, 0.0 }
 0x881   :  { %v6720_v38 = vadd.f32 %v6656_v12, %v18230_v47  ;;  %v6783_v26 = vmax.f32 %v6719_v17, 0.0  ;;  %v21359_v12 = vld [vmem:[#allocation146_spill] sm:$0xff] }
 0x882   :  { %11937 = vmatmul.mubr.msk.f32.gmra.mrb[56].mxu0 %vm199_vm0, %v6767_v28  ;;  %v21346_v28 = vld [vmem:[#allocation132_spill] sm:$0xff]  ;;  %v6671_v17 = vmul.f32 %v18227_v15, %v21359_v12 }
 0x883   :  { %11939 = vmatprep.mubr.msk.f32.mxu0 %vm199_vm0, %v6768_v8  ;;  %v6658_v60 = vmul.f32 %v18227_v15, %v21346_v28  ;;  %v6721_v8 = vadd.f32 %v6657_v49, %v18230_v47  ;;  %v6784_v53 = vmax.f32 %v6720_v38, 0.0 }
 0x885   :  { %v6722_v29 = vadd.f32 %v6658_v60, %v18230_v47  ;;  %v6785_v61 = vmax.f32 %v6721_v8, 0.0  ;;  %v21361_v60 = vld [vmem:[#allocation148_spill] sm:$0xff] }
 0x886   :  { %11940 = vmatmul.mubr.msk.f32.gmra.mrb[58].mxu0 %vm199_vm0, %v6769_v19  ;;  %v21348_v19 = vld [vmem:[#allocation134_spill] sm:$0xff]  ;;  %v6673_v8 = vmul.f32 %v18227_v15, %v21361_v60 }
 0x887   :  { %11942 = vmatprep.mubr.msk.f32.mxu0 %vm199_vm0, %v6770_v45  ;;  %v6660_v30 = vmul.f32 %v18227_v15, %v21348_v19  ;;  %v6723_v45 = vadd.f32 %v6659_v59, %v18230_v47  ;;  %v6786_v48 = vmax.f32 %v6722_v29, 0.0 }
 0x889   :  { %v6724_v62 = vadd.f32 %v6660_v30, %v18230_v47  ;;  %v6787_v7 = vmax.f32 %v6723_v45, 0.0  ;;  %v21363_v30 = vld [vmem:[#allocation150_spill] sm:$0xff] }
 0x88a   :  { %11943 = vmatmul.mubr.msk.f32.gmra.mrb[60].mxu0 %vm199_vm0, %v6771_v56  ;;  %v21350_v56 = vld [vmem:[#allocation136_spill] sm:$0xff]  ;;  %v6675_v45 = vmul.f32 %v18227_v15, %v21363_v30 }
 0x88b   :  { %11945 = vmatprep.mubr.msk.f32.mxu0 %vm199_vm0, %v6772_v24  ;;  %v6662_v6 = vmul.f32 %v18227_v15, %v21350_v56  ;;  %v6725_v24 = vadd.f32 %v6661_v0, %v18230_v47  ;;  %v6788_v41 = vmax.f32 %v6724_v62, 0.0 }
 0x88d   :  { %v6726_v58 = vadd.f32 %v6662_v6, %v18230_v47  ;;  %v6789_v42 = vmax.f32 %v6725_v24, 0.0  ;;  %v21365_v6 = vld [vmem:[#allocation152_spill] sm:$0xff] }
 0x88e   :  { %11946 = vmatmul.mubr.msk.f32.gmra.mrb[62].mxu0 %vm199_vm0, %v6773_v54  ;;  %v21352_v54 = vld [vmem:[#allocation138_spill] sm:$0xff]  ;;  %v6677_v24 = vmul.f32 %v18227_v15, %v21365_v6 }
 0x88f   :  { %11948 = vmatprep.mubr.msk.f32.mxu0 %vm199_vm0, %v6774_v5  ;;  %v6664_v37 = vmul.f32 %v18227_v15, %v21352_v54  ;;  %v6727_v5 = vadd.f32 %v6663_v44, %v18230_v47  ;;  %v6790_v14 = vmax.f32 %v6726_v58, 0.0 }
 0x891   :  { %v6728_v50 = vadd.f32 %v6664_v37, %v18230_v47  ;;  %v6791_v34 = vmax.f32 %v6727_v5, 0.0  ;;  %v21367_v37 = vld [vmem:[#allocation154_spill] sm:$0xff] }
 0x892   :  { %11949 = vmatmul.mubr.msk.f32.gmra.mrb[64].mxu0 %vm199_vm0, %v6775_v46  ;;  %v21354_v46 = vld [vmem:[#allocation140_spill] sm:$0xff]  ;;  %v6679_v5 = vmul.f32 %v18227_v15, %v21367_v37 }
 0x893   :  { %11951 = vmatprep.mubr.msk.f32.mxu0 %vm199_vm0, %v6776_v21  ;;  %v6666_v1 = vmul.f32 %v18227_v15, %v21354_v46  ;;  %v6729_v21 = vadd.f32 %v6665_v43, %v18230_v47  ;;  %v6792_v33 = vmax.f32 %v6728_v50, 0.0 }
 0x895   :  { %v6730_v55 = vadd.f32 %v6666_v1, %v18230_v47  ;;  %v6793_v36 = vmax.f32 %v6729_v21, 0.0  ;;  %v21369_v1 = vld [vmem:[#allocation156_spill] sm:$0xff] }
 0x896   :  { %11952 = vmatmul.mubr.msk.f32.gmra.mrb[66].mxu0 %vm199_vm0, %v6777_v63  ;;  %v21356_v63 = vld [vmem:[#allocation142_spill] sm:$0xff]  ;;  %v6681_v21 = vmul.f32 %v18227_v15, %v21369_v1 }
 0x897   :  { %11954 = vmatprep.mubr.msk.f32.mxu0 %vm199_vm0, %v6778_v13  ;;  %v6668_v16 = vmul.f32 %v18227_v15, %v21356_v63  ;;  %v6731_v13 = vadd.f32 %v6667_v22, %v18230_v47  ;;  %v6794_v25 = vmax.f32 %v6730_v55, 0.0 }
 0x899   :  { %v6732_v18 = vadd.f32 %v6668_v16, %v18230_v47  ;;  %v6795_v40 = vmax.f32 %v6731_v13, 0.0  ;;  %v21371_v16 = vld [vmem:[#allocation158_spill] sm:$0xff] }
 0x89a   :  { %11955 = vmatmul.mubr.msk.f32.gmra.mrb[68].mxu0 %vm199_vm0, %v6779_v32  ;;  %v21358_v32 = vld [vmem:[#allocation147_spill] sm:$0xff]  ;;  %v6683_v13 = vmul.f32 %v18227_v15, %v21371_v16 }
 0x89b   :  { %11957 = vmatprep.mubr.msk.f32.mxu0 %vm199_vm0, %v6780_v9  ;;  %v6670_v3 = vmul.f32 %v18227_v15, %v21358_v32  ;;  %v6733_v9 = vadd.f32 %v6669_v2, %v18230_v47  ;;  %v6796_v39 = vmax.f32 %v6732_v18, 0.0 }
 0x89d   :  { %v6734_v52 = vadd.f32 %v6670_v3, %v18230_v47  ;;  %v6797_v4 = vmax.f32 %v6733_v9, 0.0  ;;  %v6685_v3 = vmul.f32 %v18227_v15, %v21212_v20  ;;  %v21373_v9 = vld [vmem:[#allocation166_spill] sm:$0xff] }
 0x89e   :  { %11958 = vmatmul.mubr.msk.f32.gmra.mrb[70].mxu0 %vm199_vm0, %v6781_v23  ;;  %v21360_v23 = vld [vmem:[#allocation149_spill] sm:$0xff] }
 0x89f   :  { %11960 = vmatprep.mubr.msk.f32.mxu0 %vm199_vm0, %v6782_v35  ;;  %v6672_v38 = vmul.f32 %v18227_v15, %v21360_v23  ;;  %v6735_v35 = vadd.f32 %v6671_v17, %v18230_v47  ;;  %v6798_v28 = vmax.f32 %v6734_v52, 0.0  ;;  %v6749_v52 = vadd.f32 %v6685_v3, %v18230_v47  ;;  %v21374_v23 = vld [vmem:[#allocation165_spill] sm:$0xff] }
 0x8a1   :  { %v6736_v49 = vadd.f32 %v6672_v38, %v18230_v47  ;;  %v6799_v10 = vmax.f32 %v6735_v35, 0.0  ;;  %v6815_v38 = vmul.f32 %v18227_v15, %v21374_v23  ;;  %v21375_v35 = vld [vmem:[#allocation167_spill] sm:$0xff] }
 0x8a2   :  { %11961 = vmatmul.mubr.msk.f32.gmra.mrb[72].mxu0 %vm199_vm0, %v6783_v26  ;;  %v21362_v26 = vld [vmem:[#allocation151_spill] sm:$0xff]  ;;  %v6816_v20 = vmul.f32 %v18227_v15, %v21375_v35  ;;  %v21390_v35 = vld [vmem:[#allocation198_spill] sm:$0xff] }
 0x8a3   :  { %11963 = vmatprep.mubr.msk.f32.mxu0 %vm199_vm0, %v6784_v53  ;;  %v6674_v29 = vmul.f32 %v18227_v15, %v21362_v26  ;;  %v6737_v53 = vadd.f32 %v6673_v8, %v18230_v47  ;;  %v6800_v19 = vmax.f32 %v6736_v49, 0.0  ;;  %v6813_v49 = vmax.f32 %v6749_v52, 0.0  ;;  %v21376_v8 = vld [vmem:[#allocation170_spill] sm:$0xff]  ;;  %v21389_v52 = vld [vmem:[#allocation195_spill] sm:$0xff] }
 0x8a4   :  { %v6817_v26 = vmul.f32 %v18227_v15, %v21376_v8 }
 0x8a5   :  { %v6738_v59 = vadd.f32 %v6674_v29, %v18230_v47  ;;  %v6801_v31 = vmax.f32 %v6737_v53, 0.0  ;;  %v21377_v29 = vld [vmem:[#allocation171_spill] sm:$0xff] }
 0x8a6   :  { %11964 = vmatmul.mubr.msk.f32.gmra.mrb[74].mxu0 %vm199_vm0, %v6785_v61  ;;  %v21364_v61 = vld [vmem:[#allocation153_spill] sm:$0xff]  ;;  %v6818_v53 = vmul.f32 %v18227_v15, %v21377_v29  ;;  %v21392_v29 = vld [vmem:[#allocation203_spill] sm:$0xff] }
 0x8a7   :  { %11966 = vmatprep.mubr.msk.f32.mxu0 %vm199_vm0, %v6786_v48  ;;  %v6676_v62 = vmul.f32 %v18227_v15, %v21364_v61  ;;  %v6739_v48 = vadd.f32 %v6675_v45, %v18230_v47  ;;  %v6802_v56 = vmax.f32 %v6738_v59, 0.0  ;;  %v21378_v45 = vld [vmem:[#allocation174_spill] sm:$0xff] }
 0x8a8   :  { %v6819_v61 = vmul.f32 %v18227_v15, %v21378_v45 }
 0x8a9   :  { %v6740_v0 = vadd.f32 %v6676_v62, %v18230_v47  ;;  %v6803_v11 = vmax.f32 %v6739_v48, 0.0  ;;  %v21379_v62 = vld [vmem:[#allocation175_spill] sm:$0xff] }
 0x8aa   :  { %11967 = vmatmul.mubr.msk.f32.gmra.mrb[76].mxu0 %vm199_vm0, %v6787_v7  ;;  %v21366_v7 = vld [vmem:[#allocation155_spill] sm:$0xff]  ;;  %v6820_v48 = vmul.f32 %v18227_v15, %v21379_v62  ;;  %v21394_v62 = vld [vmem:[#allocation208_spill] sm:$0xff] }
 0x8ab   :  { %11969 = vmatprep.mubr.msk.f32.mxu0 %vm199_vm0, %v6788_v41  ;;  %v6678_v58 = vmul.f32 %v18227_v15, %v21366_v7  ;;  %v6741_v41 = vadd.f32 %v6677_v24, %v18230_v47  ;;  %v6804_v54 = vmax.f32 %v6740_v0, 0.0  ;;  %v21380_v24 = vld [vmem:[#allocation178_spill] sm:$0xff] }
 0x8ac   :  { %v6821_v7 = vmul.f32 %v18227_v15, %v21380_v24 }
 0x8ad   :  { %v6742_v44 = vadd.f32 %v6678_v58, %v18230_v47  ;;  %v6805_v51 = vmax.f32 %v6741_v41, 0.0  ;;  %v21381_v58 = vld [vmem:[#allocation179_spill] sm:$0xff] }
 0x8ae   :  { %11970 = vmatmul.mubr.msk.f32.gmra.mrb[78].mxu0 %vm199_vm0, %v6789_v42  ;;  %v21368_v42 = vld [vmem:[#allocation157_spill] sm:$0xff]  ;;  %v6822_v41 = vmul.f32 %v18227_v15, %v21381_v58  ;;  %v21396_v58 = vld [vmem:[#allocation212_spill] sm:$0xff] }
 0x8af   :  { %11972 = vmatprep.mubr.msk.f32.mxu0 %vm199_vm0, %v6790_v14  ;;  %v6680_v50 = vmul.f32 %v18227_v15, %v21368_v42  ;;  %v6743_v14 = vadd.f32 %v6679_v5, %v18230_v47  ;;  %v6806_v46 = vmax.f32 %v6742_v44, 0.0  ;;  %v21382_v5 = vld [vmem:[#allocation182_spill] sm:$0xff] }
 0x8b0   :  { %v6823_v42 = vmul.f32 %v18227_v15, %v21382_v5 }
 0x8b1   :  { %v6744_v43 = vadd.f32 %v6680_v50, %v18230_v47  ;;  %v6807_v27 = vmax.f32 %v6743_v14, 0.0  ;;  %v21383_v50 = vld [vmem:[#allocation183_spill] sm:$0xff] }
 0x8b2   :  { %11973 = vmatmul.mubr.msk.f32.gmra.mrb[80].mxu0 %vm199_vm0, %v6791_v34  ;;  %v21370_v34 = vld [vmem:[#allocation159_spill] sm:$0xff]  ;;  %v6824_v14 = vmul.f32 %v18227_v15, %v21383_v50  ;;  %v21398_v50 = vld [vmem:[#allocation218_spill] sm:$0xff] }
 0x8b3   :  { %11975 = vmatprep.mubr.msk.f32.mxu0 %vm199_vm0, %v6792_v33  ;;  %v6682_v55 = vmul.f32 %v18227_v15, %v21370_v34  ;;  %v6745_v33 = vadd.f32 %v6681_v21, %v18230_v47  ;;  %v6808_v63 = vmax.f32 %v6744_v43, 0.0  ;;  %v21384_v21 = vld [vmem:[#allocation186_spill] sm:$0xff] }
 0x8b4   :  { %v6825_v34 = vmul.f32 %v18227_v15, %v21384_v21 }
 0x8b5   :  { %v6746_v22 = vadd.f32 %v6682_v55, %v18230_v47  ;;  %v6809_v57 = vmax.f32 %v6745_v33, 0.0  ;;  %v21385_v55 = vld [vmem:[#allocation187_spill] sm:$0xff] }
 0x8b6   :  { %11976 = vmatmul.mubr.msk.f32.gmra.mrb[82].mxu0 %vm199_vm0, %v6793_v36  ;;  %v21372_v36 = vld [vmem:[#allocation161_spill] sm:$0xff]  ;;  %v6826_v33 = vmul.f32 %v18227_v15, %v21385_v55 }
 0x8b7   :  { %11978 = vmatprep.mubr.msk.f32.mxu0 %vm199_vm0, %v6794_v25  ;;  %v6684_v18 = vmul.f32 %v18227_v15, %v21372_v36  ;;  %v6747_v25 = vadd.f32 %v6683_v13, %v18230_v47  ;;  %v6810_v32 = vmax.f32 %v6746_v22, 0.0  ;;  %v21386_v13 = vld [vmem:[#allocation190_spill] sm:$0xff]  ;;  %v21400_v55 = vld [vmem:[#allocation221_spill] sm:$0xff] }
 0x8b8   :  { %v6827_v36 = vmul.f32 %v18227_v15, %v21386_v13 }
 0x8b9   :  { %v6748_v2 = vadd.f32 %v6684_v18, %v18230_v47  ;;  %v21387_v18 = vld [vmem:[#allocation191_spill] sm:$0xff] }
 0x8ba   :  { %11979 = vmatmul.mubr.msk.f32.gmra.mrb[84].mxu0 %vm199_vm0, %v6795_v40  ;;  %v6814_v40 = vmul.f32 %v18227_v15, %v21373_v9  ;;  %v21388_v9 = vld [vmem:[#allocation194_spill] sm:$0xff] }
 0x8bb   :  { %11981 = vmatprep.mubr.msk.f32.mxu0 %vm199_vm0, %v6796_v39  ;;  %v6811_v39 = vmax.f32 %v6747_v25, 0.0  ;;  %v6812_v17 = vmax.f32 %v6748_v2, 0.0  ;;  %v6828_v25 = vmul.f32 %v18227_v15, %v21387_v18  ;;  %v21402_v18 = vld [vmem:[#allocation46_spill] sm:$0xff] }
 0x8bc   :  { %v6878_v12 = vadd.f32 %v6814_v40, %v18230_v47  ;;  %v6829_v40 = vmul.f32 %v18227_v15, %v21388_v9 }
 0x8be   :  { %11982 = vmatmul.mubr.msk.f32.gmra.mrb[86].mxu0 %vm199_vm0, %v6797_v4  ;;  %v6879_v4 = vadd.f32 %v6815_v38, %v18230_v47  ;;  %v6942_v60 = vmax.f32 %v6878_v12, 0.0  ;;  %v6893_v12 = vadd.f32 %v6829_v40, %v18230_v47 }
 0x8bf   :  { %11984 = vmatprep.mubr.msk.f32.mxu0 %vm199_vm0, %v6798_v28  ;;  %v6880_v28 = vadd.f32 %v6816_v20, %v18230_v47  ;;  %v6831_v20 = vmul.f32 %v18227_v15, %v21390_v35 }
 0x8c0   :  { %v6943_v59 = vmax.f32 %v6879_v4, 0.0  ;;  %v21391_v4 = vld [vmem:[#allocation199_spill] sm:$0xff] }
 0x8c1   :  { %v6944_v30 = vmax.f32 %v6880_v28, 0.0  ;;  %v6895_v28 = vadd.f32 %v6831_v20, %v18230_v47 }
 0x8c2   :  { %11985 = vmatmul.mubr.msk.f32.gmra.mrb[88].mxu0 %vm199_vm0, %v6799_v10  ;;  %v6881_v10 = vadd.f32 %v6817_v26, %v18230_v47 }
 0x8c3   :  { %11987 = vmatprep.mubr.msk.f32.mxu0 %vm199_vm0, %v6800_v19  ;;  %v6882_v19 = vadd.f32 %v6818_v53, %v18230_v47  ;;  %v6833_v53 = vmul.f32 %v18227_v15, %v21392_v29 }
 0x8c4   :  { %v6945_v0 = vmax.f32 %v6881_v10, 0.0  ;;  %v21393_v10 = vld [vmem:[#allocation204_spill] sm:$0xff] }
 0x8c5   :  { %v6946_v6 = vmax.f32 %v6882_v19, 0.0  ;;  %v6897_v19 = vadd.f32 %v6833_v53, %v18230_v47 }
 0x8c6   :  { %11988 = vmatmul.mubr.msk.f32.gmra.mrb[90].mxu0 %vm199_vm0, %v6801_v31  ;;  %v6883_v31 = vadd.f32 %v6819_v61, %v18230_v47 }
 0x8c7   :  { %11990 = vmatprep.mubr.msk.f32.mxu0 %vm199_vm0, %v6802_v56  ;;  %v6884_v56 = vadd.f32 %v6820_v48, %v18230_v47  ;;  %v6835_v48 = vmul.f32 %v18227_v15, %v21394_v62 }
 0x8c8   :  { %v6947_v44 = vmax.f32 %v6883_v31, 0.0  ;;  %v21395_v31 = vld [vmem:[#allocation209_spill] sm:$0xff] }
 0x8c9   :  { %v6948_v37 = vmax.f32 %v6884_v56, 0.0  ;;  %v6899_v56 = vadd.f32 %v6835_v48, %v18230_v47 }
 0x8ca   :  { %11991 = vmatmul.mubr.msk.f32.gmra.mrb[92].mxu0 %vm199_vm0, %v6803_v11  ;;  %v6885_v11 = vadd.f32 %v6821_v7, %v18230_v47 }
 0x8cb   :  { %11993 = vmatprep.mubr.msk.f32.mxu0 %vm199_vm0, %v6804_v54  ;;  %v6886_v54 = vadd.f32 %v6822_v41, %v18230_v47  ;;  %v6837_v41 = vmul.f32 %v18227_v15, %v21396_v58 }
 0x8cc   :  { %v6949_v43 = vmax.f32 %v6885_v11, 0.0  ;;  %v21397_v11 = vld [vmem:[#allocation213_spill] sm:$0xff] }
 0x8cd   :  { %v6950_v1 = vmax.f32 %v6886_v54, 0.0  ;;  %v6901_v54 = vadd.f32 %v6837_v41, %v18230_v47 }
 0x8ce   :  { %11994 = vmatmul.mubr.msk.f32.gmra.mrb[94].mxu0 %vm199_vm0, %v6805_v51  ;;  %v6887_v51 = vadd.f32 %v6823_v42, %v18230_v47 }
 0x8cf   :  { %11996 = vmatprep.mubr.msk.f32.mxu0 %vm199_vm0, %v6806_v46  ;;  %v6888_v46 = vadd.f32 %v6824_v14, %v18230_v47  ;;  %v6839_v14 = vmul.f32 %v18227_v15, %v21398_v50 }
 0x8d0   :  { %v6951_v22 = vmax.f32 %v6887_v51, 0.0  ;;  %v21399_v51 = vld [vmem:[#allocation219_spill] sm:$0xff] }
 0x8d1   :  { %v6952_v16 = vmax.f32 %v6888_v46, 0.0  ;;  %v6903_v46 = vadd.f32 %v6839_v14, %v18230_v47 }
 0x8d2   :  { %11997 = vmatmul.mubr.msk.f32.gmra.mrb[96].mxu0 %vm199_vm0, %v6807_v27  ;;  %v6889_v27 = vadd.f32 %v6825_v34, %v18230_v47 }
 0x8d3   :  { %11999 = vmatprep.mubr.msk.f32.mxu0 %vm199_vm0, %v6808_v63  ;;  %v6890_v63 = vadd.f32 %v6826_v33, %v18230_v47  ;;  %v6841_v33 = vmul.f32 %v18227_v15, %v21400_v55 }
 0x8d4   :  { %v6953_v2 = vmax.f32 %v6889_v27, 0.0  ;;  %v21401_v27 = vld [vmem:[#allocation222_spill] sm:$0xff] }
 0x8d5   :  { %v6954_v3 = vmax.f32 %v6890_v63, 0.0  ;;  %v6905_v63 = vadd.f32 %v6841_v33, %v18230_v47 }
 0x8d6   :  { %12000 = vmatmul.mubr.msk.f32.gmra.mrb[98].mxu0 %vm199_vm0, %v6809_v57  ;;  %v6891_v57 = vadd.f32 %v6827_v36, %v18230_v47 }
 0x8d7   :  { %12002 = vmatprep.mubr.msk.f32.mxu0 %vm199_vm0, %v6810_v32  ;;  %v6892_v32 = vadd.f32 %v6828_v25, %v18230_v47  ;;  %v6843_v25 = vmul.f32 %v18227_v15, %v21402_v18 }
 0x8d9   :  { %v6956_v38 = vmax.f32 %v6892_v32, 0.0  ;;  %v6907_v32 = vadd.f32 %v6843_v25, %v18230_v47 }
 0x8da   :  { %12003 = vmatmul.mubr.msk.f32.gmra.mrb[100].mxu0 %vm199_vm0, %v6811_v39  ;;  %v6830_v39 = vmul.f32 %v18227_v15, %v21389_v52  ;;  %v21404_v52 = vld [vmem:[#allocation48_spill] sm:$0xff] }
 0x8db   :  { %12005 = vmatprep.mubr.msk.f32.mxu0 %vm199_vm0, %v6812_v17  ;;  %v6955_v17 = vmax.f32 %v6891_v57, 0.0  ;;  %v21403_v57 = vld [vmem:[#allocation129_spill] sm:$0xff] }
 0x8dc   :  { %v6894_v23 = vadd.f32 %v6830_v39, %v18230_v47  ;;  %v6845_v39 = vmul.f32 %v18227_v15, %v21404_v52 }
 0x8de   :  { %12006 = vmatmul.mubr.msk.f32.gmra.mrb[102].mxu0 %vm199_vm0, %v6813_v49  ;;  %v6832_v49 = vmul.f32 %v18227_v15, %v21391_v4  ;;  %v6958_v26 = vmax.f32 %v6894_v23, 0.0  ;;  %v6909_v23 = vadd.f32 %v6845_v39, %v18230_v47  ;;  %v21406_v4 = vld [vmem:[#allocation50_spill] sm:$0xff] }
 0x8df   :  { %12016 = vmatprep.mubr.msk.f32.mxu0 %vm199_vm0, %v6942_v60  ;;  %v6957_v60 = vmax.f32 %v6893_v12, 0.0  ;;  %v21405_v12 = vld [vmem:[#allocation131_spill] sm:$0xff] }
 0x8e0   :  { %v6896_v8 = vadd.f32 %v6832_v49, %v18230_v47  ;;  %v6847_v49 = vmul.f32 %v18227_v15, %v21406_v4 }
 0x8e2   :  { %12017 = vmatmul.mubr.msk.f32.vlgmr.msra.gmra.mrb[40].mxu0 %vm199_vm0, %v6943_v59  ;;  %v6834_v59 = vmul.f32 %v18227_v15, %v21393_v10  ;;  %v6960_v61 = vmax.f32 %v6896_v8, 0.0  ;;  %v6911_v8 = vadd.f32 %v6847_v49, %v18230_v47  ;;  %v21408_v10 = vld [vmem:[#allocation52_spill] sm:$0xff] }
 0x8e3   :  { %12019 = vmatprep.mubr.msk.f32.mxu0 %vm199_vm0, %v6944_v30  ;;  %v6959_v30 = vmax.f32 %v6895_v28, 0.0  ;;  %v21407_v28 = vld [vmem:[#allocation133_spill] sm:$0xff] }
 0x8e4   :  { %v6898_v45 = vadd.f32 %v6834_v59, %v18230_v47  ;;  %v6849_v59 = vmul.f32 %v18227_v15, %v21408_v10 }
 0x8e6   :  { %12020 = vmatmul.mubr.msk.f32.gmra.mrb[42].mxu0 %vm199_vm0, %v6945_v0  ;;  %v6836_v0 = vmul.f32 %v18227_v15, %v21395_v31  ;;  %v6962_v7 = vmax.f32 %v6898_v45, 0.0  ;;  %v6913_v45 = vadd.f32 %v6849_v59, %v18230_v47  ;;  %v21410_v31 = vld [vmem:[#allocation54_spill] sm:$0xff] }
 0x8e7   :  { %12022 = vmatprep.mubr.msk.f32.mxu0 %vm199_vm0, %v6946_v6  ;;  %v6961_v6 = vmax.f32 %v6897_v19, 0.0  ;;  %v21409_v19 = vld [vmem:[#allocation135_spill] sm:$0xff] }
 0x8e8   :  { %v6900_v24 = vadd.f32 %v6836_v0, %v18230_v47  ;;  %v6851_v0 = vmul.f32 %v18227_v15, %v21410_v31 }
 0x8ea   :  { %12023 = vmatmul.mubr.msk.f32.gmra.mrb[44].mxu0 %vm199_vm0, %v6947_v44  ;;  %v6838_v44 = vmul.f32 %v18227_v15, %v21397_v11  ;;  %v6964_v42 = vmax.f32 %v6900_v24, 0.0  ;;  %v6915_v24 = vadd.f32 %v6851_v0, %v18230_v47  ;;  %v21412_v11 = vld [vmem:[#allocation55_spill] sm:$0xff] }
 0x8eb   :  { %12025 = vmatprep.mubr.msk.f32.mxu0 %vm199_vm0, %v6948_v37  ;;  %v6963_v37 = vmax.f32 %v6899_v56, 0.0  ;;  %v21411_v56 = vld [vmem:[#allocation137_spill] sm:$0xff] }
 0x8ec   :  { %v6902_v5 = vadd.f32 %v6838_v44, %v18230_v47  ;;  %v6853_v44 = vmul.f32 %v18227_v15, %v21412_v11 }
 0x8ee   :  { %12026 = vmatmul.mubr.msk.f32.gmra.mrb[46].mxu0 %vm199_vm0, %v6949_v43  ;;  %v6840_v43 = vmul.f32 %v18227_v15, %v21399_v51  ;;  %v6966_v34 = vmax.f32 %v6902_v5, 0.0  ;;  %v6917_v5 = vadd.f32 %v6853_v44, %v18230_v47  ;;  %v21414_v51 = vld [vmem:[#allocation57_spill] sm:$0xff] }
 0x8ef   :  { %12028 = vmatprep.mubr.msk.f32.mxu0 %vm199_vm0, %v6950_v1  ;;  %v6965_v1 = vmax.f32 %v6901_v54, 0.0  ;;  %v21413_v54 = vld [vmem:[#allocation139_spill] sm:$0xff] }
 0x8f0   :  { %v6904_v21 = vadd.f32 %v6840_v43, %v18230_v47  ;;  %v6855_v43 = vmul.f32 %v18227_v15, %v21414_v51 }
 0x8f2   :  { %12029 = vmatmul.mubr.msk.f32.gmra.mrb[48].mxu0 %vm199_vm0, %v6951_v22  ;;  %v6842_v22 = vmul.f32 %v18227_v15, %v21401_v27  ;;  %v6968_v36 = vmax.f32 %v6904_v21, 0.0  ;;  %v6919_v21 = vadd.f32 %v6855_v43, %v18230_v47  ;;  %v21416_v27 = vld [vmem:[#allocation59_spill] sm:$0xff] }
 0x8f3   :  { %12031 = vmatprep.mubr.msk.f32.mxu0 %vm199_vm0, %v6952_v16  ;;  %v6967_v16 = vmax.f32 %v6903_v46, 0.0  ;;  %v21415_v46 = vld [vmem:[#allocation141_spill] sm:$0xff] }
 0x8f4   :  { %v6906_v13 = vadd.f32 %v6842_v22, %v18230_v47  ;;  %v6857_v22 = vmul.f32 %v18227_v15, %v21416_v27 }
 0x8f6   :  { %12032 = vmatmul.mubr.msk.f32.gmra.mrb[50].mxu0 %vm199_vm0, %v6953_v2  ;;  %v6844_v2 = vmul.f32 %v18227_v15, %v21403_v57  ;;  %v6970_v40 = vmax.f32 %v6906_v13, 0.0  ;;  %v6921_v13 = vadd.f32 %v6857_v22, %v18230_v47  ;;  %v21418_v57 = vld [vmem:[#allocation61_spill] sm:$0xff] }
 0x8f7   :  { %12034 = vmatprep.mubr.msk.f32.mxu0 %vm199_vm0, %v6954_v3  ;;  %v6969_v3 = vmax.f32 %v6905_v63, 0.0  ;;  %v21417_v63 = vld [vmem:[#allocation143_spill] sm:$0xff] }
 0x8f8   :  { %v6908_v9 = vadd.f32 %v6844_v2, %v18230_v47  ;;  %v6859_v2 = vmul.f32 %v18227_v15, %v21418_v57 }
 0x8fa   :  { %12035 = vmatmul.mubr.msk.f32.gmra.mrb[52].mxu0 %vm199_vm0, %v6955_v17  ;;  %v6846_v17 = vmul.f32 %v18227_v15, %v21405_v12  ;;  %v6972_v20 = vmax.f32 %v6908_v9, 0.0  ;;  %v6923_v9 = vadd.f32 %v6859_v2, %v18230_v47  ;;  %v21420_v12 = vld [vmem:[#allocation223_spill] sm:$0xff] }
 0x8fb   :  { %12037 = vmatprep.mubr.msk.f32.mxu0 %vm199_vm0, %v6956_v38  ;;  %v6971_v38 = vmax.f32 %v6907_v32, 0.0  ;;  %v21419_v32 = vld [vmem:[#allocation145_spill] sm:$0xff] }
 0x8fc   :  { %v6910_v35 = vadd.f32 %v6846_v17, %v18230_v47  ;;  %v6861_v17 = vmul.f32 %v18227_v15, %v21420_v12 }
 0x8fe   :  { %12038 = vmatmul.mubr.msk.f32.gmra.mrb[54].mxu0 %vm199_vm0, %v6957_v60  ;;  %v6848_v60 = vmul.f32 %v18227_v15, %v21407_v28  ;;  %v6974_v53 = vmax.f32 %v6910_v35, 0.0  ;;  %v6925_v35 = vadd.f32 %v6861_v17, %v18230_v47  ;;  %v21422_v28 = vld [vmem:[#allocation225_spill] sm:$0xff] }
 0x8ff   :  { %12040 = vmatprep.mubr.msk.f32.mxu0 %vm199_vm0, %v6958_v26  ;;  %v6973_v26 = vmax.f32 %v6909_v23, 0.0  ;;  %v21421_v23 = vld [vmem:[#allocation224_spill] sm:$0xff] }
 0x900   :  { %v6912_v29 = vadd.f32 %v6848_v60, %v18230_v47  ;;  %v6863_v60 = vmul.f32 %v18227_v15, %v21422_v28  ;;  %v19309_v28 = vld [vmem:[%s19645_s14] ss:$0 sm:$0xff] }
 0x902   :  { %12041 = vmatmul.mubr.msk.f32.gmra.mrb[56].mxu0 %vm199_vm0, %v6959_v30  ;;  %v6850_v30 = vmul.f32 %v18227_v15, %v21409_v19  ;;  %v6976_v48 = vmax.f32 %v6912_v29, 0.0  ;;  %v6927_v29 = vadd.f32 %v6863_v60, %v18230_v47  ;;  %v21424_v19 = vld [vmem:[#allocation227_spill] sm:$0xff] }
 0x903   :  { %12043 = vmatprep.mubr.msk.f32.mxu0 %vm199_vm0, %v6960_v61  ;;  %v6975_v61 = vmax.f32 %v6911_v8, 0.0  ;;  %v21423_v8 = vld [vmem:[#allocation226_spill] sm:$0xff] }
 0x904   :  { %v6914_v62 = vadd.f32 %v6850_v30, %v18230_v47  ;;  %v6865_v30 = vmul.f32 %v18227_v15, %v21424_v19 }
 0x906   :  { %12044 = vmatmul.mubr.msk.f32.gmra.mrb[58].mxu0 %vm199_vm0, %v6961_v6  ;;  %v6852_v6 = vmul.f32 %v18227_v15, %v21411_v56  ;;  %v6978_v41 = vmax.f32 %v6914_v62, 0.0  ;;  %v6929_v62 = vadd.f32 %v6865_v30, %v18230_v47  ;;  %v21426_v56 = vld [vmem:[#allocation229_spill] sm:$0xff] }
 0x907   :  { %12046 = vmatprep.mubr.msk.f32.mxu0 %vm199_vm0, %v6962_v7  ;;  %v6977_v7 = vmax.f32 %v6913_v45, 0.0  ;;  %v21425_v45 = vld [vmem:[#allocation228_spill] sm:$0xff] }
 0x908   :  { %v6916_v58 = vadd.f32 %v6852_v6, %v18230_v47  ;;  %v6867_v6 = vmul.f32 %v18227_v15, %v21426_v56 }
 0x90a   :  { %12047 = vmatmul.mubr.msk.f32.gmra.mrb[60].mxu0 %vm199_vm0, %v6963_v37  ;;  %v6854_v37 = vmul.f32 %v18227_v15, %v21413_v54  ;;  %v6980_v14 = vmax.f32 %v6916_v58, 0.0  ;;  %v6931_v58 = vadd.f32 %v6867_v6, %v18230_v47  ;;  %v21428_v54 = vld [vmem:[#allocation231_spill] sm:$0xff] }
 0x90b   :  { %12049 = vmatprep.mubr.msk.f32.mxu0 %vm199_vm0, %v6964_v42  ;;  %v6979_v42 = vmax.f32 %v6915_v24, 0.0  ;;  %v21427_v24 = vld [vmem:[#allocation230_spill] sm:$0xff] }
 0x90c   :  { %v6918_v50 = vadd.f32 %v6854_v37, %v18230_v47  ;;  %v6869_v37 = vmul.f32 %v18227_v15, %v21428_v54 }
 0x90e   :  { %12050 = vmatmul.mubr.msk.f32.gmra.mrb[62].mxu0 %vm199_vm0, %v6965_v1  ;;  %v6856_v1 = vmul.f32 %v18227_v15, %v21415_v46  ;;  %v6982_v33 = vmax.f32 %v6918_v50, 0.0  ;;  %v6933_v50 = vadd.f32 %v6869_v37, %v18230_v47  ;;  %v21430_v46 = vld [vmem:[#allocation233_spill] sm:$0xff] }
 0x90f   :  { %12052 = vmatprep.mubr.msk.f32.mxu0 %vm199_vm0, %v6966_v34  ;;  %v6981_v34 = vmax.f32 %v6917_v5, 0.0  ;;  %v21429_v5 = vld [vmem:[#allocation232_spill] sm:$0xff] }
 0x910   :  { %v6920_v55 = vadd.f32 %v6856_v1, %v18230_v47  ;;  %v6871_v1 = vmul.f32 %v18227_v15, %v21430_v46 }
 0x912   :  { %12053 = vmatmul.mubr.msk.f32.gmra.mrb[64].mxu0 %vm199_vm0, %v6967_v16  ;;  %v6858_v16 = vmul.f32 %v18227_v15, %v21417_v63  ;;  %v6984_v25 = vmax.f32 %v6920_v55, 0.0  ;;  %v6935_v55 = vadd.f32 %v6871_v1, %v18230_v47  ;;  %v21432_v63 = vld [vmem:[#allocation235_spill] sm:$0xff] }
 0x913   :  { %12055 = vmatprep.mubr.msk.f32.mxu0 %vm199_vm0, %v6968_v36  ;;  %v6983_v36 = vmax.f32 %v6919_v21, 0.0  ;;  %v21431_v21 = vld [vmem:[#allocation234_spill] sm:$0xff] }
 0x914   :  { %v6922_v18 = vadd.f32 %v6858_v16, %v18230_v47  ;;  %v6873_v16 = vmul.f32 %v18227_v15, %v21432_v63 }
 0x916   :  { %12056 = vmatmul.mubr.msk.f32.gmra.mrb[66].mxu0 %vm199_vm0, %v6969_v3  ;;  %v6860_v3 = vmul.f32 %v18227_v15, %v21419_v32  ;;  %v6986_v39 = vmax.f32 %v6922_v18, 0.0  ;;  %v6937_v18 = vadd.f32 %v6873_v16, %v18230_v47  ;;  %v21434_v32 = vld [vmem:[#allocation237_spill] sm:$0xff] }
 0x917   :  { %12058 = vmatprep.mubr.msk.f32.mxu0 %vm199_vm0, %v6970_v40  ;;  %v6985_v40 = vmax.f32 %v6921_v13, 0.0  ;;  %v21433_v13 = vld [vmem:[#allocation236_spill] sm:$0xff] }
 0x918   :  { %v6924_v52 = vadd.f32 %v6860_v3, %v18230_v47  ;;  %v6875_v3 = vmul.f32 %v18227_v15, %v21434_v32 }
 0x91a   :  { %12059 = vmatmul.mubr.msk.f32.gmra.mrb[68].mxu0 %vm199_vm0, %v6971_v38  ;;  %v6862_v38 = vmul.f32 %v18227_v15, %v21421_v23  ;;  %v6988_v49 = vmax.f32 %v6924_v52, 0.0  ;;  %v6939_v52 = vadd.f32 %v6875_v3, %v18230_v47  ;;  %v21436_v23 = vld [vmem:[#allocation239_spill] sm:$0xff] }
 0x91b   :  { %12061 = vmatprep.mubr.msk.f32.mxu0 %vm199_vm0, %v6972_v20  ;;  %v6987_v20 = vmax.f32 %v6923_v9, 0.0  ;;  %v21435_v9 = vld [vmem:[#allocation238_spill] sm:$0xff] }
 0x91c   :  { %v6926_v4 = vadd.f32 %v6862_v38, %v18230_v47  ;;  %v6877_v38 = vmul.f32 %v18227_v15, %v21436_v23 }
 0x91e   :  { %12062 = vmatmul.mubr.msk.f32.gmra.mrb[70].mxu0 %vm199_vm0, %v6973_v26  ;;  %v6864_v26 = vmul.f32 %v18227_v15, %v21423_v8  ;;  %v6990_v59 = vmax.f32 %v6926_v4, 0.0 }
 0x91f   :  { %12064 = vmatprep.mubr.msk.f32.mxu0 %vm199_vm0, %v6974_v53  ;;  %v6989_v53 = vmax.f32 %v6925_v35, 0.0  ;;  %v6941_v35 = vadd.f32 %v6877_v38, %v18230_v47 }
 0x920   :  { %v6928_v10 = vadd.f32 %v6864_v26, %v18230_v47 }
 0x922   :  { %12065 = vmatmul.mubr.msk.f32.gmra.mrb[72].mxu0 %vm199_vm0, %v6975_v61  ;;  %v6866_v61 = vmul.f32 %v18227_v15, %v21425_v45  ;;  %v6992_v0 = vmax.f32 %v6928_v10, 0.0 }
 0x923   :  { %12067 = vmatprep.mubr.msk.f32.mxu0 %vm199_vm0, %v6976_v48  ;;  %v6991_v48 = vmax.f32 %v6927_v29, 0.0 }
 0x924   :  { %v6930_v31 = vadd.f32 %v6866_v61, %v18230_v47 }
 0x926   :  { %12068 = vmatmul.mubr.msk.f32.gmra.mrb[74].mxu0 %vm199_vm0, %v6977_v7  ;;  %v6868_v7 = vmul.f32 %v18227_v15, %v21427_v24  ;;  %v6994_v44 = vmax.f32 %v6930_v31, 0.0 }
 0x927   :  { %12070 = vmatprep.mubr.msk.f32.mxu0 %vm199_vm0, %v6978_v41  ;;  %v6993_v41 = vmax.f32 %v6929_v62, 0.0 }
 0x928   :  { %v6932_v11 = vadd.f32 %v6868_v7, %v18230_v47 }
 0x92a   :  { %12071 = vmatmul.mubr.msk.f32.gmra.mrb[76].mxu0 %vm199_vm0, %v6979_v42  ;;  %v6870_v42 = vmul.f32 %v18227_v15, %v21429_v5  ;;  %v6996_v43 = vmax.f32 %v6932_v11, 0.0 }
 0x92b   :  { %12073 = vmatprep.mubr.msk.f32.mxu0 %vm199_vm0, %v6980_v14  ;;  %v6995_v14 = vmax.f32 %v6931_v58, 0.0 }
 0x92c   :  { %v6934_v51 = vadd.f32 %v6870_v42, %v18230_v47 }
 0x92e   :  { %12074 = vmatmul.mubr.msk.f32.gmra.mrb[78].mxu0 %vm199_vm0, %v6981_v34  ;;  %v6872_v34 = vmul.f32 %v18227_v15, %v21431_v21  ;;  %v6998_v22 = vmax.f32 %v6934_v51, 0.0 }
 0x92f   :  { %12076 = vmatprep.mubr.msk.f32.mxu0 %vm199_vm0, %v6982_v33  ;;  %v6997_v33 = vmax.f32 %v6933_v50, 0.0 }
 0x930   :  { %v6936_v27 = vadd.f32 %v6872_v34, %v18230_v47 }
 0x932   :  { %12077 = vmatmul.mubr.msk.f32.gmra.mrb[80].mxu0 %vm199_vm0, %v6983_v36  ;;  %v6874_v36 = vmul.f32 %v18227_v15, %v21433_v13  ;;  %v7000_v2 = vmax.f32 %v6936_v27, 0.0 }
 0x933   :  { %12079 = vmatprep.mubr.msk.f32.mxu0 %vm199_vm0, %v6984_v25  ;;  %v6999_v25 = vmax.f32 %v6935_v55, 0.0 }
 0x934   :  { %v6938_v57 = vadd.f32 %v6874_v36, %v18230_v47 }
 0x936   :  { %12080 = vmatmul.mubr.msk.f32.gmra.mrb[82].mxu0 %vm199_vm0, %v6985_v40  ;;  %v6876_v40 = vmul.f32 %v18227_v15, %v21435_v9  ;;  %v7002_v17 = vmax.f32 %v6938_v57, 0.0 }
 0x937   :  { %12082 = vmatprep.mubr.msk.f32.mxu0 %vm199_vm0, %v6986_v39  ;;  %v7001_v39 = vmax.f32 %v6937_v18, 0.0 }
 0x938   :  { %v6940_v12 = vadd.f32 %v6876_v40, %v18230_v47 }
 0x93a   :  { %12083 = vmatmul.mubr.msk.f32.gmra.mrb[84].mxu0 %vm199_vm0, %v6987_v20  ;;  %v7003_v20 = vmax.f32 %v6939_v52, 0.0  ;;  %v7004_v4 = vmax.f32 %v6940_v12, 0.0 }
 0x93b   :  { %12085 = vmatprep.mubr.msk.f32.mxu0 %vm199_vm0, %v6988_v49  ;;  %v7005_v49 = vmax.f32 %v6941_v35, 0.0 }
 0x93e   :  { %12086 = vmatmul.mubr.msk.f32.gmra.mrb[86].mxu0 %vm199_vm0, %v6989_v53 }
 0x93f   :  { %12088 = vmatprep.mubr.msk.f32.mxu0 %vm199_vm0, %v6990_v59 }
 0x942   :  { %12089 = vmatmul.mubr.msk.f32.gmra.mrb[88].mxu0 %vm199_vm0, %v6991_v48 }
 0x943   :  { %12091 = vmatprep.mubr.msk.f32.mxu0 %vm199_vm0, %v6992_v0 }
 0x946   :  { %12092 = vmatmul.mubr.msk.f32.gmra.mrb[90].mxu0 %vm199_vm0, %v6993_v41 }
 0x947   :  { %12094 = vmatprep.mubr.msk.f32.mxu0 %vm199_vm0, %v6994_v44 }
 0x94a   :  { %12095 = vmatmul.mubr.msk.f32.gmra.mrb[92].mxu0 %vm199_vm0, %v6995_v14 }
 0x94b   :  { %12097 = vmatprep.mubr.msk.f32.mxu0 %vm199_vm0, %v6996_v43 }
 0x94e   :  { %12098 = vmatmul.mubr.msk.f32.gmra.mrb[94].mxu0 %vm199_vm0, %v6997_v33 }
 0x94f   :  { %12100 = vmatprep.mubr.msk.f32.mxu0 %vm199_vm0, %v6998_v22 }
 0x952   :  { %12101 = vmatmul.mubr.msk.f32.gmra.mrb[96].mxu0 %vm199_vm0, %v6999_v25 }
 0x953   :  { %12103 = vmatprep.mubr.msk.f32.mxu0 %vm199_vm0, %v7000_v2 }
 0x956   :  { %12104 = vmatmul.mubr.msk.f32.gmra.mrb[98].mxu0 %vm199_vm0, %v7001_v39 }
 0x957   :  { %12106 = vmatprep.mubr.msk.f32.mxu0 %vm199_vm0, %v7002_v17 }
 0x95a   :  { %12107 = vmatmul.mubr.msk.f32.gmra.mrb[100].mxu0 %vm199_vm0, %v7003_v20 }
 0x95b   :  { %12109 = vmatprep.mubr.msk.f32.mxu0 %vm199_vm0, %v7004_v4 }
 0x95e   :  { %12110 = vmatmul.mubr.msk.f32.gmra.mrb[102].mxu0 %vm199_vm0, %v7005_v49 }
 0x9b5   :  { %v12018_v15 = vpop.f32.mrb[40].mxu0 }
 0x9b6   :  { %v12400_v60 = vadd.f32 %v12018_v15, %v19309_v28  ;;  %v9213_v8 = vpop.f32.mrb[41].mxu0 }
 0x9b7   :  { %v12401_v47 = vadd.f32 %v19309_v28, %v9213_v8 }
 0x9b8   :  { %12694 = vtanh.f32 %v12400_v60 }
 0x9b9   :  { %12696 = vtanh.f32 %v12401_v47  ;;  %v12021_v26 = vpop.f32.mrb[42].mxu0 }
 0x9ba   :  { %v12402_v29 = vadd.f32 %v12021_v26, %v19309_v28  ;;  %v9223_v53 = vpop.f32.mrb[43].mxu0 }
 0x9bb   :  { %v12403_v10 = vadd.f32 %v19309_v28, %v9223_v53 }
 0x9bc   :  { %12698 = vtanh.f32 %v12402_v29 }
 0x9bd   :  { %12700 = vtanh.f32 %v12403_v10  ;;  %v12024_v59 = vpop.f32.mrb[44].mxu0 }
 0x9be   :  { %v12404_v19 = vadd.f32 %v12024_v59, %v19309_v28  ;;  %v9233_v30 = vpop.f32.mrb[45].mxu0 }
 0x9bf   :  { %v12405_v45 = vadd.f32 %v19309_v28, %v9233_v30 }
 0x9c0   :  { %12702 = vtanh.f32 %v12404_v19 }
 0x9c1   :  { %12704 = vtanh.f32 %v12405_v45  ;;  %v12027_v61 = vpop.f32.mrb[46].mxu0 }
 0x9c2   :  { %v12695_v62 = vpop.eup %12694  ;;  %v12406_v48 = vadd.f32 %v12027_v61, %v19309_v28  ;;  %v9243_v31 = vpop.f32.mrb[47].mxu0 }
 0x9c3   :  { %v12697_v0 = vpop.eup %12696  ;;  %9662 = vst.msk [vmem:[%s19646_s15 + $0x8] sm:$0xff] %vm9660_vm2, %v12695_v62  ;;  %v12407_v56 = vadd.f32 %v19309_v28, %v9243_v31 }
 0x9c4   :  { %9661 = vst.msk [vmem:[%s19646_s15] sm:$0xff] %vm9660_vm2, %v12697_v0  ;;  %12706 = vtanh.f32 %v12406_v48 }
 0x9c5   :  { %12708 = vtanh.f32 %v12407_v56  ;;  %v12030_v6 = vpop.f32.mrb[48].mxu0 }
 0x9c6   :  { %v12699_v24 = vpop.eup %12698  ;;  %v12408_v7 = vadd.f32 %v12030_v6, %v19309_v28  ;;  %v9253_v58 = vpop.f32.mrb[49].mxu0 }
 0x9c7   :  { %v12701_v41 = vpop.eup %12700  ;;  %9664 = vst.msk [vmem:[%s19646_s15 + $0x18] sm:$0xff] %vm9660_vm2, %v12699_v24  ;;  %v12409_v11 = vadd.f32 %v19309_v28, %v9253_v58 }
 0x9c8   :  { %9663 = vst.msk [vmem:[%s19646_s15 + $0x10] sm:$0xff] %vm9660_vm2, %v12701_v41  ;;  %12710 = vtanh.f32 %v12408_v7 }
 0x9c9   :  { %12712 = vtanh.f32 %v12409_v11  ;;  %v12033_v44 = vpop.f32.mrb[50].mxu0 }
 0x9ca   :  { %v12703_v54 = vpop.eup %12702  ;;  %v12410_v37 = vadd.f32 %v12033_v44, %v19309_v28  ;;  %v9263_v5 = vpop.f32.mrb[51].mxu0 }
 0x9cb   :  { %v12705_v42 = vpop.eup %12704  ;;  %9666 = vst.msk [vmem:[%s19646_s15 + $0x28] sm:$0xff] %vm9660_vm2, %v12703_v54  ;;  %v12411_v50 = vadd.f32 %v19309_v28, %v9263_v5 }
 0x9cc   :  { %9665 = vst.msk [vmem:[%s19646_s15 + $0x20] sm:$0xff] %vm9660_vm2, %v12705_v42  ;;  %12714 = vtanh.f32 %v12410_v37 }
 0x9cd   :  { %12716 = vtanh.f32 %v12411_v50  ;;  %v12036_v14 = vpop.f32.mrb[52].mxu0 }
 0x9ce   :  { %v12707_v51 = vpop.eup %12706  ;;  %v12412_v43 = vadd.f32 %v12036_v14, %v19309_v28  ;;  %v9273_v46 = vpop.f32.mrb[53].mxu0 }
 0x9cf   :  { %v12709_v1 = vpop.eup %12708  ;;  %9668 = vst.msk [vmem:[%s19646_s15 + $0x38] sm:$0xff] %vm9660_vm2, %v12707_v51  ;;  %v12413_v21 = vadd.f32 %v19309_v28, %v9273_v46 }
 0x9d0   :  { %9667 = vst.msk [vmem:[%s19646_s15 + $0x30] sm:$0xff] %vm9660_vm2, %v12709_v1  ;;  %12718 = vtanh.f32 %v12412_v43 }
 0x9d1   :  { %12720 = vtanh.f32 %v12413_v21  ;;  %v12039_v34 = vpop.f32.mrb[54].mxu0 }
 0x9d2   :  { %v12711_v55 = vpop.eup %12710  ;;  %v12414_v33 = vadd.f32 %v12039_v34, %v19309_v28  ;;  %v9283_v27 = vpop.f32.mrb[55].mxu0 }
 0x9d3   :  { %v12713_v22 = vpop.eup %12712  ;;  %9670 = vst.msk [vmem:[%s19646_s15 + $0x48] sm:$0xff] %vm9660_vm2, %v12711_v55  ;;  %v12415_v63 = vadd.f32 %v19309_v28, %v9283_v27 }
 0x9d4   :  { %9669 = vst.msk [vmem:[%s19646_s15 + $0x40] sm:$0xff] %vm9660_vm2, %v12713_v22  ;;  %12722 = vtanh.f32 %v12414_v33 }
 0x9d5   :  { %12724 = vtanh.f32 %v12415_v63  ;;  %v12042_v16 = vpop.f32.mrb[56].mxu0 }
 0x9d6   :  { %v12715_v13 = vpop.eup %12714  ;;  %v12416_v36 = vadd.f32 %v12042_v16, %v19309_v28  ;;  %v9293_v18 = vpop.f32.mrb[57].mxu0 }
 0x9d7   :  { %v12717_v25 = vpop.eup %12716  ;;  %9672 = vst.msk [vmem:[%s19646_s15 + $0x58] sm:$0xff] %vm9660_vm2, %v12715_v13  ;;  %v12417_v57 = vadd.f32 %v19309_v28, %v9293_v18 }
 0x9d8   :  { %9671 = vst.msk [vmem:[%s19646_s15 + $0x50] sm:$0xff] %vm9660_vm2, %v12717_v25  ;;  %12726 = vtanh.f32 %v12416_v36 }
 0x9d9   :  { %12728 = vtanh.f32 %v12417_v57  ;;  %v12045_v2 = vpop.f32.mrb[58].mxu0 }
 0x9da   :  { %v12719_v32 = vpop.eup %12718  ;;  %v12418_v3 = vadd.f32 %v12045_v2, %v19309_v28  ;;  %v9303_v9 = vpop.f32.mrb[59].mxu0 }
 0x9db   :  { %v12721_v40 = vpop.eup %12720  ;;  %9674 = vst.msk [vmem:[%s19646_s15 + $0x68] sm:$0xff] %vm9660_vm2, %v12719_v32  ;;  %v12419_v52 = vadd.f32 %v19309_v28, %v9303_v9 }
 0x9dc   :  { %9673 = vst.msk [vmem:[%s19646_s15 + $0x60] sm:$0xff] %vm9660_vm2, %v12721_v40  ;;  %12730 = vtanh.f32 %v12418_v3 }
 0x9dd   :  { %12732 = vtanh.f32 %v12419_v52  ;;  %v12048_v39 = vpop.f32.mrb[60].mxu0 }
 0x9de   :  { %v12723_v12 = vpop.eup %12722  ;;  %v12420_v17 = vadd.f32 %v12048_v39, %v19309_v28  ;;  %v9313_v23 = vpop.f32.mrb[61].mxu0 }
 0x9df   :  { %v12725_v38 = vpop.eup %12724  ;;  %9676 = vst.msk [vmem:[%s19646_s15 + $0x78] sm:$0xff] %vm9660_vm2, %v12723_v12  ;;  %v12421_v35 = vadd.f32 %v19309_v28, %v9313_v23 }
 0x9e0   :  { %9675 = vst.msk [vmem:[%s19646_s15 + $0x70] sm:$0xff] %vm9660_vm2, %v12725_v38  ;;  %12734 = vtanh.f32 %v12420_v17 }
 0x9e1   :  { %12736 = vtanh.f32 %v12421_v35  ;;  %v12051_v20 = vpop.f32.mrb[62].mxu0 }
 0x9e2   :  { %v12727_v4 = vpop.eup %12726  ;;  %v12422_v49 = vadd.f32 %v12051_v20, %v19309_v28  ;;  %v9323_v15 = vpop.f32.mrb[63].mxu0 }
 0x9e3   :  { %v12729_v60 = vpop.eup %12728  ;;  %9678 = vst.msk [vmem:[%s19646_s15 + $0x88] sm:$0xff] %vm9660_vm2, %v12727_v4  ;;  %v12423_v8 = vadd.f32 %v19309_v28, %v9323_v15 }
 0x9e4   :  { %9677 = vst.msk [vmem:[%s19646_s15 + $0x80] sm:$0xff] %vm9660_vm2, %v12729_v60  ;;  %12738 = vtanh.f32 %v12422_v49 }
 0x9e5   :  { %12740 = vtanh.f32 %v12423_v8  ;;  %v12054_v47 = vpop.f32.mrb[64].mxu0 }
 0x9e6   :  { %v12731_v26 = vpop.eup %12730  ;;  %v12424_v29 = vadd.f32 %v12054_v47, %v19309_v28  ;;  %v9333_v53 = vpop.f32.mrb[65].mxu0 }
 0x9e7   :  { %v12733_v10 = vpop.eup %12732  ;;  %9680 = vst.msk [vmem:[%s19646_s15 + $0x98] sm:$0xff] %vm9660_vm2, %v12731_v26  ;;  %v12425_v59 = vadd.f32 %v19309_v28, %v9333_v53 }
 0x9e8   :  { %9679 = vst.msk [vmem:[%s19646_s15 + $0x90] sm:$0xff] %vm9660_vm2, %v12733_v10  ;;  %12742 = vtanh.f32 %v12424_v29 }
 0x9e9   :  { %12744 = vtanh.f32 %v12425_v59  ;;  %v12057_v19 = vpop.f32.mrb[66].mxu0 }
 0x9ea   :  { %v12735_v30 = vpop.eup %12734  ;;  %v12426_v45 = vadd.f32 %v12057_v19, %v19309_v28  ;;  %v9343_v61 = vpop.f32.mrb[67].mxu0 }
 0x9eb   :  { %v12737_v62 = vpop.eup %12736  ;;  %9682 = vst.msk [vmem:[%s19646_s15 + $0xa8] sm:$0xff] %vm9660_vm2, %v12735_v30  ;;  %v12427_v48 = vadd.f32 %v19309_v28, %v9343_v61 }
 0x9ec   :  { %9681 = vst.msk [vmem:[%s19646_s15 + $0xa0] sm:$0xff] %vm9660_vm2, %v12737_v62  ;;  %12746 = vtanh.f32 %v12426_v45 }
 0x9ed   :  { %12748 = vtanh.f32 %v12427_v48  ;;  %v12060_v31 = vpop.f32.mrb[68].mxu0 }
 0x9ee   :  { %v12739_v0 = vpop.eup %12738  ;;  %v12428_v56 = vadd.f32 %v12060_v31, %v19309_v28  ;;  %v9353_v6 = vpop.f32.mrb[69].mxu0 }
 0x9ef   :  { %v12741_v24 = vpop.eup %12740  ;;  %9684 = vst.msk [vmem:[%s19646_s15 + $0xb8] sm:$0xff] %vm9660_vm2, %v12739_v0  ;;  %v12429_v7 = vadd.f32 %v19309_v28, %v9353_v6 }
 0x9f0   :  { %9683 = vst.msk [vmem:[%s19646_s15 + $0xb0] sm:$0xff] %vm9660_vm2, %v12741_v24  ;;  %12750 = vtanh.f32 %v12428_v56 }
 0x9f1   :  { %12752 = vtanh.f32 %v12429_v7  ;;  %v12063_v58 = vpop.f32.mrb[70].mxu0 }
 0x9f2   :  { %v12743_v41 = vpop.eup %12742  ;;  %v12430_v11 = vadd.f32 %v12063_v58, %v19309_v28  ;;  %v9363_v44 = vpop.f32.mrb[71].mxu0 }
 0x9f3   :  { %v12745_v54 = vpop.eup %12744  ;;  %9686 = vst.msk [vmem:[%s19646_s15 + $0xc8] sm:$0xff] %vm9660_vm2, %v12743_v41  ;;  %v12431_v37 = vadd.f32 %v19309_v28, %v9363_v44 }
 0x9f4   :  { %9685 = vst.msk [vmem:[%s19646_s15 + $0xc0] sm:$0xff] %vm9660_vm2, %v12745_v54  ;;  %12754 = vtanh.f32 %v12430_v11 }
 0x9f5   :  { %12756 = vtanh.f32 %v12431_v37  ;;  %v12066_v5 = vpop.f32.mrb[72].mxu0 }
 0x9f6   :  { %v12747_v42 = vpop.eup %12746  ;;  %v12432_v50 = vadd.f32 %v12066_v5, %v19309_v28  ;;  %v9373_v14 = vpop.f32.mrb[73].mxu0 }
 0x9f7   :  { %v12749_v51 = vpop.eup %12748  ;;  %9688 = vst.msk [vmem:[%s19646_s15 + $0xd8] sm:$0xff] %vm9660_vm2, %v12747_v42  ;;  %v12433_v43 = vadd.f32 %v19309_v28, %v9373_v14 }
 0x9f8   :  { %9687 = vst.msk [vmem:[%s19646_s15 + $0xd0] sm:$0xff] %vm9660_vm2, %v12749_v51  ;;  %12758 = vtanh.f32 %v12432_v50 }
 0x9f9   :  { %12760 = vtanh.f32 %v12433_v43  ;;  %v12069_v46 = vpop.f32.mrb[74].mxu0 }
 0x9fa   :  { %v12751_v1 = vpop.eup %12750  ;;  %v12434_v21 = vadd.f32 %v12069_v46, %v19309_v28  ;;  %v9383_v34 = vpop.f32.mrb[75].mxu0 }
 0x9fb   :  { %v12753_v55 = vpop.eup %12752  ;;  %9690 = vst.msk [vmem:[%s19646_s15 + $0xe8] sm:$0xff] %vm9660_vm2, %v12751_v1  ;;  %v12435_v33 = vadd.f32 %v19309_v28, %v9383_v34 }
 0x9fc   :  { %9689 = vst.msk [vmem:[%s19646_s15 + $0xe0] sm:$0xff] %vm9660_vm2, %v12753_v55  ;;  %12762 = vtanh.f32 %v12434_v21 }
 0x9fd   :  { %12764 = vtanh.f32 %v12435_v33  ;;  %v12072_v27 = vpop.f32.mrb[76].mxu0 }
 0x9fe   :  { %v12755_v22 = vpop.eup %12754  ;;  %v12436_v63 = vadd.f32 %v12072_v27, %v19309_v28  ;;  %v9393_v16 = vpop.f32.mrb[77].mxu0 }
 0x9ff   :  { %v12757_v13 = vpop.eup %12756  ;;  %9692 = vst.msk [vmem:[%s19646_s15 + $0xf8] sm:$0xff] %vm9660_vm2, %v12755_v22  ;;  %v12437_v36 = vadd.f32 %v19309_v28, %v9393_v16 }
 0xa00   :  { %9691 = vst.msk [vmem:[%s19646_s15 + $0xf0] sm:$0xff] %vm9660_vm2, %v12757_v13  ;;  %12766 = vtanh.f32 %v12436_v63 }
 0xa01   :  { %12768 = vtanh.f32 %v12437_v36  ;;  %v12075_v18 = vpop.f32.mrb[78].mxu0 }
 0xa02   :  { %v12759_v25 = vpop.eup %12758  ;;  %v12438_v57 = vadd.f32 %v12075_v18, %v19309_v28  ;;  %v9403_v2 = vpop.f32.mrb[79].mxu0 }
 0xa03   :  { %v12761_v32 = vpop.eup %12760  ;;  %9694 = vst.msk [vmem:[%s19646_s15 + $0x108] sm:$0xff] %vm9660_vm2, %v12759_v25  ;;  %v12439_v3 = vadd.f32 %v19309_v28, %v9403_v2 }
 0xa04   :  { %9693 = vst.msk [vmem:[%s19646_s15 + $0x100] sm:$0xff] %vm9660_vm2, %v12761_v32  ;;  %12770 = vtanh.f32 %v12438_v57 }
 0xa05   :  { %12772 = vtanh.f32 %v12439_v3  ;;  %v12078_v9 = vpop.f32.mrb[80].mxu0 }
 0xa06   :  { %v12763_v40 = vpop.eup %12762  ;;  %v12440_v52 = vadd.f32 %v12078_v9, %v19309_v28  ;;  %v9413_v39 = vpop.f32.mrb[81].mxu0 }
 0xa07   :  { %v12765_v12 = vpop.eup %12764  ;;  %9696 = vst.msk [vmem:[%s19646_s15 + $0x118] sm:$0xff] %vm9660_vm2, %v12763_v40  ;;  %v12441_v17 = vadd.f32 %v19309_v28, %v9413_v39 }
 0xa08   :  { %9695 = vst.msk [vmem:[%s19646_s15 + $0x110] sm:$0xff] %vm9660_vm2, %v12765_v12  ;;  %12774 = vtanh.f32 %v12440_v52 }
 0xa09   :  { %12776 = vtanh.f32 %v12441_v17  ;;  %v12081_v23 = vpop.f32.mrb[82].mxu0 }
 0xa0a   :  { %v12767_v38 = vpop.eup %12766  ;;  %v12442_v35 = vadd.f32 %v12081_v23, %v19309_v28  ;;  %v9423_v20 = vpop.f32.mrb[83].mxu0 }
 0xa0b   :  { %v12769_v4 = vpop.eup %12768  ;;  %9698 = vst.msk [vmem:[%s19646_s15 + $0x128] sm:$0xff] %vm9660_vm2, %v12767_v38  ;;  %v12443_v49 = vadd.f32 %v19309_v28, %v9423_v20 }
 0xa0c   :  { %9697 = vst.msk [vmem:[%s19646_s15 + $0x120] sm:$0xff] %vm9660_vm2, %v12769_v4  ;;  %12778 = vtanh.f32 %v12442_v35 }
 0xa0d   :  { %12780 = vtanh.f32 %v12443_v49  ;;  %v12084_v15 = vpop.f32.mrb[84].mxu0 }
 0xa0e   :  { %v12771_v60 = vpop.eup %12770  ;;  %v12444_v8 = vadd.f32 %v12084_v15, %v19309_v28  ;;  %v9433_v47 = vpop.f32.mrb[85].mxu0 }
 0xa0f   :  { %v12773_v26 = vpop.eup %12772  ;;  %9700 = vst.msk [vmem:[%s19646_s15 + $0x138] sm:$0xff] %vm9660_vm2, %v12771_v60  ;;  %v12445_v29 = vadd.f32 %v19309_v28, %v9433_v47 }
 0xa10   :  { %9699 = vst.msk [vmem:[%s19646_s15 + $0x130] sm:$0xff] %vm9660_vm2, %v12773_v26  ;;  %12782 = vtanh.f32 %v12444_v8 }
 0xa11   :  { %12784 = vtanh.f32 %v12445_v29  ;;  %v12087_v53 = vpop.f32.mrb[86].mxu0 }
 0xa12   :  { %v12775_v10 = vpop.eup %12774  ;;  %v12446_v59 = vadd.f32 %v12087_v53, %v19309_v28  ;;  %v9443_v19 = vpop.f32.mrb[87].mxu0 }
 0xa13   :  { %v12777_v30 = vpop.eup %12776  ;;  %9702 = vst.msk [vmem:[%s19646_s15 + $0x148] sm:$0xff] %vm9660_vm2, %v12775_v10  ;;  %v12447_v45 = vadd.f32 %v19309_v28, %v9443_v19 }
 0xa14   :  { %9701 = vst.msk [vmem:[%s19646_s15 + $0x140] sm:$0xff] %vm9660_vm2, %v12777_v30  ;;  %12786 = vtanh.f32 %v12446_v59 }
 0xa15   :  { %12788 = vtanh.f32 %v12447_v45  ;;  %v12090_v61 = vpop.f32.mrb[88].mxu0 }
 0xa16   :  { %v12779_v62 = vpop.eup %12778  ;;  %v12448_v48 = vadd.f32 %v12090_v61, %v19309_v28  ;;  %v9453_v31 = vpop.f32.mrb[89].mxu0 }
 0xa17   :  { %v12781_v0 = vpop.eup %12780  ;;  %9704 = vst.msk [vmem:[%s19646_s15 + $0x158] sm:$0xff] %vm9660_vm2, %v12779_v62  ;;  %v12449_v56 = vadd.f32 %v19309_v28, %v9453_v31 }
 0xa18   :  { %9703 = vst.msk [vmem:[%s19646_s15 + $0x150] sm:$0xff] %vm9660_vm2, %v12781_v0  ;;  %12790 = vtanh.f32 %v12448_v48 }
 0xa19   :  { %12792 = vtanh.f32 %v12449_v56  ;;  %v12093_v6 = vpop.f32.mrb[90].mxu0 }
 0xa1a   :  { %v12783_v24 = vpop.eup %12782  ;;  %v12450_v7 = vadd.f32 %v12093_v6, %v19309_v28  ;;  %v9463_v58 = vpop.f32.mrb[91].mxu0 }
 0xa1b   :  { %v12785_v41 = vpop.eup %12784  ;;  %9706 = vst.msk [vmem:[%s19646_s15 + $0x168] sm:$0xff] %vm9660_vm2, %v12783_v24  ;;  %v12451_v11 = vadd.f32 %v19309_v28, %v9463_v58 }
 0xa1c   :  { %9705 = vst.msk [vmem:[%s19646_s15 + $0x160] sm:$0xff] %vm9660_vm2, %v12785_v41  ;;  %12794 = vtanh.f32 %v12450_v7 }
 0xa1d   :  { %12796 = vtanh.f32 %v12451_v11  ;;  %v12096_v44 = vpop.f32.mrb[92].mxu0 }
 0xa1e   :  { %v12787_v54 = vpop.eup %12786  ;;  %v12452_v37 = vadd.f32 %v12096_v44, %v19309_v28  ;;  %v9473_v5 = vpop.f32.mrb[93].mxu0 }
 0xa1f   :  { %v12789_v42 = vpop.eup %12788  ;;  %9708 = vst.msk [vmem:[%s19646_s15 + $0x178] sm:$0xff] %vm9660_vm2, %v12787_v54  ;;  %v12453_v50 = vadd.f32 %v19309_v28, %v9473_v5 }
 0xa20   :  { %9707 = vst.msk [vmem:[%s19646_s15 + $0x170] sm:$0xff] %vm9660_vm2, %v12789_v42  ;;  %12798 = vtanh.f32 %v12452_v37 }
 0xa21   :  { %12800 = vtanh.f32 %v12453_v50  ;;  %v12099_v14 = vpop.f32.mrb[94].mxu0 }
 0xa22   :  { %v12791_v51 = vpop.eup %12790  ;;  %v12454_v43 = vadd.f32 %v12099_v14, %v19309_v28  ;;  %v9483_v46 = vpop.f32.mrb[95].mxu0 }
 0xa23   :  { %v12793_v1 = vpop.eup %12792  ;;  %9710 = vst.msk [vmem:[%s19646_s15 + $0x188] sm:$0xff] %vm9660_vm2, %v12791_v51  ;;  %v12455_v21 = vadd.f32 %v19309_v28, %v9483_v46 }
 0xa24   :  { %9709 = vst.msk [vmem:[%s19646_s15 + $0x180] sm:$0xff] %vm9660_vm2, %v12793_v1  ;;  %12802 = vtanh.f32 %v12454_v43 }
 0xa25   :  { %12804 = vtanh.f32 %v12455_v21  ;;  %v12102_v34 = vpop.f32.mrb[96].mxu0 }
 0xa26   :  { %v12795_v55 = vpop.eup %12794  ;;  %v12456_v33 = vadd.f32 %v12102_v34, %v19309_v28  ;;  %v9493_v27 = vpop.f32.mrb[97].mxu0 }
 0xa27   :  { %v12797_v22 = vpop.eup %12796  ;;  %9712 = vst.msk [vmem:[%s19646_s15 + $0x198] sm:$0xff] %vm9660_vm2, %v12795_v55  ;;  %v12457_v63 = vadd.f32 %v19309_v28, %v9493_v27 }
 0xa28   :  { %9711 = vst.msk [vmem:[%s19646_s15 + $0x190] sm:$0xff] %vm9660_vm2, %v12797_v22  ;;  %12806 = vtanh.f32 %v12456_v33 }
 0xa29   :  { %12808 = vtanh.f32 %v12457_v63  ;;  %v12105_v16 = vpop.f32.mrb[98].mxu0 }
 0xa2a   :  { %v12799_v13 = vpop.eup %12798  ;;  %v12458_v36 = vadd.f32 %v12105_v16, %v19309_v28  ;;  %v9503_v18 = vpop.f32.mrb[99].mxu0 }
 0xa2b   :  { %v12801_v25 = vpop.eup %12800  ;;  %9714 = vst.msk [vmem:[%s19646_s15 + $0x1a8] sm:$0xff] %vm9660_vm2, %v12799_v13  ;;  %v12459_v57 = vadd.f32 %v19309_v28, %v9503_v18 }
 0xa2c   :  { %9713 = vst.msk [vmem:[%s19646_s15 + $0x1a0] sm:$0xff] %vm9660_vm2, %v12801_v25  ;;  %12810 = vtanh.f32 %v12458_v36 }
 0xa2d   :  { %12812 = vtanh.f32 %v12459_v57  ;;  %v12108_v2 = vpop.f32.mrb[100].mxu0 }
 0xa2e   :  { %v12803_v32 = vpop.eup %12802  ;;  %v12460_v3 = vadd.f32 %v12108_v2, %v19309_v28  ;;  %v9513_v9 = vpop.f32.mrb[101].mxu0 }
 0xa2f   :  { %v12805_v40 = vpop.eup %12804  ;;  %9716 = vst.msk [vmem:[%s19646_s15 + $0x1b8] sm:$0xff] %vm9660_vm2, %v12803_v32  ;;  %v12461_v52 = vadd.f32 %v19309_v28, %v9513_v9 }
 0xa30   :  { %9715 = vst.msk [vmem:[%s19646_s15 + $0x1b0] sm:$0xff] %vm9660_vm2, %v12805_v40  ;;  %12814 = vtanh.f32 %v12460_v3 }
 0xa31   :  { %12816 = vtanh.f32 %v12461_v52  ;;  %v12111_v39 = vpop.f32.mrb[102].mxu0 }
 0xa32   :  { %v12807_v12 = vpop.eup %12806  ;;  %v12462_v17 = vadd.f32 %v12111_v39, %v19309_v28  ;;  %v9523_v23 = vpop.f32.mrb[103].mxu0 }
 0xa33   :  { %v12809_v38 = vpop.eup %12808  ;;  %9718 = vst.msk [vmem:[%s19646_s15 + $0x1c8] sm:$0xff] %vm9660_vm2, %v12807_v12  ;;  %v12463_v35 = vadd.f32 %v19309_v28, %v9523_v23 }
 0xa34   :  { %9717 = vst.msk [vmem:[%s19646_s15 + $0x1c0] sm:$0xff] %vm9660_vm2, %v12809_v38  ;;  %12818 = vtanh.f32 %v12462_v17 }
 0xa35   :  { %12820 = vtanh.f32 %v12463_v35 }
 0xa36   :  { %v12811_v20 = vpop.eup %12810 }
 0xa37   :  { %v12813_v4 = vpop.eup %12812  ;;  %9720 = vst.msk [vmem:[%s19646_s15 + $0x1d8] sm:$0xff] %vm9660_vm2, %v12811_v20 }
 0xa38   :  { %9719 = vst.msk [vmem:[%s19646_s15 + $0x1d0] sm:$0xff] %vm9660_vm2, %v12813_v4 }
 0xa3a   :  { %v12815_v28 = vpop.eup %12814 }
 0xa3b   :  { %v12817_v49 = vpop.eup %12816  ;;  %9722 = vst.msk [vmem:[%s19646_s15 + $0x1e8] sm:$0xff] %vm9660_vm2, %v12815_v28 }
 0xa3c   :  { %9721 = vst.msk [vmem:[%s19646_s15 + $0x1e0] sm:$0xff] %vm9660_vm2, %v12817_v49 }
 0xa3e   :  { %v12819_v15 = vpop.eup %12818 }
 0xa3f   :  { %v12821_v60 = vpop.eup %12820  ;;  %9724 = vst.msk [vmem:[%s19646_s15 + $0x1f8] sm:$0xff] %vm9660_vm2, %v12819_v15 }
 0xa40   :  { %9723 = vst.msk [vmem:[%s19646_s15 + $0x1f0] sm:$0xff] %vm9660_vm2, %v12821_v60 }

</bundles_post_ra>
